<compile_context>
chip_gen: v7x
topology: tpu7x:2x2x1
jax: 0.10.0
libtpu: 0.0.40
codegen_flags: <defaults>
</compile_context>

<pallas_src>
import functools

import numpy as np
import jax
import jax.numpy as jnp
from jax.experimental import pallas as pl
from jax.experimental.pallas import tpu as pltpu


# ---------------------------------------------------------------------------
# Fused kernel
# ---------------------------------------------------------------------------
# Activation layout: 2-D matrices whose rows are (image, output_row) and whose
# columns are the fused (channel, output_col) axis.  Convolutions are banded
# weight matmuls (one per kernel-row offset di); pooling is a row-pair max via
# reshape plus two column-selector matmuls.

def _lenet5_kernel(x_ref,
                   c1w_ref, c1b_ref, p1e_ref, p1o_ref,
                   c2w_ref, c2b_ref, p2e_ref, p2o_ref,
                   f1w_ref, f1b_ref, f2w_ref, f2b_ref, f3w_ref, f3b_ref,
                   out_ref, *, tb):
    f32 = jnp.float32
    cdt = c1w_ref.dtype                              # compute (matmul) dtype

    def sigmoid(v):                                  # v is f32
        return pl.reciprocal(1.0 + jnp.exp(-v), approx=True)

    # ---- conv1 (1 -> 6, 5x5, padding=2) + sigmoid --------------------------
    x = x_ref[...]                                   # (tb, 28, 28)
    zpad = jnp.zeros((tb, 2, 28), x.dtype)
    xp = jnp.concatenate([zpad, x, zpad], axis=1).astype(cdt)   # (tb, 32, 28)

    acc = c1b_ref[...]                               # (1, 168) f32
    for di in range(5):
        lhs = xp[:, di:di + 28, :].reshape(tb * 28, 28)
        acc = acc + jnp.dot(lhs, c1w_ref[di], preferred_element_type=f32)
    z1 = sigmoid(acc).astype(cdt)                    # (tb*28, 6*28=168)

    # ---- pool1 (2x2, stride 2) ---------------------------------------------
    z1r = z1.reshape(tb * 14, 2, 168)                # adjacent row pairs
    rmax = jnp.maximum(z1r[:, 0, :], z1r[:, 1, :])   # (tb*14, 168)
    p1 = jnp.maximum(
        jnp.dot(rmax, p1e_ref[...], preferred_element_type=f32),
        jnp.dot(rmax, p1o_ref[...], preferred_element_type=f32)).astype(cdt)
    p1 = p1.reshape(tb, 14, 84)                      # (img, row, (ci, col))

    # ---- conv2 (6 -> 16, 5x5, valid) + sigmoid ------------------------------
    acc = c2b_ref[...]                               # (1, 160) f32
    for di in range(5):
        lhs = p1[:, di:di + 10, :].reshape(tb * 10, 84)
        acc = acc + jnp.dot(lhs, c2w_ref[di], preferred_element_type=f32)
    z2 = sigmoid(acc).astype(cdt)                    # (tb*10, 16*10=160)

    # ---- pool2 (2x2, stride 2) ---------------------------------------------
    z2r = z2.reshape(tb * 5, 2, 160)
    rmax2 = jnp.maximum(z2r[:, 0, :], z2r[:, 1, :])  # (tb*5, 160)
    p2 = jnp.maximum(
        jnp.dot(rmax2, p2e_ref[...], preferred_element_type=f32),
        jnp.dot(rmax2, p2o_ref[...], preferred_element_type=f32)).astype(cdt)
    p2 = p2.reshape(tb, 5, 80)                       # (img, pooled row, (co, col))

    # ---- fc1 + sigmoid (5 banded chunks, f32 accumulation) ------------------
    h = f1b_ref[...]                                 # (1, 120) f32
    for ii in range(5):
        h = h + jnp.dot(p2[:, ii, :], f1w_ref[ii], preferred_element_type=f32)
    h1 = sigmoid(h).astype(cdt)                      # (tb, 120)

    # ---- fc2 + sigmoid, fc3 (logits, 128-lane padded) -----------------------
    h2 = sigmoid(jnp.dot(h1, f2w_ref[...], preferred_element_type=f32)
                 + f2b_ref[...]).astype(cdt)         # (tb, 84)
    out = jnp.dot(h2, f3w_ref[...], preferred_element_type=f32) + f3b_ref[...]
    out_ref[...] = out.astype(out_ref.dtype)         # (tb, 128), lane-dense


# ---------------------------------------------------------------------------
# Parameter handling
# ---------------------------------------------------------------------------

_WEIGHT_KEYS = ("conv1_band", "conv1_bias", "pool1_even", "pool1_odd",
                "conv2_band", "conv2_bias", "pool2_even", "pool2_odd",
                "fc1_w", "fc1_b", "fc2_w", "fc2_b", "fc3_w", "fc3_b")


def init_lenet5_params(key):
    """Parameters in PyTorch layout (Conv2d OIHW, Linear (out, in))."""
    ks = jax.random.split(key, 10)
    s = 0.1
    return {
        "conv1_w": s * jax.random.normal(ks[0], (6, 1, 5, 5), jnp.float32),
        "conv1_b": s * jax.random.normal(ks[1], (6,), jnp.float32),
        "conv2_w": s * jax.random.normal(ks[2], (16, 6, 5, 5), jnp.float32),
        "conv2_b": s * jax.random.normal(ks[3], (16,), jnp.float32),
        "fc1_w": s * jax.random.normal(ks[4], (120, 400), jnp.float32),
        "fc1_b": s * jax.random.normal(ks[5], (120,), jnp.float32),
        "fc2_w": s * jax.random.normal(ks[6], (84, 120), jnp.float32),
        "fc2_b": s * jax.random.normal(ks[7], (84,), jnp.float32),
        "fc3_w": s * jax.random.normal(ks[8], (10, 84), jnp.float32),
        "fc3_b": s * jax.random.normal(ks[9], (10,), jnp.float32),
    }


def prepare_params(params, compute_dtype=jnp.bfloat16):
    """One-time repack of PyTorch-layout weights into the fused-kernel layout.

    Matmul operands are stored in `compute_dtype` (bf16 by default); biases
    stay f32 (they are added to f32 accumulators).
    """
    w1 = np.asarray(params["conv1_w"], np.float32)
    b1 = np.asarray(params["conv1_b"], np.float32)
    w2 = np.asarray(params["conv2_w"], np.float32)
    b2 = np.asarray(params["conv2_b"], np.float32)
    fc1w = np.asarray(params["fc1_w"], np.float32)
    fc1b = np.asarray(params["fc1_b"], np.float32)
    fc2w = np.asarray(params["fc2_w"], np.float32)
    fc2b = np.asarray(params["fc2_b"], np.float32)
    fc3w = np.asarray(params["fc3_w"], np.float32)
    fc3b = np.asarray(params["fc3_b"], np.float32)

    # conv1 banded matrices on the UNPADDED 28-wide input; the 2-pixel column
    # zero-padding is baked in by omitting out-of-range input columns.
    conv1_band = np.zeros((5, 28, 6 * 28), np.float32)
    for di in range(5):
        for c in range(6):
            for j in range(28):
                for dj in range(5):
                    u = j + dj - 2
                    if 0 <= u < 28:
                        conv1_band[di, u, c * 28 + j] = w1[c, 0, di, dj]
    conv1_bias = np.repeat(b1, 28)[None, :]                      # (1, 168)

    # pool1 even/odd column selectors: fused col (c, j) -> (c, jj)
    pool1_even = np.zeros((6 * 28, 6 * 14), np.float32)
    pool1_odd = np.zeros((6 * 28, 6 * 14), np.float32)
    for c in range(6):
        for jj in range(14):
            pool1_even[c * 28 + 2 * jj, c * 14 + jj] = 1.0
            pool1_odd[c * 28 + 2 * jj + 1, c * 14 + jj] = 1.0

    # conv2 banded matrices acting on the fused (ci, col) axis (valid conv)
    conv2_band = np.zeros((5, 6 * 14, 16 * 10), np.float32)
    for di in range(5):
        for co in range(16):
            for ci in range(6):
                for j in range(10):
                    conv2_band[di, ci * 14 + j:ci * 14 + j + 5, co * 10 + j] = \
                        w2[co, ci, di, :]
    conv2_bias = np.repeat(b2, 10)[None, :]                      # (1, 160)

    pool2_even = np.zeros((16 * 10, 16 * 5), np.float32)
    pool2_odd = np.zeros((16 * 10, 16 * 5), np.float32)
    for co in range(16):
        for jj in range(5):
            pool2_even[co * 10 + 2 * jj, co * 5 + jj] = 1.0
            pool2_odd[co * 10 + 2 * jj + 1, co * 5 + jj] = 1.0

    # fc1: PyTorch flatten order is f = co*25 + ii*5 + jj.  The kernel consumes
    # one (80 = co*5 + jj, 120) chunk per pooled row ii.
    fc1_chunks = np.ascontiguousarray(
        np.transpose(fc1w.reshape(120, 16, 5, 5), (2, 1, 3, 0)).reshape(5, 80, 120))

    # fc3 padded to 128 output lanes so the final store is lane-dense.
    fc3w_pad = np.zeros((84, 128), np.float32)
    fc3w_pad[:, :10] = fc3w.T
    fc3b_pad = np.zeros((1, 128), np.float32)
    fc3b_pad[0, :10] = fc3b

    def mm(a):                        # matmul operand
        return jnp.asarray(a, compute_dtype)

    def bias(a):                      # added to f32 accumulators
        return jnp.asarray(a, jnp.float32)

    return {
        "conv1_band": mm(conv1_band), "conv1_bias": bias(conv1_bias),
        "pool1_even": mm(pool1_even), "pool1_odd": mm(pool1_odd),
        "conv2_band": mm(conv2_band), "conv2_bias": bias(conv2_bias),
        "pool2_even": mm(pool2_even), "pool2_odd": mm(pool2_odd),
        "fc1_w": mm(fc1_chunks), "fc1_b": bias(fc1b[None, :]),
        "fc2_w": mm(np.ascontiguousarray(fc2w.T)), "fc2_b": bias(fc2b[None, :]),
        "fc3_w": mm(fc3w_pad), "fc3_b": bias(fc3b_pad),
    }


# ---------------------------------------------------------------------------
# Forward wrapper (one pallas_call per forward)
# ---------------------------------------------------------------------------

def _round_up(x, m):
    return ((x + m - 1) // m) * m


def _choose_tb(n):
    """Images per grid step: multiple of 8, >=2 steps when n > 8 (v7x mega-
    core), capped at 128 so VMEM stays comfortable on v5e/v6e/v7x."""
    if n <= 8:
        return 8
    return min(128, _round_up((n + 1) // 2, 8))


def _const_spec(a):
    nd = a.ndim
    return pl.BlockSpec(tuple(a.shape), lambda i, _nd=nd: (0,) * _nd)


@jax.jit
def lenet5_forward(prepared, x):
    """x: (N, 1, 28, 28) float32 -> logits (N, 10)."""
    n = x.shape[0]
    tb = _choose_tb(n)
    n_pad = _round_up(n, tb)

    xs = x.reshape(n, 28, 28)                       # no spatial pad: in-kernel
    if n_pad != n:
        xs = jnp.pad(xs, ((0, n_pad - n), (0, 0), (0, 0)))

    weights = [prepared[k] for k in _WEIGHT_KEYS]
    in_specs = [pl.BlockSpec((tb, 28, 28), lambda i: (i, 0, 0))]
    in_specs += [_const_spec(w) for w in weights]

    flops_per_img = (5 * 2 * 28 * 28 * 168          # conv1 bands
                     + 2 * 2 * 14 * 168 * 84        # pool1 selectors
                     + 5 * 2 * 10 * 84 * 160        # conv2 bands
                     + 2 * 2 * 5 * 160 * 80         # pool2 selectors
                     + 5 * 2 * 80 * 120             # fc1 chunks
                     + 2 * 120 * 84 + 2 * 84 * 128)
    trans_per_img = 28 * 168 + 10 * 160 + 120 + 84
    bytes_accessed = (n_pad * (28 * 28 * 4 + 128 * 4)
                      + sum(int(w.size) * w.dtype.itemsize for w in weights))

    out = pl.pallas_call(
        functools.partial(_lenet5_kernel, tb=tb),
        grid=(n_pad // tb,),
        in_specs=in_specs,
        out_specs=pl.BlockSpec((tb, 128), lambda i: (i, 0)),
        out_shape=jax.ShapeDtypeStruct((n_pad, 128), jnp.float32),
        compiler_params=pltpu.CompilerParams(
            dimension_semantics=("parallel",),
            vmem_limit_bytes=32 * 1024 * 1024),
        cost_estimate=pl.CostEstimate(flops=n_pad * flops_per_img,
                                      transcendentals=n_pad * trans_per_img,
                                      bytes_accessed=bytes_accessed),
    )(xs, *weights)
    return out[:n, :10]


# ---------------------------------------------------------------------------
# Pure-XLA reference (same semantics as the PyTorch module) + demo
# ---------------------------------------------------------------------------

def lenet5_reference(params, x):
    hi = jax.lax.Precision.HIGHEST
    y = jax.lax.conv_general_dilated(
        x, params["conv1_w"], window_strides=(1, 1), padding=((2, 2), (2, 2)),
        dimension_numbers=("NCHW", "OIHW", "NCHW"), precision=hi)
    y = jax.nn.sigmoid(y + params["conv1_b"][None, :, None, None])
    y = jax.lax.reduce_window(y, -jnp.inf, jax.lax.max,
                              (1, 1, 2, 2), (1, 1, 2, 2), "VALID")
    y = jax.lax.conv_general_dilated(
        y, params["conv2_w"], window_strides=(1, 1), padding="VALID",
        dimension_numbers=("NCHW", "OIHW", "NCHW"), precision=hi)
    y = jax.nn.sigmoid(y + params["conv2_b"][None, :, None, None])
    y = jax.lax.reduce_window(y, -jnp.inf, jax.lax.max,
                              (1, 1, 2, 2), (1, 1, 2, 2), "VALID")
    y = y.reshape(y.shape[0], -1)
    y = jax.nn.sigmoid(y @ params["fc1_w"].T + params["fc1_b"])
    y = jax.nn.sigmoid(y @ params["fc2_w"].T + params["fc2_b"])
    return y @ params["fc3_w"].T + params["fc3_b"]


if __name__ == "__main__":
    key = jax.random.PRNGKey(0)
    pkey, xkey = jax.random.split(key)
    params = init_lenet5_params(pkey)
    prepared = prepare_params(params)

    # LeNet5 requires 28x28 single-channel inputs (fc1 expects 16*5*5 = 400).
    x = jax.random.normal(xkey, (2, 1, 28, 28), jnp.float32)

    out = jax.block_until_ready(lenet5_forward(prepared, x))
    assert out.shape == (2, 10), out.shape

    ref = jax.block_until_ready(lenet5_reference(params, x))
    max_err = float(jnp.max(jnp.abs(out - ref)))
    assert max_err < 5e-2, f"mismatch vs XLA reference: {max_err}"
    print("KERNEL_OK")
</pallas_src>

<mosaic_0001>
module attributes {stable_mosaic.version = 11 : i64} {
  func.func @_lenet5_kernel(%arg0: i32, %arg1: memref<8x28x28xf32, #tpu.memory_space<vmem>>, %arg2: memref<5x28x168xbf16, #tpu.memory_space<vmem>>, %arg3: memref<1x168xf32, #tpu.memory_space<vmem>>, %arg4: memref<168x84xbf16, #tpu.memory_space<vmem>>, %arg5: memref<168x84xbf16, #tpu.memory_space<vmem>>, %arg6: memref<5x84x160xbf16, #tpu.memory_space<vmem>>, %arg7: memref<1x160xf32, #tpu.memory_space<vmem>>, %arg8: memref<160x80xbf16, #tpu.memory_space<vmem>>, %arg9: memref<160x80xbf16, #tpu.memory_space<vmem>>, %arg10: memref<5x80x120xbf16, #tpu.memory_space<vmem>>, %arg11: memref<1x120xf32, #tpu.memory_space<vmem>>, %arg12: memref<120x84xbf16, #tpu.memory_space<vmem>>, %arg13: memref<1x84xf32, #tpu.memory_space<vmem>>, %arg14: memref<84x128xbf16, #tpu.memory_space<vmem>>, %arg15: memref<1x128xf32, #tpu.memory_space<vmem>>, %arg16: memref<8x128xf32, #tpu.memory_space<vmem>>) attributes {dimension_semantics = [#tpu.dimension_semantics<parallel>], iteration_bounds = array<i64: 1>, scalar_prefetch = 0 : i64, scratch_operands = 0 : i64, tpu.core_type = #tpu.core_type<tc>, window_params = [{transform_indices = @transform_0, window_bounds = array<i64: 8, 28, 28>}, {pipeline_mode = #tpu.pipeline_mode<synchronous>, transform_indices = @transform_1, window_bounds = array<i64: 5, 28, 168>}, {pipeline_mode = #tpu.pipeline_mode<synchronous>, transform_indices = @transform_2, window_bounds = array<i64: 1, 168>}, {pipeline_mode = #tpu.pipeline_mode<synchronous>, transform_indices = @transform_3, window_bounds = array<i64: 168, 84>}, {pipeline_mode = #tpu.pipeline_mode<synchronous>, transform_indices = @transform_4, window_bounds = array<i64: 168, 84>}, {pipeline_mode = #tpu.pipeline_mode<synchronous>, transform_indices = @transform_5, window_bounds = array<i64: 5, 84, 160>}, {pipeline_mode = #tpu.pipeline_mode<synchronous>, transform_indices = @transform_6, window_bounds = array<i64: 1, 160>}, {pipeline_mode = #tpu.pipeline_mode<synchronous>, transform_indices = @transform_7, window_bounds = array<i64: 160, 80>}, {pipeline_mode = #tpu.pipeline_mode<synchronous>, transform_indices = @transform_8, window_bounds = array<i64: 160, 80>}, {pipeline_mode = #tpu.pipeline_mode<synchronous>, transform_indices = @transform_9, window_bounds = array<i64: 5, 80, 120>}, {pipeline_mode = #tpu.pipeline_mode<synchronous>, transform_indices = @transform_10, window_bounds = array<i64: 1, 120>}, {pipeline_mode = #tpu.pipeline_mode<synchronous>, transform_indices = @transform_11, window_bounds = array<i64: 120, 84>}, {pipeline_mode = #tpu.pipeline_mode<synchronous>, transform_indices = @transform_12, window_bounds = array<i64: 1, 84>}, {pipeline_mode = #tpu.pipeline_mode<synchronous>, transform_indices = @transform_13, window_bounds = array<i64: 84, 128>}, {pipeline_mode = #tpu.pipeline_mode<synchronous>, transform_indices = @transform_14, window_bounds = array<i64: 1, 128>}, {transform_indices = @transform_15, window_bounds = array<i64: 8, 128>}]} {
    %c0 = arith.constant 0 : index
    %c0_0 = arith.constant 0 : index
    %c0_1 = arith.constant 0 : index
    %0 = vector.load %arg1[%c0, %c0_0, %c0_1] : memref<8x28x28xf32, #tpu.memory_space<vmem>>, vector<8x28x28xf32>
    %cst = arith.constant 0.000000e+00 : f32
    %1 = vector.broadcast %cst : f32 to vector<8x2x28xf32>
    %2 = tpu.concatenate %1, %0, %1 in 1 : vector<8x2x28xf32>, vector<8x28x28xf32>, vector<8x2x28xf32> -> vector<8x32x28xf32>
    %3 = arith.truncf %2 : vector<8x32x28xf32> to vector<8x32x28xbf16>
    %c0_2 = arith.constant 0 : index
    %c0_3 = arith.constant 0 : index
    %4 = vector.load %arg3[%c0_2, %c0_3] : memref<1x168xf32, #tpu.memory_space<vmem>>, vector<1x168xf32>
    %5 = vector.extract_strided_slice %3 {offsets = [0, 0, 0], sizes = [8, 28, 28], strides = [1, 1, 1]} : vector<8x32x28xbf16> to vector<8x28x28xbf16>
    %6 = vector.shape_cast %5 : vector<8x28x28xbf16> to vector<224x28xbf16>
    %c0_4 = arith.constant 0 : index
    %c0_5 = arith.constant 0 : index
    %c0_6 = arith.constant 0 : index
    %7 = vector.load %arg2[%c0_4, %c0_5, %c0_6] : memref<5x28x168xbf16, #tpu.memory_space<vmem>>, vector<1x28x168xbf16>
    %8 = vector.shape_cast %7 : vector<1x28x168xbf16> to vector<28x168xbf16>
    %cst_7 = arith.constant dense<0.000000e+00> : vector<224x168xf32>
    %9 = tpu.matmul %6, %8, %cst_7 {dimension_numbers = #tpu.dot_dimension_numbers<[1], [0], [0], [1], [0, 0, 1, 1], [], []>} : vector<224x28xbf16>, vector<28x168xbf16>, vector<224x168xf32> -> vector<224x168xf32>
    %10 = vector.broadcast %4 : vector<1x168xf32> to vector<224x168xf32>
    %11 = arith.addf %10, %9 : vector<224x168xf32>
    %12 = vector.extract_strided_slice %3 {offsets = [0, 1, 0], sizes = [8, 28, 28], strides = [1, 1, 1]} : vector<8x32x28xbf16> to vector<8x28x28xbf16>
    %13 = vector.shape_cast %12 : vector<8x28x28xbf16> to vector<224x28xbf16>
    %c1 = arith.constant 1 : index
    %c0_8 = arith.constant 0 : index
    %c0_9 = arith.constant 0 : index
    %14 = vector.load %arg2[%c1, %c0_8, %c0_9] : memref<5x28x168xbf16, #tpu.memory_space<vmem>>, vector<1x28x168xbf16>
    %15 = vector.shape_cast %14 : vector<1x28x168xbf16> to vector<28x168xbf16>
    %cst_10 = arith.constant dense<0.000000e+00> : vector<224x168xf32>
    %16 = tpu.matmul %13, %15, %cst_10 {dimension_numbers = #tpu.dot_dimension_numbers<[1], [0], [0], [1], [0, 0, 1, 1], [], []>} : vector<224x28xbf16>, vector<28x168xbf16>, vector<224x168xf32> -> vector<224x168xf32>
    %17 = arith.addf %11, %16 : vector<224x168xf32>
    %18 = vector.extract_strided_slice %3 {offsets = [0, 2, 0], sizes = [8, 28, 28], strides = [1, 1, 1]} : vector<8x32x28xbf16> to vector<8x28x28xbf16>
    %19 = vector.shape_cast %18 : vector<8x28x28xbf16> to vector<224x28xbf16>
    %c2 = arith.constant 2 : index
    %c0_11 = arith.constant 0 : index
    %c0_12 = arith.constant 0 : index
    %20 = vector.load %arg2[%c2, %c0_11, %c0_12] : memref<5x28x168xbf16, #tpu.memory_space<vmem>>, vector<1x28x168xbf16>
    %21 = vector.shape_cast %20 : vector<1x28x168xbf16> to vector<28x168xbf16>
    %cst_13 = arith.constant dense<0.000000e+00> : vector<224x168xf32>
    %22 = tpu.matmul %19, %21, %cst_13 {dimension_numbers = #tpu.dot_dimension_numbers<[1], [0], [0], [1], [0, 0, 1, 1], [], []>} : vector<224x28xbf16>, vector<28x168xbf16>, vector<224x168xf32> -> vector<224x168xf32>
    %23 = arith.addf %17, %22 : vector<224x168xf32>
    %24 = vector.extract_strided_slice %3 {offsets = [0, 3, 0], sizes = [8, 28, 28], strides = [1, 1, 1]} : vector<8x32x28xbf16> to vector<8x28x28xbf16>
    %25 = vector.shape_cast %24 : vector<8x28x28xbf16> to vector<224x28xbf16>
    %c3 = arith.constant 3 : index
    %c0_14 = arith.constant 0 : index
    %c0_15 = arith.constant 0 : index
    %26 = vector.load %arg2[%c3, %c0_14, %c0_15] : memref<5x28x168xbf16, #tpu.memory_space<vmem>>, vector<1x28x168xbf16>
    %27 = vector.shape_cast %26 : vector<1x28x168xbf16> to vector<28x168xbf16>
    %cst_16 = arith.constant dense<0.000000e+00> : vector<224x168xf32>
    %28 = tpu.matmul %25, %27, %cst_16 {dimension_numbers = #tpu.dot_dimension_numbers<[1], [0], [0], [1], [0, 0, 1, 1], [], []>} : vector<224x28xbf16>, vector<28x168xbf16>, vector<224x168xf32> -> vector<224x168xf32>
    %29 = arith.addf %23, %28 : vector<224x168xf32>
    %30 = vector.extract_strided_slice %3 {offsets = [0, 4, 0], sizes = [8, 28, 28], strides = [1, 1, 1]} : vector<8x32x28xbf16> to vector<8x28x28xbf16>
    %31 = vector.shape_cast %30 : vector<8x28x28xbf16> to vector<224x28xbf16>
    %c4 = arith.constant 4 : index
    %c0_17 = arith.constant 0 : index
    %c0_18 = arith.constant 0 : index
    %32 = vector.load %arg2[%c4, %c0_17, %c0_18] : memref<5x28x168xbf16, #tpu.memory_space<vmem>>, vector<1x28x168xbf16>
    %33 = vector.shape_cast %32 : vector<1x28x168xbf16> to vector<28x168xbf16>
    %cst_19 = arith.constant dense<0.000000e+00> : vector<224x168xf32>
    %34 = tpu.matmul %31, %33, %cst_19 {dimension_numbers = #tpu.dot_dimension_numbers<[1], [0], [0], [1], [0, 0, 1, 1], [], []>} : vector<224x28xbf16>, vector<28x168xbf16>, vector<224x168xf32> -> vector<224x168xf32>
    %35 = arith.addf %29, %34 : vector<224x168xf32>
    %cst_20 = arith.constant 0.000000e+00 : f32
    %36 = vector.broadcast %cst_20 : f32 to vector<224x168xf32>
    %37 = arith.subf %36, %35 : vector<224x168xf32>
    %38 = math.exp %37 : vector<224x168xf32>
    %cst_21 = arith.constant 1.000000e+00 : f32
    %39 = vector.broadcast %cst_21 : f32 to vector<224x168xf32>
    %40 = arith.addf %39, %38 : vector<224x168xf32>
    %41 = tpu.reciprocal %40 {approx = true} : vector<224x168xf32> -> vector<224x168xf32>
    %42 = arith.truncf %41 : vector<224x168xf32> to vector<224x168xbf16>
    %43 = vector.shape_cast %42 : vector<224x168xbf16> to vector<112x2x168xbf16>
    %44 = vector.extract_strided_slice %43 {offsets = [0, 0, 0], sizes = [112, 1, 168], strides = [1, 1, 1]} : vector<112x2x168xbf16> to vector<112x1x168xbf16>
    %45 = vector.shape_cast %44 : vector<112x1x168xbf16> to vector<112x168xbf16>
    %46 = vector.extract_strided_slice %43 {offsets = [0, 1, 0], sizes = [112, 1, 168], strides = [1, 1, 1]} : vector<112x2x168xbf16> to vector<112x1x168xbf16>
    %47 = vector.shape_cast %46 : vector<112x1x168xbf16> to vector<112x168xbf16>
    %48 = arith.maximumf %45, %47 : vector<112x168xbf16>
    %c0_22 = arith.constant 0 : index
    %c0_23 = arith.constant 0 : index
    %49 = vector.load %arg4[%c0_22, %c0_23] : memref<168x84xbf16, #tpu.memory_space<vmem>>, vector<168x84xbf16>
    %cst_24 = arith.constant dense<0.000000e+00> : vector<112x84xf32>
    %50 = tpu.matmul %48, %49, %cst_24 {dimension_numbers = #tpu.dot_dimension_numbers<[1], [0], [0], [1], [0, 0, 1, 1], [], []>} : vector<112x168xbf16>, vector<168x84xbf16>, vector<112x84xf32> -> vector<112x84xf32>
    %c0_25 = arith.constant 0 : index
    %c0_26 = arith.constant 0 : index
    %51 = vector.load %arg5[%c0_25, %c0_26] : memref<168x84xbf16, #tpu.memory_space<vmem>>, vector<168x84xbf16>
    %cst_27 = arith.constant dense<0.000000e+00> : vector<112x84xf32>
    %52 = tpu.matmul %48, %51, %cst_27 {dimension_numbers = #tpu.dot_dimension_numbers<[1], [0], [0], [1], [0, 0, 1, 1], [], []>} : vector<112x168xbf16>, vector<168x84xbf16>, vector<112x84xf32> -> vector<112x84xf32>
    %53 = arith.maximumf %50, %52 : vector<112x84xf32>
    %54 = arith.truncf %53 : vector<112x84xf32> to vector<112x84xbf16>
    %55 = vector.shape_cast %54 : vector<112x84xbf16> to vector<8x14x84xbf16>
    %c0_28 = arith.constant 0 : index
    %c0_29 = arith.constant 0 : index
    %56 = vector.load %arg7[%c0_28, %c0_29] : memref<1x160xf32, #tpu.memory_space<vmem>>, vector<1x160xf32>
    %57 = vector.extract_strided_slice %55 {offsets = [0, 0, 0], sizes = [8, 10, 84], strides = [1, 1, 1]} : vector<8x14x84xbf16> to vector<8x10x84xbf16>
    %58 = vector.shape_cast %57 : vector<8x10x84xbf16> to vector<80x84xbf16>
    %c0_30 = arith.constant 0 : index
    %c0_31 = arith.constant 0 : index
    %c0_32 = arith.constant 0 : index
    %59 = vector.load %arg6[%c0_30, %c0_31, %c0_32] : memref<5x84x160xbf16, #tpu.memory_space<vmem>>, vector<1x84x160xbf16>
    %60 = vector.shape_cast %59 : vector<1x84x160xbf16> to vector<84x160xbf16>
    %cst_33 = arith.constant dense<0.000000e+00> : vector<80x160xf32>
    %61 = tpu.matmul %58, %60, %cst_33 {dimension_numbers = #tpu.dot_dimension_numbers<[1], [0], [0], [1], [0, 0, 1, 1], [], []>} : vector<80x84xbf16>, vector<84x160xbf16>, vector<80x160xf32> -> vector<80x160xf32>
    %62 = vector.broadcast %56 : vector<1x160xf32> to vector<80x160xf32>
    %63 = arith.addf %62, %61 : vector<80x160xf32>
    %64 = vector.extract_strided_slice %55 {offsets = [0, 1, 0], sizes = [8, 10, 84], strides = [1, 1, 1]} : vector<8x14x84xbf16> to vector<8x10x84xbf16>
    %65 = vector.shape_cast %64 : vector<8x10x84xbf16> to vector<80x84xbf16>
    %c1_34 = arith.constant 1 : index
    %c0_35 = arith.constant 0 : index
    %c0_36 = arith.constant 0 : index
    %66 = vector.load %arg6[%c1_34, %c0_35, %c0_36] : memref<5x84x160xbf16, #tpu.memory_space<vmem>>, vector<1x84x160xbf16>
    %67 = vector.shape_cast %66 : vector<1x84x160xbf16> to vector<84x160xbf16>
    %cst_37 = arith.constant dense<0.000000e+00> : vector<80x160xf32>
    %68 = tpu.matmul %65, %67, %cst_37 {dimension_numbers = #tpu.dot_dimension_numbers<[1], [0], [0], [1], [0, 0, 1, 1], [], []>} : vector<80x84xbf16>, vector<84x160xbf16>, vector<80x160xf32> -> vector<80x160xf32>
    %69 = arith.addf %63, %68 : vector<80x160xf32>
    %70 = vector.extract_strided_slice %55 {offsets = [0, 2, 0], sizes = [8, 10, 84], strides = [1, 1, 1]} : vector<8x14x84xbf16> to vector<8x10x84xbf16>
    %71 = vector.shape_cast %70 : vector<8x10x84xbf16> to vector<80x84xbf16>
    %c2_38 = arith.constant 2 : index
    %c0_39 = arith.constant 0 : index
    %c0_40 = arith.constant 0 : index
    %72 = vector.load %arg6[%c2_38, %c0_39, %c0_40] : memref<5x84x160xbf16, #tpu.memory_space<vmem>>, vector<1x84x160xbf16>
    %73 = vector.shape_cast %72 : vector<1x84x160xbf16> to vector<84x160xbf16>
    %cst_41 = arith.constant dense<0.000000e+00> : vector<80x160xf32>
    %74 = tpu.matmul %71, %73, %cst_41 {dimension_numbers = #tpu.dot_dimension_numbers<[1], [0], [0], [1], [0, 0, 1, 1], [], []>} : vector<80x84xbf16>, vector<84x160xbf16>, vector<80x160xf32> -> vector<80x160xf32>
    %75 = arith.addf %69, %74 : vector<80x160xf32>
    %76 = vector.extract_strided_slice %55 {offsets = [0, 3, 0], sizes = [8, 10, 84], strides = [1, 1, 1]} : vector<8x14x84xbf16> to vector<8x10x84xbf16>
    %77 = vector.shape_cast %76 : vector<8x10x84xbf16> to vector<80x84xbf16>
    %c3_42 = arith.constant 3 : index
    %c0_43 = arith.constant 0 : index
    %c0_44 = arith.constant 0 : index
    %78 = vector.load %arg6[%c3_42, %c0_43, %c0_44] : memref<5x84x160xbf16, #tpu.memory_space<vmem>>, vector<1x84x160xbf16>
    %79 = vector.shape_cast %78 : vector<1x84x160xbf16> to vector<84x160xbf16>
    %cst_45 = arith.constant dense<0.000000e+00> : vector<80x160xf32>
    %80 = tpu.matmul %77, %79, %cst_45 {dimension_numbers = #tpu.dot_dimension_numbers<[1], [0], [0], [1], [0, 0, 1, 1], [], []>} : vector<80x84xbf16>, vector<84x160xbf16>, vector<80x160xf32> -> vector<80x160xf32>
    %81 = arith.addf %75, %80 : vector<80x160xf32>
    %82 = vector.extract_strided_slice %55 {offsets = [0, 4, 0], sizes = [8, 10, 84], strides = [1, 1, 1]} : vector<8x14x84xbf16> to vector<8x10x84xbf16>
    %83 = vector.shape_cast %82 : vector<8x10x84xbf16> to vector<80x84xbf16>
    %c4_46 = arith.constant 4 : index
    %c0_47 = arith.constant 0 : index
    %c0_48 = arith.constant 0 : index
    %84 = vector.load %arg6[%c4_46, %c0_47, %c0_48] : memref<5x84x160xbf16, #tpu.memory_space<vmem>>, vector<1x84x160xbf16>
    %85 = vector.shape_cast %84 : vector<1x84x160xbf16> to vector<84x160xbf16>
    %cst_49 = arith.constant dense<0.000000e+00> : vector<80x160xf32>
    %86 = tpu.matmul %83, %85, %cst_49 {dimension_numbers = #tpu.dot_dimension_numbers<[1], [0], [0], [1], [0, 0, 1, 1], [], []>} : vector<80x84xbf16>, vector<84x160xbf16>, vector<80x160xf32> -> vector<80x160xf32>
    %87 = arith.addf %81, %86 : vector<80x160xf32>
    %cst_50 = arith.constant 0.000000e+00 : f32
    %88 = vector.broadcast %cst_50 : f32 to vector<80x160xf32>
    %89 = arith.subf %88, %87 : vector<80x160xf32>
    %90 = math.exp %89 : vector<80x160xf32>
    %cst_51 = arith.constant 1.000000e+00 : f32
    %91 = vector.broadcast %cst_51 : f32 to vector<80x160xf32>
    %92 = arith.addf %91, %90 : vector<80x160xf32>
    %93 = tpu.reciprocal %92 {approx = true} : vector<80x160xf32> -> vector<80x160xf32>
    %94 = arith.truncf %93 : vector<80x160xf32> to vector<80x160xbf16>
    %95 = vector.shape_cast %94 : vector<80x160xbf16> to vector<40x2x160xbf16>
    %96 = vector.extract_strided_slice %95 {offsets = [0, 0, 0], sizes = [40, 1, 160], strides = [1, 1, 1]} : vector<40x2x160xbf16> to vector<40x1x160xbf16>
    %97 = vector.shape_cast %96 : vector<40x1x160xbf16> to vector<40x160xbf16>
    %98 = vector.extract_strided_slice %95 {offsets = [0, 1, 0], sizes = [40, 1, 160], strides = [1, 1, 1]} : vector<40x2x160xbf16> to vector<40x1x160xbf16>
    %99 = vector.shape_cast %98 : vector<40x1x160xbf16> to vector<40x160xbf16>
    %100 = arith.maximumf %97, %99 : vector<40x160xbf16>
    %c0_52 = arith.constant 0 : index
    %c0_53 = arith.constant 0 : index
    %101 = vector.load %arg8[%c0_52, %c0_53] : memref<160x80xbf16, #tpu.memory_space<vmem>>, vector<160x80xbf16>
    %cst_54 = arith.constant dense<0.000000e+00> : vector<40x80xf32>
    %102 = tpu.matmul %100, %101, %cst_54 {dimension_numbers = #tpu.dot_dimension_numbers<[1], [0], [0], [1], [0, 0, 1, 1], [], []>} : vector<40x160xbf16>, vector<160x80xbf16>, vector<40x80xf32> -> vector<40x80xf32>
    %c0_55 = arith.constant 0 : index
    %c0_56 = arith.constant 0 : index
    %103 = vector.load %arg9[%c0_55, %c0_56] : memref<160x80xbf16, #tpu.memory_space<vmem>>, vector<160x80xbf16>
    %cst_57 = arith.constant dense<0.000000e+00> : vector<40x80xf32>
    %104 = tpu.matmul %100, %103, %cst_57 {dimension_numbers = #tpu.dot_dimension_numbers<[1], [0], [0], [1], [0, 0, 1, 1], [], []>} : vector<40x160xbf16>, vector<160x80xbf16>, vector<40x80xf32> -> vector<40x80xf32>
    %105 = arith.maximumf %102, %104 : vector<40x80xf32>
    %106 = arith.truncf %105 : vector<40x80xf32> to vector<40x80xbf16>
    %107 = vector.shape_cast %106 : vector<40x80xbf16> to vector<8x5x80xbf16>
    %c0_58 = arith.constant 0 : index
    %c0_59 = arith.constant 0 : index
    %108 = vector.load %arg11[%c0_58, %c0_59] : memref<1x120xf32, #tpu.memory_space<vmem>>, vector<1x120xf32>
    %109 = vector.extract_strided_slice %107 {offsets = [0, 0, 0], sizes = [8, 1, 80], strides = [1, 1, 1]} : vector<8x5x80xbf16> to vector<8x1x80xbf16>
    %110 = vector.shape_cast %109 : vector<8x1x80xbf16> to vector<8x80xbf16>
    %c0_60 = arith.constant 0 : index
    %c0_61 = arith.constant 0 : index
    %c0_62 = arith.constant 0 : index
    %111 = vector.load %arg10[%c0_60, %c0_61, %c0_62] : memref<5x80x120xbf16, #tpu.memory_space<vmem>>, vector<1x80x120xbf16>
    %112 = vector.shape_cast %111 : vector<1x80x120xbf16> to vector<80x120xbf16>
    %cst_63 = arith.constant dense<0.000000e+00> : vector<8x120xf32>
    %113 = tpu.matmul %110, %112, %cst_63 {dimension_numbers = #tpu.dot_dimension_numbers<[1], [0], [0], [1], [0, 0, 1, 1], [], []>} : vector<8x80xbf16>, vector<80x120xbf16>, vector<8x120xf32> -> vector<8x120xf32>
    %114 = vector.broadcast %108 : vector<1x120xf32> to vector<8x120xf32>
    %115 = arith.addf %114, %113 : vector<8x120xf32>
    %116 = vector.extract_strided_slice %107 {offsets = [0, 1, 0], sizes = [8, 1, 80], strides = [1, 1, 1]} : vector<8x5x80xbf16> to vector<8x1x80xbf16>
    %117 = vector.shape_cast %116 : vector<8x1x80xbf16> to vector<8x80xbf16>
    %c1_64 = arith.constant 1 : index
    %c0_65 = arith.constant 0 : index
    %c0_66 = arith.constant 0 : index
    %118 = vector.load %arg10[%c1_64, %c0_65, %c0_66] : memref<5x80x120xbf16, #tpu.memory_space<vmem>>, vector<1x80x120xbf16>
    %119 = vector.shape_cast %118 : vector<1x80x120xbf16> to vector<80x120xbf16>
    %cst_67 = arith.constant dense<0.000000e+00> : vector<8x120xf32>
    %120 = tpu.matmul %117, %119, %cst_67 {dimension_numbers = #tpu.dot_dimension_numbers<[1], [0], [0], [1], [0, 0, 1, 1], [], []>} : vector<8x80xbf16>, vector<80x120xbf16>, vector<8x120xf32> -> vector<8x120xf32>
    %121 = arith.addf %115, %120 : vector<8x120xf32>
    %122 = vector.extract_strided_slice %107 {offsets = [0, 2, 0], sizes = [8, 1, 80], strides = [1, 1, 1]} : vector<8x5x80xbf16> to vector<8x1x80xbf16>
    %123 = vector.shape_cast %122 : vector<8x1x80xbf16> to vector<8x80xbf16>
    %c2_68 = arith.constant 2 : index
    %c0_69 = arith.constant 0 : index
    %c0_70 = arith.constant 0 : index
    %124 = vector.load %arg10[%c2_68, %c0_69, %c0_70] : memref<5x80x120xbf16, #tpu.memory_space<vmem>>, vector<1x80x120xbf16>
    %125 = vector.shape_cast %124 : vector<1x80x120xbf16> to vector<80x120xbf16>
    %cst_71 = arith.constant dense<0.000000e+00> : vector<8x120xf32>
    %126 = tpu.matmul %123, %125, %cst_71 {dimension_numbers = #tpu.dot_dimension_numbers<[1], [0], [0], [1], [0, 0, 1, 1], [], []>} : vector<8x80xbf16>, vector<80x120xbf16>, vector<8x120xf32> -> vector<8x120xf32>
    %127 = arith.addf %121, %126 : vector<8x120xf32>
    %128 = vector.extract_strided_slice %107 {offsets = [0, 3, 0], sizes = [8, 1, 80], strides = [1, 1, 1]} : vector<8x5x80xbf16> to vector<8x1x80xbf16>
    %129 = vector.shape_cast %128 : vector<8x1x80xbf16> to vector<8x80xbf16>
    %c3_72 = arith.constant 3 : index
    %c0_73 = arith.constant 0 : index
    %c0_74 = arith.constant 0 : index
    %130 = vector.load %arg10[%c3_72, %c0_73, %c0_74] : memref<5x80x120xbf16, #tpu.memory_space<vmem>>, vector<1x80x120xbf16>
    %131 = vector.shape_cast %130 : vector<1x80x120xbf16> to vector<80x120xbf16>
    %cst_75 = arith.constant dense<0.000000e+00> : vector<8x120xf32>
    %132 = tpu.matmul %129, %131, %cst_75 {dimension_numbers = #tpu.dot_dimension_numbers<[1], [0], [0], [1], [0, 0, 1, 1], [], []>} : vector<8x80xbf16>, vector<80x120xbf16>, vector<8x120xf32> -> vector<8x120xf32>
    %133 = arith.addf %127, %132 : vector<8x120xf32>
    %134 = vector.extract_strided_slice %107 {offsets = [0, 4, 0], sizes = [8, 1, 80], strides = [1, 1, 1]} : vector<8x5x80xbf16> to vector<8x1x80xbf16>
    %135 = vector.shape_cast %134 : vector<8x1x80xbf16> to vector<8x80xbf16>
    %c4_76 = arith.constant 4 : index
    %c0_77 = arith.constant 0 : index
    %c0_78 = arith.constant 0 : index
    %136 = vector.load %arg10[%c4_76, %c0_77, %c0_78] : memref<5x80x120xbf16, #tpu.memory_space<vmem>>, vector<1x80x120xbf16>
    %137 = vector.shape_cast %136 : vector<1x80x120xbf16> to vector<80x120xbf16>
    %cst_79 = arith.constant dense<0.000000e+00> : vector<8x120xf32>
    %138 = tpu.matmul %135, %137, %cst_79 {dimension_numbers = #tpu.dot_dimension_numbers<[1], [0], [0], [1], [0, 0, 1, 1], [], []>} : vector<8x80xbf16>, vector<80x120xbf16>, vector<8x120xf32> -> vector<8x120xf32>
    %139 = arith.addf %133, %138 : vector<8x120xf32>
    %cst_80 = arith.constant 0.000000e+00 : f32
    %140 = vector.broadcast %cst_80 : f32 to vector<8x120xf32>
    %141 = arith.subf %140, %139 : vector<8x120xf32>
    %142 = math.exp %141 : vector<8x120xf32>
    %cst_81 = arith.constant 1.000000e+00 : f32
    %143 = vector.broadcast %cst_81 : f32 to vector<8x120xf32>
    %144 = arith.addf %143, %142 : vector<8x120xf32>
    %145 = tpu.reciprocal %144 {approx = true} : vector<8x120xf32> -> vector<8x120xf32>
    %146 = arith.truncf %145 : vector<8x120xf32> to vector<8x120xbf16>
    %c0_82 = arith.constant 0 : index
    %c0_83 = arith.constant 0 : index
    %147 = vector.load %arg12[%c0_82, %c0_83] : memref<120x84xbf16, #tpu.memory_space<vmem>>, vector<120x84xbf16>
    %cst_84 = arith.constant dense<0.000000e+00> : vector<8x84xf32>
    %148 = tpu.matmul %146, %147, %cst_84 {dimension_numbers = #tpu.dot_dimension_numbers<[1], [0], [0], [1], [0, 0, 1, 1], [], []>} : vector<8x120xbf16>, vector<120x84xbf16>, vector<8x84xf32> -> vector<8x84xf32>
    %c0_85 = arith.constant 0 : index
    %c0_86 = arith.constant 0 : index
    %149 = vector.load %arg13[%c0_85, %c0_86] : memref<1x84xf32, #tpu.memory_space<vmem>>, vector<1x84xf32>
    %150 = vector.broadcast %149 : vector<1x84xf32> to vector<8x84xf32>
    %151 = arith.addf %148, %150 : vector<8x84xf32>
    %cst_87 = arith.constant 0.000000e+00 : f32
    %152 = vector.broadcast %cst_87 : f32 to vector<8x84xf32>
    %153 = arith.subf %152, %151 : vector<8x84xf32>
    %154 = math.exp %153 : vector<8x84xf32>
    %cst_88 = arith.constant 1.000000e+00 : f32
    %155 = vector.broadcast %cst_88 : f32 to vector<8x84xf32>
    %156 = arith.addf %155, %154 : vector<8x84xf32>
    %157 = tpu.reciprocal %156 {approx = true} : vector<8x84xf32> -> vector<8x84xf32>
    %158 = arith.truncf %157 : vector<8x84xf32> to vector<8x84xbf16>
    %c0_89 = arith.constant 0 : index
    %c0_90 = arith.constant 0 : index
    %159 = vector.load %arg14[%c0_89, %c0_90] : memref<84x128xbf16, #tpu.memory_space<vmem>>, vector<84x128xbf16>
    %cst_91 = arith.constant dense<0.000000e+00> : vector<8x128xf32>
    %160 = tpu.matmul %158, %159, %cst_91 {dimension_numbers = #tpu.dot_dimension_numbers<[1], [0], [0], [1], [0, 0, 1, 1], [], []>} : vector<8x84xbf16>, vector<84x128xbf16>, vector<8x128xf32> -> vector<8x128xf32>
    %c0_92 = arith.constant 0 : index
    %c0_93 = arith.constant 0 : index
    %161 = vector.load %arg15[%c0_92, %c0_93] : memref<1x128xf32, #tpu.memory_space<vmem>>, vector<1x128xf32>
    %162 = vector.broadcast %161 : vector<1x128xf32> to vector<8x128xf32>
    %163 = arith.addf %160, %162 : vector<8x128xf32>
    %c0_94 = arith.constant 0 : index
    %c0_95 = arith.constant 0 : index
    %164 = vector.load %arg16[%c0_94, %c0_95] : memref<8x128xf32, #tpu.memory_space<vmem>>, vector<8x128xf32>
    tpu.vector_store %arg16[%c0_94, %c0_95], %163 {strides = array<i32>} : memref<8x128xf32, #tpu.memory_space<vmem>>, vector<8x128xf32>,
    return
  }
  func.func @transform_0(%arg0: i32) -> (i32, i32, i32) {
    %c0_i32 = arith.constant 0 : i32
    %c0_i32_0 = arith.constant 0 : i32
    %c0_i32_1 = arith.constant 0 : i32
    return %arg0, %c0_i32, %c0_i32_0 : i32, i32, i32
  }
  func.func @transform_1(%arg0: i32) -> (i32, i32, i32) {
    %c0_i32 = arith.constant 0 : i32
    %c0_i32_0 = arith.constant 0 : i32
    %c0_i32_1 = arith.constant 0 : i32
    %c0_i32_2 = arith.constant 0 : i32
    return %c0_i32, %c0_i32_0, %c0_i32_1 : i32, i32, i32
  }
  func.func @transform_2(%arg0: i32) -> (i32, i32) {
    %c0_i32 = arith.constant 0 : i32
    %c0_i32_0 = arith.constant 0 : i32
    %c0_i32_1 = arith.constant 0 : i32
    return %c0_i32, %c0_i32_0 : i32, i32
  }
  func.func @transform_3(%arg0: i32) -> (i32, i32) {
    %c0_i32 = arith.constant 0 : i32
    %c0_i32_0 = arith.constant 0 : i32
    %c0_i32_1 = arith.constant 0 : i32
    return %c0_i32, %c0_i32_0 : i32, i32
  }
  func.func @transform_4(%arg0: i32) -> (i32, i32) {
    %c0_i32 = arith.constant 0 : i32
    %c0_i32_0 = arith.constant 0 : i32
    %c0_i32_1 = arith.constant 0 : i32
    return %c0_i32, %c0_i32_0 : i32, i32
  }
  func.func @transform_5(%arg0: i32) -> (i32, i32, i32) {
    %c0_i32 = arith.constant 0 : i32
    %c0_i32_0 = arith.constant 0 : i32
    %c0_i32_1 = arith.constant 0 : i32
    %c0_i32_2 = arith.constant 0 : i32
    return %c0_i32, %c0_i32_0, %c0_i32_1 : i32, i32, i32
  }
  func.func @transform_6(%arg0: i32) -> (i32, i32) {
    %c0_i32 = arith.constant 0 : i32
    %c0_i32_0 = arith.constant 0 : i32
    %c0_i32_1 = arith.constant 0 : i32
    return %c0_i32, %c0_i32_0 : i32, i32
  }
  func.func @transform_7(%arg0: i32) -> (i32, i32) {
    %c0_i32 = arith.constant 0 : i32
    %c0_i32_0 = arith.constant 0 : i32
    %c0_i32_1 = arith.constant 0 : i32
    return %c0_i32, %c0_i32_0 : i32, i32
  }
  func.func @transform_8(%arg0: i32) -> (i32, i32) {
    %c0_i32 = arith.constant 0 : i32
    %c0_i32_0 = arith.constant 0 : i32
    %c0_i32_1 = arith.constant 0 : i32
    return %c0_i32, %c0_i32_0 : i32, i32
  }
  func.func @transform_9(%arg0: i32) -> (i32, i32, i32) {
    %c0_i32 = arith.constant 0 : i32
    %c0_i32_0 = arith.constant 0 : i32
    %c0_i32_1 = arith.constant 0 : i32
    %c0_i32_2 = arith.constant 0 : i32
    return %c0_i32, %c0_i32_0, %c0_i32_1 : i32, i32, i32
  }
  func.func @transform_10(%arg0: i32) -> (i32, i32) {
    %c0_i32 = arith.constant 0 : i32
    %c0_i32_0 = arith.constant 0 : i32
    %c0_i32_1 = arith.constant 0 : i32
    return %c0_i32, %c0_i32_0 : i32, i32
  }
  func.func @transform_11(%arg0: i32) -> (i32, i32) {
    %c0_i32 = arith.constant 0 : i32
    %c0_i32_0 = arith.constant 0 : i32
    %c0_i32_1 = arith.constant 0 : i32
    return %c0_i32, %c0_i32_0 : i32, i32
  }
  func.func @transform_12(%arg0: i32) -> (i32, i32) {
    %c0_i32 = arith.constant 0 : i32
    %c0_i32_0 = arith.constant 0 : i32
    %c0_i32_1 = arith.constant 0 : i32
    return %c0_i32, %c0_i32_0 : i32, i32
  }
  func.func @transform_13(%arg0: i32) -> (i32, i32) {
    %c0_i32 = arith.constant 0 : i32
    %c0_i32_0 = arith.constant 0 : i32
    %c0_i32_1 = arith.constant 0 : i32
    return %c0_i32, %c0_i32_0 : i32, i32
  }
  func.func @transform_14(%arg0: i32) -> (i32, i32) {
    %c0_i32 = arith.constant 0 : i32
    %c0_i32_0 = arith.constant 0 : i32
    %c0_i32_1 = arith.constant 0 : i32
    return %c0_i32, %c0_i32_0 : i32, i32
  }
  func.func @transform_15(%arg0: i32) -> (i32, i32) {
    %c0_i32 = arith.constant 0 : i32
    %c0_i32_0 = arith.constant 0 : i32
    return %arg0, %c0_i32 : i32, i32
  }
}

</mosaic_0001>

<bundles_post_ra>
// kernel: lenet5_forward.1
= control target key start
LH: loop header
LB: loop body
LE: loop exit
PB: predicated region body
PF: predicated region fallthrough
CT: control target
= control target key end

     0   :  { %v23868_v1 = vmov 0   ;;  %v17563_v2 = vmov 1983009808   ;;  %v258_v4 = vlaneseq  ;;  %vm212_vm0 = vcmask 1045504   ;;  %s23848_s1 = inlined_call_operand.vmem [shape: bf16[5,28,168], index: 1, kind: input, shape index: {}]   ;;  %s23849_s0 = inlined_call_operand.vmem [shape: f32[8,28,28], index: 0, kind: input, shape index: {}]   ;;  %s23850_s3 = inlined_call_operand.vmem [shape: bf16[168,84], index: 3, kind: input, shape index: {}]   ;;  %s23851_s2 = inlined_call_operand.vmem [shape: f32[1,168], index: 2, kind: input, shape index: {}]   ;;  %s23852_s4 = inlined_call_operand.vmem [shape: bf16[168,84], index: 4, kind: input, shape index: {}]   ;;  %s23853_s5 = inlined_call_operand.vmem [shape: bf16[5,84,160], index: 5, kind: input, shape index: {}]   ;;  %s23854_s7 = inlined_call_operand.vmem [shape: bf16[160,80], index: 7, kind: input, shape index: {}]   ;;  %s23855_s6 = inlined_call_operand.vmem [shape: f32[1,160], index: 6, kind: input, shape index: {}]   ;;  %s23856_s8 = inlined_call_operand.vmem [shape: bf16[160,80], index: 8, kind: input, shape index: {}]   ;;  %s23857_s9 = inlined_call_operand.vmem [shape: bf16[5,80,120], index: 9, kind: input, shape index: {}]   ;;  %s23858_s11 = inlined_call_operand.vmem [shape: bf16[120,84], index: 11, kind: input, shape index: {}]   ;;  %s23859_s10 = inlined_call_operand.vmem [shape: f32[1,120], index: 10, kind: input, shape index: {}]   ;;  %s23860_s13 = inlined_call_operand.vmem [shape: bf16[84,128], index: 13, kind: input, shape index: {}]   ;;  %s23861_s12 = inlined_call_operand.vmem [shape: f32[1,84], index: 12, kind: input, shape index: {}]   ;;  %s23862_s14 = inlined_call_operand.vmem [shape: f32[1,128], index: 14, kind: input, shape index: {}]   ;;  %s23863_s15 = inlined_call_operand.vmem [shape: f32[8,128], index: 15, kind: output, shape index: {}]  }
   0x1   :  { %v17054_v0 = vld [vmem:[%s23848_s1 + $0x4] ss:$8 sps:$4 sm:$0xff]   ;;  %859 = vmatprep.mubr.bf16.mxu0 %v23868_v1  ;;  %v256_v3 = vunpack.c.l.s4 %v17563_v2  ;;  %9526 = vmatprep.subr.bf16.mxu1 %v23868_v1  ;;  %v17056_v5 = vld [vmem:[%s23848_s1] ss:$8 sps:$4 sm:$0xff]   ;;  %vm115_vm1 = vcmask 1041408   ;;  %v53_v16 = vld [vmem:[%s23849_s0 + $0x10] sm:$0xff] }
   0x2   :  { %827 = vmatprep.subr.bf16.mxu0 %v17054_v0  ;;  %v17057_v6 = vld [vmem:[%s23848_s1 + $0x14] ss:$8 sps:$4 sm:$0x3f]   ;;  %v17059_v7 = vld [vmem:[%s23848_s1 + $0x10] ss:$8 sps:$4 sm:$0x3f]  }
   0x3   :  { %v257_v8 = vunpack.c.0.s8 %v256_v3  ;;  %828 = vmatpush1.bf16.msra.mxu0 %v17056_v5  ;;  %v17661_v9 = vshrl.u32 %v258_v4, 7  ;;  %v822_v10 = vsel %vm212_vm0, %v17059_v7, 0  ;;  %v17062_v11 = vld [vmem:[%s23848_s1 + $0x24] ss:$8 sps:$4 sm:$0xff]   ;;  %v54_v19 = vld [vmem:[%s23849_s0 + $0x18] sm:$0xf] }
   0x4   :  { %15807 = vmatprep.subr.msk.bf16.mxu0 %vm212_vm0, %v17057_v6  ;;  %v51_v12 = vld [vmem:[%s23849_s0] sm:$0xff]  ;;  %v52_v13 = vld [vmem:[%s23849_s0 + $0x8] sm:$0xff]  ;;  %v119_v21 = vrot.slane %v53_v16, 6  ;;  %v57_v23 = vld [vmem:[%s23849_s0 + $0x30] sm:$0xff]  ;;  %v121_v26 = vrot.slane %v54_v19, 6  ;;  %vm778_vm2 = vcmask 228352  }
   0x5   :  { %24176 = vst [vmem:[#allocation2_spill] sm:$0xff] %v17661_v9  ;;  %v116_v14 = vrot.slane %v51_v12, 6  ;;  %v117_v15 = vrot.slane %v52_v13, 6  ;;  %v55_v17 = vld [vmem:[%s23849_s0 + $0x20] sm:$0xff]  ;;  %v17681_v18 = vsub.s32 %v257_v8, %v17661_v9  ;;  %v56_v20 = vld [vmem:[%s23849_s0 + $0x28] sm:$0xff]  ;;  %v126_v35 = vrot.slane %v57_v23, 6 }
   0x6   :  { %v123_v22 = vrot.slane %v55_v17, 6  ;;  %v124_v27 = vrot.slane %v56_v20, 6  ;;  %v122_v31 = vsel %vm115_vm1, %v119_v21, %v121_v26  ;;  %v58_v34 = vld [vmem:[%s23849_s0 + $0x38] sm:$0xf]  ;;  %v59_v42 = vld [vmem:[%s23849_s0 + $0x40] sm:$0xff]  ;;  %v60_v54 = vld [vmem:[%s23849_s0 + $0x48] sm:$0xff] }
   0x7   :  { %830 = vmatpush1.bf16.msra.mxu0 %v822_v10  ;;  %v118_v24 = vsel %vm115_vm1, %v116_v14, %v117_v15  ;;  %v204_v25 = vsel %vm115_vm1, 0.0, %v116_v14  ;;  %v120_v30 = vsel %vm115_vm1, %v117_v15, %v119_v21  ;;  %v213_v38 = vsel %vm212_vm0, %v122_v31, 0.0  ;;  %v17060_v59 = vld [vmem:[%s23848_s1 + $0x20] ss:$8 sps:$4 sm:$0xff]   ;;  %v61_v0 = vld [vmem:[%s23849_s0 + $0x50] sm:$0xff] }
   0x8   :  { %1983 = vmatprep.subr.bf16.mxu0 %v17062_v11  ;;  %v221_v28 = vpack.c.bf16 %v118_v24, %v204_v25  ;;  %v15787_v29 = vpack.c.bf16 %v118_v24, %v118_v24  ;;  %v125_v32 = vsel %vm115_vm1, %v123_v22, %v124_v27  ;;  %v205_v33 = vsel %vm115_vm1, 0.0, %v123_v22  ;;  %v17063_v4 = vld [vmem:[%s23848_s1 + $0x34] ss:$8 sps:$4 sm:$0x3f]   ;;  %v62_v8 = vld [vmem:[%s23849_s0 + $0x58] sm:$0xf] }
   0x9   :  { %v222_v39 = vpack.c.bf16 %v213_v38, %v120_v30  ;;  %v223_v40 = vpack.c.bf16 %v125_v32, %v205_v33  ;;  %v15788_v41 = vpack.c.bf16 %v213_v38, %v213_v38  ;;  %v128_v45 = vrot.slane %v58_v34, 6  ;;  %v63_v25 = vld [vmem:[%s23849_s0 + $0x60] sm:$0xff]  ;;  %v64_v26 = vld [vmem:[%s23849_s0 + $0x68] sm:$0xff] }
   0xa   :  { %v17702_v36 = vrot.slane %v221_v28, %v17681_v18  ;;  %v17705_v37 = vrot.slane %v15787_v29, %v17681_v18  ;;  %v15789_v46 = vpack.c.bf16 %v125_v32, %v125_v32  ;;  %v127_v50 = vsel %vm115_vm1, %v124_v27, %v126_v35 }
   0xb   :  { %v17720_v47 = vrot.slane %v222_v39, %v17681_v18  ;;  %v17723_v48 = vrot.slane %v15788_v41, %v17681_v18  ;;  %v17726_v49 = vrot.slane %v223_v40, %v17681_v18  ;;  %v129_v53 = vsel %vm115_vm1, %v126_v35, %v128_v45  ;;  %v17065_v40 = vld [vmem:[%s23848_s1 + $0x30] ss:$8 sps:$4 sm:$0x3f]   ;;  %v17068_v41 = vld [vmem:[%s23848_s1 + $0x44] ss:$8 sps:$4 sm:$0xff]  }
   0xc   :  { %24177 = vst [vmem:[#allocation3_spill] sm:$0xff] %v17702_v36  ;;  %24178 = vst [vmem:[#allocation4_spill] sm:$0xff] %v17705_v37  ;;  %v17713_v43 = vcombine.high %v17702_v36, %v17702_v36  ;;  %v17717_v44 = vcombine.high %v17705_v37, %v17705_v37  ;;  %v130_v55 = vrot.slane %v59_v42, 6  ;;  %v214_v57 = vsel %vm212_vm0, %v129_v53, 0.0 }
   0xd   :  { %24181 = vst [vmem:[#allocation7_spill] sm:$0xff] %v17720_v47  ;;  %24182 = vst [vmem:[#allocation8_spill] sm:$0xff] %v17726_v49  ;;  %v17739_v56 = vcombine.high %v17720_v47, %v17720_v47  ;;  %v17743_v58 = vrot.slane %v15789_v46, %v17681_v18  ;;  %v540_v62 = vcombine.low %v17723_v48, %v17726_v49  ;;  %v131_v3 = vrot.slane %v60_v54, 6 }
   0xe   :  { %24179 = vst [vmem:[#allocation5_spill] sm:$0xff] %v17713_v43  ;;  %24180 = vst [vmem:[#allocation6_spill] sm:$0xff] %v17717_v44  ;;  %v522_v51 = vcombine.low %v17702_v36, %v17713_v43  ;;  %v523_v52 = vcombine.low %v17705_v37, %v17717_v44  ;;  %v224_v63 = vpack.c.bf16 %v214_v57, %v127_v50  ;;  %v206_v7 = vsel %vm115_vm1, 0.0, %v130_v55 }
   0xf   :  { %24183 = vst [vmem:[#allocation9_spill] sm:$0xff] %v17739_v56  ;;  %24184 = vst [vmem:[#allocation10_spill] sm:$0xff] %v17743_v58  ;;  %v539_v2 = vcombine.low %v17720_v47, %v17739_v56  ;;  %v17762_v6 = vcombine.high %v17726_v49, %v17726_v49  ;;  %v17770_v10 = vcombine.high %v17743_v58, %v17743_v58  ;;  %v133_v13 = vrot.slane %v61_v0, 6 }
  0x10   :  { %v530_v60 = vrot.slane %v522_v51, %v17681_v18  ;;  %v537_v61 = vrot.slane %v523_v52, %v17681_v18  ;;  %v17773_v11 = vrot.slane %v224_v63, %v17681_v18  ;;  %v132_v12 = vsel %vm115_vm1, %v130_v55, %v131_v3  ;;  %v65_v51 = vld [vmem:[%s23849_s0 + $0x70] sm:$0xff]  ;;  %v66_v52 = vld [vmem:[%s23849_s0 + $0x78] sm:$0xf] }
  0x11   :  { %24185 = vst [vmem:[#allocation11_spill] sm:$0xff] %v17770_v10  ;;  %v547_v14 = vrot.slane %v539_v2, %v17681_v18  ;;  %v554_v15 = vrot.slane %v540_v62, %v17681_v18  ;;  %v225_v16 = vpack.c.bf16 %v132_v12, %v206_v7  ;;  %v135_v17 = vrot.slane %v62_v8, 6 }
  0x12   :  { %v538_v5 = vcombine.low %v530_v60, %v537_v61  ;;  %24186 = vst [vmem:[#allocation12_spill] sm:$0xff] %v17773_v11  ;;  %v556_v19 = vcombine.low %v17762_v6, %v17743_v58  ;;  %v15790_v20 = vpack.c.bf16 %v214_v57, %v214_v57  ;;  %v557_v21 = vcombine.low %v17770_v10, %v17773_v11 }
  0x13   :  { %v136_v22 = vsel %vm115_vm1, %v133_v13, %v135_v17  ;;  %v555_v23 = vcombine.low %v547_v14, %v554_v15  ;;  %v17787_v24 = vrot.slane %v225_v16, %v17681_v18  ;;  %v134_v27 = vsel %vm115_vm1, %v131_v3, %v133_v13  ;;  %v67_v14 = vld [vmem:[%s23849_s0 + $0x80] sm:$0xff]  ;;  %v68_v15 = vld [vmem:[%s23849_s0 + $0x88] sm:$0xff] }
  0x14   :  { %15808 = vmatmul.mubr.msk.bf16.vlgmr.msra.gmra.mrb[0].mxu0 %vm778_vm2, %v538_v5  ;;  %v215_v28 = vsel %vm212_vm0, %v136_v22, 0.0  ;;  %v564_v29 = vrot.slane %v556_v19, %v17681_v18  ;;  %v17799_v30 = vrot.slane %v15790_v20, %v17681_v18  ;;  %v17803_v31 = vcombine.high %v17773_v11, %v17773_v11 }
  0x15   :  { %1984 = vmatpush1.bf16.msra.mxu0 %v17060_v59  ;;  %869 = vmatprep.mubr.bf16.mxu0 %v23868_v1  ;;  %24187 = vst [vmem:[#allocation13_spill] sm:$0xff] %v17787_v24  ;;  %v571_v32 = vrot.slane %v557_v21, %v17681_v18  ;;  %v15791_v33 = vpack.c.bf16 %v132_v12, %v132_v12  ;;  %v137_v34 = vrot.slane %v63_v25, 6  ;;  %v138_v35 = vrot.slane %v64_v26, 6 }
  0x16   :  { %15830 = vmatprep.subr.msk.bf16.mxu0 %vm212_vm0, %v17063_v4  ;;  %24188 = vst [vmem:[#allocation14_spill] sm:$0xff] %v17799_v30  ;;  %24189 = vst [vmem:[#allocation15_spill] sm:$0xff] %v17803_v31  ;;  %v17809_v38 = vcombine.high %v17787_v24, %v17787_v24  ;;  %v226_v39 = vpack.c.bf16 %v215_v28, %v134_v27  ;;  %v573_v45 = vcombine.low %v17803_v31, %v17799_v30  ;;  %vm1075_vm3 = vsmask.f32 1280 }
  0x17   :  { %v572_v42 = vcombine.low %v564_v29, %v571_v32  ;;  %v17821_v46 = vrot.slane %v15791_v33, %v17681_v18  ;;  %v139_v50 = vsel %vm115_vm1, %v137_v34, %v138_v35  ;;  %v207_v55 = vsel %vm115_vm1, 0.0, %v137_v34  ;;  %v70_v29 = vld [vmem:[%s23849_s0 + $0x98] sm:$0xf] }
  0x18   :  { %24190 = vst [vmem:[#allocation16_spill] sm:$0xff] %v17809_v38  ;;  %v574_v53 = vcombine.low %v17787_v24, %v17809_v38  ;;  %v17833_v54 = vrot.slane %v226_v39, %v17681_v18  ;;  %v1978_v57 = vsel %vm212_vm0, %v17065_v40, 0  ;;  %v140_v59 = vrot.slane %v65_v51, 6 }
  0x19   :  { %24191 = vst [vmem:[#allocation17_spill] sm:$0xff] %v17821_v46  ;;  %1986 = vmatpush1.bf16.msra.mxu0 %v1978_v57  ;;  %v142_v60 = vrot.slane %v66_v52, 6  ;;  %v227_v61 = vpack.c.bf16 %v139_v50, %v207_v55  ;;  %v581_v62 = vrot.slane %v573_v45, %v17681_v18  ;;  %v17842_v0 = vcombine.high %v17821_v46, %v17821_v46 }
  0x1a   :  { %24192 = vst [vmem:[#allocation18_spill] sm:$0xff] %v17833_v54  ;;  %2704 = vmatprep.subr.bf16.mxu0 %v17068_v41  ;;  %v588_v63 = vrot.slane %v574_v53, %v17681_v18  ;;  %v17846_v2 = vcombine.high %v17833_v54, %v17833_v54  ;;  %v15792_v3 = vpack.c.bf16 %v215_v28, %v215_v28  ;;  %v144_v22 = vrot.slane %v67_v14, 6  ;;  %v69_v28 = vld [vmem:[%s23849_s0 + $0x90] sm:$0xff] }
  0x1b   :  { %24193 = vst [vmem:[#allocation19_spill] sm:$0xff] %v17842_v0  ;;  %v143_v4 = vsel %vm115_vm1, %v140_v59, %v142_v60  ;;  %v15793_v5 = vpack.c.bf16 %v139_v50, %v139_v50  ;;  %v17851_v7 = vrot.slane %v227_v61, %v17681_v18  ;;  %v590_v12 = vcombine.low %v17821_v46, %v17842_v0  ;;  %v71_v60 = vld [vmem:[%s23849_s0 + $0xa0] sm:$0xff]  ;;  %v72_v61 = vld [vmem:[%s23849_s0 + $0xa8] sm:$0xff] }
  0x1c   :  { %15809 = vmatmul.mubr.msk.bf16.gmra.mrb[4].mxu0 %vm778_vm2, %v555_v23  ;;  %24194 = vst [vmem:[#allocation20_spill] sm:$0xff] %v17846_v2  ;;  %v589_v8 = vcombine.low %v581_v62, %v588_v63  ;;  %v591_v13 = vcombine.low %v17833_v54, %v17846_v2  ;;  %v141_v16 = vsel %vm115_vm1, %v138_v35, %v140_v59  ;;  %v216_v17 = vsel %vm212_vm0, %v143_v4, 0.0 }
  0x1d   :  { %879 = vmatprep.mubr.bf16.mxu0 %v23868_v1  ;;  %24195 = vst [vmem:[#allocation21_spill] sm:$0xff] %v17851_v7  ;;  %v17866_v19 = vrot.slane %v15792_v3, %v17681_v18  ;;  %v17869_v20 = vrot.slane %v15793_v5, %v17681_v18  ;;  %v17873_v21 = vcombine.high %v17851_v7, %v17851_v7  ;;  %v145_v23 = vrot.slane %v68_v15, 6 }
  0x1e   :  { %v598_v25 = vrot.slane %v590_v12, %v17681_v18  ;;  %v605_v26 = vrot.slane %v591_v13, %v17681_v18  ;;  %v228_v27 = vpack.c.bf16 %v216_v17, %v141_v16  ;;  %v208_v35 = vsel %vm115_vm1, 0.0, %v144_v22  ;;  %v73_v12 = vld [vmem:[%s23849_s0 + $0xb0] sm:$0xff]  ;;  %v74_v13 = vld [vmem:[%s23849_s0 + $0xb8] sm:$0xf] }
  0x1f   :  { %24196 = vst [vmem:[#allocation22_spill] sm:$0xff] %v17866_v19  ;;  %v607_v32 = vcombine.low %v17866_v19, %v17851_v7  ;;  %v608_v33 = vcombine.low %v17873_v21, %v17869_v20  ;;  %v146_v34 = vsel %vm115_vm1, %v144_v22, %v145_v23  ;;  %v15794_v40 = vpack.c.bf16 %v216_v17, %v216_v17 }
  0x20   :  { %v606_v39 = vcombine.low %v598_v25, %v605_v26  ;;  %v17892_v41 = vrot.slane %v228_v27, %v17681_v18  ;;  %v149_v45 = vrot.slane %v70_v29, 6  ;;  %v229_v50 = vpack.c.bf16 %v146_v34, %v208_v35  ;;  %v78_v35 = vld [vmem:[%s23849_s0 + $0xd8] sm:$0xf] }
  0x21   :  { %v15795_v51 = vpack.c.bf16 %v146_v34, %v146_v34  ;;  %v615_v52 = vrot.slane %v607_v32, %v17681_v18  ;;  %v622_v53 = vrot.slane %v608_v33, %v17681_v18  ;;  %v17898_v55 = vcombine.high %v17869_v20, %v17869_v20  ;;  %v77_v34 = vld [vmem:[%s23849_s0 + $0xd0] sm:$0xff] }
  0x22   :  { %24197 = vst [vmem:[#allocation23_spill] sm:$0xff] %v17892_v41  ;;  %v17902_v57 = vrot.slane %v15794_v40, %v17681_v18  ;;  %v17906_v59 = vcombine.high %v17892_v41, %v17892_v41  ;;  %v17917_v63 = vrot.slane %v229_v50, %v17681_v18  ;;  %v151_v15 = vrot.slane %v71_v60, 6  ;;  %v76_v50 = vld [vmem:[%s23849_s0 + $0xc8] sm:$0xff] }
  0x23   :  { %v17920_v3 = vrot.slane %v15795_v51, %v17681_v18  ;;  %v623_v4 = vcombine.low %v615_v52, %v622_v53  ;;  %v624_v5 = vcombine.low %v17898_v55, %v17892_v41  ;;  %v152_v16 = vrot.slane %v72_v61, 6 }
  0x24   :  { %15810 = vmatmul.mubr.msk.bf16.gmra.mrb[8].mxu0 %vm778_vm2, %v572_v42  ;;  %v147_v42 = vrot.slane %v69_v28, 6  ;;  %v625_v14 = vcombine.low %v17906_v59, %v17902_v57  ;;  %v17936_v22 = vcombine.high %v17917_v63, %v17917_v63  ;;  %v154_v25 = vrot.slane %v73_v12, 6 }
  0x25   :  { %889 = vmatprep.mubr.bf16.mxu0 %v23868_v1  ;;  %v156_v26 = vrot.slane %v74_v13, 6  ;;  %v632_v28 = vrot.slane %v624_v5, %v17681_v18  ;;  %v153_v32 = vsel %vm115_vm1, %v151_v15, %v152_v16  ;;  %v209_v33 = vsel %vm115_vm1, 0.0, %v151_v15 }
  0x26   :  { %v150_v62 = vsel %vm115_vm1, %v147_v42, %v149_v45  ;;  %v639_v29 = vrot.slane %v625_v14, %v17681_v18  ;;  %v75_v45 = vld [vmem:[%s23849_s0 + $0xc0] sm:$0xff]  ;;  %v231_v51 = vpack.c.bf16 %v153_v32, %v209_v33  ;;  %v15797_v61 = vpack.c.bf16 %v153_v32, %v153_v32 }
  0x27   :  { %v217_v17 = vsel %vm212_vm0, %v150_v62, 0.0  ;;  %v161_v62 = vrot.slane %v77_v34, 6  ;;  %v155_v5 = vsel %vm115_vm1, %v152_v16, %v154_v25  ;;  %v158_v12 = vrot.slane %v75_v45, 6  ;;  %v79_v45 = vld [vmem:[%s23849_s0 + $0xe0] sm:$0xff] }
  0x28   :  { %v15796_v52 = vpack.c.bf16 %v217_v17, %v217_v17  ;;  %v640_v60 = vcombine.low %v632_v28, %v639_v29  ;;  %v159_v13 = vrot.slane %v76_v50, 6  ;;  %v80_v50 = vld [vmem:[%s23849_s0 + $0xe8] sm:$0xff]  ;;  %vm1076_vm4 = vsmask.f32 3336 }
  0x29   :  { %v210_v32 = vsel %vm115_vm1, 0.0, %v158_v12  ;;  %vm1078_vm5 = vsmask.f32 5392  ;;  %vm1077_vm6 = vmor %vm1075_vm3, %vm1076_vm4  ;;  %vm1080_vm8 = vsmask.f32 7448  ;;  %vm2212_vm10 = vcmask 1040384  }
  0x2a   :  { %v160_v29 = vsel %vm115_vm1, %v158_v12, %v159_v13  ;;  %v165_v12 = vrot.slane %v79_v45, 6  ;;  %vm1079_vm7 = vmor %vm1077_vm6, %vm1078_vm5  ;;  %vm2213_vm11 = vcmask 1042434   ;;  %vm2215_vm13 = vcmask 1044484  }
  0x2b   :  { %vm18164_vm9 = vmor %vm1079_vm7, %vm1080_vm8  ;;  %vm24125_vm15 = vcmask 1046534   ;;  %vm2933_vm4 = vsmask.f32 256  ;;  %vm2934_vm5 = vsmask.f32 2312 }
  0x2c   :  { %15811 = vmatmul.mubr.msk.bf16.gmra.mrb[12].mxu0 %vm778_vm2, %v589_v8  ;;  %v148_v8 = vsel %vm115_vm1, %v145_v23, %v147_v42  ;;  %v17940_v23 = vcombine.high %v17920_v3, %v17920_v3  ;;  %v157_v42 = vsel %vm115_vm1, %v154_v25, %v156_v26  ;;  %v17973_v26 = vrot.slane %v15796_v52, %v17681_v18  ;;  %vm2214_vm12 = vmor %vm2212_vm10, %vm2213_vm11 }
  0x2d   :  { %899 = vmatprep.mubr.bf16.mxu0 %v23868_v1  ;;  %v230_v27 = vpack.c.bf16 %v217_v17, %v148_v8  ;;  %v218_v8 = vsel %vm212_vm0, %v157_v42, 0.0  ;;  %v17984_v25 = vrot.slane %v15797_v61, %v17681_v18  ;;  %vm2216_vm14 = vmor %vm2214_vm12, %vm2215_vm13  ;;  %vm2936_vm7 = vsmask.f32 4368 }
  0x2e   :  { %24198 = vst [vmem:[#allocation24_spill] sm:$0xff] %v17940_v23  ;;  %v642_v40 = vcombine.low %v17920_v3, %v17940_v23  ;;  %24200 = vst [vmem:[#allocation26_spill] sm:$0xff] %v17973_v26  ;;  %v232_v16 = vpack.c.bf16 %v218_v8, %v155_v5  ;;  %v15798_v61 = vpack.c.bf16 %v218_v8, %v218_v8  ;;  %vm9024_vm12 = vcmask 1043459  }
  0x2f   :  { %v17966_v53 = vrot.slane %v230_v27, %v17681_v18  ;;  %v17980_v27 = vrot.slane %v231_v51, %v17681_v18  ;;  %24203 = vst [vmem:[#allocation29_spill] sm:$0xff] %v17984_v25  ;;  %v18010_v51 = vcombine.high %v17984_v25, %v17984_v25  ;;  %vm18851_vm3 = vmor %vm2216_vm14, %vm24125_vm15  ;;  %vm24126_vm14 = vcmask 1045509  }
  0x30   :  { %v656_v15 = vrot.slane %v642_v40, %v17681_v18  ;;  %v162_v40 = vsel %vm115_vm1, %v159_v13, %v161_v62  ;;  %v18013_v52 = vrot.slane %v232_v16, %v17681_v18  ;;  %v166_v13 = vrot.slane %v80_v50, 6  ;;  %vm2935_vm6 = vmor %vm2933_vm4, %vm2934_vm5 }
  0x31   :  { %24199 = vst [vmem:[#allocation25_spill] sm:$0xff] %v17966_v53  ;;  %v17977_v17 = vcombine.high %v17966_v53, %v17966_v53  ;;  %24202 = vst [vmem:[#allocation28_spill] sm:$0xff] %v17980_v27  ;;  %v17992_v34 = vcombine.high %v17980_v27, %v17980_v27 }
  0x32   :  { %24205 = vst [vmem:[#allocation31_spill] sm:$0xff] %v18010_v51  ;;  %24206 = vst [vmem:[#allocation32_spill] sm:$0xff] %v18013_v52  ;;  %v676_v16 = vcombine.low %v18010_v51, %v18013_v52  ;;  %v18028_v8 = vcombine.high %v18013_v52, %v18013_v52  ;;  %v167_v50 = vsel %vm115_vm1, %v165_v12, %v166_v13  ;;  %v23877_v52 = vshll.u32 %v17720_v47, 16 }
  0x33   :  { %24201 = vst [vmem:[#allocation27_spill] sm:$0xff] %v17977_v17  ;;  %24204 = vst [vmem:[#allocation30_spill] sm:$0xff] %v17992_v34 }
  0x34   :  { %15812 = vmatmul.mubr.msk.bf16.gmra.mrb[16].mxu0 %vm778_vm2, %v606_v39  ;;  %v641_v39 = vcombine.low %v17917_v63, %v17936_v22  ;;  %24208 = vst [vmem:[#allocation34_spill] sm:$0xff] %v18028_v8  ;;  %v690_v51 = vrot.slane %v676_v16, %v17681_v18  ;;  %vm2937_vm8 = vmor %vm2935_vm6, %vm2936_vm7  ;;  %vm9500_vm6 = vcmask 326656  }
  0x35   :  { %909 = vmatprep.mubr.bf16.mxu0 %v23868_v1 }
  0x36   :  { %v649_v14 = vrot.slane %v641_v39, %v17681_v18  ;;  %v659_v39 = vcombine.low %v17973_v26, %v17980_v27 }
  0x38   :  { %v657_v33 = vcombine.low %v649_v14, %v656_v15  ;;  %v673_v15 = vrot.slane %v659_v39, %v17681_v18  ;;  %v23872_v39 = vshrl.u32 %v17720_v47, 16 }
  0x3c   :  { %15813 = vmatmul.mubr.msk.bf16.gmra.mrb[20].mxu0 %vm778_vm2, %v623_v4  ;;  %v163_v4 = vrot.slane %v78_v35, 6  ;;  %v658_v35 = vcombine.low %v17966_v53, %v17977_v17 }
  0x3d   :  { %919 = vmatprep.mubr.bf16.mxu0 %v23868_v1 }
  0x3e   :  { %v164_v28 = vsel %vm115_vm1, %v161_v62, %v163_v4  ;;  %v15799_v62 = vpack.c.bf16 %v160_v29, %v160_v29  ;;  %v675_v4 = vcombine.low %v17992_v34, %v17984_v25  ;;  %v666_v14 = vrot.slane %v658_v35, %v17681_v18 }
  0x3f   :  { %v18000_v42 = vsel %vm212_vm0, %v164_v28, 0.0  ;;  %v18024_v28 = vrot.slane %v15798_v61, %v17681_v18 }
  0x40   :  { %v234_v5 = vpack.c.bf16 %v18000_v42, %v162_v40  ;;  %v18041_v35 = vrot.slane %v15799_v62, %v17681_v18  ;;  %v683_v40 = vrot.slane %v675_v4, %v17681_v18  ;;  %v674_v62 = vcombine.low %v666_v14, %v673_v15 }
  0x41   :  { %24207 = vst [vmem:[#allocation33_spill] sm:$0xff] %v18024_v28 }
  0x42   :  { %24210 = vst [vmem:[#allocation36_spill] sm:$0xff] %v18041_v35  ;;  %v18046_v45 = vrot.slane %v234_v5, %v17681_v18  ;;  %v692_v5 = vcombine.low %v18028_v8, %v18024_v28  ;;  %v691_v28 = vcombine.low %v683_v40, %v690_v51 }
  0x44   :  { %15814 = vmatmul.mubr.msk.bf16.gmra.mrb[24].mxu0 %vm778_vm2, %v640_v60  ;;  %v233_v60 = vpack.c.bf16 %v160_v29, %v210_v32  ;;  %v81_v32 = vld [vmem:[%s23849_s0 + $0xf0] sm:$0xff]  ;;  %24211 = vst [vmem:[#allocation37_spill] sm:$0xff] %v18046_v45  ;;  %v18073_v14 = vcombine.high %v18046_v45, %v18046_v45 }
  0x45   :  { %929 = vmatprep.mubr.bf16.mxu0 %v23868_v1  ;;  %v168_v61 = vrot.slane %v81_v32, 6 }
  0x46   :  { %v18031_v29 = vrot.slane %v233_v60, %v17681_v18  ;;  %v211_v60 = vsel %vm115_vm1, 0.0, %v165_v12  ;;  %v18064_v12 = vcombine.high %v18041_v35, %v18041_v35  ;;  %24216 = vst [vmem:[#allocation42_spill] sm:$0xff] %v18073_v14  ;;  %v710_v51 = vcombine.low %v18046_v45, %v18073_v14 }
  0x47   :  { %v235_v15 = vpack.c.bf16 %v167_v50, %v211_v60  ;;  %v15801_v60 = vpack.c.bf16 %v167_v50, %v167_v50 }
  0x48   :  { %24209 = vst [vmem:[#allocation35_spill] sm:$0xff] %v18031_v29  ;;  %v18058_v4 = vcombine.high %v18031_v29, %v18031_v29  ;;  %24214 = vst [vmem:[#allocation40_spill] sm:$0xff] %v18064_v12 }
  0x49   :  { %v18093_v40 = vrot.slane %v235_v15, %v17681_v18 }
  0x4a   :  { %24213 = vst [vmem:[#allocation39_spill] sm:$0xff] %v18058_v4  ;;  %v693_v8 = vcombine.low %v18031_v29, %v18058_v4  ;;  %v23891_v29 = vshll.u32 %v17713_v43, 16 }
  0x4b   :  { %24218 = vst [vmem:[#allocation43_spill] sm:$0xff] %v18093_v40 }
  0x4c   :  { %15815 = vmatmul.mubr.msk.bf16.gmra.mrb[28].mxu0 %vm778_vm2, %v657_v33  ;;  %v82_v33 = vld [vmem:[%s23849_s0 + $0xf8] sm:$0xf]  ;;  %v707_v45 = vrot.slane %v693_v8, %v17681_v18  ;;  %v18121_v8 = vcombine.high %v18093_v40, %v18093_v40 }
  0x4d   :  { %939 = vmatprep.mubr.bf16.mxu0 %v23868_v1  ;;  %v170_v9 = vrot.slane %v82_v33, 6  ;;  %v18053_v1 = vrot.slane %v23872_v39, 7  ;;  %v1086_v39 = vshll.u32 %v17702_v36, 16  ;;  %v169_v33 = vsel %vm115_vm1, %v166_v13, %v168_v61 }
  0x4e   :  { %v18115_v13 = vrot.slane %v15801_v60, %v17681_v18  ;;  %24222 = vst [vmem:[#allocation46_spill] sm:$0xff] %v18121_v8 }
  0x4f   :  { %24212 = vst [vmem:[#allocation38_spill] sm:$0xff] %v18053_v1  ;;  %v18069_v32 = vor.u32 %v18053_v1, %v23877_v52  ;;  %v171_v16 = vsel %vm115_vm1, %v168_v61, %v170_v9  ;;  %v18082_v52 = vrot.slane %v692_v5, %v17681_v18  ;;  %v15800_v1 = vpack.c.bf16 %v18000_v42, %v18000_v42 }
  0x50   :  { %v709_v9 = vcombine.low %v18041_v35, %v18064_v12  ;;  %v24219_v42 = vshrl.u32 %v17702_v36, 16  ;;  %v1088_v4 = vrot.slane %v1086_v39, 7  ;;  %v18112_v39 = vrot.slane %v710_v51, %v17681_v18  ;;  %24221 = vst [vmem:[#allocation45_spill] sm:$0xff] %v18115_v13 }
  0x51   :  { %24215 = vst [vmem:[#allocation41_spill] sm:$0xff] %v18069_v32  ;;  %v24217_v32 = vmov 0   ;;  %v24223_v51 = vshrl.u32 %v17713_v43, 16  ;;  %v24226_v36 = vshll.u32 %v17717_v44, 16  ;;  %v24239_v35 = vshrl.u32 %v17723_v48, 16 }
  0x52   :  { %v1085_v5 = vrot.slane %v24219_v42, 6  ;;  %v18109_v42 = vrot.slane %v709_v9, %v17681_v18  ;;  %v18125_v9 = vrot.slane %v23891_v29, 7 }
  0x53   :  { %v1098_v15 = vrot.slane %v24223_v51, 6  ;;  %v18138_v12 = vrot.slane %v24226_v36, 7  ;;  %v708_v51 = vcombine.low %v18082_v52, %v707_v45  ;;  %v18151_v36 = vcombine.high %v18115_v13, %v18115_v13 }
  0x54   :  { %15816 = vmatmul.mubr.msk.bf16.gmra.mrb[32].mxu0 %vm778_vm2, %v674_v62  ;;  %v220_v62 = vsel %vm212_vm0, %v171_v16, 0.0  ;;  %v18106_v16 = vrot.slane %v15800_v1, %v17681_v18  ;;  %v1089_v1 = vor.u32 %v1088_v4, %v1085_v5  ;;  %v24227_v4 = vshrl.u32 %v17717_v44, 16 }
  0x55   :  { %949 = vmatprep.mubr.bf16.mxu0 %v24217_v32  ;;  %v236_v61 = vpack.c.bf16 %v220_v62, %v169_v33  ;;  %v15802_v50 = vpack.c.bf16 %v220_v62, %v220_v62  ;;  %v24224_v33 = vshll.u32 %v17705_v37, 16  ;;  %v24225_v62 = vshrl.u32 %v17705_v37, 16  ;;  %24228 = vst [vmem:[#allocation47_spill] sm:$0xff] %v18151_v36 }
  0x56   :  { %24220 = vst [vmem:[#allocation44_spill] sm:$0xff] %v18106_v16  ;;  %v1118_v5 = vrot.slane %v24227_v4, 6  ;;  %v725_v52 = vcombine.low %v18109_v42, %v18112_v39  ;;  %v727_v45 = vcombine.low %v18121_v8, %v18115_v13  ;;  %v24234_v42 = vshll.u32 %v17739_v56, 16 }
  0x57   :  { %v18132_v60 = vrot.slane %v24224_v33, 7  ;;  %v1108_v14 = vrot.slane %v24225_v62, 6  ;;  %v726_v62 = vcombine.low %v18106_v16, %v18093_v40  ;;  %v18154_v4 = vrot.slane %v236_v61, %v17681_v18 }
  0x58   :  { %v18157_v29 = vrot.slane %v15802_v50, %v17681_v18  ;;  %v1090_v33 = vrot.slane %v1089_v1, 2  ;;  %v1119_v61 = vor.u32 %v1118_v5, %v18138_v12  ;;  %v24233_v50 = vshrl.u32 %v17720_v47, 16 }
  0x59   :  { %24229 = vst [vmem:[#allocation48_spill] sm:$0xff] %v18154_v4  ;;  %v1109_v37 = vor.u32 %v1108_v14, %v18132_v60  ;;  %v18175_v39 = vrot.slane %v24234_v42, 7  ;;  %v24235_v1 = vshrl.u32 %v17739_v56, 16  ;;  %v18182_v14 = vrot.slane %v726_v62, %v17681_v18 }
  0x5a   :  { %24230 = vst [vmem:[#allocation49_spill] sm:$0xff] %v18157_v29  ;;  %v1128_v43 = vrot.slane %v24233_v50, 6  ;;  %v18186_v5 = vcombine.high %v18154_v4, %v18154_v4  ;;  %v24237_v50 = vshll.u32 %v17720_v47, 16  ;;  %v1160_v42 = vshll.u32 %v17726_v49, 16 }
  0x5b   :  { %v18192_v16 = vrot.slane %v727_v45, %v17681_v18  ;;  %v1095_v62 = vsel %vm18164_vm9, %v1090_v33, %v18125_v9  ;;  %v18201_v8 = vcombine.high %v17723_v48, %v17723_v48  ;;  %v1120_v56 = vrot.slane %v1119_v61, 2 }
  0x5c   :  { %15817 = vmatmul.mubr.msk.bf16.gmra.mrb[36].mxu0 %vm778_vm2, %v691_v28  ;;  %v1099_v28 = vor.u32 %v1098_v15, %v18125_v9  ;;  %v1138_v15 = vrot.slane %v24235_v1, 6  ;;  %24236 = vst [vmem:[#allocation50_spill] sm:$0xff] %v18186_v5  ;;  %v1124_v40 = vrot.slane %v24237_v50, 7  ;;  %v743_v1 = vcombine.low %v18151_v36, %v18154_v4 }
  0x5d   :  { %959 = vmatprep.mubr.bf16.mxu0 %v24217_v32  ;;  %v1110_v50 = vrot.slane %v1109_v37, 2  ;;  %v24238_v4 = vshll.u32 %v17723_v48, 16  ;;  %v1148_v9 = vrot.slane %v24239_v35, 6  ;;  %v24240_v33 = vshrl.u32 %v17726_v49, 16 }
  0x5e   :  { %v1100_v13 = vrot.slane %v1099_v28, 2  ;;  %v1129_v47 = vor.u32 %v1128_v43, %v1124_v40  ;;  %v1139_v45 = vor.u32 %v1138_v15, %v18175_v39  ;;  %v1162_v34 = vrot.slane %v1160_v42, 7 }
  0x5f   :  { %v1144_v36 = vrot.slane %v24238_v4, 7  ;;  %v1159_v25 = vrot.slane %v24240_v33, 6  ;;  %v1115_v42 = vsel %vm18164_vm9, %v1110_v50, %v18138_v12  ;;  %v1125_v28 = vsel %vm18164_vm9, %v1120_v56, %v1124_v40 }
  0x60   :  { %v1105_v35 = vsel %vm18164_vm9, %v1100_v13, %v18132_v60  ;;  %v1130_v61 = vrot.slane %v1129_v47, 2  ;;  %v1140_v37 = vrot.slane %v1139_v45, 2  ;;  %v24241_v4 = vshrl.u32 %v17762_v6, 16 }
  0x61   :  { %v1149_v15 = vor.u32 %v1148_v9, %v1144_v36  ;;  %v24242_v13 = vshll.u32 %v17743_v58, 16  ;;  %v24243_v12 = vshrl.u32 %v17743_v58, 16  ;;  %v24244_v33 = vshll.u32 %v17770_v10, 16 }
  0x62   :  { %v1172_v49 = vrot.slane %v24241_v4, 6  ;;  %v24245_v56 = vshrl.u32 %v17770_v10, 16  ;;  %v24246_v40 = vshll.u32 %v17773_v11, 16  ;;  %v744_v9 = vcombine.low %v18186_v5, %v18157_v29 }
  0x63   :  { %v18233_v60 = vrot.slane %v24242_v13, 7  ;;  %v1182_v50 = vrot.slane %v24243_v12, 6  ;;  %v18239_v43 = vrot.slane %v24244_v33, 7  ;;  %v18253_v4 = vrot.slane %v743_v1, %v17681_v18 }
  0x64   :  { %15818 = vmatmul.mubr.msk.bf16.gmra.mrb[40].mxu0 %vm778_vm2, %v708_v51  ;;  %v1163_v51 = vor.u32 %v1162_v34, %v1159_v25  ;;  %v1192_v47 = vrot.slane %v24245_v56, 6  ;;  %v18245_v25 = vrot.slane %v24246_v40, 7  ;;  %v24247_v34 = vshrl.u32 %v17773_v11, 16 }
  0x65   :  { %969 = vmatprep.mubr.bf16.mxu0 %v24217_v32  ;;  %v1679_v33 = vcombine.low %v1095_v62, %v1105_v35  ;;  %v24248_v13 = vshll.u32 %v17762_v6, 16  ;;  %v1680_v56 = vcombine.low %v1115_v42, %v1125_v28  ;;  %v1135_v40 = vsel %vm18164_vm9, %v1130_v61, %v18175_v39 }
  0x66   :  { %v1202_v45 = vrot.slane %v24247_v34, 6  ;;  %v1150_v34 = vrot.slane %v1149_v15, 2  ;;  %v1145_v10 = vsel %vm18164_vm9, %v1140_v37, %v1144_v36  ;;  %v1164_v1 = vrot.slane %v1163_v51, 2 }
  0x67   :  { %v1168_v12 = vrot.slane %v24248_v13, 7  ;;  %v1183_v62 = vor.u32 %v1182_v50, %v18233_v60  ;;  %v1193_v35 = vor.u32 %v1192_v47, %v18239_v43  ;;  %v23931_v28 = vshll.u32 %v17803_v31, 16 }
  0x68   :  { %v1203_v13 = vor.u32 %v1202_v45, %v18245_v25  ;;  %v23932_v42 = vshrl.u32 %v17803_v31, 16  ;;  %v742_v39 = vcombine.low %v18182_v14, %v18192_v16  ;;  %v758_v61 = vrot.slane %v744_v9, %v17681_v18 }
  0x69   :  { %v1173_v58 = vor.u32 %v1172_v49, %v1168_v12  ;;  %v23929_v15 = vshll.u32 %v17799_v30, 16  ;;  %v23930_v36 = vshrl.u32 %v17799_v30, 16  ;;  %v1687_v49 = vrot.slane %v1679_v33, %v17681_v18 }
  0x6a   :  { %v1694_v51 = vrot.slane %v1680_v56, %v17681_v18  ;;  %v18279_v50 = vcombine.low %v1135_v40, %v1145_v10  ;;  %v1169_v47 = vsel %vm18164_vm9, %v1164_v1, %v1168_v12  ;;  %v1184_v16 = vrot.slane %v1183_v62, 2 }
  0x6b   :  { %v1174_v45 = vrot.slane %v1173_v58, 2  ;;  %v18285_v14 = vcombine.high %v17799_v30, %v17799_v30  ;;  %v1194_v9 = vrot.slane %v1193_v35, 2  ;;  %v1208_v33 = vrot.slane %v23931_v28, 7 }
  0x6c   :  { %15819 = vmatmul.mubr.msk.bf16.gmra.mrb[44].mxu0 %vm778_vm2, %v725_v52  ;;  %v24249_v52 = vshll.u32 %v18201_v8, 16  ;;  %v1212_v56 = vrot.slane %v23932_v42, 6  ;;  %v18294_v10 = vrot.slane %v23929_v15, 7  ;;  %v1222_v58 = vrot.slane %v23930_v36, 6 }
  0x6d   :  { %979 = vmatprep.mubr.bf16.mxu0 %v24217_v32  ;;  %v1234_v12 = vshll.u32 %v17787_v24, 16  ;;  %v759_v40 = vcombine.low %v18253_v4, %v758_v61  ;;  %v1179_v35 = vsel %vm18164_vm9, %v1174_v45, %v18233_v60  ;;  %v23934_v45 = vshll.u32 %v17821_v46, 16 }
  0x6e   :  { %v1154_v11 = vrot.slane %v24249_v52, 7  ;;  %v1204_v52 = vrot.slane %v1203_v13, 2  ;;  %v1189_v13 = vsel %vm18164_vm9, %v1184_v16, %v18239_v43  ;;  %v1213_v61 = vor.u32 %v1212_v56, %v1208_v33 }
  0x6f   :  { %v1236_v60 = vrot.slane %v1234_v12, 7  ;;  %v23943_v43 = vshrl.u32 %v17809_v38, 16  ;;  %v23933_v16 = vshll.u32 %v17842_v0, 16  ;;  %v23939_v56 = vshll.u32 %v17846_v2, 16 }
  0x70   :  { %v1155_v37 = vsel %vm18164_vm9, %v1150_v34, %v1154_v11  ;;  %v23928_v11 = vshrl.u32 %v17787_v24, 16  ;;  %v1695_v34 = vcombine.low %v1687_v49, %v1694_v51  ;;  %v1209_v4 = vsel %vm18164_vm9, %v1204_v52, %v1208_v33 }
  0x71   :  { %v18302_v1 = vcombine.low %v1155_v37, %v1169_v47  ;;  %v23941_v49 = vshll.u32 %v18285_v14, 16  ;;  %v1223_v51 = vor.u32 %v1222_v58, %v18294_v10  ;;  %v23937_v47 = vshll.u32 %v17809_v38, 16 }
  0x72   :  { %v1233_v37 = vrot.slane %v23928_v11, 6  ;;  %v23936_v52 = vshll.u32 %v17833_v54, 16  ;;  %v23938_v33 = vshrl.u32 %v17833_v54, 16  ;;  %v18330_v58 = vcombine.low %v1179_v35, %v1189_v13 }
  0x73   :  { %v1228_v11 = vrot.slane %v23941_v49, 7  ;;  %v23940_v15 = vshrl.u32 %v17846_v2, 16  ;;  %v1214_v36 = vrot.slane %v1213_v61, 2  ;;  %v1224_v28 = vrot.slane %v1223_v51, 2 }
  0x74   :  { %15820 = vmatmul.mubr.msk.bf16.gmra.mrb[48].mxu0 %vm778_vm2, %v742_v39  ;;  %v1199_v39 = vsel %vm18164_vm9, %v1194_v9, %v18245_v25  ;;  %v23942_v25 = vshrl.u32 %v17821_v46, 16  ;;  %v23935_v9 = vshrl.u32 %v17842_v0, 16  ;;  %v1237_v42 = vor.u32 %v1236_v60, %v1233_v37 }
  0x75   :  { %989 = vmatprep.mubr.bf16.mxu0 %v24217_v32  ;;  %v18332_v12 = vcombine.low %v1199_v39, %v1209_v4  ;;  %v18340_v62 = vrot.slane %v23937_v47, 7  ;;  %v1246_v35 = vrot.slane %v23943_v43, 6  ;;  %v18347_v13 = vrot.slane %v23934_v45, 7 }
  0x76   :  { %v1256_v39 = vrot.slane %v23942_v25, 6  ;;  %v1266_v4 = vrot.slane %v23935_v9, 6  ;;  %v18359_v61 = vrot.slane %v23936_v52, 7  ;;  %v1276_v51 = vrot.slane %v23938_v33, 6 }
  0x77   :  { %v18365_v37 = vrot.slane %v23939_v56, 7  ;;  %v1286_v60 = vrot.slane %v23940_v15, 6  ;;  %v1308_v9 = vshll.u32 %v17851_v7, 16  ;;  %v1711_v52 = vrot.slane %v18302_v1, %v17681_v18  ;;  %v17066_v15 = vld [vmem:[%s23848_s1 + $0x40] ss:$8 sps:$4 sm:$0xff]  }
  0x78   :  { %v1721_v47 = vrot.slane %v18330_v58, %v17681_v18  ;;  %v1728_v33 = vrot.slane %v18332_v12, %v17681_v18  ;;  %v1219_v56 = vsel %vm18164_vm9, %v1214_v36, %v18294_v10  ;;  %v1229_v49 = vsel %vm18164_vm9, %v1224_v28, %v1228_v11  ;;  %v17069_v12 = vld [vmem:[%s23848_s1 + $0x54] ss:$8 sps:$4 sm:$0x3f]   ;;  %v17071_v28 = vld [vmem:[%s23848_s1 + $0x50] ss:$8 sps:$4 sm:$0x3f]  }
  0x79   :  { %v1247_v25 = vor.u32 %v1246_v35, %v18340_v62  ;;  %v1257_v1 = vor.u32 %v1256_v39, %v18347_v13  ;;  %v1238_v43 = vrot.slane %v1237_v42, 2  ;;  %v1277_v10 = vor.u32 %v1276_v51, %v18359_v61 }
  0x7a   :  { %v18396_v45 = vcombine.high %v17866_v19, %v17866_v19  ;;  %v1287_v11 = vor.u32 %v1286_v60, %v18365_v37  ;;  %v24250_v39 = vshrl.u32 %v17851_v7, 16  ;;  %v1310_v58 = vrot.slane %v1308_v9, 7 }
  0x7b   :  { %v23968_v51 = vshrl.u32 %v17873_v21, 16  ;;  %v1248_v60 = vrot.slane %v1247_v25, 2  ;;  %v18412_v0 = vcombine.low %v1219_v56, %v1229_v49  ;;  %v2699_v2 = vsel %vm212_vm0, %v17071_v28, 0 }
  0x7c   :  { %15821 = vmatmul.mubr.msk.bf16.gmra.mrb[52].mxu0 %vm778_vm2, %v759_v40  ;;  %v18353_v40 = vrot.slane %v23933_v16, 7  ;;  %v23950_v16 = vshrl.u32 %v17866_v19, 16  ;;  %v1307_v42 = vrot.slane %v24250_v39, 6  ;;  %v24251_v39 = vshll.u32 %v17866_v19, 16 }
  0x7d   :  { %2015 = vmatprep.mubr.bf16.mxu0 %v24217_v32  ;;  %v24252_v49 = vrot.slane %v18279_v50, %v17681_v18  ;;  %v1288_v56 = vrot.slane %v1287_v11, 2  ;;  %v1729_v46 = vcombine.low %v1721_v47, %v1728_v33  ;;  %v1243_v50 = vsel %vm18164_vm9, %v1238_v43, %v18340_v62 }
  0x7e   :  { %v1267_v36 = vor.u32 %v1266_v4, %v18353_v40  ;;  %v1296_v35 = vrot.slane %v23950_v16, 6  ;;  %v1258_v16 = vrot.slane %v1257_v1, 2  ;;  %v1292_v9 = vrot.slane %v24251_v39, 7 }
  0x7f   :  { %v1712_v25 = vcombine.low %v24252_v49, %v1711_v52  ;;  %v1311_v54 = vor.u32 %v1310_v58, %v1307_v42  ;;  %v1320_v39 = vrot.slane %v23968_v51, 6  ;;  %v24255_v4 = vshrl.u32 %v17869_v20, 16 }
  0x80   :  { %v1268_v7 = vrot.slane %v1267_v36, 2  ;;  %v1297_v1 = vor.u32 %v1296_v35, %v1292_v9  ;;  %v24253_v36 = vshll.u32 %v17873_v21, 16  ;;  %v1253_v52 = vsel %vm18164_vm9, %v1248_v60, %v18347_v13 }
  0x81   :  { %v1330_v19 = vrot.slane %v24255_v4, 6  ;;  %v1738_v58 = vrot.slane %v18412_v0, %v17681_v18  ;;  %v1263_v11 = vsel %vm18164_vm9, %v1258_v16, %v18353_v40  ;;  %v24256_v43 = vshll.u32 %v18396_v45, 16 }
  0x82   :  { %v1273_v47 = vsel %vm18164_vm9, %v1268_v7, %v18359_v61  ;;  %v1293_v13 = vsel %vm18164_vm9, %v1288_v56, %v1292_v9  ;;  %v1312_v35 = vrot.slane %v1311_v54, 2  ;;  %v23965_v42 = vshll.u32 %v17898_v55, 16 }
  0x83   :  { %v1302_v33 = vrot.slane %v24256_v43, 7  ;;  %v23967_v40 = vshrl.u32 %v17898_v55, 16  ;;  %v23959_v61 = vshll.u32 %v17892_v41, 16  ;;  %v23963_v4 = vshrl.u32 %v17892_v41, 16 }
  0x84   :  { %15831 = vmatmul.mubr.msk.bf16.vlgmr.msra.gmra.mrb[0].mxu0 %vm778_vm2, %v1695_v34  ;;  %v1278_v34 = vrot.slane %v1277_v10, 2  ;;  %v1316_v10 = vrot.slane %v24253_v36, 7  ;;  %v23958_v60 = vshll.u32 %v17906_v59, 16  ;;  %v23961_v54 = vshrl.u32 %v17906_v59, 16 }
  0x85   :  { %2705 = vmatpush1.bf16.msra.mxu0 %v17066_v15  ;;  %2025 = vmatprep.mubr.bf16.mxu0 %v24217_v32  ;;  %v17074_v15 = vld [vmem:[%s23848_s1 + $0x64] ss:$8 sps:$4 sm:$0xff]   ;;  %v1747_v9 = vcombine.low %v1263_v11, %v1273_v47  ;;  %v23960_v49 = vshrl.u32 %v17902_v57, 16  ;;  %v1336_v56 = vrot.slane %v23965_v42, 7  ;;  %v23962_v47 = vshrl.u32 %v17917_v63, 16 }
  0x86   :  { %15861 = vmatprep.subr.msk.bf16.mxu0 %vm212_vm0, %v17069_v12  ;;  %v24254_v12 = vshll.u32 %v17869_v20, 16  ;;  %v1283_v62 = vsel %vm18164_vm9, %v1278_v34, %v18365_v37  ;;  %v1321_v16 = vor.u32 %v1320_v39, %v1316_v10  ;;  %v1731_v37 = vcombine.low %v1243_v50, %v1253_v52 }
  0x87   :  { %v1748_v34 = vcombine.low %v1283_v62, %v1293_v13  ;;  %v18481_v50 = vrot.slane %v23959_v61, 7  ;;  %v1350_v52 = vrot.slane %v23963_v4, 6  ;;  %v1360_v11 = vrot.slane %v23961_v54, 6 }
  0x88   :  { %v18431_v28 = vrot.slane %v24254_v12, 7  ;;  %v1322_v36 = vrot.slane %v1321_v16, 2  ;;  %v1340_v12 = vrot.slane %v23967_v40, 6  ;;  %v1745_v62 = vrot.slane %v1731_v37, %v17681_v18 }
  0x89   :  { %2707 = vmatpush1.bf16.msra.mxu0 %v2699_v2  ;;  %v1298_v2 = vrot.slane %v1297_v1, 2  ;;  %v18475_v1 = vcombine.high %v17902_v57, %v17902_v57  ;;  %v1382_v13 = vshll.u32 %v17917_v63, 16  ;;  %v23964_v16 = vshll.u32 %v17936_v22, 16 }
  0x8a   :  { %3497 = vmatprep.subr.bf16.mxu0 %v17074_v15  ;;  %v1331_v7 = vor.u32 %v1330_v19, %v18431_v28  ;;  %v23957_v15 = vshll.u32 %v17902_v57, 16  ;;  %v1327_v37 = vsel %vm18164_vm9, %v1322_v36, %v18431_v28  ;;  %v1341_v61 = vor.u32 %v1340_v12, %v1336_v56 }
  0x8b   :  { %v1303_v19 = vsel %vm18164_vm9, %v1298_v2, %v1302_v33  ;;  %v1370_v33 = vrot.slane %v23960_v49, 6  ;;  %v1755_v2 = vrot.slane %v1747_v9, %v17681_v18  ;;  %v1351_v9 = vor.u32 %v1350_v52, %v18481_v50 }
  0x8c   :  { %15832 = vmatmul.mubr.msk.bf16.gmra.mrb[4].mxu0 %vm778_vm2, %v1712_v25  ;;  %v1317_v25 = vsel %vm18164_vm9, %v1312_v35, %v1316_v10  ;;  %v1332_v39 = vrot.slane %v1331_v7, 2  ;;  %v18487_v10 = vrot.slane %v23958_v60, 7  ;;  %v18495_v43 = vrot.slane %v23957_v15, 7 }
  0x8d   :  { %2035 = vmatprep.mubr.bf16.mxu0 %v24217_v32  ;;  %v1762_v35 = vrot.slane %v1748_v34, %v17681_v18  ;;  %v23966_v7 = vshrl.u32 %v17936_v22, 16  ;;  %v18510_v60 = vcombine.low %v1303_v19, %v1317_v25  ;;  %v23988_v49 = vshll.u32 %v18475_v1, 16 }
  0x8e   :  { %v1337_v15 = vsel %vm18164_vm9, %v1332_v39, %v1336_v56  ;;  %v1361_v34 = vor.u32 %v1360_v11, %v18487_v10  ;;  %v1371_v54 = vor.u32 %v1370_v33, %v18495_v43  ;;  %v1384_v28 = vrot.slane %v1382_v13, 7 }
  0x8f   :  { %v23971_v36 = vshll.u32 %v17920_v3, 16  ;;  %v23978_v19 = vshrl.u32 %v17920_v3, 16  ;;  %v18523_v25 = vrot.slane %v23964_v16, 7  ;;  %v1394_v56 = vrot.slane %v23966_v7, 6 }
  0x90   :  { %v23969_v39 = vshll.u32 %v17940_v23, 16  ;;  %v1746_v52 = vcombine.low %v1738_v58, %v1745_v62  ;;  %v1763_v11 = vcombine.low %v1755_v2, %v1762_v35  ;;  %v1342_v33 = vrot.slane %v1341_v61, 2 }
  0x91   :  { %v1765_v13 = vcombine.low %v1327_v37, %v1337_v15  ;;  %v1352_v4 = vrot.slane %v1351_v9, 2  ;;  %v1362_v16 = vrot.slane %v1361_v34, 2  ;;  %v1372_v42 = vrot.slane %v1371_v54, 2 }
  0x92   :  { %v1376_v7 = vrot.slane %v23988_v49, 7  ;;  %v1400_v51 = vrot.slane %v23971_v36, 7  ;;  %v1395_v12 = vor.u32 %v1394_v56, %v18523_v25  ;;  %v1404_v0 = vrot.slane %v23978_v19, 6 }
  0x93   :  { %v18543_v58 = vrot.slane %v23969_v39, 7  ;;  %v24257_v61 = vshrl.u32 %v17940_v23, 16  ;;  %v1347_v54 = vsel %vm18164_vm9, %v1342_v33, %v18481_v50  ;;  %v23977_v15 = vshrl.u32 %v17966_v53, 16 }
  0x94   :  { %15833 = vmatmul.mubr.msk.bf16.gmra.mrb[8].mxu0 %vm778_vm2, %v1729_v46  ;;  %v1381_v46 = vrot.slane %v23962_v47, 6  ;;  %v1772_v47 = vrot.slane %v18510_v60, %v17681_v18  ;;  %v23970_v62 = vshll.u32 %v17977_v17, 16  ;;  %v23972_v2 = vshrl.u32 %v17977_v17, 16 }
  0x95   :  { %2045 = vmatprep.mubr.bf16.mxu0 %v24217_v32  ;;  %v1414_v60 = vrot.slane %v24257_v61, 6  ;;  %v1357_v35 = vsel %vm18164_vm9, %v1352_v4, %v18487_v10  ;;  %v1367_v37 = vsel %vm18164_vm9, %v1362_v16, %v18495_v43  ;;  %v23973_v9 = vshll.u32 %v17973_v26, 16 }
  0x96   :  { %v1385_v40 = vor.u32 %v1384_v28, %v1381_v46  ;;  %v23974_v50 = vshrl.u32 %v17973_v26, 16  ;;  %v1377_v34 = vsel %vm18164_vm9, %v1372_v42, %v1376_v7  ;;  %v23975_v46 = vshll.u32 %v17966_v53, 16 }
  0x97   :  { %v23976_v28 = vshrl.u32 %v17980_v27, 16  ;;  %v1456_v56 = vshll.u32 %v17980_v27, 16  ;;  %v1396_v33 = vrot.slane %v1395_v12, 2  ;;  %v1405_v4 = vor.u32 %v1404_v0, %v1400_v51 }
  0x98   :  { %v1415_v10 = vor.u32 %v1414_v60, %v18543_v58  ;;  %v18571_v43 = vcombine.high %v17973_v26, %v17973_v26  ;;  %v1424_v16 = vrot.slane %v23977_v15, 6  ;;  %v18577_v42 = vrot.slane %v23970_v62, 7 }
  0x99   :  { %v1434_v7 = vrot.slane %v23972_v2, 6  ;;  %v1781_v12 = vcombine.low %v1347_v54, %v1357_v35  ;;  %v1440_v0 = vrot.slane %v23973_v9, 7  ;;  %v1444_v61 = vrot.slane %v23974_v50, 6  ;;  %v24258_v50 = vld [vmem:[#allocation30_spill] sm:$0xff] }
  0x9a   :  { %v1782_v60 = vcombine.low %v1367_v37, %v1377_v34  ;;  %v1420_v39 = vrot.slane %v23975_v46, 7  ;;  %v1455_v62 = vrot.slane %v23976_v28, 6  ;;  %v1458_v36 = vrot.slane %v1456_v56, 7 }
  0x9b   :  { %v1406_v54 = vrot.slane %v1405_v4, 2  ;;  %v1416_v35 = vrot.slane %v1415_v10, 2  ;;  %v1435_v37 = vor.u32 %v1434_v7, %v18577_v42  ;;  %v23982_v34 = vshll.u32 %v18571_v43, 16 }
  0x9c   :  { %15834 = vmatmul.mubr.msk.bf16.gmra.mrb[12].mxu0 %vm778_vm2, %v1746_v52  ;;  %v1386_v52 = vrot.slane %v1385_v40, 2  ;;  %v1779_v40 = vrot.slane %v1765_v13, %v17681_v18  ;;  %v1401_v13 = vsel %vm18164_vm9, %v1396_v33, %v1400_v51  ;;  %v1425_v9 = vor.u32 %v1424_v16, %v1420_v39 }
  0x9d   :  { %2055 = vmatprep.mubr.bf16.mxu0 %v24217_v32  ;;  %v23979_v46 = vshll.u32 %v24258_v50, 16  ;;  %v1445_v56 = vor.u32 %v1444_v61, %v1440_v0  ;;  %v23986_v28 = vshrl.u32 %v24258_v50, 16  ;;  %v1789_v51 = vrot.slane %v1781_v12, %v17681_v18 }
  0x9e   :  { %v1391_v2 = vsel %vm18164_vm9, %v1386_v52, %v18523_v25  ;;  %v24259_v25 = vld [vmem:[#allocation29_spill] sm:$0xff]  ;;  %v1780_v15 = vcombine.low %v1772_v47, %v1779_v40  ;;  %v1459_v33 = vor.u32 %v1458_v36, %v1455_v62  ;;  %v1796_v4 = vrot.slane %v1782_v60, %v17681_v18 }
  0x9f   :  { %v23980_v52 = vshll.u32 %v24259_v25, 16  ;;  %v1411_v10 = vsel %vm18164_vm9, %v1406_v54, %v18543_v58  ;;  %v1421_v16 = vsel %vm18164_vm9, %v1416_v35, %v1420_v39  ;;  %v1798_v7 = vcombine.low %v1391_v2, %v1401_v13  ;;  %v24260_v58 = vld [vmem:[#allocation31_spill] sm:$0xff]  ;;  %v24261_v13 = vld [vmem:[#allocation32_spill] sm:$0xff] }
  0xa0   :  { %v1426_v61 = vrot.slane %v1425_v9, 2  ;;  %v1436_v19 = vrot.slane %v1435_v37, 2  ;;  %v1450_v47 = vrot.slane %v23982_v34, 7  ;;  %v1464_v36 = vrot.slane %v23979_v46, 7 }
  0xa1   :  { %v1446_v62 = vrot.slane %v1445_v56, 2  ;;  %v1468_v40 = vrot.slane %v23986_v28, 6  ;;  %v18618_v12 = vrot.slane %v23980_v52, 7  ;;  %v23983_v60 = vshll.u32 %v24260_v58, 16 }
  0xa2   :  { %v1460_v39 = vrot.slane %v1459_v33, 2  ;;  %v23985_v9 = vshrl.u32 %v24260_v58, 16  ;;  %v23984_v54 = vshll.u32 %v24261_v13, 16  ;;  %v23987_v35 = vshrl.u32 %v24261_v13, 16 }
  0xa3   :  { %v1797_v37 = vcombine.low %v1789_v51, %v1796_v4  ;;  %v1799_v56 = vcombine.low %v1411_v10, %v1421_v16  ;;  %v1806_v46 = vrot.slane %v1798_v7, %v17681_v18  ;;  %v1431_v52 = vsel %vm18164_vm9, %v1426_v61, %v18577_v42  ;;  %v24263_v7 = vld [vmem:[#allocation33_spill] sm:$0xff] }
  0xa4   :  { %15835 = vmatmul.mubr.msk.bf16.gmra.mrb[16].mxu0 %vm778_vm2, %v1763_v11  ;;  %v23981_v11 = vshrl.u32 %v24259_v25, 16  ;;  %v1441_v33 = vsel %vm18164_vm9, %v1436_v19, %v1440_v0  ;;  %v1469_v34 = vor.u32 %v1468_v40, %v1464_v36  ;;  %v1465_v51 = vsel %vm18164_vm9, %v1460_v39, %v1464_v36  ;;  %v24262_v0 = vld [vmem:[#allocation34_spill] sm:$0xff]  ;;  %v24264_v40 = vld [vmem:[#allocation35_spill] sm:$0xff] }
  0xa5   :  { %2065 = vmatprep.mubr.bf16.mxu0 %v24217_v32  ;;  %v1488_v42 = vrot.slane %v23985_v9, 6  ;;  %v18645_v10 = vrot.slane %v23984_v54, 7  ;;  %v1498_v19 = vrot.slane %v23987_v35, 6  ;;  %v23990_v61 = vshll.u32 %v24263_v7, 16  ;;  %v24265_v9 = vld [vmem:[#allocation39_spill] sm:$0xff] }
  0xa6   :  { %v1478_v2 = vrot.slane %v23981_v11, 6  ;;  %v1451_v11 = vsel %vm18164_vm9, %v1446_v62, %v1450_v47  ;;  %v1813_v36 = vrot.slane %v1799_v56, %v17681_v18  ;;  %v1815_v62 = vcombine.low %v1431_v52, %v1441_v33 }
  0xa7   :  { %v23992_v39 = vshrl.u32 %v24264_v40, 16  ;;  %v1816_v49 = vcombine.low %v1451_v11, %v1465_v51  ;;  %v18660_v47 = vcombine.high %v24263_v7, %v24263_v7  ;;  %v1499_v52 = vor.u32 %v1498_v19, %v18645_v10 }
  0xa8   :  { %v1479_v4 = vor.u32 %v1478_v2, %v18618_v12  ;;  %v1530_v2 = vshll.u32 %v24264_v40, 16  ;;  %v24266_v56 = vshrl.u32 %v24262_v0, 16  ;;  %v24267_v28 = vshrl.u32 %v24263_v7, 16 }
  0xa9   :  { %v1814_v11 = vcombine.low %v1806_v46, %v1813_v36  ;;  %v1529_v51 = vrot.slane %v23992_v39, 6  ;;  %v24268_v19 = vshll.u32 %v24262_v0, 16  ;;  %v24270_v7 = vshrl.u32 %v24265_v9, 16  ;;  %v24271_v0 = vld [vmem:[#allocation36_spill] sm:$0xff] }
  0xaa   :  { %v1480_v16 = vrot.slane %v1479_v4, 2  ;;  %v1508_v33 = vrot.slane %v24266_v56, 6  ;;  %v1518_v54 = vrot.slane %v24267_v28, 6  ;;  %v1532_v4 = vrot.slane %v1530_v2, 7 }
  0xab   :  { %v1504_v56 = vrot.slane %v24268_v19, 7  ;;  %v1542_v28 = vrot.slane %v24270_v7, 6  ;;  %v24001_v40 = vshll.u32 %v18660_v47, 16  ;;  %v24002_v7 = vshrl.u32 %v24271_v0, 16 }
  0xac   :  { %15836 = vmatmul.mubr.msk.bf16.gmra.mrb[20].mxu0 %vm778_vm2, %v1780_v15  ;;  %v1484_v15 = vrot.slane %v23983_v60, 7  ;;  %v1470_v60 = vrot.slane %v1469_v34, 2  ;;  %v18667_v34 = vrot.slane %v23990_v61, 7  ;;  %v24269_v61 = vshll.u32 %v24265_v9, 16 }
  0xad   :  { %2075 = vmatprep.mubr.bf16.mxu0 %v24217_v32  ;;  %v1509_v39 = vor.u32 %v1508_v33, %v1504_v56  ;;  %v24000_v9 = vshll.u32 %v24271_v0, 16 }
  0xae   :  { %v1489_v13 = vor.u32 %v1488_v42, %v1484_v15  ;;  %v1823_v42 = vrot.slane %v1815_v62, %v17681_v18  ;;  %v1538_v35 = vrot.slane %v24269_v61, 7  ;;  %v1475_v46 = vsel %vm18164_vm9, %v1470_v60, %v18618_v12  ;;  %v24273_v60 = vld [vmem:[#allocation37_spill] sm:$0xff] }
  0xaf   :  { %v1485_v36 = vsel %vm18164_vm9, %v1480_v16, %v1484_v15  ;;  %v1500_v62 = vrot.slane %v1499_v52, 2  ;;  %v1519_v19 = vor.u32 %v1518_v54, %v18667_v34  ;;  %v1533_v61 = vor.u32 %v1532_v4, %v1529_v51  ;;  %v24274_v16 = vld [vmem:[#allocation42_spill] sm:$0xff] }
  0xb0   :  { %v1490_v2 = vrot.slane %v1489_v13, 2  ;;  %v1543_v25 = vor.u32 %v1542_v28, %v1538_v35  ;;  %v1832_v15 = vcombine.low %v1475_v46, %v1485_v36  ;;  %v24003_v52 = vshll.u32 %v24274_v16, 16 }
  0xb1   :  { %v24004_v33 = vshrl.u32 %v24274_v16, 16  ;;  %v1505_v51 = vsel %vm18164_vm9, %v1500_v62, %v1504_v56  ;;  %v1510_v4 = vrot.slane %v1509_v39, 2  ;;  %v1520_v28 = vrot.slane %v1519_v19, 2 }
  0xb2   :  { %v1495_v54 = vsel %vm18164_vm9, %v1490_v2, %v18645_v10  ;;  %v1524_v12 = vrot.slane %v24001_v40, 7  ;;  %v1534_v13 = vrot.slane %v1533_v61, 2  ;;  %v1548_v50 = vrot.slane %v24000_v9, 7 }
  0xb3   :  { %v1552_v10 = vrot.slane %v24002_v7, 6  ;;  %v1544_v39 = vrot.slane %v1543_v25, 2  ;;  %v24276_v2 = vshll.u32 %v24273_v60, 16  ;;  %v24277_v62 = vshrl.u32 %v24273_v60, 16 }
  0xb4   :  { %15837 = vmatmul.mubr.msk.bf16.gmra.mrb[24].mxu0 %vm778_vm2, %v1797_v37  ;;  %v1830_v37 = vrot.slane %v1816_v49, %v17681_v18  ;;  %v24272_v49 = vld [vmem:[#allocation40_spill] sm:$0xff]  ;;  %v18725_v61 = vrot.slane %v24003_v52, 7  ;;  %v1833_v40 = vcombine.low %v1495_v54, %v1505_v51  ;;  %v1840_v25 = vrot.slane %v1832_v15, %v17681_v18  ;;  %v24279_v51 = vld [vmem:[#allocation43_spill] sm:$0xff] }
  0xb5   :  { %2085 = vmatprep.mubr.bf16.mxu0 %v24217_v32  ;;  %v23999_v58 = vshll.u32 %v24272_v49, 16  ;;  %v24275_v56 = vshrl.u32 %v24272_v49, 16  ;;  %v1572_v19 = vrot.slane %v24277_v62, 6  ;;  %v1539_v62 = vsel %vm18164_vm9, %v1534_v13, %v1538_v35 }
  0xb6   :  { %v1831_v9 = vcombine.low %v1823_v42, %v1830_v37  ;;  %v1553_v7 = vor.u32 %v1552_v10, %v1548_v50  ;;  %v1549_v52 = vsel %vm18164_vm9, %v1544_v39, %v1548_v50  ;;  %v24278_v37 = vld [vmem:[#allocation44_spill] sm:$0xff]  ;;  %v24281_v10 = vld [vmem:[#allocation45_spill] sm:$0xff] }
  0xb7   :  { %v18712_v46 = vrot.slane %v23999_v58, 7  ;;  %v1562_v36 = vrot.slane %v24275_v56, 6  ;;  %v1582_v58 = vrot.slane %v24004_v33, 6  ;;  %v1515_v56 = vsel %vm18164_vm9, %v1510_v4, %v18667_v34 }
  0xb8   :  { %v1554_v54 = vrot.slane %v1553_v7, 2  ;;  %v24282_v16 = vshll.u32 %v24278_v37, 16  ;;  %v18757_v13 = vcombine.high %v24278_v37, %v24278_v37  ;;  %v24283_v39 = vshrl.u32 %v24278_v37, 16 }
  0xb9   :  { %v1563_v33 = vor.u32 %v1562_v36, %v18712_v46  ;;  %v1583_v15 = vor.u32 %v1582_v58, %v18725_v61  ;;  %v1847_v36 = vrot.slane %v1833_v40, %v17681_v18  ;;  %v1850_v58 = vcombine.low %v1539_v62, %v1549_v52 }
  0xba   :  { %v1588_v35 = vrot.slane %v24282_v16, 7  ;;  %v24284_v40 = vshrl.u32 %v24279_v51, 16  ;;  %v24287_v16 = vshll.u32 %v24281_v10, 16  ;;  %v24288_v60 = vshrl.u32 %v24281_v10, 16 }
  0xbb   :  { %v1564_v4 = vrot.slane %v1563_v33, 2  ;;  %v1584_v50 = vrot.slane %v1583_v15, 2  ;;  %v1848_v15 = vcombine.low %v1840_v25, %v1847_v36  ;;  %v24289_v36 = vld [vmem:[#allocation47_spill] sm:$0xff] }
  0xbc   :  { %15838 = vmatmul.mubr.msk.bf16.gmra.mrb[28].mxu0 %vm778_vm2, %v1814_v11  ;;  %v18719_v11 = vrot.slane %v24276_v2, 7  ;;  %v1525_v2 = vsel %vm18164_vm9, %v1520_v28, %v1524_v12  ;;  %v1604_v12 = vshll.u32 %v24279_v51, 16  ;;  %v24280_v28 = vld [vmem:[#allocation46_spill] sm:$0xff]  ;;  %v1626_v49 = vrot.slane %v24288_v60, 6 }
  0xbd   :  { %2095 = vmatprep.mubr.bf16.mxu0 %v24217_v32  ;;  %v24285_v7 = vshll.u32 %v24280_v28, 16  ;;  %v24286_v33 = vshrl.u32 %v24280_v28, 16  ;;  %v1589_v60 = vsel %vm18164_vm9, %v1584_v50, %v1588_v35  ;;  %v24012_v50 = vshll.u32 %v18157_v29, 16 }
  0xbe   :  { %v1573_v42 = vor.u32 %v1572_v19, %v18719_v11  ;;  %v1849_v19 = vcombine.low %v1515_v56, %v1525_v2  ;;  %v1603_v56 = vrot.slane %v24284_v40, 6  ;;  %v1606_v52 = vrot.slane %v1604_v12, 7 }
  0xbf   :  { %v1612_v2 = vrot.slane %v24285_v7, 7  ;;  %v1616_v62 = vrot.slane %v24286_v33, 6  ;;  %v1559_v12 = vsel %vm18164_vm9, %v1554_v54, %v18712_v46  ;;  %v1569_v40 = vsel %vm18164_vm9, %v1564_v4, %v18719_v11  ;;  %v24290_v11 = vld [vmem:[#allocation48_spill] sm:$0xff] }
  0xc0   :  { %v1574_v34 = vrot.slane %v1573_v42, 2  ;;  %v1622_v42 = vrot.slane %v24287_v16, 7  ;;  %v1857_v37 = vrot.slane %v1849_v19, %v17681_v18  ;;  %v24010_v19 = vshll.u32 %v24289_v36, 16 }
  0xc1   :  { %v1617_v16 = vor.u32 %v1616_v62, %v1612_v2  ;;  %v24011_v46 = vshrl.u32 %v24289_v36, 16 }
  0xc2   :  { %v1579_v33 = vsel %vm18164_vm9, %v1574_v34, %v18725_v61  ;;  %v1627_v51 = vor.u32 %v1626_v49, %v1622_v42  ;;  %v24013_v49 = vshrl.u32 %v18157_v29, 16 }
  0xc3   :  { %v1618_v7 = vrot.slane %v1617_v16, 2  ;;  %v1636_v61 = vrot.slane %v24011_v46, 6 }
  0xc4   :  { %15839 = vmatmul.mubr.msk.bf16.gmra.mrb[32].mxu0 %vm778_vm2, %v1831_v9  ;;  %v1592_v9 = vrot.slane %v24283_v39, 6  ;;  %v1864_v39 = vrot.slane %v1850_v58, %v17681_v18  ;;  %v1607_v58 = vor.u32 %v1606_v52, %v1603_v56  ;;  %v24291_v52 = vshll.u32 %v18757_v13, 16 }
  0xc5   :  { %2105 = vmatprep.mubr.bf16.mxu0 %v24217_v32  ;;  %v1628_v54 = vrot.slane %v1627_v51, 2  ;;  %v1662_v51 = vrot.slane %v24012_v50, 7  ;;  %v1666_v16 = vrot.slane %v24013_v49, 6  ;;  %v1623_v46 = vsel %vm18164_vm9, %v1618_v7, %v1622_v42 }
  0xc6   :  { %v1593_v25 = vor.u32 %v1592_v9, %v1588_v35  ;;  %v1865_v34 = vcombine.low %v1857_v37, %v1864_v39  ;;  %v1866_v35 = vcombine.low %v1559_v12, %v1569_v40  ;;  %v1867_v9 = vcombine.low %v1579_v33, %v1589_v60 }
  0xc7   :  { %v1598_v62 = vrot.slane %v24291_v52, 7  ;;  %v1608_v4 = vrot.slane %v1607_v58, 2  ;;  %v24292_v37 = vshll.u32 %v24290_v11, 16  ;;  %v24293_v12 = vshrl.u32 %v24290_v11, 16 }
  0xc8   :  { %v1594_v56 = vrot.slane %v1593_v25, 2  ;;  %v24294_v33 = vshll.u32 %v18186_v5, 16  ;;  %v24295_v25 = vshrl.u32 %v18186_v5, 16  ;;  %v18811_v58 = vcombine.high %v18157_v29, %v18157_v29 }
  0xc9   :  { %v1642_v39 = vrot.slane %v24292_v37, 7  ;;  %v1646_v40 = vrot.slane %v24293_v12, 6  ;;  %v1874_v37 = vrot.slane %v1866_v35, %v17681_v18  ;;  %v1881_v12 = vrot.slane %v1867_v9, %v17681_v18 }
  0xca   :  { %v1652_v60 = vrot.slane %v24294_v33, 7  ;;  %v1656_v52 = vrot.slane %v24295_v25, 6  ;;  %v1599_v33 = vsel %vm18164_vm9, %v1594_v56, %v1598_v62  ;;  %v1613_v25 = vsel %vm18164_vm9, %v1608_v4, %v1612_v2 }
  0xcb   :  { %v1647_v49 = vor.u32 %v1646_v40, %v1642_v39  ;;  %v1667_v35 = vor.u32 %v1666_v16, %v1662_v51  ;;  %v24018_v9 = vshll.u32 %v18811_v58, 16  ;;  %v1882_v56 = vcombine.low %v1874_v37, %v1881_v12  ;;  %v24297_v40 = vld [vmem:[#allocation4_spill] sm:$0xff]  ;;  %v24298_v16 = vld [vmem:[#allocation6_spill] sm:$0xff]  ;;  %v24299_v12 = vld [vmem:[#allocation3_spill] sm:$0xff] }
  0xcc   :  { %15840 = vmatmul.mubr.msk.bf16.gmra.mrb[36].mxu0 %vm778_vm2, %v1848_v15  ;;  %v1632_v15 = vrot.slane %v24010_v19, 7  ;;  %v1657_v29 = vor.u32 %v1656_v52, %v1652_v60  ;;  %v1883_v62 = vcombine.low %v1599_v33, %v1613_v25  ;;  %v2224_v52 = vrot.slane %v24297_v40, 7 }
  0xcd   :  { %2115 = vmatprep.mubr.bf16.mxu0 %v24217_v32  ;;  %v1648_v4 = vrot.slane %v1647_v49, 2  ;;  %v1672_v42 = vrot.slane %v24018_v9, 7  ;;  %v24296_v49 = vld [vmem:[#allocation5_spill] sm:$0xff]  ;;  %v15845_v33 = vrot.slane %v24299_v12, 9  ;;  %v24304_v9 = vld [vmem:[#allocation8_spill] sm:$0xff] }
  0xce   :  { %v1637_v19 = vor.u32 %v1636_v61, %v1632_v15  ;;  %v1633_v50 = vsel %vm18164_vm9, %v1628_v54, %v1632_v15  ;;  %v1658_v61 = vrot.slane %v1657_v29, 2  ;;  %v1891_v7 = vrot.slane %v1883_v62, %v17681_v18 }
  0xcf   :  { %v1884_v5 = vcombine.low %v1623_v46, %v1633_v50  ;;  %v1653_v29 = vsel %vm18164_vm9, %v1648_v4, %v1652_v60  ;;  %v2221_v15 = vrot.slane %v24296_v49, 7  ;;  %v2226_v25 = vrot.slane %v2224_v52, 2 }
  0xd0   :  { %v1638_v2 = vrot.slane %v1637_v19, 2  ;;  %v1663_v46 = vsel %vm18164_vm9, %v1658_v61, %v1662_v51 }
  0xd1   :  { %v1898_v54 = vrot.slane %v1884_v5, %v17681_v18  ;;  %v2227_v5 = vrot.slane %v24298_v16, 7  ;;  %v2223_v44 = vrot.slane %v2221_v15, 2  ;;  %v2222_v61 = vsel %vm18851_vm3, %v15845_v33, %v2221_v15 }
  0xd2   :  { %v1643_v19 = vsel %vm18164_vm9, %v1638_v2, %v1642_v39  ;;  %v2239_v33 = vrot.slane %v18201_v8, 7 }
  0xd3   :  { %v1899_v39 = vcombine.low %v1891_v7, %v1898_v54  ;;  %v1900_v37 = vcombine.low %v1643_v19, %v1653_v29  ;;  %v2225_v7 = vsel %vm18851_vm3, %v2223_v44, %v2224_v52  ;;  %v2228_v54 = vsel %vm18851_vm3, %v2226_v25, %v2227_v5 }
  0xd4   :  { %15841 = vmatmul.mubr.msk.bf16.gmra.mrb[40].mxu0 %vm778_vm2, %v1865_v34  ;;  %v1668_v34 = vrot.slane %v1667_v35, 2  ;;  %v2229_v35 = vrot.slane %v2227_v5, 2  ;;  %v2236_v29 = vrot.slane %v17723_v48, 7  ;;  %v2243_v52 = vrot.slane %v17762_v6, 7 }
  0xd5   :  { %2125 = vmatprep.mubr.bf16.mxu0 %v24217_v32  ;;  %v1908_v2 = vrot.slane %v1900_v37, %v17681_v18 }
  0xd6   :  { %v1673_v50 = vsel %vm18164_vm9, %v1668_v34, %v1672_v42  ;;  %v24303_v34 = vld [vmem:[#allocation9_spill] sm:$0xff]  ;;  %vm2938_vm9 = vsmask.f32 6424 }
  0xd7   :  { %v1901_v60 = vcombine.low %v1663_v46, %v1673_v50  ;;  %v2233_v42 = vrot.slane %v24303_v34, 7  ;;  %vm19113_vm10 = vmor %vm2937_vm8, %vm2938_vm9  ;;  %vm10610_vm8 = vsmask.f32 1284 }
  0xd9   :  { %v1915_v4 = vrot.slane %v1901_v60, %v17681_v18  ;;  %v2235_v15 = vrot.slane %v2233_v42, 2  ;;  %v2238_v60 = vrot.slane %v2236_v29, 2 }
  0xdb   :  { %v1916_v50 = vcombine.low %v1908_v2, %v1915_v4  ;;  %v2240_v4 = vsel %vm18851_vm3, %v2238_v60, %v2239_v33  ;;  %v2255_v60 = vrot.slane %v17803_v31, 7  ;;  %v17077_v33 = vld [vmem:[%s23848_s1 + $0x70] ss:$8 sps:$4 sm:$0x3f]  }
  0xdc   :  { %15842 = vmatmul.mubr.msk.bf16.gmra.mrb[44].mxu0 %vm778_vm2, %v1882_v56  ;;  %v24302_v56 = vld [vmem:[#allocation7_spill] sm:$0xff] }
  0xdd   :  { %2135 = vmatprep.mubr.bf16.mxu0 %v24217_v32  ;;  %v2230_v62 = vrot.slane %v24302_v56, 7  ;;  %v15846_v56 = vrot.slane %v24304_v9, 9 }
  0xdf   :  { %v2231_v19 = vsel %vm18851_vm3, %v2229_v35, %v2230_v62  ;;  %v2232_v46 = vrot.slane %v2230_v62, 2  ;;  %v2237_v35 = vsel %vm18851_vm3, %v2235_v15, %v2236_v29  ;;  %v24305_v62 = vld [vmem:[#allocation10_spill] sm:$0xff] }
  0xe0   :  { %v2401_v37 = vcombine.low %v2228_v54, %v2231_v19  ;;  %v2246_v2 = vrot.slane %v24305_v62, 7  ;;  %v24307_v54 = vld [vmem:[#allocation12_spill] sm:$0xff]  ;;  %v17072_v29 = vld [vmem:[%s23848_s1 + $0x60] ss:$8 sps:$4 sm:$0xff]  }
  0xe1   :  { %v2234_v5 = vsel %vm18851_vm3, %v2232_v46, %v2233_v42  ;;  %v24306_v42 = vld [vmem:[#allocation11_spill] sm:$0xff]  ;;  %v2252_v19 = vrot.slane %v24307_v54, 7 }
  0xe2   :  { %v2415_v25 = vrot.slane %v2401_v37, %v17681_v18  ;;  %v2417_v46 = vcombine.low %v2234_v5, %v2237_v35  ;;  %v2245_v37 = vrot.slane %v2243_v52, 2  ;;  %v2248_v9 = vrot.slane %v2246_v2, 2 }
  0xe3   :  { %v2254_v62 = vrot.slane %v2252_v19, 2  ;;  %v2258_v35 = vrot.slane %v17799_v30, 7  ;;  %v24308_v30 = vld [vmem:[#allocation17_spill] sm:$0xff] }
  0xe4   :  { %15843 = vmatmul.mubr.msk.bf16.gmra.mrb[48].mxu0 %vm778_vm2, %v1899_v39  ;;  %v2400_v39 = vcombine.low %v2222_v61, %v2225_v7  ;;  %v2244_v61 = vsel %vm18851_vm3, %v15846_v56, %v2243_v52  ;;  %v2249_v7 = vrot.slane %v24306_v42, 7  ;;  %v17075_v56 = vld [vmem:[%s23848_s1 + $0x74] ss:$8 sps:$4 sm:$0x3f]   ;;  %v2425_v5 = vrot.slane %v2417_v46, %v17681_v18 }
  0xe5   :  { %2145 = vmatprep.mubr.bf16.mxu0 %v24217_v32  ;;  %v2265_v46 = vrot.slane %v17809_v38, 7  ;;  %v2268_v38 = vrot.slane %v24308_v30, 7 }
  0xe6   :  { %v2408_v44 = vrot.slane %v2400_v39, %v17681_v18  ;;  %v2418_v39 = vcombine.low %v2240_v4, %v2244_v61  ;;  %v2251_v15 = vrot.slane %v2249_v7, 2  ;;  %v2256_v61 = vsel %vm18851_vm3, %v2254_v62, %v2255_v60 }
  0xe7   :  { %v2267_v62 = vrot.slane %v2265_v46, 2 }
  0xe8   :  { %v2432_v52 = vrot.slane %v2418_v39, %v17681_v18  ;;  %v2253_v4 = vsel %vm18851_vm3, %v2251_v15, %v2252_v19  ;;  %v2260_v19 = vrot.slane %v2258_v35, 2  ;;  %v15847_v15 = vrot.slane %v17787_v24, 9 }
  0xea   :  { %v2433_v39 = vcombine.low %v2425_v5, %v2432_v52  ;;  %v24309_v5 = vld [vmem:[#allocation19_spill] sm:$0xff] }
  0xeb   :  { %v2271_v52 = vrot.slane %v24309_v5, 7  ;;  %v24312_v5 = vld [vmem:[#allocation22_spill] sm:$0xff] }
  0xec   :  { %15844 = vmatmul.mubr.msk.bf16.gmra.mrb[52].mxu0 %vm778_vm2, %v1916_v50  ;;  %v2416_v50 = vcombine.low %v2408_v44, %v2415_v25  ;;  %v2247_v44 = vsel %vm18851_vm3, %v2245_v37, %v2246_v2  ;;  %v2250_v25 = vsel %vm18851_vm3, %v2248_v9, %v2249_v7  ;;  %v3492_v2 = vsel %vm212_vm0, %v17077_v33, 0  ;;  %v17080_v9 = vld [vmem:[%s23848_s1 + $0x84] ss:$8 sps:$4 sm:$0xff]  }
  0xed   :  { %2736 = vmatprep.mubr.bf16.mxu0 %v24217_v32  ;;  %v2434_v7 = vcombine.low %v2247_v44, %v2250_v25  ;;  %v2435_v37 = vcombine.low %v2253_v4, %v2256_v61  ;;  %v2266_v25 = vsel %vm18851_vm3, %v15847_v15, %v2265_v46  ;;  %v2269_v4 = vsel %vm18851_vm3, %v2267_v62, %v2268_v38  ;;  %v24310_v61 = vld [vmem:[#allocation18_spill] sm:$0xff] }
  0xee   :  { %v2273_v24 = vrot.slane %v2271_v52, 2  ;;  %v2280_v30 = vrot.slane %v24312_v5, 7  ;;  %v2293_v5 = vrot.slane %v17898_v55, 7 }
  0xef   :  { %v2449_v33 = vrot.slane %v2435_v37, %v17681_v18 }
  0xf4   :  { %15862 = vmatmul.mubr.msk.bf16.vlgmr.msra.gmra.mrb[0].mxu0 %vm778_vm2, %v2416_v50  ;;  %v2261_v50 = vrot.slane %v18285_v14, 7 }
  0xf5   :  { %3498 = vmatpush1.bf16.msra.mxu0 %v17072_v29  ;;  %2746 = vmatprep.mubr.bf16.mxu0 %v24217_v32  ;;  %v2257_v29 = vrot.slane %v2255_v60, 2 }
  0xf6   :  { %15892 = vmatprep.subr.msk.bf16.mxu0 %vm212_vm0, %v17075_v56  ;;  %v2442_v56 = vrot.slane %v2434_v7, %v17681_v18  ;;  %v2262_v60 = vsel %vm18851_vm3, %v2260_v19, %v2261_v50 }
  0xf7   :  { %v2259_v44 = vsel %vm18851_vm3, %v2257_v29, %v2258_v35  ;;  %v2452_v35 = vcombine.low %v2266_v25, %v2269_v4  ;;  %v2270_v29 = vrot.slane %v2268_v38, 2  ;;  %v2282_v25 = vrot.slane %v2280_v30, 2 }
  0xf8   :  { %v2450_v37 = vcombine.low %v2442_v56, %v2449_v33  ;;  %v2287_v33 = vrot.slane %v17873_v21, 7  ;;  %v2283_v4 = vrot.slane %v18396_v45, 7 }
  0xf9   :  { %3500 = vmatpush1.bf16.msra.mxu0 %v3492_v2  ;;  %v2274_v2 = vrot.slane %v24310_v61, 7  ;;  %v2466_v15 = vrot.slane %v2452_v35, %v17681_v18  ;;  %v2272_v62 = vsel %vm18851_vm3, %v2270_v29, %v2271_v52  ;;  %v24313_v35 = vld [vmem:[#allocation21_spill] sm:$0xff] }
  0xfa   :  { %4035 = vmatprep.subr.bf16.mxu0 %v17080_v9  ;;  %v24311_v9 = vld [vmem:[#allocation20_spill] sm:$0xff] }
  0xfb   :  { %v2277_v7 = vrot.slane %v24311_v9, 7  ;;  %v2276_v50 = vrot.slane %v2274_v2, 2 }
  0xfc   :  { %15863 = vmatmul.mubr.msk.bf16.gmra.mrb[4].mxu0 %vm778_vm2, %v2433_v39  ;;  %v2451_v39 = vcombine.low %v2259_v44, %v2262_v60  ;;  %v2275_v44 = vsel %vm18851_vm3, %v2273_v24, %v2274_v2  ;;  %v2290_v60 = vrot.slane %v17869_v20, 7  ;;  %v15848_v24 = vrot.slane %v24313_v35, 9 }
  0xfd   :  { %2756 = vmatprep.mubr.bf16.mxu0 %v24217_v32  ;;  %v2279_v19 = vrot.slane %v2277_v7, 2  ;;  %v2278_v38 = vsel %vm18851_vm3, %v2276_v50, %v2277_v7  ;;  %v2468_v52 = vcombine.low %v2272_v62, %v2275_v44  ;;  %v2289_v2 = vrot.slane %v2287_v33, 2 }
  0xfe   :  { %v2459_v46 = vrot.slane %v2451_v39, %v17681_v18  ;;  %v2292_v29 = vrot.slane %v2290_v60, 2  ;;  %v2284_v7 = vsel %vm18851_vm3, %v2282_v25, %v2283_v4  ;;  %v2299_v44 = vrot.slane %v17906_v59, 7 }
  0xff   :  { %v2281_v56 = vsel %vm18851_vm3, %v2279_v19, %v2280_v30  ;;  %v2476_v50 = vrot.slane %v2468_v52, %v17681_v18  ;;  %v2288_v19 = vsel %vm18851_vm3, %v15848_v24, %v2287_v33  ;;  %v2305_v24 = vrot.slane %v18475_v1, 7 }
 0x100   :  { %v2467_v39 = vcombine.low %v2459_v46, %v2466_v15  ;;  %v2296_v46 = vrot.slane %v17892_v41, 7  ;;  %v2291_v15 = vsel %vm18851_vm3, %v2289_v2, %v2290_v60  ;;  %v2294_v62 = vsel %vm18851_vm3, %v2292_v29, %v2293_v5 }
 0x101   :  { %v2486_v4 = vcombine.low %v2291_v15, %v2294_v62  ;;  %v2301_v33 = vrot.slane %v2299_v44, 2  ;;  %v15849_v15 = vrot.slane %v17917_v63, 9 }
 0x102   :  { %v2298_v52 = vrot.slane %v2296_v46, 2 }
 0x103   :  { %v2500_v60 = vrot.slane %v2486_v4, %v17681_v18 }
 0x104   :  { %15864 = vmatmul.mubr.msk.bf16.gmra.mrb[8].mxu0 %vm778_vm2, %v2450_v37  ;;  %v2469_v37 = vcombine.low %v2278_v38, %v2281_v56  ;;  %v2302_v38 = vrot.slane %v17902_v57, 7  ;;  %v2485_v56 = vcombine.low %v2284_v7, %v2288_v19  ;;  %v2300_v29 = vsel %vm18851_vm3, %v2298_v52, %v2299_v44 }
 0x105   :  { %2766 = vmatprep.mubr.bf16.mxu0 %v24217_v32  ;;  %v2309_v7 = vrot.slane %v17936_v22, 7  ;;  %v2315_v19 = vrot.slane %v17940_v23, 7 }
 0x106   :  { %v2483_v30 = vrot.slane %v2469_v37, %v17681_v18  ;;  %v2304_v37 = vrot.slane %v2302_v38, 2  ;;  %v2493_v41 = vrot.slane %v2485_v56, %v17681_v18 }
 0x107   :  { %v2311_v44 = vrot.slane %v2309_v7, 2  ;;  %v2317_v4 = vrot.slane %v2315_v19, 2 }
 0x108   :  { %v2484_v25 = vcombine.low %v2476_v50, %v2483_v30  ;;  %v2306_v50 = vsel %vm18851_vm3, %v2304_v37, %v2305_v24  ;;  %v2312_v30 = vrot.slane %v17920_v3, 7 }
 0x10a   :  { %v2313_v37 = vsel %vm18851_vm3, %v2311_v44, %v2312_v30 }
 0x10c   :  { %15865 = vmatmul.mubr.msk.bf16.gmra.mrb[12].mxu0 %vm778_vm2, %v2467_v39  ;;  %v2295_v39 = vrot.slane %v2293_v5, 2  ;;  %v2303_v5 = vsel %vm18851_vm3, %v2301_v33, %v2302_v38  ;;  %v2310_v38 = vsel %vm18851_vm3, %v15849_v15, %v2309_v7 }
 0x10d   :  { %2776 = vmatprep.mubr.bf16.mxu0 %v24217_v32  ;;  %v2503_v56 = vcombine.low %v2303_v5, %v2306_v50 }
 0x10e   :  { %v2297_v2 = vsel %vm18851_vm3, %v2295_v39, %v2296_v46  ;;  %v2501_v46 = vcombine.low %v2493_v41, %v2500_v60  ;;  %v2318_v39 = vrot.slane %v17966_v53, 7  ;;  %v2321_v41 = vrot.slane %v17977_v17, 7 }
 0x10f   :  { %v2502_v62 = vcombine.low %v2297_v2, %v2300_v29  ;;  %v2517_v33 = vrot.slane %v2503_v56, %v17681_v18  ;;  %v2324_v2 = vrot.slane %v17973_v26, 7  ;;  %v2519_v29 = vcombine.low %v2310_v38, %v2313_v37  ;;  %v24314_v56 = vld [vmem:[#allocation30_spill] sm:$0xff]  ;;  %v24316_v37 = vld [vmem:[#allocation31_spill] sm:$0xff] }
 0x110   :  { %v2319_v60 = vsel %vm18851_vm3, %v2317_v4, %v2318_v39  ;;  %v2320_v50 = vrot.slane %v2318_v39, 2  ;;  %v2323_v15 = vrot.slane %v2321_v41, 2  ;;  %v2331_v44 = vrot.slane %v24314_v56, 7  ;;  %v24315_v39 = vld [vmem:[#allocation29_spill] sm:$0xff] }
 0x111   :  { %v2510_v52 = vrot.slane %v2502_v62, %v17681_v18  ;;  %v15850_v62 = vrot.slane %v17980_v27, 9  ;;  %v2527_v17 = vrot.slane %v2519_v29, %v17681_v18  ;;  %v2334_v38 = vrot.slane %v24315_v39, 7  ;;  %v24318_v39 = vld [vmem:[#allocation34_spill] sm:$0xff] }
 0x112   :  { %v2325_v4 = vsel %vm18851_vm3, %v2323_v15, %v2324_v2  ;;  %v2343_v56 = vrot.slane %v24318_v39, 7  ;;  %v2356_v39 = vrot.slane %v24271_v0, 7  ;;  %v24325_v0 = vld [vmem:[#allocation44_spill] sm:$0xff] }
 0x113   :  { %v2518_v7 = vcombine.low %v2510_v52, %v2517_v33  ;;  %v2332_v33 = vsel %vm18851_vm3, %v15850_v62, %v2331_v44  ;;  %v2336_v27 = vrot.slane %v2334_v38, 2 }
 0x114   :  { %15866 = vmatmul.mubr.msk.bf16.gmra.mrb[16].mxu0 %vm778_vm2, %v2484_v25  ;;  %v2314_v25 = vrot.slane %v2312_v30, 2  ;;  %v2327_v30 = vrot.slane %v18571_v43, 7 }
 0x115   :  { %2786 = vmatprep.mubr.bf16.mxu0 %v24217_v32 }
 0x116   :  { %v2316_v24 = vsel %vm18851_vm3, %v2314_v25, %v2315_v19  ;;  %v2322_v25 = vsel %vm18851_vm3, %v2320_v50, %v2321_v41  ;;  %v2333_v50 = vrot.slane %v2331_v44, 2 }
 0x117   :  { %v2520_v5 = vcombine.low %v2316_v24, %v2319_v60  ;;  %v2337_v24 = vrot.slane %v24316_v37, 7  ;;  %v24317_v60 = vld [vmem:[#allocation32_spill] sm:$0xff] }
 0x118   :  { %v2340_v29 = vrot.slane %v24317_v60, 7 }
 0x119   :  { %v2534_v19 = vrot.slane %v2520_v5, %v17681_v18  ;;  %v2338_v62 = vsel %vm18851_vm3, %v2336_v27, %v2337_v24  ;;  %v24321_v27 = vld [vmem:[#allocation35_spill] sm:$0xff] }
 0x11a   :  { %v2342_v15 = vrot.slane %v2340_v29, 2 }
 0x11b   :  { %v2535_v5 = vcombine.low %v2527_v17, %v2534_v19  ;;  %v24319_v17 = vld [vmem:[#allocation33_spill] sm:$0xff] }
 0x11c   :  { %15867 = vmatmul.mubr.msk.bf16.gmra.mrb[20].mxu0 %vm778_vm2, %v2501_v46  ;;  %v2326_v46 = vrot.slane %v2324_v2, 2  ;;  %v2339_v2 = vrot.slane %v2337_v24, 2  ;;  %v2346_v19 = vrot.slane %v24319_v17, 7  ;;  %v15851_v24 = vrot.slane %v24321_v27, 9 }
 0x11d   :  { %2796 = vmatprep.mubr.bf16.mxu0 %v24217_v32 }
 0x11e   :  { %v2328_v52 = vsel %vm18851_vm3, %v2326_v46, %v2327_v30  ;;  %v2335_v30 = vsel %vm18851_vm3, %v2333_v50, %v2334_v38  ;;  %v2341_v44 = vsel %vm18851_vm3, %v2339_v2, %v2340_v29  ;;  %v2348_v50 = vrot.slane %v2346_v19, 2 }
 0x11f   :  { %v2537_v41 = vcombine.low %v2328_v52, %v2332_v33  ;;  %v2553_v33 = vcombine.low %v2335_v30, %v2338_v62  ;;  %v24323_v62 = vld [vmem:[#allocation37_spill] sm:$0xff] }
 0x121   :  { %v2551_v46 = vrot.slane %v2537_v41, %v17681_v18  ;;  %v2561_v60 = vrot.slane %v2553_v33, %v17681_v18 }
 0x124   :  { %15868 = vmatmul.mubr.msk.bf16.gmra.mrb[24].mxu0 %vm778_vm2, %v2518_v7  ;;  %v2536_v7 = vcombine.low %v2322_v25, %v2325_v4  ;;  %v2344_v25 = vsel %vm18851_vm3, %v2342_v15, %v2343_v56  ;;  %v24320_v4 = vld [vmem:[#allocation39_spill] sm:$0xff] }
 0x125   :  { %2806 = vmatprep.mubr.bf16.mxu0 %v24217_v32  ;;  %v2353_v52 = vrot.slane %v24320_v4, 7  ;;  %v2554_v41 = vcombine.low %v2341_v44, %v2344_v25  ;;  %v2362_v44 = vrot.slane %v24323_v62, 7  ;;  %v24324_v25 = vld [vmem:[#allocation42_spill] sm:$0xff]  ;;  %v2378_v4 = vrot.slane %v24281_v10, 7 }
 0x126   :  { %v2544_v26 = vrot.slane %v2536_v7, %v17681_v18  ;;  %v2345_v7 = vrot.slane %v2343_v56, 2  ;;  %v2365_v33 = vrot.slane %v24324_v25, 7  ;;  %v2381_v10 = vrot.slane %v24289_v36, 7  ;;  %v24328_v36 = vld [vmem:[#allocation49_spill] sm:$0xff] }
 0x127   :  { %v2355_v17 = vrot.slane %v2353_v52, 2  ;;  %v2568_v29 = vrot.slane %v2554_v41, %v17681_v18 }
 0x128   :  { %v2552_v38 = vcombine.low %v2544_v26, %v2551_v46  ;;  %v2347_v2 = vsel %vm18851_vm3, %v2345_v7, %v2346_v19  ;;  %v2354_v26 = vsel %vm18851_vm3, %v15851_v24, %v2353_v52  ;;  %v24322_v46 = vld [vmem:[#allocation40_spill] sm:$0xff]  ;;  %v2358_v7 = vrot.slane %v2356_v39, 2 }
 0x129   :  { %v2357_v15 = vsel %vm18851_vm3, %v2355_v17, %v2356_v39  ;;  %v2359_v30 = vrot.slane %v24322_v46, 7  ;;  %v2368_v52 = vrot.slane %v24325_v0, 7  ;;  %v2375_v24 = vrot.slane %v24280_v28, 7 }
 0x12a   :  { %v2571_v19 = vcombine.low %v2354_v26, %v2357_v15  ;;  %v2371_v26 = vrot.slane %v18757_v13, 7  ;;  %v24326_v15 = vld [vmem:[#allocation43_spill] sm:$0xff] }
 0x12b   :  { %v2361_v27 = vrot.slane %v2359_v30, 2  ;;  %v2360_v39 = vsel %vm18851_vm3, %v2358_v7, %v2359_v30 }
 0x12c   :  { %15869 = vmatmul.mubr.msk.bf16.gmra.mrb[28].mxu0 %vm778_vm2, %v2535_v5  ;;  %v2349_v5 = vrot.slane %v18660_v47, 7  ;;  %v2585_v62 = vrot.slane %v2571_v19, %v17681_v18  ;;  %v2380_v19 = vrot.slane %v2378_v4, 2 }
 0x12d   :  { %2816 = vmatprep.mubr.bf16.mxu0 %v24217_v32 }
 0x12e   :  { %v2350_v56 = vsel %vm18851_vm3, %v2348_v50, %v2349_v5  ;;  %v2364_v5 = vrot.slane %v2362_v44, 2  ;;  %v2367_v50 = vrot.slane %v2365_v33, 2 }
 0x12f   :  { %v2570_v41 = vcombine.low %v2347_v2, %v2350_v56  ;;  %v2370_v56 = vrot.slane %v2368_v52, 2 }
 0x130   :  { %v2369_v2 = vsel %vm18851_vm3, %v2367_v50, %v2368_v52 }
 0x131   :  { %v2578_v17 = vrot.slane %v2570_v41, %v17681_v18  ;;  %v2377_v41 = vrot.slane %v2375_v24, 2 }
 0x133   :  { %v2586_v28 = vcombine.low %v2578_v17, %v2585_v62  ;;  %v2379_v52 = vsel %vm18851_vm3, %v2377_v41, %v2378_v4  ;;  %v2390_v62 = vrot.slane %v24328_v36, 7  ;;  %v2393_v4 = vrot.slane %v18811_v58, 7 }
 0x134   :  { %15870 = vmatmul.mubr.msk.bf16.gmra.mrb[32].mxu0 %vm778_vm2, %v2552_v38  ;;  %v2569_v38 = vcombine.low %v2561_v60, %v2568_v29  ;;  %v2363_v60 = vsel %vm18851_vm3, %v2361_v27, %v2362_v44  ;;  %v2366_v29 = vsel %vm18851_vm3, %v2364_v5, %v2365_v33  ;;  %v2372_v27 = vsel %vm18851_vm3, %v2370_v56, %v2371_v26  ;;  %v24327_v5 = vld [vmem:[#allocation50_spill] sm:$0xff] }
 0x135   :  { %2826 = vmatprep.mubr.bf16.mxu0 %v24217_v32  ;;  %v2587_v30 = vcombine.low %v2360_v39, %v2363_v60  ;;  %v2588_v7 = vcombine.low %v2366_v29, %v2369_v2  ;;  %v2384_v33 = vrot.slane %v24290_v11, 7  ;;  %v2387_v50 = vrot.slane %v24327_v5, 7 }
 0x136   :  { %v2383_v29 = vrot.slane %v2381_v10, 2  ;;  %v2392_v26 = vrot.slane %v2390_v62, 2 }
 0x137   :  { %v2595_v17 = vrot.slane %v2587_v30, %v17681_v18  ;;  %v2602_v39 = vrot.slane %v2588_v7, %v17681_v18  ;;  %v2386_v2 = vrot.slane %v2384_v33, 2  ;;  %v2389_v56 = vrot.slane %v2387_v50, 2 }
 0x138   :  { %v24329_v7 = vshrl.u32 %v24296_v49, 16 }
 0x139   :  { %v2388_v30 = vsel %vm18851_vm3, %v2386_v2, %v2387_v50 }
 0x13c   :  { %15871 = vmatmul.mubr.msk.bf16.gmra.mrb[36].mxu0 %vm778_vm2, %v2569_v38  ;;  %v15852_v38 = vrot.slane %v24326_v15, 9  ;;  %v2382_v15 = vsel %vm18851_vm3, %v2380_v19, %v2381_v10  ;;  %v2385_v19 = vsel %vm18851_vm3, %v2383_v29, %v2384_v33  ;;  %v2391_v10 = vsel %vm18851_vm3, %v2389_v56, %v2390_v62 }
 0x13d   :  { %2836 = vmatprep.mubr.bf16.mxu0 %v24217_v32  ;;  %v2605_v60 = vcombine.low %v2379_v52, %v2382_v15  ;;  %v2394_v15 = vsel %vm18851_vm3, %v2392_v26, %v2393_v4  ;;  %v24331_v33 = vshrl.u32 %v24298_v16, 16  ;;  %v24334_v56 = vshll.u32 %v24297_v40, 16 }
 0x13e   :  { %v2376_v44 = vsel %vm18851_vm3, %v15852_v38, %v2375_v24  ;;  %v2603_v38 = vcombine.low %v2595_v17, %v2602_v39  ;;  %v2621_v17 = vcombine.low %v2385_v19, %v2388_v30  ;;  %v2622_v51 = vcombine.low %v2391_v10, %v2394_v15 }
 0x13f   :  { %v2604_v24 = vcombine.low %v2372_v27, %v2376_v44  ;;  %v2942_v27 = vrot.slane %v24329_v7, 7  ;;  %v24330_v44 = vshrl.u32 %v24297_v40, 16  ;;  %v2950_v50 = vrot.slane %v24331_v33, 7 }
 0x140   :  { %v24332_v39 = vshrl.u32 %v24299_v12, 16  ;;  %v2966_v12 = vshrl.u32 %v18201_v8, 16  ;;  %v2629_v30 = vrot.slane %v2621_v17, %v17681_v18  ;;  %v2636_v10 = vrot.slane %v2622_v51, %v17681_v18  ;;  %v24340_v17 = vld [vmem:[#allocation41_spill] sm:$0xff] }
 0x141   :  { %v2612_v41 = vrot.slane %v2604_v24, %v17681_v18  ;;  %v2946_v52 = vrot.slane %v24330_v44, 7  ;;  %v2945_v2 = vrot.slane %v2942_v27, 2  ;;  %v2953_v19 = vrot.slane %v2950_v50, 2 }
 0x142   :  { %v15876_v24 = vrot.slane %v24332_v39, 9  ;;  %v24338_v15 = vshrl.u32 %v24303_v34, 16  ;;  %v2968_v39 = vrot.slane %v2966_v12, 7  ;;  %vm24124_vm3 = vcmask 1047559  }
 0x143   :  { %v2947_v26 = vor.u32 %v2946_v52, %v24334_v56  ;;  %v2956_v51 = vsel %vm19113_vm10, %v2953_v19, %v24340_v17  ;;  %v24345_v19 = vshll.u32 %v18201_v8, 16  ;;  %v24346_v17 = vld [vmem:[#allocation8_spill] sm:$0xff]  ;;  %v24351_v8 = vshrl.u32 %v24306_v42, 16 }
 0x144   :  { %15872 = vmatmul.mubr.msk.bf16.gmra.mrb[40].mxu0 %vm778_vm2, %v2586_v28  ;;  %v2619_v28 = vrot.slane %v2605_v60, %v17681_v18  ;;  %v24333_v60 = vshll.u32 %v24296_v49, 16  ;;  %v2958_v7 = vrot.slane %v24338_v15, 7 }
 0x145   :  { %2846 = vmatprep.mubr.bf16.mxu0 %v24217_v32  ;;  %v2948_v44 = vsel %vm19113_vm10, %v2945_v2, %v2947_v26  ;;  %v24343_v26 = vshll.u32 %v24303_v34, 16  ;;  %v2969_v12 = vor.u32 %v2968_v39, %v24345_v19 }
 0x146   :  { %v2620_v62 = vcombine.low %v2612_v41, %v2619_v28  ;;  %v2943_v29 = vor.u32 %v2942_v27, %v24333_v60  ;;  %v24337_v41 = vshll.u32 %v24298_v16, 16  ;;  %v24341_v60 = vshrl.u32 %v17762_v6, 16 }
 0x148   :  { %v2951_v28 = vor.u32 %v2950_v50, %v24337_v41  ;;  %v2944_v27 = vsel %vm19113_vm10, %v15876_v24, %v2943_v29  ;;  %v2973_v56 = vrot.slane %v24341_v60, 7  ;;  %v2637_v24 = vcombine.low %v2629_v30, %v2636_v10  ;;  %v24342_v29 = vld [vmem:[#allocation38_spill] sm:$0xff] }
 0x149   :  { %v2957_v2 = vrot.slane %v24342_v29, 2  ;;  %v2959_v41 = vor.u32 %v2958_v7, %v24343_v26  ;;  %v24347_v60 = vshrl.u32 %v24346_v17, 16  ;;  %v24348_v30 = vshll.u32 %v17762_v6, 16  ;;  %v24349_v26 = vld [vmem:[#allocation10_spill] sm:$0xff] }
 0x14a   :  { %v24354_v19 = vshll.u32 %v24349_v26, 16 }
 0x14b   :  { %v15877_v49 = vrot.slane %v24347_v60, 9  ;;  %v2974_v10 = vor.u32 %v2973_v56, %v24348_v30  ;;  %v2960_v29 = vsel %vm19113_vm10, %v2957_v2, %v2959_v41 }
 0x14c   :  { %15873 = vmatmul.mubr.msk.bf16.gmra.mrb[44].mxu0 %vm778_vm2, %v2603_v38  ;;  %v2949_v38 = vrot.slane %v2946_v52, 2  ;;  %v24339_v52 = vshrl.u32 %v17723_v48, 16 }
 0x14d   :  { %2856 = vmatprep.mubr.bf16.mxu0 %v24217_v32  ;;  %v2975_v41 = vsel %vm19113_vm10, %v15877_v49, %v2974_v10 }
 0x14e   :  { %v2962_v33 = vrot.slane %v24339_v52, 7  ;;  %v2952_v50 = vsel %vm19113_vm10, %v2949_v38, %v2951_v28  ;;  %v2961_v52 = vrot.slane %v2958_v7, 2  ;;  %v24344_v38 = vshll.u32 %v17723_v48, 16 }
 0x14f   :  { %v3194_v15 = vcombine.low %v2952_v50, %v2956_v51  ;;  %v2981_v50 = vrot.slane %v24351_v8, 7  ;;  %v24352_v51 = vshrl.u32 %v24307_v54, 16 }
 0x150   :  { %v2963_v28 = vor.u32 %v2962_v33, %v24344_v38  ;;  %v2965_v16 = vrot.slane %v2962_v33, 2 }
 0x151   :  { %v2985_v39 = vrot.slane %v24352_v51, 7  ;;  %v3208_v6 = vrot.slane %v3194_v15, %v17681_v18  ;;  %v24355_v15 = vshll.u32 %v24306_v42, 16  ;;  %v2984_v8 = vrot.slane %v2981_v50, 2 }
 0x152   :  { %v2964_v33 = vsel %vm19113_vm10, %v2961_v52, %v2963_v28  ;;  %v2970_v2 = vsel %vm19113_vm10, %v2965_v16, %v2969_v12  ;;  %v2976_v28 = vrot.slane %v2973_v56, 2  ;;  %v24356_v16 = vshll.u32 %v24307_v54, 16  ;;  %v17078_v56 = vld [vmem:[%s23848_s1 + $0x80] ss:$8 sps:$4 sm:$0xff]  }
 0x153   :  { %v3210_v52 = vcombine.low %v2960_v29, %v2964_v33  ;;  %v2988_v10 = vrot.slane %v2985_v39, 2  ;;  %v24357_v51 = vshll.u32 %v17803_v31, 16  ;;  %v2997_v29 = vshrl.u32 %v18285_v14, 16 }
 0x154   :  { %15874 = vmatmul.mubr.msk.bf16.gmra.mrb[48].mxu0 %vm778_vm2, %v2620_v62  ;;  %v3193_v62 = vcombine.low %v2944_v27, %v2948_v44  ;;  %v24350_v27 = vshrl.u32 %v24349_v26, 16  ;;  %v2986_v12 = vor.u32 %v2985_v39, %v24356_v16 }
 0x155   :  { %2866 = vmatprep.mubr.bf16.mxu0 %v24217_v32  ;;  %v2999_v16 = vrot.slane %v2997_v29, 7 }
 0x156   :  { %v2977_v44 = vrot.slane %v24350_v27, 7  ;;  %v3201_v7 = vrot.slane %v3193_v62, %v17681_v18  ;;  %v24353_v62 = vshrl.u32 %v17803_v31, 16  ;;  %v2982_v27 = vor.u32 %v2981_v50, %v24355_v15  ;;  %v17081_v50 = vld [vmem:[%s23848_s1 + $0x94] ss:$8 sps:$4 sm:$0x3f]  }
 0x157   :  { %v2987_v15 = vsel %vm19113_vm10, %v2984_v8, %v2986_v12  ;;  %v24362_v31 = vld [vmem:[#allocation17_spill] sm:$0xff] }
 0x158   :  { %v2989_v38 = vrot.slane %v24353_v62, 7  ;;  %v2978_v60 = vor.u32 %v2977_v44, %v24354_v19  ;;  %v2980_v30 = vrot.slane %v2977_v44, 2  ;;  %v3209_v49 = vcombine.low %v3201_v7, %v3208_v6  ;;  %v24358_v44 = vld [vmem:[#allocation14_spill] sm:$0xff]  ;;  %v17083_v7 = vld [vmem:[%s23848_s1 + $0x90] ss:$8 sps:$4 sm:$0x3f]  }
 0x159   :  { %v24359_v33 = vshrl.u32 %v24358_v44, 16  ;;  %v4030_v8 = vsel %vm212_vm0, %v17083_v7, 0 }
 0x15a   :  { %v2990_v62 = vor.u32 %v2989_v38, %v24357_v51  ;;  %v2979_v6 = vsel %vm19113_vm10, %v2976_v28, %v2978_v60  ;;  %v2983_v19 = vsel %vm19113_vm10, %v2980_v30, %v2982_v27  ;;  %v24360_v51 = vld [vmem:[#allocation16_spill] sm:$0xff]  ;;  %v2992_v60 = vrot.slane %v2989_v38, 2 }
 0x15b   :  { %v3227_v28 = vcombine.low %v2979_v6, %v2983_v19  ;;  %v24364_v30 = vshll.u32 %v24358_v44, 16  ;;  %v24368_v42 = vshll.u32 %v24360_v51, 16  ;;  %v24369_v19 = vshll.u32 %v24362_v31, 16 }
 0x15c   :  { %15875 = vmatmul.mubr.msk.bf16.gmra.mrb[52].mxu0 %vm778_vm2, %v2637_v24  ;;  %v3211_v24 = vcombine.low %v2970_v2, %v2975_v41  ;;  %v2993_v2 = vrot.slane %v24359_v33, 7  ;;  %v3218_v41 = vrot.slane %v3210_v52, %v17681_v18  ;;  %v2991_v52 = vsel %vm19113_vm10, %v2988_v10, %v2990_v62  ;;  %v24365_v62 = vld [vmem:[#allocation13_spill] sm:$0xff] }
 0x15d   :  { %3529 = vmatprep.mubr.bf16.mxu0 %v24217_v32  ;;  %v24361_v33 = vshrl.u32 %v24360_v51, 16  ;;  %v24366_v29 = vshrl.u32 %v24365_v62, 16 }
 0x15e   :  { %v3225_v39 = vrot.slane %v3211_v24, %v17681_v18  ;;  %v24363_v24 = vshrl.u32 %v24362_v31, 16  ;;  %v2994_v27 = vor.u32 %v2993_v2, %v24364_v30  ;;  %v2996_v10 = vrot.slane %v2993_v2, 2  ;;  %v24370_v2 = vld [vmem:[#allocation19_spill] sm:$0xff] }
 0x15f   :  { %v3004_v54 = vrot.slane %v24361_v33, 7  ;;  %v15878_v33 = vrot.slane %v24366_v29, 9  ;;  %v24371_v7 = vshrl.u32 %v24370_v2, 16 }
 0x160   :  { %v3008_v26 = vrot.slane %v24363_v24, 7  ;;  %v3226_v12 = vcombine.low %v3218_v41, %v3225_v39  ;;  %v24367_v24 = vshll.u32 %v18285_v14, 16  ;;  %v2995_v41 = vsel %vm19113_vm10, %v2992_v60, %v2994_v27 }
 0x161   :  { %v3005_v6 = vor.u32 %v3004_v54, %v24368_v42  ;;  %v3007_v38 = vrot.slane %v3004_v54, 2  ;;  %v3012_v39 = vrot.slane %v24371_v7, 7  ;;  %v24373_v60 = vshrl.u32 %v24311_v9, 16 }
 0x162   :  { %v3009_v30 = vor.u32 %v3008_v26, %v24369_v19  ;;  %v24376_v19 = vshll.u32 %v24370_v2, 16 }
 0x163   :  { %v3020_v27 = vrot.slane %v24373_v60, 7  ;;  %v3015_v7 = vrot.slane %v3012_v39, 2 }
 0x164   :  { %15893 = vmatmul.mubr.msk.bf16.vlgmr.msra.gmra.mrb[0].mxu0 %vm778_vm2, %v3209_v49  ;;  %v3228_v49 = vcombine.low %v2987_v15, %v2991_v52  ;;  %v24372_v15 = vshrl.u32 %v24310_v61, 16 }
 0x165   :  { %4036 = vmatpush1.bf16.msra.mxu0 %v17078_v56  ;;  %3539 = vmatprep.mubr.bf16.mxu0 %v24217_v32  ;;  %v3000_v56 = vor.u32 %v2999_v16, %v24367_v24  ;;  %v3006_v16 = vsel %vm19113_vm10, %v15878_v33, %v3005_v6  ;;  %v24377_v33 = vshll.u32 %v24310_v61, 16  ;;  %v3023_v51 = vrot.slane %v3020_v27, 2 }
 0x166   :  { %15919 = vmatprep.subr.msk.bf16.mxu0 %vm212_vm0, %v17081_v50  ;;  %v3235_v50 = vrot.slane %v3227_v28, %v17681_v18  ;;  %v3016_v52 = vrot.slane %v24372_v15, 7  ;;  %v3242_v42 = vrot.slane %v3228_v49, %v17681_v18  ;;  %v3010_v28 = vsel %vm19113_vm10, %v3007_v38, %v3009_v30 }
 0x167   :  { %v3001_v54 = vsel %vm19113_vm10, %v2996_v10, %v3000_v56  ;;  %v3245_v24 = vcombine.low %v3006_v16, %v3010_v28  ;;  %v3011_v49 = vrot.slane %v3008_v26, 2  ;;  %v3013_v10 = vor.u32 %v3012_v39, %v24376_v19 }
 0x168   :  { %v3243_v56 = vcombine.low %v3235_v50, %v3242_v42  ;;  %v3017_v6 = vor.u32 %v3016_v52, %v24377_v33  ;;  %v3028_v38 = vshrl.u32 %v18396_v45, 16  ;;  %v3019_v30 = vrot.slane %v3016_v52, 2 }
 0x169   :  { %4038 = vmatpush1.bf16.msra.mxu0 %v4030_v8  ;;  %v24374_v8 = vld [vmem:[#allocation22_spill] sm:$0xff]  ;;  %v24378_v15 = vshll.u32 %v24311_v9, 16  ;;  %v3014_v50 = vsel %vm19113_vm10, %v3011_v49, %v3013_v10  ;;  %v24380_v42 = vshrl.u32 %v17873_v21, 16  ;;  %v24382_v49 = vshrl.u32 %v17898_v55, 16 }
 0x16a   :  { %v24375_v62 = vshrl.u32 %v24374_v8, 16  ;;  %v3018_v39 = vsel %vm19113_vm10, %v3015_v7, %v3017_v6  ;;  %v3030_v52 = vrot.slane %v3028_v38, 7  ;;  %v24383_v33 = vshrl.u32 %v24313_v35, 16 }
 0x16b   :  { %v3021_v60 = vor.u32 %v3020_v27, %v24378_v15  ;;  %v3035_v16 = vrot.slane %v24380_v42, 7  ;;  %v3043_v19 = vrot.slane %v24382_v49, 7  ;;  %v24384_v15 = vshll.u32 %v18396_v45, 16 }
 0x16c   :  { %15894 = vmatmul.mubr.msk.bf16.gmra.mrb[4].mxu0 %vm778_vm2, %v3226_v12  ;;  %v3024_v29 = vrot.slane %v24375_v62, 7  ;;  %v3244_v12 = vcombine.low %v2995_v41, %v3001_v54  ;;  %v24379_v62 = vshll.u32 %v24374_v8, 16  ;;  %v3259_v54 = vrot.slane %v3245_v24, %v17681_v18 }
 0x16d   :  { %3549 = vmatprep.mubr.bf16.mxu0 %v24217_v32  ;;  %v3022_v28 = vsel %vm19113_vm10, %v3019_v30, %v3021_v60  ;;  %v15879_v6 = vrot.slane %v24383_v33, 9  ;;  %v24385_v30 = vshll.u32 %v17873_v21, 16  ;;  %v24387_v49 = vshll.u32 %v17898_v55, 16 }
 0x16e   :  { %v3025_v41 = vor.u32 %v3024_v29, %v24379_v62  ;;  %v3252_v26 = vrot.slane %v3244_v12, %v17681_v18  ;;  %v24381_v12 = vshrl.u32 %v17869_v20, 16  ;;  %v3027_v7 = vrot.slane %v3024_v29, 2 }
 0x16f   :  { %v3031_v62 = vor.u32 %v3030_v52, %v24384_v15  ;;  %v3036_v60 = vor.u32 %v3035_v16, %v24385_v30  ;;  %v3059_v29 = vshrl.u32 %v18475_v1, 16  ;;  %v3046_v30 = vrot.slane %v3043_v19, 2 }
 0x170   :  { %v3026_v27 = vsel %vm19113_vm10, %v3023_v51, %v3025_v41  ;;  %v3039_v24 = vrot.slane %v24381_v12, 7  ;;  %v3260_v10 = vcombine.low %v3252_v26, %v3259_v54  ;;  %v3038_v51 = vrot.slane %v3035_v16, 2  ;;  %v24388_v54 = vld [vmem:[#allocation23_spill] sm:$0xff] }
 0x171   :  { %v3262_v38 = vcombine.low %v3022_v28, %v3026_v27  ;;  %v24386_v41 = vshll.u32 %v17869_v20, 16  ;;  %v3044_v26 = vor.u32 %v3043_v19, %v24387_v49  ;;  %v24390_v28 = vshrl.u32 %v17906_v59, 16 }
 0x172   :  { %v3042_v12 = vrot.slane %v3039_v24, 2  ;;  %v3032_v16 = vsel %vm19113_vm10, %v3027_v7, %v3031_v62  ;;  %v3037_v27 = vsel %vm19113_vm10, %v15879_v6, %v3036_v60  ;;  %v24393_v62 = vshll.u32 %v17906_v59, 16 }
 0x173   :  { %v3040_v42 = vor.u32 %v3039_v24, %v24386_v41  ;;  %v3051_v45 = vrot.slane %v24390_v28, 7  ;;  %v3276_v52 = vrot.slane %v3262_v38, %v17681_v18  ;;  %v24392_v38 = vshll.u32 %v24388_v54, 16 }
 0x174   :  { %15895 = vmatmul.mubr.msk.bf16.gmra.mrb[8].mxu0 %vm778_vm2, %v3243_v56  ;;  %v3261_v56 = vcombine.low %v3014_v50, %v3018_v39  ;;  %v24389_v50 = vshrl.u32 %v24388_v54, 16  ;;  %v3045_v33 = vsel %vm19113_vm10, %v3042_v12, %v3044_v26  ;;  %v3278_v49 = vcombine.low %v3032_v16, %v3037_v27 }
 0x175   :  { %3559 = vmatprep.mubr.bf16.mxu0 %v24217_v32  ;;  %v3041_v24 = vsel %vm19113_vm10, %v3038_v51, %v3040_v42  ;;  %v3052_v6 = vor.u32 %v3051_v45, %v24393_v62  ;;  %v3054_v28 = vrot.slane %v3051_v45, 2  ;;  %v24394_v51 = vshll.u32 %v17902_v57, 16 }
 0x176   :  { %v3047_v39 = vrot.slane %v24389_v50, 7  ;;  %v3269_v21 = vrot.slane %v3261_v56, %v17681_v18  ;;  %v3061_v56 = vrot.slane %v3059_v29, 7  ;;  %v3279_v50 = vcombine.low %v3041_v24, %v3045_v33 }
 0x177   :  { %v24395_v26 = vshll.u32 %v18475_v1, 16  ;;  %v24396_v19 = vshrl.u32 %v17936_v22, 16  ;;  %v24398_v45 = vshrl.u32 %v17940_v23, 16  ;;  %v3286_v27 = vrot.slane %v3278_v49, %v17681_v18 }
 0x178   :  { %v3048_v41 = vor.u32 %v3047_v39, %v24392_v38  ;;  %v3050_v7 = vrot.slane %v3047_v39, 2  ;;  %v3277_v60 = vcombine.low %v3269_v21, %v3276_v52  ;;  %v24397_v21 = vshrl.u32 %v17920_v3, 16 }
 0x179   :  { %v3066_v29 = vrot.slane %v24396_v19, 7  ;;  %v3074_v16 = vrot.slane %v24398_v45, 7  ;;  %v3293_v24 = vrot.slane %v3279_v50, %v17681_v18  ;;  %v24399_v33 = vshrl.u32 %v17966_v53, 16 }
 0x17a   :  { %v3049_v39 = vsel %vm19113_vm10, %v3046_v30, %v3048_v41  ;;  %v3053_v38 = vsel %vm19113_vm10, %v3050_v7, %v3052_v6  ;;  %v3070_v52 = vrot.slane %v24397_v21, 7  ;;  %v24400_v7 = vshrl.u32 %v17917_v63, 16 }
 0x17b   :  { %v3295_v41 = vcombine.low %v3049_v39, %v3053_v38  ;;  %v24401_v6 = vshll.u32 %v17936_v22, 16  ;;  %v3069_v49 = vrot.slane %v3066_v29, 2  ;;  %v24402_v50 = vshll.u32 %v17920_v3, 16 }
 0x17c   :  { %15896 = vmatmul.mubr.msk.bf16.gmra.mrb[12].mxu0 %vm778_vm2, %v3260_v10  ;;  %v24391_v10 = vshrl.u32 %v17902_v57, 16  ;;  %v15880_v62 = vrot.slane %v24400_v7, 9  ;;  %v24403_v19 = vshll.u32 %v17940_v23, 16  ;;  %v3294_v45 = vcombine.low %v3286_v27, %v3293_v24  ;;  %v24405_v24 = vld [vmem:[#allocation27_spill] sm:$0xff]  ;;  %v24414_v23 = vld [vmem:[#allocation28_spill] sm:$0xff] }
 0x17d   :  { %3569 = vmatprep.mubr.bf16.mxu0 %v24217_v32  ;;  %v3090_v63 = vshrl.u32 %v18571_v43, 16  ;;  %v3303_v39 = vrot.slane %v3295_v41, %v17681_v18  ;;  %vm24123_vm0 = vcmask 1043456  }
 0x17e   :  { %v3055_v15 = vrot.slane %v24391_v10, 7  ;;  %v3062_v10 = vor.u32 %v3061_v56, %v24395_v26  ;;  %v3073_v26 = vrot.slane %v3070_v52, 2  ;;  %v3075_v21 = vor.u32 %v3074_v16, %v24403_v19 }
 0x180   :  { %v3056_v42 = vor.u32 %v3055_v15, %v24394_v51  ;;  %v3058_v12 = vrot.slane %v3055_v15, 2  ;;  %v3078_v15 = vrot.slane %v24399_v33, 7  ;;  %v3071_v51 = vor.u32 %v3070_v52, %v24402_v50 }
 0x181   :  { %v3076_v52 = vsel %vm19113_vm10, %v3073_v26, %v3075_v21  ;;  %v24406_v33 = vshrl.u32 %v24405_v24, 16  ;;  %v24411_v21 = vshll.u32 %v24405_v24, 16 }
 0x182   :  { %v3057_v56 = vsel %vm19113_vm10, %v3054_v28, %v3056_v42  ;;  %v3063_v30 = vsel %vm19113_vm10, %v3058_v12, %v3062_v10  ;;  %v3077_v42 = vrot.slane %v3074_v16, 2  ;;  %v24404_v12 = vshll.u32 %v17966_v53, 16 }
 0x183   :  { %v3296_v28 = vcombine.low %v3057_v56, %v3063_v30  ;;  %v3072_v38 = vsel %vm19113_vm10, %v3069_v49, %v3071_v51  ;;  %v3082_v56 = vrot.slane %v24406_v33, 7  ;;  %v24407_v30 = vld [vmem:[#allocation26_spill] sm:$0xff]  ;;  %v3081_v26 = vrot.slane %v3078_v15, 2 }
 0x184   :  { %15897 = vmatmul.mubr.msk.bf16.gmra.mrb[16].mxu0 %vm778_vm2, %v3277_v60  ;;  %v3067_v60 = vor.u32 %v3066_v29, %v24401_v6  ;;  %v3079_v10 = vor.u32 %v3078_v15, %v24404_v12  ;;  %v24408_v41 = vshrl.u32 %v24407_v30, 16  ;;  %v24409_v6 = vld [vmem:[#allocation30_spill] sm:$0xff]  ;;  %v24413_v33 = vshll.u32 %v18571_v43, 16  ;;  %v24417_v43 = vld [vmem:[#allocation29_spill] sm:$0xff] }
 0x185   :  { %3579 = vmatprep.mubr.bf16.mxu0 %v24217_v32  ;;  %v3310_v16 = vrot.slane %v3296_v28, %v17681_v18  ;;  %v3085_v28 = vrot.slane %v3082_v56, 2 }
 0x186   :  { %v3068_v29 = vsel %vm19113_vm10, %v15880_v62, %v3067_v60  ;;  %v3080_v27 = vsel %vm19113_vm10, %v3077_v42, %v3079_v10  ;;  %v3086_v7 = vrot.slane %v24408_v41, 7  ;;  %v3092_v62 = vrot.slane %v3090_v63, 7 }
 0x187   :  { %v24410_v60 = vshrl.u32 %v24409_v6, 16  ;;  %v3312_v50 = vcombine.low %v3068_v29, %v3072_v38  ;;  %v3313_v51 = vcombine.low %v3076_v52, %v3080_v27  ;;  %v3311_v19 = vcombine.low %v3303_v39, %v3310_v16 }
 0x188   :  { %v24412_v42 = vshll.u32 %v24407_v30, 16  ;;  %v3089_v10 = vrot.slane %v3086_v7, 2  ;;  %v3093_v41 = vor.u32 %v3092_v62, %v24413_v33  ;;  %v24415_v63 = vshrl.u32 %v24414_v23, 16  ;;  %v24428_v30 = vld [vmem:[#allocation33_spill] sm:$0xff] }
 0x189   :  { %v3097_v49 = vrot.slane %v24410_v60, 7  ;;  %v24416_v60 = vshll.u32 %v24409_v6, 16  ;;  %v3320_v15 = vrot.slane %v3312_v50, %v17681_v18  ;;  %v3327_v39 = vrot.slane %v3313_v51, %v17681_v18  ;;  %v24420_v50 = vld [vmem:[#allocation32_spill] sm:$0xff] }
 0x18a   :  { %v3087_v12 = vor.u32 %v3086_v7, %v24412_v42  ;;  %v15881_v53 = vrot.slane %v24415_v63, 9  ;;  %v24418_v16 = vshrl.u32 %v24417_v43, 16  ;;  %v3094_v62 = vsel %vm19113_vm10, %v3089_v10, %v3093_v41 }
 0x18b   :  { %v3098_v29 = vor.u32 %v3097_v49, %v24416_v60  ;;  %v24421_v51 = vshrl.u32 %v24420_v50, 16  ;;  %v3328_v42 = vcombine.low %v3320_v15, %v3327_v39  ;;  %v3100_v33 = vrot.slane %v3097_v49, 2 }
 0x18c   :  { %15898 = vmatmul.mubr.msk.bf16.gmra.mrb[20].mxu0 %vm778_vm2, %v3294_v45  ;;  %v3083_v45 = vor.u32 %v3082_v56, %v24411_v21  ;;  %v3088_v52 = vsel %vm19113_vm10, %v3085_v28, %v3087_v12  ;;  %v3101_v27 = vrot.slane %v24418_v16, 7  ;;  %v24419_v56 = vshrl.u32 %v24316_v37, 16 }
 0x18d   :  { %3589 = vmatprep.mubr.bf16.mxu0 %v24217_v32  ;;  %v3099_v6 = vsel %vm19113_vm10, %v15881_v53, %v3098_v29  ;;  %v3121_v28 = vshrl.u32 %v18660_v47, 16  ;;  %v24424_v60 = vshll.u32 %v24417_v43, 16  ;;  %v24425_v10 = vshll.u32 %v24316_v37, 16 }
 0x18e   :  { %v3084_v38 = vsel %vm19113_vm10, %v3081_v26, %v3083_v45  ;;  %v3105_v7 = vrot.slane %v24419_v56, 7  ;;  %v3109_v26 = vrot.slane %v24421_v51, 7  ;;  %v3330_v63 = vcombine.low %v3094_v62, %v3099_v6  ;;  %v24432_v6 = vld [vmem:[#allocation36_spill] sm:$0xff] }
 0x18f   :  { %v3329_v12 = vcombine.low %v3084_v38, %v3088_v52  ;;  %v3102_v16 = vor.u32 %v3101_v27, %v24424_v60  ;;  %v3104_v56 = vrot.slane %v3101_v27, 2  ;;  %v24426_v29 = vshll.u32 %v24420_v50, 16  ;;  %v24430_v38 = vld [vmem:[#allocation39_spill] sm:$0xff] }
 0x190   :  { %v3106_v41 = vor.u32 %v3105_v7, %v24425_v10  ;;  %v3108_v53 = vrot.slane %v3105_v7, 2  ;;  %v3112_v23 = vrot.slane %v3109_v26, 2  ;;  %v24429_v15 = vshrl.u32 %v24428_v30, 16  ;;  %v24436_v50 = vld [vmem:[#allocation35_spill] sm:$0xff] }
 0x191   :  { %v3110_v51 = vor.u32 %v3109_v26, %v24426_v29  ;;  %v3123_v49 = vrot.slane %v3121_v28, 7  ;;  %v24431_v52 = vshrl.u32 %v24430_v38, 16  ;;  %v24433_v27 = vshrl.u32 %v24432_v6, 16 }
 0x192   :  { %v3117_v39 = vrot.slane %v24429_v15, 7  ;;  %v3337_v7 = vrot.slane %v3329_v12, %v17681_v18  ;;  %v3344_v10 = vrot.slane %v3330_v63, %v17681_v18  ;;  %v3103_v26 = vsel %vm19113_vm10, %v3100_v33, %v3102_v16 }
 0x193   :  { %v3128_v62 = vrot.slane %v24431_v52, 7  ;;  %v3132_v60 = vrot.slane %v24433_v27, 7  ;;  %v3107_v28 = vsel %vm19113_vm10, %v3104_v56, %v3106_v41  ;;  %v3111_v29 = vsel %vm19113_vm10, %v3108_v53, %v3110_v51 }
 0x194   :  { %15899 = vmatmul.mubr.msk.bf16.gmra.mrb[24].mxu0 %vm778_vm2, %v3311_v19  ;;  %v24422_v19 = vld [vmem:[#allocation34_spill] sm:$0xff]  ;;  %v3120_v52 = vrot.slane %v3117_v39, 2  ;;  %v24435_v63 = vshll.u32 %v18660_v47, 16  ;;  %v24438_v16 = vshll.u32 %v24430_v38, 16  ;;  %v24439_v53 = vshll.u32 %v24432_v6, 16 }
 0x195   :  { %3599 = vmatprep.mubr.bf16.mxu0 %v24217_v32  ;;  %v24423_v21 = vshrl.u32 %v24422_v19, 16  ;;  %v3131_v41 = vrot.slane %v3128_v62, 2  ;;  %v3345_v43 = vcombine.low %v3337_v7, %v3344_v10  ;;  %v24443_v10 = vshrl.u32 %v24324_v25, 16 }
 0x196   :  { %v3124_v27 = vor.u32 %v3123_v49, %v24435_v63  ;;  %v3129_v56 = vor.u32 %v3128_v62, %v24438_v16  ;;  %v3133_v51 = vor.u32 %v3132_v60, %v24439_v53 }
 0x197   :  { %v3113_v45 = vrot.slane %v24423_v21, 7  ;;  %v24427_v21 = vshll.u32 %v24422_v19, 16  ;;  %v24437_v19 = vshrl.u32 %v24436_v50, 16 }
 0x198   :  { %v3125_v50 = vsel %vm19113_vm10, %v3120_v52, %v3124_v27  ;;  %v3134_v7 = vsel %vm19113_vm10, %v3131_v41, %v3133_v51  ;;  %v3135_v52 = vrot.slane %v3132_v60, 2  ;;  %v24445_v27 = vshll.u32 %v24322_v46, 16 }
 0x199   :  { %v3114_v24 = vor.u32 %v3113_v45, %v24427_v21  ;;  %v3116_v15 = vrot.slane %v3113_v45, 2  ;;  %v15882_v33 = vrot.slane %v24437_v19, 9  ;;  %v24440_v45 = vshrl.u32 %v24322_v46, 16  ;;  %v24441_v19 = vld [vmem:[#allocation37_spill] sm:$0xff] }
 0x19a   :  { %v24442_v49 = vshrl.u32 %v24441_v19, 16  ;;  %v24446_v41 = vshll.u32 %v24441_v19, 16 }
 0x19b   :  { %v3115_v21 = vsel %vm19113_vm10, %v3112_v23, %v3114_v24  ;;  %v3346_v23 = vcombine.low %v3103_v26, %v3107_v28  ;;  %v3130_v62 = vsel %vm19113_vm10, %v15882_v33, %v3129_v56  ;;  %v3144_v26 = vrot.slane %v24443_v10, 7 }
 0x19c   :  { %15900 = vmatmul.mubr.msk.bf16.gmra.mrb[28].mxu0 %vm778_vm2, %v3328_v42  ;;  %v24434_v42 = vshll.u32 %v24428_v30, 16  ;;  %v3347_v24 = vcombine.low %v3111_v29, %v3115_v21  ;;  %v3140_v63 = vrot.slane %v24442_v49, 7  ;;  %v24444_v28 = vshrl.u32 %v24325_v0, 16 }
 0x19d   :  { %3609 = vmatprep.mubr.bf16.mxu0 %v24217_v32  ;;  %v3354_v21 = vrot.slane %v3346_v23, %v17681_v18  ;;  %v3364_v16 = vcombine.low %v3130_v62, %v3134_v7  ;;  %v3147_v49 = vrot.slane %v3144_v26, 2  ;;  %v24448_v23 = vshll.u32 %v24325_v0, 16 }
 0x19e   :  { %v3118_v12 = vor.u32 %v3117_v39, %v24434_v42  ;;  %v3136_v42 = vrot.slane %v24440_v45, 7  ;;  %v3148_v29 = vrot.slane %v24444_v28, 7  ;;  %v3141_v53 = vor.u32 %v3140_v63, %v24446_v41  ;;  %v24449_v28 = vld [vmem:[#allocation46_spill] sm:$0xff]  ;;  %v24453_v41 = vld [vmem:[#allocation47_spill] sm:$0xff] }
 0x19f   :  { %v3143_v51 = vrot.slane %v3140_v63, 2  ;;  %v24447_v45 = vshll.u32 %v24324_v25, 16  ;;  %v3152_v10 = vshrl.u32 %v18757_v13, 16  ;;  %v24460_v46 = vshll.u32 %v24453_v41, 16 }
 0x1a0   :  { %v3119_v39 = vsel %vm19113_vm10, %v3116_v15, %v3118_v12  ;;  %v3361_v15 = vrot.slane %v3347_v24, %v17681_v18  ;;  %v3137_v33 = vor.u32 %v3136_v42, %v24445_v27  ;;  %v3139_v56 = vrot.slane %v3136_v42, 2 }
 0x1a1   :  { %v3363_v12 = vcombine.low %v3119_v39, %v3125_v50  ;;  %v3149_v24 = vor.u32 %v3148_v29, %v24448_v23  ;;  %v3378_v50 = vrot.slane %v3364_v16, %v17681_v18  ;;  %v24450_v27 = vshrl.u32 %v24449_v28, 16  ;;  %v24456_v23 = vld [vmem:[#allocation43_spill] sm:$0xff] }
 0x1a2   :  { %v3362_v39 = vcombine.low %v3354_v21, %v3361_v15  ;;  %v3138_v42 = vsel %vm19113_vm10, %v3135_v52, %v3137_v33  ;;  %v3142_v63 = vsel %vm19113_vm10, %v3139_v56, %v3141_v53  ;;  %v24451_v15 = vld [vmem:[#allocation45_spill] sm:$0xff]  ;;  %v24454_v52 = vshrl.u32 %v24453_v41, 16 }
 0x1a3   :  { %v3371_v60 = vrot.slane %v3363_v12, %v17681_v18  ;;  %v3150_v7 = vsel %vm19113_vm10, %v3147_v49, %v3149_v24  ;;  %v3159_v21 = vrot.slane %v24450_v27, 7  ;;  %v24452_v12 = vshrl.u32 %v24451_v15, 16 }
 0x1a4   :  { %15901 = vmatmul.mubr.msk.bf16.gmra.mrb[32].mxu0 %vm778_vm2, %v3345_v43  ;;  %v3145_v43 = vor.u32 %v3144_v26, %v24447_v45  ;;  %v3154_v26 = vrot.slane %v3152_v10, 7  ;;  %v3167_v33 = vrot.slane %v24454_v52, 7  ;;  %v3380_v53 = vcombine.low %v3138_v42, %v3142_v63 }
 0x1a5   :  { %3619 = vmatprep.mubr.bf16.mxu0 %v24217_v32  ;;  %v3163_v16 = vrot.slane %v24452_v12, 7  ;;  %v3379_v56 = vcombine.low %v3371_v60, %v3378_v50  ;;  %v3151_v45 = vrot.slane %v3148_v29, 2  ;;  %v24457_v24 = vshrl.u32 %v24456_v23, 16 }
 0x1a6   :  { %v3146_v62 = vsel %vm19113_vm10, %v3143_v51, %v3145_v43  ;;  %v24455_v43 = vshll.u32 %v18757_v13, 16  ;;  %v3162_v25 = vrot.slane %v3159_v21, 2  ;;  %v24459_v12 = vshll.u32 %v24451_v15, 16 }
 0x1a7   :  { %v3381_v51 = vcombine.low %v3146_v62, %v3150_v7  ;;  %v15883_v10 = vrot.slane %v24457_v24, 9  ;;  %v3166_v52 = vrot.slane %v3163_v16, 2  ;;  %v3168_v60 = vor.u32 %v3167_v33, %v24460_v46 }
 0x1a8   :  { %v3155_v49 = vor.u32 %v3154_v26, %v24455_v43  ;;  %v3164_v0 = vor.u32 %v3163_v16, %v24459_v12  ;;  %v3183_v50 = vshrl.u32 %v18811_v58, 16  ;;  %v3388_v29 = vrot.slane %v3380_v53, %v17681_v18 }
 0x1a9   :  { %v3395_v13 = vrot.slane %v3381_v51, %v17681_v18  ;;  %v3169_v46 = vsel %vm19113_vm10, %v3166_v52, %v3168_v60  ;;  %v24461_v7 = vshrl.u32 %v24290_v11, 16  ;;  %v24463_v16 = vshrl.u32 %v24328_v36, 16 }
 0x1aa   :  { %v3156_v42 = vsel %vm19113_vm10, %v3151_v45, %v3155_v49  ;;  %v3165_v62 = vsel %vm19113_vm10, %v3162_v25, %v3164_v0  ;;  %v3185_v51 = vrot.slane %v3183_v50, 7  ;;  %v3170_v49 = vrot.slane %v3167_v33, 2 }
 0x1ab   :  { %v3171_v26 = vrot.slane %v24461_v7, 7  ;;  %v3179_v53 = vrot.slane %v24463_v16, 7  ;;  %v3396_v45 = vcombine.low %v3388_v29, %v3395_v13  ;;  %v3398_v43 = vcombine.low %v3165_v62, %v3169_v46 }
 0x1ac   :  { %15902 = vmatmul.mubr.msk.bf16.gmra.mrb[36].mxu0 %vm778_vm2, %v3362_v39  ;;  %v24458_v39 = vshll.u32 %v24449_v28, 16  ;;  %v24462_v28 = vshrl.u32 %v24327_v5, 16  ;;  %v24464_v0 = vshll.u32 %v24290_v11, 16  ;;  %v24466_v12 = vshll.u32 %v24328_v36, 16 }
 0x1ad   :  { %3629 = vmatprep.mubr.bf16.mxu0 %v24217_v32  ;;  %v3174_v24 = vrot.slane %v3171_v26, 2  ;;  %v3182_v60 = vrot.slane %v3179_v53, 2  ;;  %v24467_v7 = vshll.u32 %v18811_v58, 16  ;;  %v3412_v33 = vrot.slane %v3398_v43, %v17681_v18  ;;  %v24470_v43 = vld [vmem:[#allocation6_spill] sm:$0xff] }
 0x1ae   :  { %v3160_v27 = vor.u32 %v3159_v21, %v24458_v39  ;;  %v3175_v21 = vrot.slane %v24462_v28, 7  ;;  %v3172_v25 = vor.u32 %v3171_v26, %v24464_v0  ;;  %v3180_v52 = vor.u32 %v3179_v53, %v24466_v12  ;;  %v24471_v12 = vld [vmem:[#allocation11_spill] sm:$0xff] }
 0x1af   :  { %v3186_v28 = vor.u32 %v3185_v51, %v24467_v7  ;;  %v24468_v51 = vld [vmem:[#allocation5_spill] sm:$0xff]  ;;  %v24473_v7 = vld [vmem:[#allocation15_spill] sm:$0xff] }
 0x1b0   :  { %v3161_v63 = vsel %vm19113_vm10, %v15883_v10, %v3160_v27  ;;  %v24465_v10 = vshll.u32 %v24327_v5, 16  ;;  %v3178_v27 = vrot.slane %v3175_v21, 2  ;;  %v3173_v29 = vsel %vm19113_vm10, %v3170_v49, %v3172_v25 }
 0x1b2   :  { %v3176_v39 = vor.u32 %v3175_v21, %v24465_v10  ;;  %v15911_v10 = vcombine.high %v17723_v48, %v24346_v17 }
 0x1b4   :  { %15903 = vmatmul.mubr.msk.bf16.gmra.mrb[40].mxu0 %vm778_vm2, %v3379_v56  ;;  %v3397_v56 = vcombine.low %v3156_v42, %v3161_v63  ;;  %v3177_v13 = vsel %vm19113_vm10, %v3174_v24, %v3176_v39  ;;  %v3181_v42 = vsel %vm19113_vm10, %v3178_v27, %v3180_v52  ;;  %v3187_v63 = vsel %vm19113_vm10, %v3182_v60, %v3186_v28  ;;  %v24472_v52 = vld [vmem:[#allocation10_spill] sm:$0xff]  ;;  %v24474_v28 = vld [vmem:[#allocation12_spill] sm:$0xff]  ;;  %vm10611_vm10 = vmor %vm2933_vm4, %vm10610_vm8 }
 0x1b5   :  { %3639 = vmatprep.mubr.bf16.mxu0 %v24217_v32  ;;  %v3414_v46 = vcombine.low %v3173_v29, %v3177_v13  ;;  %v3415_v26 = vcombine.low %v3181_v42, %v3187_v63  ;;  %v3748_v24 = vcombine.low %v24303_v34, %v17723_v48  ;;  %v3763_v39 = vrot.slane %v15911_v10, %v17681_v18  ;;  %v24475_v29 = vld [vmem:[#allocation16_spill] sm:$0xff]  ;;  %v24481_v10 = vld [vmem:[#allocation29_spill] sm:$0xff] }
 0x1b6   :  { %v3405_v50 = vrot.slane %v3397_v56, %v17681_v18  ;;  %v24469_v56 = vld [vmem:[#allocation7_spill] sm:$0xff]  ;;  %v3765_v60 = vcombine.low %v24472_v52, %v24471_v12  ;;  %v3783_v13 = vcombine.low %v24475_v29, %v24362_v31  ;;  %v24485_v29 = vld [vmem:[#allocation44_spill] sm:$0xff]  ;;  %vm24819_vm8 = vcmask 1047559  }
 0x1b7   :  { %v3422_v21 = vrot.slane %v3414_v46, %v17681_v18  ;;  %v3429_v16 = vrot.slane %v3415_v26, %v17681_v18  ;;  %v3732_v49 = vcombine.low %v24470_v43, %v24469_v56  ;;  %v3799_v46 = vcombine.low %v24370_v2, %v24310_v61  ;;  %v24477_v56 = vld [vmem:[#allocation24_spill] sm:$0xff] }
 0x1b8   :  { %v3413_v62 = vcombine.low %v3405_v50, %v3412_v33  ;;  %v3766_v50 = vcombine.low %v24474_v28, %v24473_v7  ;;  %v3773_v34 = vrot.slane %v3765_v60, %v17681_v18  ;;  %v3782_v33 = vcombine.low %v24358_v44, %v18285_v14 }
 0x1b9   :  { %v3430_v53 = vcombine.low %v3422_v21, %v3429_v16  ;;  %v3746_v0 = vrot.slane %v3732_v49, %v17681_v18  ;;  %v3797_v63 = vrot.slane %v3783_v13, %v17681_v18  ;;  %v3800_v26 = vcombine.low %v24311_v9, %v24374_v8  ;;  %v24479_v49 = vld [vmem:[#allocation27_spill] sm:$0xff]  ;;  %v24486_v13 = vld [vmem:[#allocation42_spill] sm:$0xff] }
 0x1ba   :  { %v3780_v48 = vrot.slane %v3766_v50, %v17681_v18  ;;  %v3790_v42 = vrot.slane %v3782_v33, %v17681_v18  ;;  %v3807_v14 = vrot.slane %v3799_v46, %v17681_v18  ;;  %v15912_v21 = vcombine.high %v24374_v8, %v24313_v35 }
 0x1bb   :  { %v3814_v31 = vrot.slane %v3800_v26, %v17681_v18  ;;  %v3817_v16 = vcombine.low %v17869_v20, %v17898_v55  ;;  %v3850_v8 = vcombine.low %v17936_v22, %v17920_v3  ;;  %v3901_v28 = vcombine.low %v24428_v30, %v18660_v47 }
 0x1bc   :  { %15904 = vmatmul.mubr.msk.bf16.gmra.mrb[44].mxu0 %vm778_vm2, %v3396_v45  ;;  %v3731_v45 = vcombine.low %v24468_v51, %v24297_v40  ;;  %v3756_v40 = vrot.slane %v3748_v24, %v17681_v18  ;;  %v3781_v17 = vcombine.low %v3773_v34, %v3780_v48  ;;  %v3824_v61 = vrot.slane %v15912_v21, %v17681_v18  ;;  %v17091_v21 = vld [vmem:[%s23850_s3 + $0x38] sm:$0xff]  }
 0x1bd   :  { %3649 = vmatprep.mubr.bf16.mxu0 %v24217_v32  ;;  %v3815_v44 = vcombine.low %v3807_v14, %v3814_v31  ;;  %v3831_v9 = vrot.slane %v3817_v16, %v17681_v18  ;;  %v3834_v51 = vcombine.low %v17902_v57, %v18475_v1  ;;  %v3902_v50 = vcombine.low %v24430_v38, %v24432_v6  ;;  %v17084_v31 = vld [vmem:[%s23850_s3] sm:$0xff]  }
 0x1be   :  { %v3739_v4 = vrot.slane %v3731_v45, %v17681_v18  ;;  %v3764_v27 = vcombine.low %v3756_v40, %v3763_v39  ;;  %v24476_v45 = vld [vmem:[#allocation25_spill] sm:$0xff]  ;;  %v3884_v40 = vcombine.low %v24481_v10, %v24316_v37  ;;  %v24482_v39 = vld [vmem:[#allocation34_spill] sm:$0xff]  ;;  %v3909_v37 = vrot.slane %v3901_v28, %v17681_v18  ;;  %9527 = vmatpush1.bf16.msra.mxu1 %v17084_v31 }
 0x1bf   :  { %v3832_v2 = vcombine.low %v3824_v61, %v3831_v9  ;;  %v3848_v20 = vrot.slane %v3834_v51, %v17681_v18  ;;  %v3851_v43 = vcombine.low %v24477_v56, %v24476_v45  ;;  %v3916_v34 = vrot.slane %v3902_v50, %v17681_v18  ;;  %9528 = vmatprep.subr.bf16.mxu1 %v24217_v32  ;;  %v17092_v16 = vld [vmem:[%s23850_s3 + $0x40] sm:$0xff]   ;;  %v17093_v61 = vld [vmem:[%s23850_s3 + $0x48] sm:$0xff]   ;;  %v17094_v9 = vld [vmem:[%s23850_s3 + $0x50] ss:$0 sps:$4 sm:$0xff]  }
 0x1c0   :  { %v3747_v25 = vcombine.low %v3739_v4, %v3746_v0  ;;  %v24480_v0 = vld [vmem:[#allocation28_spill] sm:$0xff]  ;;  %v3892_v52 = vrot.slane %v3884_v40, %v17681_v18  ;;  %v15914_v6 = vcombine.high %v24485_v29, %v24456_v23  ;;  %v3952_v26 = vcombine.low %v24290_v11, %v24327_v5  ;;  %v17087_v11 = vld [vmem:[%s23850_s3 + $0x18] sm:$0xff]   ;;  %v17089_v5 = vld [vmem:[%s23850_s3 + $0x28] sm:$0xff]  }
 0x1c1   :  { %v3865_v57 = vrot.slane %v3851_v43, %v17681_v18  ;;  %v3917_v48 = vcombine.low %v3909_v37, %v3916_v34  ;;  %v3953_v14 = vcombine.low %v24328_v36, %v18811_v58  ;;  %v17085_v36 = vld [vmem:[%s23850_s3 + $0x8] sm:$0xff]   ;;  %v17088_v58 = vld [vmem:[%s23850_s3 + $0x20] sm:$0xff]  }
 0x1c2   :  { %v3960_v23 = vrot.slane %v3952_v26, %v17681_v18  ;;  %9529 = vmatpush1.bf16.msra.mxu1 %v17085_v36 }
 0x1c3   :  { %9530 = vmatprep.subr.bf16.mxu1 %v24217_v32 }
 0x1c4   :  { %15905 = vmatmul.mubr.msk.bf16.gmra.mrb[48].mxu0 %vm778_vm2, %v3413_v62  ;;  %v3798_v62 = vcombine.low %v3790_v42, %v3797_v63  ;;  %v3919_v42 = vcombine.low %v24486_v13, %v24485_v29  ;;  %v3936_v63 = vcombine.low %v24451_v15, %v24453_v41  ;;  %v3967_v15 = vrot.slane %v3953_v14, %v17681_v18 }
 0x1c5   :  { %3659 = vmatprep.mubr.bf16.mxu0 %v24217_v32 }
 0x1c6   :  { %v3933_v30 = vrot.slane %v3919_v42, %v17681_v18  ;;  %v3968_v41 = vcombine.low %v3960_v23, %v3967_v15 }
 0x1cc   :  { %15906 = vmatmul.mubr.msk.bf16.gmra.mrb[52].mxu0 %vm778_vm2, %v3430_v53  ;;  %v3833_v53 = vcombine.low %v24388_v54, %v17906_v59  ;;  %v3858_v59 = vrot.slane %v3850_v8, %v17681_v18  ;;  %v24478_v54 = vld [vmem:[#allocation26_spill] sm:$0xff] }
 0x1cd   :  { %4067 = vmatprep.mubr.bf16.mxu0 %v24217_v32  ;;  %v3867_v4 = vcombine.low %v24479_v49, %v24478_v54 }
 0x1ce   :  { %v3841_v35 = vrot.slane %v3833_v53, %v17681_v18  ;;  %v3866_v1 = vcombine.low %v3858_v59, %v3865_v57  ;;  %v24487_v53 = vld [vmem:[#allocation2_spill] sm:$0xff] }
 0x1cf   :  { %v3875_v3 = vrot.slane %v3867_v4, %v17681_v18  ;;  %v24054_v51 = vsub.s32 0, %v24487_v53 }
 0x1d0   :  { %v3849_v55 = vcombine.low %v3841_v35, %v3848_v20  ;;  %v237_v35 = vld [vmem:[%s23851_s2] sm:$0x3]  ;;  %v24053_v20 = vsub.s32 1, %v24487_v53 }
 0x1d2   :  { %v19687_v8 = vrot.slane %v237_v35, %v24053_v20 }
 0x1d4   :  { %15920 = vmatmul.mubr.msk.bf16.vlgmr.msra.gmra.mrb[0].mxu0 %vm778_vm2, %v3747_v25  ;;  %v15913_v25 = vcombine.high %v24478_v54, %v24480_v0 }
 0x1d5   :  { %4077 = vmatprep.mubr.bf16.mxu0 %v24217_v32 }
 0x1d6   :  { %v3882_v22 = vrot.slane %v15913_v25, %v17681_v18 }
 0x1d8   :  { %v3883_v24 = vcombine.low %v3875_v3, %v3882_v22 }
 0x1dc   :  { %15921 = vmatmul.mubr.msk.bf16.gmra.mrb[4].mxu0 %vm778_vm2, %v3764_v27  ;;  %v24483_v27 = vld [vmem:[#allocation32_spill] sm:$0xff] }
 0x1dd   :  { %4087 = vmatprep.mubr.bf16.mxu0 %v24217_v32  ;;  %v3885_v12 = vcombine.low %v24483_v27, %v24482_v39 }
 0x1df   :  { %v3899_v60 = vrot.slane %v3885_v12, %v17681_v18 }
 0x1e1   :  { %v3900_v7 = vcombine.low %v3892_v52, %v3899_v60 }
 0x1e4   :  { %15922 = vmatmul.mubr.msk.bf16.gmra.mrb[8].mxu0 %vm778_vm2, %v3781_v17  ;;  %v24484_v17 = vld [vmem:[#allocation40_spill] sm:$0xff] }
 0x1e5   :  { %4097 = vmatprep.mubr.bf16.mxu0 %v24217_v32  ;;  %v3918_v33 = vcombine.low %v24484_v17, %v24441_v19  ;;  %v3943_v19 = vrot.slane %v15914_v6, %v17681_v18 }
 0x1e7   :  { %v3926_v47 = vrot.slane %v3918_v33, %v17681_v18 }
 0x1e9   :  { %v3934_v38 = vcombine.low %v3926_v47, %v3933_v30 }
 0x1ec   :  { %15923 = vmatmul.mubr.msk.bf16.gmra.mrb[12].mxu0 %vm778_vm2, %v3798_v62  ;;  %v3950_v62 = vrot.slane %v3936_v63, %v17681_v18  ;;  %v17086_v18 = vld [vmem:[%s23850_s3 + $0x10] sm:$0xff]  }
 0x1ed   :  { %4107 = vmatprep.mubr.bf16.mxu0 %v24217_v32  ;;  %9531 = vmatpush1.bf16.msra.mxu1 %v17086_v18 }
 0x1ee   :  { %v3951_v46 = vcombine.low %v3943_v19, %v3950_v62  ;;  %9532 = vmatprep.subr.bf16.mxu1 %v24217_v32 }
 0x1f1   :  { %9533 = vmatpush1.bf16.msra.mxu1 %v17087_v11 }
 0x1f2   :  { %9534 = vmatprep.subr.bf16.mxu1 %v24217_v32 }
 0x1f4   :  { %15924 = vmatmul.mubr.msk.bf16.gmra.mrb[16].mxu0 %vm778_vm2, %v3815_v44  ;;  %v17090_v44 = vld [vmem:[%s23850_s3 + $0x30] sm:$0xff]  }
 0x1f5   :  { %4117 = vmatprep.mubr.bf16.mxu0 %v24217_v32  ;;  %9535 = vmatpush1.bf16.msra.mxu1 %v17088_v58 }
 0x1f6   :  { %9536 = vmatprep.subr.bf16.mxu1 %v24217_v32 }
 0x1f9   :  { %9537 = vmatpush1.bf16.msra.mxu1 %v17089_v5 }
 0x1fa   :  { %9538 = vmatprep.subr.bf16.mxu1 %v24217_v32 }
 0x1fc   :  { %15925 = vmatmul.mubr.msk.bf16.gmra.mrb[20].mxu0 %vm778_vm2, %v3832_v2  ;;  %v9524_v2 = vsel %vm24123_vm0, %v17094_v9, 0 }
 0x1fd   :  { %4127 = vmatprep.mubr.bf16.mxu0 %v24217_v32  ;;  %9539 = vmatpush1.bf16.msra.mxu1 %v17090_v44 }
 0x1fe   :  { %9540 = vmatprep.subr.bf16.mxu1 %v24217_v32 }
 0x201   :  { %9541 = vmatpush1.bf16.msra.mxu1 %v17091_v21  ;;  %v17564_v21 = vmov 1966171168  }
 0x202   :  { %9542 = vmatprep.subr.bf16.mxu1 %v24217_v32 }
 0x204   :  { %15926 = vmatmul.mubr.msk.bf16.gmra.mrb[24].mxu0 %vm778_vm2, %v3849_v55  ;;  %v19683_v55 = vrot.slane %v237_v35, %v24054_v51 }
 0x205   :  { %4137 = vmatprep.mubr.bf16.mxu0 %v24217_v32  ;;  %9543 = vmatpush1.bf16.msra.mxu1 %v17092_v16  ;;  %v4603_v16 = vunpack.c.l.s4 %v17564_v21 }
 0x206   :  { %9544 = vmatprep.subr.bf16.mxu1 %v24217_v32 }
 0x209   :  { %9545 = vmatpush1.bf16.msra.mxu1 %v17093_v61 }
 0x20a   :  { %9546 = vmatprep.subr.bf16.mxu1 %v24217_v32 }
 0x20c   :  { %15927 = vmatmul.mubr.msk.bf16.gmra.mrb[28].mxu0 %vm778_vm2, %v3866_v1 }
 0x20d   :  { %4147 = vmatprep.mubr.bf16.mxu0 %v24217_v32  ;;  %9547 = vmatpush1.bf16.msra.mxu1 %v9524_v2 }
 0x20e   :  { %9702 = vmatprep.subr.bf16.mxu1 %v24217_v32 }
 0x214   :  { %15928 = vmatmul.mubr.msk.bf16.gmra.mrb[32].mxu0 %vm778_vm2, %v3883_v24 }
 0x215   :  { %4157 = vmatprep.mubr.bf16.mxu0 %v24217_v32 }
 0x21c   :  { %15929 = vmatmul.mubr.msk.bf16.gmra.mrb[36].mxu0 %vm778_vm2, %v3900_v7 }
 0x21d   :  { %4167 = vmatprep.mubr.bf16.mxu0 %v24217_v32 }
 0x224   :  { %15930 = vmatmul.mubr.msk.bf16.gmra.mrb[40].mxu0 %vm778_vm2, %v3917_v48 }
 0x225   :  { %4177 = vmatprep.mubr.bf16.mxu0 %v24217_v32 }
 0x22c   :  { %15931 = vmatmul.mubr.msk.bf16.gmra.mrb[44].mxu0 %vm778_vm2, %v3934_v38 }
 0x22d   :  { %4187 = vmatprep.mubr.bf16.mxu0 %v24217_v32 }
 0x234   :  { %15932 = vmatmul.mubr.msk.bf16.gmra.mrb[48].mxu0 %vm778_vm2, %v3951_v46 }
 0x235   :  { %4197 = vmatprep.mubr.bf16.mxu0 %v24217_v32 }
 0x23c   :  { %15933 = vmatmul.mubr.msk.bf16.gmra.mrb[52].mxu0 %vm778_vm2, %v3968_v41  ;;  %vm9018_vm2 = vcmask 1041409  }
 0x2a7   :  { %v4069_v45 = vpop.f32.mrb[0].mxu0 }
 0x2a8   :  { %v16652_v56 = vadd.f32 %v4069_v45, %v19683_v55  ;;  %v4071_v43 = vpop.f32.mrb[1].mxu0 }
 0x2a9   :  { %v16653_v59 = vadd.f32 %v4071_v43, %v19687_v8  ;;  %v4073_v57 = vpop.f32.mrb[2].mxu0 }
 0x2aa   :  { %v4264_v1 = vsub.f32 0.0, %v16652_v56  ;;  %v16654_v54 = vadd.f32 %v4073_v57, %v19683_v55  ;;  %v4075_v49 = vpop.f32.mrb[3].mxu0 }
 0x2ab   :  { %v4265_v4 = vsub.f32 0.0, %v16653_v59  ;;  %v16655_v0 = vadd.f32 %v4075_v49, %v19687_v8 }
 0x2ac   :  { %v4320_v25 = vmul.f32 1.442695, %v4264_v1  ;;  %v4266_v3 = vsub.f32 0.0, %v16654_v54  ;;  %v4604_v1 = vunpack.c.0.s8 %v4603_v16 }
 0x2ad   :  { %v4322_v22 = vmul.f32 1.442695, %v4265_v4  ;;  %v4267_v24 = vsub.f32 0.0, %v16655_v0 }
 0x2ae   :  { %17250 = vpow2.f32 %v4320_v25  ;;  %v4324_v10 = vmul.f32 1.442695, %v4266_v3 }
 0x2af   :  { %17252 = vpow2.f32 %v4322_v22  ;;  %v4326_v40 = vmul.f32 1.442695, %v4267_v24  ;;  %v4079_v39 = vpop.f32.mrb[4].mxu0 }
 0x2b0   :  { %17254 = vpow2.f32 %v4324_v10  ;;  %v16656_v27 = vadd.f32 %v4079_v39, %v19683_v55  ;;  %v4081_v12 = vpop.f32.mrb[5].mxu0 }
 0x2b1   :  { %17256 = vpow2.f32 %v4326_v40  ;;  %v16657_v52 = vadd.f32 %v4081_v12, %v19687_v8  ;;  %v4083_v60 = vpop.f32.mrb[6].mxu0 }
 0x2b2   :  { %v4268_v7 = vsub.f32 0.0, %v16656_v27  ;;  %v16658_v28 = vadd.f32 %v4083_v60, %v19683_v55  ;;  %v4085_v50 = vpop.f32.mrb[7].mxu0 }
 0x2b3   :  { %v4269_v37 = vsub.f32 0.0, %v16657_v52  ;;  %v16659_v34 = vadd.f32 %v4085_v50, %v19687_v8 }
 0x2b4   :  { %v4328_v48 = vmul.f32 1.442695, %v4268_v7  ;;  %v4270_v17 = vsub.f32 0.0, %v16658_v28  ;;  %v19706_v28 = vsub.s32 %v4604_v1, %v24487_v53 }
 0x2b5   :  { %v4330_v33 = vmul.f32 1.442695, %v4269_v37  ;;  %v4271_v29 = vsub.f32 0.0, %v16659_v34 }
 0x2b6   :  { %17258 = vpow2.f32 %v4328_v48  ;;  %v4332_v13 = vmul.f32 1.442695, %v4270_v17 }
 0x2b7   :  { %17260 = vpow2.f32 %v4330_v33  ;;  %v4334_v42 = vmul.f32 1.442695, %v4271_v29  ;;  %v4089_v47 = vpop.f32.mrb[8].mxu0 }
 0x2b8   :  { %v17251_v30 = vpop.eup %17250  ;;  %17262 = vpow2.f32 %v4332_v13  ;;  %v16660_v38 = vadd.f32 %v4089_v47, %v19683_v55  ;;  %v4091_v6 = vpop.f32.mrb[9].mxu0 }
 0x2b9   :  { %v17253_v63 = vpop.eup %17252  ;;  %v4432_v19 = vadd.f32 1.0, %v17251_v30  ;;  %17264 = vpow2.f32 %v4334_v42  ;;  %v16661_v62 = vadd.f32 %v4091_v6, %v19687_v8  ;;  %v4093_v46 = vpop.f32.mrb[10].mxu0 }
 0x2ba   :  { %v17255_v26 = vpop.eup %17254  ;;  %v4433_v14 = vadd.f32 1.0, %v17253_v63  ;;  %v4272_v23 = vsub.f32 0.0, %v16660_v38  ;;  %v16662_v15 = vadd.f32 %v4093_v46, %v19683_v55  ;;  %v4095_v41 = vpop.f32.mrb[11].mxu0 }
 0x2bb   :  { %v17257_v31 = vpop.eup %17256  ;;  %17266 = vrcp.f32 %v4432_v19  ;;  %v4434_v36 = vadd.f32 1.0, %v17255_v26  ;;  %v4273_v18 = vsub.f32 0.0, %v16661_v62  ;;  %v16663_v11 = vadd.f32 %v4095_v41, %v19687_v8 }
 0x2bc   :  { %17268 = vrcp.f32 %v4433_v14  ;;  %v4435_v58 = vadd.f32 1.0, %v17257_v31  ;;  %v4336_v5 = vmul.f32 1.442695, %v4272_v23  ;;  %v4274_v44 = vsub.f32 0.0, %v16662_v15 }
 0x2bd   :  { %17270 = vrcp.f32 %v4434_v36  ;;  %v4338_v61 = vmul.f32 1.442695, %v4273_v18  ;;  %v4275_v9 = vsub.f32 0.0, %v16663_v11 }
 0x2be   :  { %17272 = vrcp.f32 %v4435_v58  ;;  %v4340_v2 = vmul.f32 1.442695, %v4274_v44 }
 0x2bf   :  { %17274 = vpow2.f32 %v4336_v5  ;;  %v4342_v35 = vmul.f32 1.442695, %v4275_v9  ;;  %v4099_v45 = vpop.f32.mrb[12].mxu0 }
 0x2c0   :  { %v17259_v56 = vpop.eup %17258  ;;  %17276 = vpow2.f32 %v4338_v61  ;;  %v16664_v43 = vadd.f32 %v4099_v45, %v19683_v55  ;;  %v4101_v59 = vpop.f32.mrb[13].mxu0 }
 0x2c1   :  { %v17261_v57 = vpop.eup %17260  ;;  %v4436_v54 = vadd.f32 1.0, %v17259_v56  ;;  %17278 = vpow2.f32 %v4340_v2  ;;  %v16665_v49 = vadd.f32 %v4101_v59, %v19687_v8  ;;  %v4103_v4 = vpop.f32.mrb[14].mxu0 }
 0x2c2   :  { %v17263_v0 = vpop.eup %17262  ;;  %v4437_v25 = vadd.f32 1.0, %v17261_v57  ;;  %17280 = vpow2.f32 %v4342_v35  ;;  %v4276_v3 = vsub.f32 0.0, %v16664_v43  ;;  %v16666_v22 = vadd.f32 %v4103_v4, %v19683_v55  ;;  %v4105_v24 = vpop.f32.mrb[15].mxu0 }
 0x2c3   :  { %v17265_v10 = vpop.eup %17264  ;;  %17282 = vrcp.f32 %v4436_v54  ;;  %v4438_v40 = vadd.f32 1.0, %v17263_v0  ;;  %v4277_v39 = vsub.f32 0.0, %v16665_v49  ;;  %v16667_v27 = vadd.f32 %v4105_v24, %v19687_v8 }
 0x2c4   :  { %17284 = vrcp.f32 %v4437_v25  ;;  %v4439_v12 = vadd.f32 1.0, %v17265_v10  ;;  %v4344_v52 = vmul.f32 1.442695, %v4276_v3  ;;  %v4278_v60 = vsub.f32 0.0, %v16666_v22 }
 0x2c5   :  { %v17267_v7 = vpop.eup %17266  ;;  %17286 = vrcp.f32 %v4438_v40  ;;  %v4346_v50 = vmul.f32 1.442695, %v4277_v39  ;;  %v4279_v37 = vsub.f32 0.0, %v16667_v27 }
 0x2c6   :  { %v17269_v34 = vpop.eup %17268  ;;  %17288 = vrcp.f32 %v4439_v12  ;;  %v4348_v48 = vmul.f32 1.442695, %v4278_v60 }
 0x2c7   :  { %v17271_v17 = vpop.eup %17270  ;;  %v15934_v33 = vpack.c.bf16 %v17269_v34, %v17267_v7  ;;  %17290 = vpow2.f32 %v4344_v52  ;;  %v4350_v29 = vmul.f32 1.442695, %v4279_v37  ;;  %v4109_v13 = vpop.f32.mrb[16].mxu0 }
 0x2c8   :  { %v17273_v42 = vpop.eup %17272  ;;  %17292 = vpow2.f32 %v4346_v50  ;;  %v16668_v47 = vadd.f32 %v4109_v13, %v19683_v55  ;;  %v4111_v30 = vpop.f32.mrb[17].mxu0 }
 0x2c9   :  { %v17275_v38 = vpop.eup %17274  ;;  %v4608_v6 = vrot.slane %v15934_v33, %v19706_v28  ;;  %v15935_v63 = vpack.c.bf16 %v17273_v42, %v17271_v17  ;;  %17294 = vpow2.f32 %v4348_v48  ;;  %v4113_v19 = vpop.f32.mrb[18].mxu0  ;;  %v16669_v14 = vadd.f32 %v4111_v30, %v19687_v8 }
 0x2ca   :  { %v17277_v62 = vpop.eup %17276  ;;  %v4440_v46 = vadd.f32 1.0, %v17275_v38  ;;  %17296 = vpow2.f32 %v4350_v29  ;;  %v4280_v26 = vsub.f32 0.0, %v16668_v47  ;;  %v4115_v23 = vpop.f32.mrb[19].mxu0  ;;  %v16670_v21 = vadd.f32 %v4113_v19, %v19683_v55 }
 0x2cb   :  { %v17279_v15 = vpop.eup %17278  ;;  %v4616_v41 = vcombine.high %v4608_v6, %v4608_v6  ;;  %v4624_v31 = vrot.slane %v4608_v6, %v19706_v28  ;;  %v19713_v36 = vrot.slane %v15935_v63, %v19706_v28  ;;  %v4441_v18 = vadd.f32 1.0, %v17277_v62 }
 0x2cc   :  { %v17281_v11 = vpop.eup %17280  ;;  %17298 = vrcp.f32 %v4440_v46  ;;  %v4442_v58 = vadd.f32 1.0, %v17279_v15  ;;  %v4352_v9 = vmul.f32 1.442695, %v4280_v26  ;;  %v4281_v2 = vsub.f32 0.0, %v16669_v14 }
 0x2cd   :  { %v17283_v5 = vpop.eup %17282  ;;  %v19716_v44 = vrot.slane %v4616_v41, %v19706_v28  ;;  %17300 = vrcp.f32 %v4441_v18  ;;  %v4443_v61 = vadd.f32 1.0, %v17281_v11  ;;  %v19719_v45 = vcombine.high %v4624_v31, %v4624_v31 }
 0x2ce   :  { %v17285_v16 = vpop.eup %17284  ;;  %v5413_v56 = vshrl.u32 %v4624_v31, 16  ;;  %17302 = vrcp.f32 %v4442_v58  ;;  %v16671_v49 = vadd.f32 %v4115_v23, %v19687_v8  ;;  %v4282_v24 = vsub.f32 0.0, %v16670_v21 }
 0x2cf   :  { %v17287_v35 = vpop.eup %17286  ;;  %v15936_v59 = vpack.c.bf16 %v17285_v16, %v17283_v5  ;;  %v4119_v57 = vpop.f32.mrb[20].mxu0  ;;  %v5418_v54 = vshrl.u32 %v19716_v44, 16  ;;  %17304 = vrcp.f32 %v4443_v61  ;;  %v19729_v39 = vrot.slane %v19713_v36, %v19706_v28 }
 0x2d0   :  { %v17289_v1 = vpop.eup %17288  ;;  %v16672_v4 = vadd.f32 %v4119_v57, %v19683_v55  ;;  %v4121_v0 = vpop.f32.mrb[21].mxu0  ;;  %17306 = vpow2.f32 %v4352_v9  ;;  %v4283_v12 = vsub.f32 0.0, %v16671_v49  ;;  %v4354_v34 = vmul.f32 1.442695, %v4281_v2 }
 0x2d1   :  { %v17291_v25 = vpop.eup %17290  ;;  %v4658_v3 = vrot.slane %v15936_v59, %v19706_v28  ;;  %v15937_v22 = vpack.c.bf16 %v17289_v1, %v17287_v35  ;;  %v4123_v10 = vpop.f32.mrb[22].mxu0  ;;  %v19735_v33 = vmax.bf16 %v5413_v56, %v4624_v31  ;;  %v19738_v42 = vmax.bf16 %v5418_v54, %v19716_v44 }
 0x2d2   :  { %v17293_v40 = vpop.eup %17292  ;;  %v4444_v27 = vadd.f32 1.0, %v17291_v25  ;;  %v4125_v52 = vpop.f32.mrb[23].mxu0  ;;  %v4284_v13 = vsub.f32 0.0, %v16672_v4  ;;  %v4356_v30 = vmul.f32 1.442695, %v4282_v24  ;;  %v16673_v15 = vadd.f32 %v4121_v0, %v19687_v8 }
 0x2d3   :  { %v17295_v60 = vpop.eup %17294  ;;  %v4666_v7 = vcombine.high %v4658_v3, %v4658_v3  ;;  %v19732_v50 = vrot.slane %v4658_v3, %v19706_v28  ;;  %v4445_v37 = vadd.f32 1.0, %v17293_v40  ;;  %v19741_v47 = vrot.slane %v15937_v22, %v19706_v28 }
 0x2d4   :  { %v17297_v48 = vpop.eup %17296  ;;  %v4446_v29 = vadd.f32 1.0, %v17295_v60  ;;  %17308 = vrcp.f32 %v4444_v27  ;;  %v4358_v19 = vmul.f32 1.442695, %v4283_v12  ;;  %v4360_v26 = vmul.f32 1.442695, %v4284_v13 }
 0x2d5   :  { %v19744_v6 = vrot.slane %v4666_v7, %v19706_v28  ;;  %17310 = vrcp.f32 %v4445_v37  ;;  %v4447_v63 = vadd.f32 1.0, %v17297_v48  ;;  %v19748_v62 = vcombine.high %v19732_v50, %v19732_v50 }
 0x2d6   :  { %v17299_v38 = vpop.eup %17298  ;;  %v5453_v46 = vshrl.u32 %v19732_v50, 16  ;;  %17312 = vrcp.f32 %v4446_v29  ;;  %v16674_v41 = vadd.f32 %v4123_v10, %v19683_v55  ;;  %v16675_v31 = vadd.f32 %v4125_v52, %v19687_v8 }
 0x2d7   :  { %v4129_v14 = vpop.f32.mrb[24].mxu0  ;;  %v17301_v23 = vpop.eup %17300  ;;  %17314 = vrcp.f32 %v4447_v63  ;;  %v4285_v61 = vsub.f32 0.0, %v16673_v15  ;;  %v19763_v59 = vrot.slane %v19741_v47, %v19706_v28  ;;  %v5458_v25 = vshrl.u32 %v19744_v6, 16 }
 0x2d8   :  { %v4131_v18 = vpop.f32.mrb[25].mxu0  ;;  %v15938_v58 = vpack.c.bf16 %v17301_v23, %v17299_v38  ;;  %17316 = vpow2.f32 %v4354_v34  ;;  %v16676_v5 = vadd.f32 %v4129_v14, %v19683_v55  ;;  %v17303_v16 = vpop.eup %17302  ;;  %v4286_v9 = vsub.f32 0.0, %v16674_v41 }
 0x2d9   :  { %v19757_v21 = vpop.f32.mrb[26].mxu0  ;;  %17318 = vpow2.f32 %v4356_v30  ;;  %v4287_v2 = vsub.f32 0.0, %v16675_v31  ;;  %v17305_v56 = vpop.eup %17304  ;;  %v16677_v1 = vadd.f32 %v4131_v18, %v19687_v8  ;;  %v4362_v4 = vmul.f32 1.442695, %v4285_v61 }
 0x2da   :  { %v19759_v35 = vpop.f32.mrb[27].mxu0  ;;  %v4708_v57 = vrot.slane %v15938_v58, %v19706_v28  ;;  %17320 = vpow2.f32 %v4358_v19  ;;  %v17307_v54 = vpop.eup %17306  ;;  %v15939_v49 = vpack.c.bf16 %v17305_v56, %v17303_v16  ;;  %v4364_v0 = vmul.f32 1.442695, %v4286_v9 }
 0x2db   :  { %17322 = vpow2.f32 %v4360_v26  ;;  %v4288_v24 = vsub.f32 0.0, %v16676_v5  ;;  %v4448_v40 = vadd.f32 1.0, %v17307_v54  ;;  %v4366_v27 = vmul.f32 1.442695, %v4287_v2 }
 0x2dc   :  { %v4716_v3 = vcombine.high %v4708_v57, %v4708_v57  ;;  %v4724_v22 = vrot.slane %v4708_v57, %v19706_v28  ;;  %v4715_v10 = vrot.slane %v15939_v49, %v19706_v28  ;;  %17324 = vpow2.f32 %v4362_v4 }
 0x2dd   :  { %v4289_v37 = vsub.f32 0.0, %v16677_v1  ;;  %17326 = vpow2.f32 %v4364_v0  ;;  %v19782_v31 = vmax.bf16 %v5453_v46, %v19732_v50  ;;  %v19785_v18 = vmax.bf16 %v5458_v25, %v19744_v6 }
 0x2de   :  { %v17309_v12 = vpop.eup %17308  ;;  %v4738_v52 = vrot.slane %v4716_v3, %v19706_v28  ;;  %v4746_v60 = vcombine.high %v4724_v22, %v4724_v22  ;;  %v5493_v7 = vshrl.u32 %v4724_v22, 16  ;;  %v4717_v13 = vcombine.high %v4715_v10, %v4715_v10 }
 0x2df   :  { %v19771_v34 = vpop.f32.mrb[28].mxu0  ;;  %v17311_v48 = vpop.eup %17310  ;;  %v19775_v30 = vrot.slane %v4715_v10, %v19706_v28  ;;  %17328 = vpow2.f32 %v4366_v27  ;;  %v4368_v9 = vmul.f32 1.442695, %v4288_v24  ;;  %v19790_v2 = vmul.f32 1.442695, %v4289_v37 }
 0x2e0   :  { %v19777_v38 = vpop.f32.mrb[29].mxu0  ;;  %v17313_v63 = vpop.eup %17312  ;;  %v4748_v19 = vcombine.high %v4738_v52, %v4738_v52  ;;  %v5498_v26 = vshrl.u32 %v4738_v52, 16  ;;  %v5503_v14 = vshrl.u32 %v4746_v60, 16  ;;  %v6100_v23 = vmax.bf16 %v5493_v7, %v4724_v22 }
 0x2e1   :  { %v19779_v15 = vpop.f32.mrb[30].mxu0  ;;  %v17315_v41 = vpop.eup %17314  ;;  %v15940_v58 = vpack.c.bf16 %v17311_v48, %v17309_v12  ;;  %v5513_v61 = vshrl.u32 %v19775_v30, 16  ;;  %17330 = vrcp.f32 %v4448_v40  ;;  %v19793_v57 = vrot.slane %v4717_v13, %v19706_v28 }
 0x2e2   :  { %v19787_v5 = vpop.f32.mrb[31].mxu0  ;;  %v17317_v16 = vpop.eup %17316  ;;  %v15941_v46 = vpack.c.bf16 %v17315_v41, %v17313_v63  ;;  %v5508_v49 = vshrl.u32 %v4748_v19, 16  ;;  %v6101_v4 = vmax.bf16 %v5498_v26, %v4738_v52  ;;  %v6102_v0 = vmax.bf16 %v5503_v14, %v4746_v60 }
 0x2e3   :  { %v17319_v56 = vpop.eup %17318  ;;  %24488 = vst [vmem:[#allocation48_spill] sm:$0xff] %v19793_v57  ;;  %v4758_v50 = vrot.slane %v15940_v58, %v19706_v28  ;;  %v4449_v1 = vadd.f32 1.0, %v17317_v16  ;;  %v19797_v25 = vrot.slane %v6100_v23, %v19706_v28  ;;  %v19802_v40 = vmax.bf16 %v5513_v61, %v19775_v30 }
 0x2e4   :  { %v17321_v54 = vpop.eup %17320  ;;  %v4765_v10 = vrot.slane %v15941_v46, %v19706_v28  ;;  %v4450_v27 = vadd.f32 1.0, %v17319_v56  ;;  %v16678_v23 = vadd.f32 %v19757_v21, %v19683_v55  ;;  %v19818_v46 = vmax.bf16 %v5508_v49, %v4748_v19 }
 0x2e5   :  { %24489 = vst [vmem:[#allocation4_spill] sm:$0xff] %v19797_v25  ;;  %v17323_v3 = vpop.eup %17322  ;;  %v4766_v22 = vcombine.high %v4758_v50, %v4758_v50  ;;  %v4774_v24 = vrot.slane %v4758_v50, %v19706_v28  ;;  %17332 = vrcp.f32 %v4449_v1  ;;  %24490 = vst [vmem:[#allocation3_spill] sm:$0xff] %v19802_v40  ;;  %v4451_v12 = vadd.f32 1.0, %v17321_v54 }
 0x2e6   :  { %17334 = vpow2.f32 %v4368_v9  ;;  %v17325_v52 = vpop.eup %17324  ;;  %v4767_v13 = vcombine.high %v4765_v10, %v4765_v10  ;;  %v19810_v26 = vrot.slane %v4765_v10, %v19706_v28  ;;  %v4452_v14 = vadd.f32 1.0, %v17323_v3  ;;  %24492 = vst [vmem:[#allocation18_spill] sm:$0xff] %v19818_v46 }
 0x2e7   :  { %v19804_v7 = vpop.f32.mrb[32].mxu0  ;;  %v4788_v60 = vrot.slane %v4766_v22, %v19706_v28  ;;  %v4796_v37 = vcombine.high %v4774_v24, %v4774_v24  ;;  %v5533_v48 = vshrl.u32 %v4774_v24, 16  ;;  %17336 = vrcp.f32 %v4450_v27  ;;  %v17327_v58 = vpop.eup %17326 }
 0x2e8   :  { %v19807_v63 = vpop.f32.mrb[33].mxu0  ;;  %24491 = vst [vmem:[#allocation9_spill] sm:$0xff] %v19810_v26  ;;  %17338 = vrcp.f32 %v4451_v12  ;;  %v4453_v54 = vadd.f32 1.0, %v17325_v52  ;;  %v19823_v22 = vrot.slane %v6101_v4, %v19706_v28  ;;  %v19826_v21 = vrot.slane %v6102_v0, %v19706_v28 }
 0x2e9   :  { %v19814_v41 = vpop.f32.mrb[34].mxu0  ;;  %v4798_v16 = vcombine.high %v4788_v60, %v4788_v60  ;;  %v5538_v61 = vshrl.u32 %v4788_v60, 16  ;;  %v5543_v9 = vshrl.u32 %v4796_v37, 16  ;;  %v6108_v56 = vmax.bf16 %v5533_v48, %v4774_v24  ;;  %v17329_v3 = vpop.eup %17328 }
 0x2ea   :  { %v19816_v50 = vpop.f32.mrb[35].mxu0  ;;  %24493 = vst [vmem:[#allocation20_spill] sm:$0xff] %v19823_v22  ;;  %24494 = vst [vmem:[#allocation21_spill] sm:$0xff] %v19826_v21  ;;  %v19829_v10 = vrot.slane %v4767_v13, %v19706_v28  ;;  %v4454_v24 = vadd.f32 1.0, %v17327_v58  ;;  %v5553_v19 = vshrl.u32 %v19810_v26, 16  ;;  %17340 = vrcp.f32 %v4452_v14 }
 0x2eb   :  { %v17331_v27 = vpop.eup %17330  ;;  %v4455_v49 = vadd.f32 1.0, %v17329_v3  ;;  %v4290_v48 = vsub.f32 0.0, %v16678_v23  ;;  %v5548_v20 = vshrl.u32 %v4798_v16, 16  ;;  %v19832_v12 = vmax.bf16 %v5538_v61, %v4788_v60 }
 0x2ec   :  { %24495 = vst [vmem:[#allocation31_spill] sm:$0xff] %v19829_v10  ;;  %v19834_v52 = vmax.bf16 %v5543_v9, %v4796_v37  ;;  %v19837_v4 = vrot.slane %v6108_v56, %v19706_v28  ;;  %17342 = vrcp.f32 %v4453_v54  ;;  %v16679_v13 = vadd.f32 %v19759_v35, %v19687_v8 }
 0x2ed   :  { %v4372_v0 = vmul.f32 1.442695, %v4290_v48  ;;  %v16680_v58 = vadd.f32 %v19771_v34, %v19683_v55  ;;  %17344 = vrcp.f32 %v4454_v24  ;;  %v16681_v60 = vadd.f32 %v19777_v38, %v19687_v8 }
 0x2ee   :  { %24496 = vst [vmem:[#allocation50_spill] sm:$0xff] %v19837_v4  ;;  %v16682_v37 = vadd.f32 %v19779_v15, %v19683_v55  ;;  %v16683_v23 = vadd.f32 %v19787_v5, %v19687_v8  ;;  %17346 = vrcp.f32 %v4455_v49  ;;  %v4291_v56 = vsub.f32 0.0, %v16679_v13 }
 0x2ef   :  { %v19843_v51 = vpop.f32.mrb[36].mxu0  ;;  %v17333_v14 = vpop.eup %17332  ;;  %v4292_v34 = vsub.f32 0.0, %v16680_v58  ;;  %v19856_v3 = vmax.bf16 %v5553_v19, %v19810_v26  ;;  %17348 = vpow2.f32 %v19790_v2  ;;  %v4293_v38 = vsub.f32 0.0, %v16681_v60 }
 0x2f0   :  { %v19851_v61 = vpop.f32.mrb[37].mxu0  ;;  %v17335_v9 = vpop.eup %17334  ;;  %v15942_v35 = vpack.c.bf16 %v17333_v14, %v17331_v27  ;;  %v4294_v24 = vsub.f32 0.0, %v16682_v37  ;;  %17350 = vpow2.f32 %v4372_v0  ;;  %v4374_v1 = vmul.f32 1.442695, %v4291_v56 }
 0x2f1   :  { %v19853_v54 = vpop.f32.mrb[38].mxu0  ;;  %24497 = vst [vmem:[#allocation49_spill] sm:$0xff] %v19856_v3  ;;  %v17337_v48 = vpop.eup %17336  ;;  %v4376_v27 = vmul.f32 1.442695, %v4292_v34  ;;  %v19862_v49 = vmax.bf16 %v5548_v20, %v4798_v16  ;;  %v4378_v13 = vmul.f32 1.442695, %v4293_v38  ;;  %v16684_v38 = vadd.f32 %v19804_v7, %v19683_v55 }
 0x2f2   :  { %v19859_v15 = vpop.f32.mrb[39].mxu0  ;;  %v4808_v5 = vrot.slane %v15942_v35, %v19706_v28  ;;  %v4380_v58 = vmul.f32 1.442695, %v4294_v24  ;;  %v4295_v14 = vsub.f32 0.0, %v16683_v23  ;;  %v17339_v29 = vpop.eup %17338  ;;  %17352 = vpow2.f32 %v4374_v1 }
 0x2f3   :  { %24498 = vst [vmem:[#allocation41_spill] sm:$0xff] %v19862_v49  ;;  %v15943_v37 = vpack.c.bf16 %v17339_v29, %v17337_v48  ;;  %v4456_v17 = vadd.f32 1.0, %v17335_v9  ;;  %17354 = vpow2.f32 %v4376_v27  ;;  %v19875_v29 = vadd.f32 %v19807_v63, %v19687_v8 }
 0x2f4   :  { %v4816_v2 = vcombine.high %v4808_v5, %v4808_v5  ;;  %v4824_v60 = vrot.slane %v4808_v5, %v19706_v28  ;;  %v4382_v35 = vmul.f32 1.442695, %v4295_v14  ;;  %v17341_v0 = vpop.eup %17340  ;;  %17356 = vpow2.f32 %v4378_v13 }
 0x2f5   :  { %v4815_v23 = vrot.slane %v15943_v37, %v19706_v28  ;;  %17358 = vpow2.f32 %v4380_v58  ;;  %v19888_v19 = vrot.slane %v19832_v12, %v19706_v28  ;;  %v19892_v11 = vrot.slane %v19834_v52, %v19706_v28 }
 0x2f6   :  { %v4838_v56 = vrot.slane %v4816_v2, %v19706_v28  ;;  %v4846_v20 = vcombine.high %v4824_v60, %v4824_v60  ;;  %v5573_v16 = vshrl.u32 %v4824_v60, 16  ;;  %v17343_v9 = vpop.eup %17342  ;;  %17360 = vpow2.f32 %v4382_v35 }
 0x2f7   :  { %v19868_v34 = vpop.f32.mrb[40].mxu0  ;;  %v17345_v14 = vpop.eup %17344  ;;  %v4817_v2 = vcombine.high %v4815_v23, %v4815_v23  ;;  %v19882_v58 = vrot.slane %v4815_v23, %v19706_v28  ;;  %v15944_v37 = vpack.c.bf16 %v17343_v9, %v17341_v0  ;;  %24500 = vst [vmem:[#allocation8_spill] sm:$0xff] %v19888_v19  ;;  %24501 = vst [vmem:[#allocation14_spill] sm:$0xff] %v19892_v11  ;;  %17362 = vrcp.f32 %v4456_v17 }
 0x2f8   :  { %v19877_v1 = vpop.f32.mrb[41].mxu0  ;;  %v4848_v24 = vcombine.high %v4838_v56, %v4838_v56  ;;  %v5578_v48 = vshrl.u32 %v4838_v56, 16  ;;  %v5583_v5 = vshrl.u32 %v4846_v20, 16  ;;  %v6116_v27 = vmax.bf16 %v5573_v16, %v4824_v60  ;;  %v17347_v63 = vpop.eup %17346 }
 0x2f9   :  { %v19879_v13 = vpop.f32.mrb[42].mxu0  ;;  %24499 = vst [vmem:[#allocation38_spill] sm:$0xff] %v19882_v58  ;;  %v17349_v43 = vpop.eup %17348  ;;  %v4858_v0 = vrot.slane %v15944_v37, %v19706_v28  ;;  %v15945_v35 = vpack.c.bf16 %v17347_v63, %v17345_v14  ;;  %v19899_v32 = vrot.slane %v4817_v2, %v19706_v28  ;;  %v4296_v12 = vsub.f32 0.0, %v16684_v38 }
 0x2fa   :  { %v19884_v7 = vpop.f32.mrb[43].mxu0  ;;  %v5588_v60 = vshrl.u32 %v4848_v24, 16  ;;  %v19895_v16 = vrot.slane %v6116_v27, %v19706_v28  ;;  %v6117_v23 = vmax.bf16 %v5578_v48, %v4838_v56  ;;  %v17351_v9 = vpop.eup %17350  ;;  %v6118_v53 = vmax.bf16 %v5583_v5, %v4846_v20 }
 0x2fb   :  { %24503 = vst [vmem:[#allocation13_spill] sm:$0xff] %v19899_v32  ;;  %v4297_v19 = vsub.f32 0.0, %v19875_v29  ;;  %v5593_v52 = vshrl.u32 %v19882_v58, 16  ;;  %v4866_v11 = vcombine.high %v4858_v0, %v4858_v0  ;;  %v4874_v27 = vrot.slane %v4858_v0, %v19706_v28 }
 0x2fc   :  { %24502 = vst [vmem:[#allocation17_spill] sm:$0xff] %v19895_v16  ;;  %v4865_v3 = vrot.slane %v15945_v35, %v19706_v28  ;;  %v17353_v56 = vpop.eup %17352  ;;  %v19905_v48 = vmax.bf16 %v5588_v60, %v4848_v24  ;;  %v4457_v20 = vadd.f32 1.0, %v17349_v43  ;;  %v4458_v5 = vadd.f32 1.0, %v17351_v9 }
 0x2fd   :  { %v17355_v14 = vpop.eup %17354  ;;  %v19910_v38 = vrot.slane %v6117_v23, %v19706_v28  ;;  %v4888_v29 = vrot.slane %v4866_v11, %v19706_v28  ;;  %v4896_v2 = vcombine.high %v4874_v27, %v4874_v27  ;;  %v5613_v37 = vshrl.u32 %v4874_v27, 16 }
 0x2fe   :  { %24504 = vst [vmem:[#allocation19_spill] sm:$0xff] %v19905_v48  ;;  %v17357_v63 = vpop.eup %17356  ;;  %v4867_v0 = vcombine.high %v4865_v3, %v4865_v3  ;;  %v19914_v35 = vrot.slane %v4865_v3, %v19706_v28  ;;  %17364 = vrcp.f32 %v4457_v20  ;;  %v4459_v24 = vadd.f32 1.0, %v17353_v56 }
 0x2ff   :  { %24505 = vst [vmem:[#allocation22_spill] sm:$0xff] %v19910_v38  ;;  %v17359_v60 = vpop.eup %17358  ;;  %v4898_v48 = vcombine.high %v4888_v29, %v4888_v29  ;;  %v5618_v17 = vshrl.u32 %v4888_v29, 16  ;;  %v5623_v43 = vshrl.u32 %v4896_v2, 16  ;;  %v6124_v9 = vmax.bf16 %v5613_v37, %v4874_v27 }
 0x300   :  { %24506 = vst [vmem:[#allocation23_spill] sm:$0xff] %v19914_v35  ;;  %v19917_v16 = vrot.slane %v6118_v53, %v19706_v28  ;;  %v19920_v23 = vmax.bf16 %v5593_v52, %v19882_v58  ;;  %17366 = vrcp.f32 %v4458_v5  ;;  %v4460_v11 = vadd.f32 1.0, %v17355_v14  ;;  %v17361_v38 = vpop.eup %17360  ;;  %v19929_v14 = vpop.f32.mrb[44].mxu0 }
 0x301   :  { %v5628_v32 = vshrl.u32 %v4898_v48, 16  ;;  %v5633_v3 = vshrl.u32 %v19914_v35, 16  ;;  %v4461_v49 = vadd.f32 1.0, %v17357_v63  ;;  %v4384_v20 = vmul.f32 1.442695, %v4296_v12  ;;  %v17363_v37 = vpop.eup %17362  ;;  %24511 = vst [vmem:[#allocation35_spill] sm:$0xff] %v19929_v14 }
 0x302   :  { %24507 = vst [vmem:[#allocation30_spill] sm:$0xff] %v19917_v16  ;;  %24508 = vst [vmem:[#allocation33_spill] sm:$0xff] %v19920_v23  ;;  %v19924_v56 = vrot.slane %v4867_v0, %v19706_v28  ;;  %17368 = vrcp.f32 %v4459_v24  ;;  %v4462_v4 = vadd.f32 1.0, %v17359_v60  ;;  %v4386_v27 = vmul.f32 1.442695, %v4297_v19 }
 0x303   :  { %v6125_v53 = vmax.bf16 %v5618_v17, %v4888_v29  ;;  %v6126_v16 = vmax.bf16 %v5623_v43, %v4896_v2  ;;  %v19927_v52 = vrot.slane %v6124_v9, %v19706_v28  ;;  %v4463_v5 = vadd.f32 1.0, %v17361_v38 }
 0x304   :  { %24509 = vst [vmem:[#allocation39_spill] sm:$0xff] %v19924_v56  ;;  %17370 = vrcp.f32 %v4460_v11  ;;  %v16686_v63 = vadd.f32 %v19814_v41, %v19683_v55  ;;  %v16687_v12 = vadd.f32 %v19816_v50, %v19687_v8  ;;  %v24512_v19 = vcombine.high %v19713_v36, %v19713_v36 }
 0x305   :  { %24510 = vst [vmem:[#allocation36_spill] sm:$0xff] %v19927_v52  ;;  %v19939_v17 = vmax.bf16 %v5628_v32, %v4898_v48  ;;  %v19942_v29 = vmax.bf16 %v5633_v3, %v19914_v35  ;;  %17372 = vrcp.f32 %v4461_v49  ;;  %v4648_v38 = vcombine.high %v19716_v44, %v19716_v44 }
 0x306   :  { %v4645_v0 = vrot.slane %v24512_v19, %v19706_v28  ;;  %17374 = vrcp.f32 %v4462_v4  ;;  %v4298_v2 = vsub.f32 0.0, %v16686_v63  ;;  %v4299_v41 = vsub.f32 0.0, %v16687_v12 }
 0x307   :  { %24513 = vst [vmem:[#allocation37_spill] sm:$0xff] %v19939_v17  ;;  %24514 = vst [vmem:[#allocation46_spill] sm:$0xff] %v19942_v29  ;;  %v24515_v50 = vcombine.high %v19741_v47, %v19741_v47  ;;  %v19955_v36 = vrot.slane %v6125_v53, %v19706_v28  ;;  %17376 = vrcp.f32 %v4463_v5  ;;  %v4647_v49 = vcombine.high %v19729_v39, %v19729_v39 }
 0x308   :  { %v17365_v44 = vpop.eup %17364  ;;  %v4388_v4 = vmul.f32 1.442695, %v4298_v2  ;;  %v4390_v48 = vmul.f32 1.442695, %v4299_v41  ;;  %v4649_v60 = vcombine.high %v4645_v0, %v4645_v0  ;;  %v4698_v43 = vcombine.high %v19744_v6, %v19744_v6 }
 0x309   :  { %v19950_v24 = vrot.slane %v24515_v50, %v19706_v28  ;;  %24516 = vst [vmem:[#allocation45_spill] sm:$0xff] %v19955_v36  ;;  %v19962_v47 = vrot.slane %v6126_v16, %v19706_v28  ;;  %v15946_v9 = vpack.c.bf16 %v17365_v44, %v17363_v37  ;;  %17378 = vpow2.f32 %v4384_v20 }
 0x30a   :  { %v19966_v11 = vcombine.high %v19763_v59, %v19763_v59  ;;  %v17367_v3 = vpop.eup %17366  ;;  %17380 = vpow2.f32 %v4386_v27  ;;  %v5428_v5 = vshrl.u32 %v4648_v38, 16  ;;  %v5433_v63 = vshrl.u32 %v19729_v39, 16 }
 0x30b   :  { %24517 = vst [vmem:[#allocation47_spill] sm:$0xff] %v19962_v47  ;;  %v19970_v53 = vcombine.high %v19950_v24, %v19950_v24  ;;  %v4908_v6 = vrot.slane %v15946_v9, %v19706_v28  ;;  %17382 = vpow2.f32 %v4388_v4  ;;  %v5438_v16 = vshrl.u32 %v4645_v0, 16 }
 0x30c   :  { %v5443_v12 = vshrl.u32 %v4647_v49, 16  ;;  %v17369_v37 = vpop.eup %17368  ;;  %17384 = vpow2.f32 %v4390_v48  ;;  %v5448_v20 = vshrl.u32 %v4649_v60, 16  ;;  %v5468_v19 = vshrl.u32 %v4698_v43, 16 }
 0x30d   :  { %v5473_v2 = vshrl.u32 %v19763_v59, 16  ;;  %v4916_v41 = vcombine.high %v4908_v6, %v4908_v6  ;;  %v4924_v27 = vrot.slane %v4908_v6, %v19706_v28  ;;  %v15947_v50 = vpack.c.bf16 %v17369_v37, %v17367_v3 }
 0x30e   :  { %v5478_v44 = vshrl.u32 %v19950_v24, 16  ;;  %v17371_v32 = vpop.eup %17370  ;;  %v24518_v4 = vshrl.u32 %v19719_v45, 16  ;;  %v19984_v48 = vmax.bf16 %v5428_v5, %v4648_v38  ;;  %v19989_v52 = vmax.bf16 %v5433_v63, %v19729_v39 }
 0x30f   :  { %v17373_v36 = vpop.eup %17372  ;;  %v4938_v29 = vrot.slane %v4916_v41, %v19706_v28  ;;  %v4946_v17 = vcombine.high %v4924_v27, %v4924_v27  ;;  %v5653_v6 = vshrl.u32 %v4924_v27, 16  ;;  %v4915_v3 = vrot.slane %v15947_v50, %v19706_v28 }
 0x310   :  { %v19982_v47 = vmax.bf16 %v24518_v4, %v19719_v45  ;;  %v17375_v37 = vpop.eup %17374  ;;  %v15948_v23 = vpack.c.bf16 %v17373_v36, %v17371_v32  ;;  %v19991_v9 = vmax.bf16 %v5438_v16, %v4645_v0  ;;  %v19993_v56 = vmax.bf16 %v5443_v12, %v4647_v49  ;;  %v20006_v16 = vpop.f32.mrb[45].mxu0 }
 0x311   :  { %v17377_v45 = vpop.eup %17376  ;;  %v4948_v4 = vcombine.high %v4938_v29, %v4938_v29  ;;  %v5658_v38 = vshrl.u32 %v4938_v29, 16  ;;  %v5663_v5 = vshrl.u32 %v4946_v17, 16  ;;  %v6132_v35 = vmax.bf16 %v5653_v6, %v4924_v27  ;;  %24521 = vst [vmem:[#allocation5_spill] sm:$0xff] %v20006_v16 }
 0x312   :  { %v4917_v58 = vcombine.high %v4915_v3, %v4915_v3  ;;  %v19996_v41 = vrot.slane %v4915_v3, %v19706_v28  ;;  %v4958_v50 = vrot.slane %v15948_v23, %v19706_v28  ;;  %v15949_v14 = vpack.c.bf16 %v17377_v45, %v17375_v37 }
 0x313   :  { %v17379_v32 = vpop.eup %17378  ;;  %v5668_v36 = vshrl.u32 %v4948_v4, 16  ;;  %v6091_v39 = vmax.bf16 %v5448_v20, %v4649_v60  ;;  %v24520_v0 = vshrl.u32 %v19748_v62, 16  ;;  %v20004_v63 = vmax.bf16 %v5468_v19, %v4698_v43 }
 0x314   :  { %24519 = vst [vmem:[#allocation43_spill] sm:$0xff] %v19996_v41  ;;  %v17381_v12 = vpop.eup %17380  ;;  %v4966_v27 = vcombine.high %v4958_v50, %v4958_v50  ;;  %v4974_v6 = vrot.slane %v4958_v50, %v19706_v28  ;;  %v20010_v3 = vmax.bf16 %v5473_v2, %v19763_v59  ;;  %v20013_v23 = vmax.bf16 %v5478_v44, %v19950_v24 }
 0x315   :  { %v20002_v49 = vmax.bf16 %v24520_v0, %v19748_v62  ;;  %v17383_v60 = vpop.eup %17382  ;;  %v6133_v20 = vmax.bf16 %v5658_v38, %v4938_v29  ;;  %v6134_v37 = vmax.bf16 %v5663_v5, %v4946_v17  ;;  %v20016_v62 = vrot.slane %v6132_v35, %v19706_v28 }
 0x316   :  { %v20019_v43 = vrot.slane %v4917_v58, %v19706_v28  ;;  %v17385_v19 = vpop.eup %17384  ;;  %v5673_v45 = vshrl.u32 %v19996_v41, 16  ;;  %v4988_v50 = vrot.slane %v4966_v27, %v19706_v28  ;;  %v4996_v0 = vcombine.high %v4974_v6, %v4974_v6 }
 0x317   :  { %24522 = vst [vmem:[#allocation7_spill] sm:$0xff] %v20016_v62  ;;  %v5693_v59 = vshrl.u32 %v4974_v6, 16  ;;  %v20023_v2 = vmax.bf16 %v5668_v36, %v4948_v4  ;;  %v4965_v24 = vrot.slane %v15949_v14, %v19706_v28  ;;  %v4464_v44 = vadd.f32 1.0, %v17379_v32 }
 0x318   :  { %24523 = vst [vmem:[#allocation6_spill] sm:$0xff] %v20019_v43  ;;  %v4465_v29 = vadd.f32 1.0, %v17381_v12  ;;  %v4998_v17 = vcombine.high %v4988_v50, %v4988_v50  ;;  %v5698_v38 = vshrl.u32 %v4988_v50, 16  ;;  %v5703_v35 = vshrl.u32 %v4996_v0, 16 }
 0x319   :  { %24524 = vst [vmem:[#allocation11_spill] sm:$0xff] %v20023_v2  ;;  %v6140_v5 = vmax.bf16 %v5693_v59, %v4974_v6  ;;  %v4967_v16 = vcombine.high %v4965_v24, %v4965_v24  ;;  %v20027_v58 = vrot.slane %v4965_v24, %v19706_v28  ;;  %17386 = vrcp.f32 %v4464_v44 }
 0x31a   :  { %v4466_v43 = vadd.f32 1.0, %v17383_v60  ;;  %v20032_v4 = vrot.slane %v6133_v20, %v19706_v28  ;;  %v5708_v36 = vshrl.u32 %v4998_v17, 16  ;;  %v4467_v14 = vadd.f32 1.0, %v17385_v19 }
 0x31b   :  { %24525 = vst [vmem:[#allocation10_spill] sm:$0xff] %v20027_v58  ;;  %v20035_v32 = vrot.slane %v6134_v37, %v19706_v28  ;;  %v20038_v12 = vmax.bf16 %v5673_v45, %v19996_v41  ;;  %v6141_v6 = vmax.bf16 %v5698_v38, %v4988_v50  ;;  %17388 = vrcp.f32 %v4465_v29 }
 0x31c   :  { %24526 = vst [vmem:[#allocation15_spill] sm:$0xff] %v20032_v4  ;;  %v6142_v59 = vmax.bf16 %v5703_v35, %v4996_v0  ;;  %v20041_v24 = vrot.slane %v6140_v5, %v19706_v28  ;;  %v20044_v60 = vrot.slane %v4967_v16, %v19706_v28  ;;  %v5713_v20 = vshrl.u32 %v20027_v58, 16 }
 0x31d   :  { %24527 = vst [vmem:[#allocation12_spill] sm:$0xff] %v20035_v32  ;;  %24528 = vst [vmem:[#allocation16_spill] sm:$0xff] %v20038_v12  ;;  %v20047_v44 = vmax.bf16 %v5708_v36, %v4998_v17  ;;  %17390 = vrcp.f32 %v4466_v43  ;;  %v24532_v37 = vshrl.u32 %v19966_v11, 16  ;;  %v20054_v45 = vrot.slane %v19735_v33, %v19706_v28 }
 0x31e   :  { %24529 = vst [vmem:[#allocation25_spill] sm:$0xff] %v20041_v24  ;;  %24530 = vst [vmem:[#allocation24_spill] sm:$0xff] %v20044_v60  ;;  %17392 = vrcp.f32 %v4467_v14  ;;  %v20058_v50 = vrot.slane %v19738_v42, %v19706_v28  ;;  %v20062_v16 = vrot.slane %v19982_v47, %v19706_v28  ;;  %v20066_v43 = vrot.slane %v19984_v48, %v19706_v28  ;;  %v20082_v47 = vpop.f32.mrb[46].mxu0 }
 0x31f   :  { %24531 = vst [vmem:[#allocation26_spill] sm:$0xff] %v20047_v44  ;;  %v6098_v19 = vmax.bf16 %v24532_v37, %v19966_v11  ;;  %v6336_v11 = vcombine.high %v20054_v45, %v20054_v45  ;;  %v20072_v33 = vrot.slane %v19989_v52, %v19706_v28  ;;  %v20076_v0 = vrot.slane %v19991_v9, %v19706_v28  ;;  %v20093_v9 = vpop.f32.mrb[47].mxu0 }
 0x320   :  { %v20080_v42 = vrot.slane %v19993_v56, %v19706_v28  ;;  %24533 = vst [vmem:[#allocation27_spill] sm:$0xff] %v20082_v47  ;;  %v6358_v29 = vcombine.high %v20058_v50, %v20058_v50  ;;  %v6380_v52 = vcombine.high %v20062_v16, %v20062_v16  ;;  %v20091_v17 = vrot.slane %v6091_v39, %v19706_v28 }
 0x321   :  { %24534 = vst [vmem:[#allocation28_spill] sm:$0xff] %v20093_v9  ;;  %v20096_v38 = vrot.slane %v6141_v6, %v19706_v28  ;;  %v20099_v56 = vrot.slane %v6142_v59, %v19706_v28  ;;  %v20102_v35 = vmax.bf16 %v5713_v20, %v20027_v58  ;;  %v24538_v5 = vshrl.u32 %v19970_v53, 16 }
 0x322   :  { %v20108_v14 = vrot.slane %v6336_v11, %v19706_v28  ;;  %v6402_v39 = vcombine.high %v20066_v43, %v20066_v43  ;;  %v6424_v6 = vcombine.high %v20072_v33, %v20072_v33  ;;  %v6446_v59 = vcombine.high %v20076_v0, %v20076_v0 }
 0x323   :  { %24535 = vst [vmem:[#allocation29_spill] sm:$0xff] %v20096_v38  ;;  %24536 = vst [vmem:[#allocation34_spill] sm:$0xff] %v20099_v56  ;;  %v6099_v36 = vmax.bf16 %v24538_v5, %v19970_v53  ;;  %v17387_v37 = vpop.eup %17386  ;;  %v20117_v20 = vrot.slane %v6358_v29, %v19706_v28  ;;  %v20120_v48 = vrot.slane %v6380_v52, %v19706_v28 }
 0x324   :  { %24537 = vst [vmem:[#allocation32_spill] sm:$0xff] %v20102_v35  ;;  %v6468_v53 = vcombine.high %v20080_v42, %v20080_v42  ;;  %v20126_v11 = vrot.slane %v19782_v31, %v19706_v28  ;;  %v6490_v5 = vcombine.high %v20091_v17, %v20091_v17  ;;  %v20132_v27 = vrot.slane %v19785_v18, %v19706_v28 }
 0x325   :  { %v20136_v29 = vrot.slane %v20002_v49, %v19706_v28  ;;  %v20140_v52 = vrot.slane %v20004_v63, %v19706_v28  ;;  %v17389_v35 = vpop.eup %17388  ;;  %v20146_v44 = vrot.slane %v20010_v3, %v19706_v28  ;;  %v20150_v18 = vrot.slane %v20013_v23, %v19706_v28  ;;  %v20155_v49 = vpop.f32.mrb[48].mxu0 }
 0x326   :  { %v6512_v31 = vcombine.high %v20126_v11, %v20126_v11  ;;  %v20153_v56 = vrot.slane %v6098_v19, %v19706_v28  ;;  %24539 = vst [vmem:[#allocation40_spill] sm:$0xff] %v20155_v49  ;;  %v15950_v38 = vpack.c.bf16 %v17389_v35, %v17387_v37  ;;  %v20158_v63 = vrot.slane %v6402_v39, %v19706_v28  ;;  %v20164_v62 = vpop.f32.mrb[49].mxu0 }
 0x327   :  { %v6534_v24 = vcombine.high %v20132_v27, %v20132_v27  ;;  %v6556_v3 = vcombine.high %v20136_v29, %v20136_v29  ;;  %24540 = vst [vmem:[#allocation44_spill] sm:$0xff] %v20164_v62  ;;  %v17391_v12 = vpop.eup %17390  ;;  %v20167_v23 = vrot.slane %v6424_v6, %v19706_v28  ;;  %v6578_v19 = vcombine.high %v20140_v52, %v20140_v52  ;;  %v20175_v37 = vpop.f32.mrb[50].mxu0 }
 0x328   :  { %v6600_v35 = vcombine.high %v20146_v44, %v20146_v44  ;;  %v6622_v39 = vcombine.high %v20150_v18, %v20150_v18  ;;  %24541 = vst [vmem:[#allocation42_spill] sm:$0xff] %v20175_v37  ;;  %v17393_v2 = vpop.eup %17392  ;;  %v5008_v32 = vrot.slane %v15950_v38, %v19706_v28  ;;  %v6460_v4 = vrot.slane %v6446_v59, %v19706_v28  ;;  %v20184_v58 = vpop.f32.mrb[51].mxu0 }
 0x329   :  { %v20180_v60 = vrot.slane %v6468_v53, %v19706_v28  ;;  %v6644_v6 = vcombine.high %v20153_v56, %v20153_v56  ;;  %24542 = vst [vmem:[#allocation51_spill] sm:$0xff] %v20184_v58  ;;  %v15951_v41 = vpack.c.bf16 %v17393_v2, %v17391_v12  ;;  %v6504_v62 = vrot.slane %v6490_v5, %v19706_v28 }
 0x32a   :  { %v20188_v49 = vrot.slane %v6512_v31, %v19706_v28  ;;  %v6548_v37 = vrot.slane %v6534_v24, %v19706_v28  ;;  %v5016_v9 = vcombine.high %v5008_v32, %v5008_v32  ;;  %v5024_v38 = vrot.slane %v5008_v32, %v19706_v28 }
 0x32b   :  { %v6570_v59 = vrot.slane %v6556_v3, %v19706_v28  ;;  %v20194_v53 = vrot.slane %v6099_v36, %v19706_v28  ;;  %v5015_v47 = vrot.slane %v15951_v41, %v19706_v28  ;;  %v6592_v58 = vrot.slane %v6578_v19, %v19706_v28 }
 0x32c   :  { %v6614_v2 = vrot.slane %v6600_v35, %v19706_v28  ;;  %v6636_v12 = vrot.slane %v6622_v39, %v19706_v28  ;;  %v5038_v5 = vrot.slane %v5016_v9, %v19706_v28  ;;  %v5046_v31 = vcombine.high %v5024_v38, %v5024_v38 }
 0x32d   :  { %v5733_v24 = vshrl.u32 %v5024_v38, 16  ;;  %v6658_v25 = vrot.slane %v6644_v6, %v19706_v28  ;;  %v5017_v32 = vcombine.high %v5015_v47, %v5015_v47  ;;  %v20203_v3 = vrot.slane %v5015_v47, %v19706_v28 }
 0x32e   :  { %v6666_v36 = vcombine.high %v20194_v53, %v20194_v53  ;;  %v8794_v41 = vunpack.c.l.b16 %v20108_v14  ;;  %v5048_v19 = vcombine.high %v5038_v5, %v5038_v5  ;;  %v5738_v35 = vshrl.u32 %v5038_v5, 16 }
 0x32f   :  { %24543 = vst [vmem:[#allocation52_spill] sm:$0xff] %v20203_v3  ;;  %v5743_v40 = vshrl.u32 %v5046_v31, 16  ;;  %v6148_v39 = vmax.bf16 %v5733_v24, %v5024_v38  ;;  %v5753_v9 = vshrl.u32 %v20203_v3, 16  ;;  %v8796_v46 = vunpack.c.l.b16 %v20117_v20 }
 0x330   :  { %v8798_v6 = vunpack.c.l.b16 %v20120_v48  ;;  %v8800_v21 = vunpack.c.l.b16 %v20158_v63  ;;  %v5748_v47 = vshrl.u32 %v5048_v19, 16  ;;  %v20213_v22 = vrot.slane %v5017_v32, %v19706_v28 }
 0x331   :  { %v8802_v14 = vunpack.c.l.b16 %v20167_v23  ;;  %v8804_v10 = vunpack.c.l.b16 %v6460_v4  ;;  %v20216_v26 = vmax.bf16 %v5738_v35, %v5038_v5  ;;  %v20218_v57 = vmax.bf16 %v5743_v40, %v5046_v31 }
 0x332   :  { %24544 = vst [vmem:[#allocation53_spill] sm:$0xff] %v20213_v22  ;;  %v6680_v38 = vrot.slane %v6666_v36, %v19706_v28  ;;  %v8806_v20 = vunpack.c.l.b16 %v20180_v60  ;;  %v20223_v48 = vrot.slane %v6148_v39, %v19706_v28  ;;  %v20226_v63 = vmax.bf16 %v5753_v9, %v20203_v3 }
 0x333   :  { %24545 = vst [vmem:[#allocation54_spill] sm:$0xff] %v20216_v26  ;;  %24546 = vst [vmem:[#allocation55_spill] sm:$0xff] %v20218_v57  ;;  %v8808_v24 = vunpack.c.l.b16 %v6504_v62  ;;  %v8812_v32 = vunpack.c.l.b16 %v6548_v37  ;;  %v20228_v22 = vmax.bf16 %v5748_v47, %v5048_v19  ;;  %v8810_v4 = vunpack.c.l.b16 %v20188_v49 }
 0x334   :  { %24547 = vst [vmem:[#allocation56_spill] sm:$0xff] %v20223_v48  ;;  %24548 = vst [vmem:[#allocation57_spill] sm:$0xff] %v20226_v63  ;;  %v8814_v23 = vunpack.c.l.b16 %v6570_v59  ;;  %v8816_v40 = vunpack.c.l.b16 %v6592_v58  ;;  %v8818_v5 = vunpack.c.l.b16 %v6614_v2  ;;  %v8820_v31 = vunpack.c.l.b16 %v6636_v12 }
 0x335   :  { %24549 = vst [vmem:[#allocation58_spill] sm:$0xff] %v20228_v22  ;;  %v9038_v36 = vrot.slane %v8796_v46, 7  ;;  %v9040_v60 = vrot.slane %v8798_v6, 6  ;;  %v8822_v35 = vunpack.c.l.b16 %v6658_v25  ;;  %v8824_v57 = vunpack.c.l.b16 %v6680_v38 }
 0x336   :  { %v9042_v39 = vrot.slane %v8800_v21, 5  ;;  %v9044_v26 = vrot.slane %v8802_v14, 4  ;;  %v9046_v63 = vrot.slane %v8804_v10, 3  ;;  %v9066_v62 = vrot.slane %v8812_v32, 7 }
 0x337   :  { %v9039_v9 = vsel %vm9018_vm2, %v9038_v36, %v8794_v41  ;;  %v9068_v37 = vrot.slane %v8814_v23, 6  ;;  %v9048_v49 = vrot.slane %v8806_v20, 2  ;;  %v9050_v59 = vrot.slane %v8808_v24, 1 }
 0x338   :  { %v9041_v19 = vsel %vm2213_vm11, %v9040_v60, %v9039_v9  ;;  %v9070_v58 = vrot.slane %v8816_v40, 5  ;;  %v9067_v46 = vsel %vm9018_vm2, %v9066_v62, %v8810_v4  ;;  %v9072_v12 = vrot.slane %v8818_v5, 4 }
 0x339   :  { %v9043_v2 = vsel %vm9024_vm12, %v9042_v39, %v9041_v19  ;;  %v9074_v25 = vrot.slane %v8820_v31, 3  ;;  %v9069_v6 = vsel %vm2213_vm11, %v9068_v37, %v9067_v46  ;;  %v9076_v41 = vrot.slane %v8822_v35, 2 }
 0x33a   :  { %v9045_v21 = vsel %vm2215_vm13, %v9044_v26, %v9043_v2  ;;  %v16688_v10 = vadd.f32 %v19843_v51, %v19683_v55  ;;  %v9071_v14 = vsel %vm9024_vm12, %v9070_v58, %v9069_v6  ;;  %v9078_v38 = vrot.slane %v8824_v57, 1  ;;  %v20283_v58 = vpop.f32.mrb[52].mxu0 }
 0x33b   :  { %v9047_v47 = vsel %vm24126_vm14, %v9046_v63, %v9045_v21  ;;  %v6343_v20 = vrot.slane %v20054_v45, %v19706_v28  ;;  %v9073_v32 = vsel %vm2215_vm13, %v9072_v12, %v9071_v14  ;;  %v6365_v26 = vrot.slane %v20058_v50, %v19706_v28 }
 0x33c   :  { %v9049_v24 = vsel %vm24125_vm15, %v9048_v49, %v9047_v47  ;;  %v4300_v4 = vsub.f32 0.0, %v16688_v10  ;;  %v9075_v51 = vsel %vm24126_vm14, %v9074_v25, %v9073_v32  ;;  %v6387_v63 = vrot.slane %v20062_v16, %v19706_v28 }
 0x33d   :  { %v9051_v23 = vsel %vm24124_vm3, %v9050_v59, %v9049_v24  ;;  %v6409_v57 = vrot.slane %v20066_v43, %v19706_v28  ;;  %v9077_v45 = vsel %vm24125_vm15, %v9076_v41, %v9075_v51  ;;  %v6431_v5 = vrot.slane %v20072_v33, %v19706_v28 }
 0x33e   :  { %v4392_v40 = vmul.f32 1.442695, %v4300_v4  ;;  %v6453_v31 = vrot.slane %v20076_v0, %v19706_v28  ;;  %v9079_v50 = vsel %vm24124_vm3, %v9078_v38, %v9077_v45  ;;  %v6475_v36 = vrot.slane %v20080_v42, %v19706_v28 }
 0x33f   :  { %v6497_v16 = vrot.slane %v20091_v17, %v19706_v28  ;;  %v6519_v43 = vrot.slane %v20126_v11, %v19706_v28  ;;  %v20265_v60 = vpack.c.b16 %v9079_v50, %v9051_v23  ;;  %v6541_v35 = vrot.slane %v20132_v27, %v19706_v28 }
 0x340   :  { %v6563_v33 = vrot.slane %v20136_v29, %v19706_v28  ;;  %v6585_v0 = vrot.slane %v20140_v52, %v19706_v28  ;;  %17394 = vpow2.f32 %v4392_v40  ;;  %v6607_v42 = vrot.slane %v20146_v44, %v19706_v28 }
 0x341   :  { %24550 = vst [vmem:[#allocation59_spill] sm:$0xff] %v20265_v60  ;;  %v6629_v17 = vrot.slane %v20150_v18, %v19706_v28  ;;  %v6651_v11 = vrot.slane %v20153_v56, %v19706_v28  ;;  %16085 = vmatprep.mubr.msk.bf16.mxu1 %vm9500_vm6, %v20265_v60  ;;  %v6673_v27 = vrot.slane %v20194_v53, %v19706_v28  ;;  %v8795_v29 = vunpack.c.l.b16 %v6365_v26 }
 0x342   :  { %v8797_v39 = vunpack.c.l.b16 %v6387_v63  ;;  %v8799_v9 = vunpack.c.l.b16 %v6409_v57  ;;  %v8793_v52 = vunpack.c.l.b16 %v6343_v20  ;;  %v8801_v62 = vunpack.c.l.b16 %v6431_v5 }
 0x343   :  { %v8803_v37 = vunpack.c.l.b16 %v6453_v31  ;;  %v8805_v19 = vunpack.c.l.b16 %v6475_v36  ;;  %v8807_v44 = vunpack.c.l.b16 %v6497_v16  ;;  %v8811_v49 = vunpack.c.l.b16 %v6541_v35 }
 0x344   :  { %v8813_v59 = vunpack.c.l.b16 %v6563_v33  ;;  %v8815_v18 = vunpack.c.l.b16 %v6585_v0  ;;  %v8809_v56 = vunpack.c.l.b16 %v6519_v43  ;;  %v8817_v2 = vunpack.c.l.b16 %v6607_v42 }
 0x345   :  { %v8819_v46 = vunpack.c.l.b16 %v6629_v17  ;;  %v9017_v12 = vrot.slane %v8795_v29, 7  ;;  %v8821_v25 = vunpack.c.l.b16 %v6651_v11  ;;  %v8823_v21 = vunpack.c.l.b16 %v6673_v27 }
 0x346   :  { %v9020_v53 = vrot.slane %v8797_v39, 6  ;;  %v9023_v6 = vrot.slane %v8799_v9, 5  ;;  %v9026_v10 = vrot.slane %v8801_v62, 4  ;;  %v9029_v47 = vrot.slane %v8803_v37, 3 }
 0x347   :  { %v9019_v41 = vsel %vm9018_vm2, %v9017_v12, %v8793_v52  ;;  %v9052_v14 = vrot.slane %v8811_v49, 7  ;;  %v9032_v20 = vrot.slane %v8805_v19, 2  ;;  %v9054_v24 = vrot.slane %v8813_v59, 6 }
 0x348   :  { %v9022_v38 = vsel %vm2213_vm11, %v9020_v53, %v9019_v41  ;;  %v9056_v32 = vrot.slane %v8815_v18, 5  ;;  %v9035_v26 = vrot.slane %v8807_v44, 1  ;;  %v9058_v51 = vrot.slane %v8817_v2, 4  ;;  %v24554_v53 = vld [vmem:[#allocation31_spill] sm:$0xff] }
 0x349   :  { %v9025_v4 = vsel %vm9024_vm12, %v9023_v6, %v9022_v38  ;;  %v9053_v23 = vsel %vm9018_vm2, %v9052_v14, %v8809_v56  ;;  %v9060_v45 = vrot.slane %v8819_v46, 3  ;;  %v16689_v40 = vadd.f32 %v19851_v61, %v19687_v8  ;;  %v24552_v56 = vld [vmem:[#allocation48_spill] sm:$0xff]  ;;  %v20325_v14 = vpop.f32.mrb[53].mxu0 }
 0x34a   :  { %v9028_v63 = vsel %vm2215_vm13, %v9026_v10, %v9025_v4  ;;  %v9055_v57 = vsel %vm2213_vm11, %v9054_v24, %v9053_v23  ;;  %v17395_v5 = vpop.eup %17394  ;;  %v9062_v36 = vrot.slane %v8821_v25, 2  ;;  %v16690_v16 = vadd.f32 %v19853_v54, %v19683_v55  ;;  %v24553_v25 = vld [vmem:[#allocation9_spill] sm:$0xff]  ;;  %v24555_v23 = vld [vmem:[#allocation54_spill] sm:$0xff] }
 0x34b   :  { %v9031_v31 = vsel %vm24126_vm14, %v9029_v47, %v9028_v63  ;;  %v9057_v50 = vsel %vm9024_vm12, %v9056_v32, %v9055_v57  ;;  %v4301_v33 = vsub.f32 0.0, %v16689_v40  ;;  %v16691_v0 = vadd.f32 %v19859_v15, %v19687_v8  ;;  %v24557_v63 = vld [vmem:[#allocation55_spill] sm:$0xff]  ;;  %v24559_v40 = vld [vmem:[#allocation20_spill] sm:$0xff] }
 0x34c   :  { %v9034_v43 = vsel %vm24125_vm15, %v9032_v20, %v9031_v31  ;;  %v9059_v35 = vsel %vm2215_vm13, %v9058_v51, %v9057_v50  ;;  %v9064_v17 = vrot.slane %v8823_v21, 1  ;;  %v4302_v11 = vsub.f32 0.0, %v16690_v16  ;;  %v24560_v31 = vld [vmem:[#allocation21_spill] sm:$0xff] }
 0x34d   :  { %v9037_v42 = vsel %vm24124_vm3, %v9035_v26, %v9034_v43  ;;  %v9061_v61 = vsel %vm24126_vm14, %v9060_v45, %v9059_v35  ;;  %v4394_v29 = vmul.f32 1.442695, %v4301_v33  ;;  %v4303_v39 = vsub.f32 0.0, %v16691_v0  ;;  %v24562_v43 = vld [vmem:[#allocation3_spill] sm:$0xff] }
 0x34e   :  { %v9063_v27 = vsel %vm24125_vm15, %v9062_v36, %v9061_v61  ;;  %v16692_v54 = vadd.f32 %v19868_v34, %v19683_v55  ;;  %v4396_v52 = vmul.f32 1.442695, %v4302_v11  ;;  %v16693_v62 = vadd.f32 %v19877_v1, %v19687_v8  ;;  %v24561_v36 = vld [vmem:[#allocation18_spill] sm:$0xff] }
 0x34f   :  { %v9065_v9 = vsel %vm24124_vm3, %v9064_v17, %v9063_v27  ;;  %v16694_v15 = vadd.f32 %v19879_v13, %v19683_v55  ;;  %17396 = vpow2.f32 %v4394_v29  ;;  %v4398_v19 = vmul.f32 1.442695, %v4303_v39 }
 0x350   :  { %v20311_v37 = vpack.c.b16 %v9065_v9, %v9037_v42  ;;  %v4304_v44 = vsub.f32 0.0, %v16692_v54  ;;  %17398 = vpow2.f32 %v4396_v52  ;;  %v4305_v49 = vsub.f32 0.0, %v16693_v62 }
 0x351   :  { %v4306_v59 = vsub.f32 0.0, %v16694_v15  ;;  %v16695_v34 = vadd.f32 %v19884_v7, %v19687_v8  ;;  %17400 = vpow2.f32 %v4398_v19  ;;  %v4747_v1 = vcombine.high %v19775_v30, %v19775_v30  ;;  %v24563_v15 = vld [vmem:[#allocation4_spill] sm:$0xff] }
 0x352   :  { %24551 = vst [vmem:[#allocation60_spill] sm:$0xff] %v20311_v37  ;;  %9559 = vmatmul.mubr.bf16.vlgmr.msra.gmra.mrb[0].mxu1 %v20311_v37  ;;  %v4400_v18 = vmul.f32 1.442695, %v4304_v44  ;;  %v4749_v13 = vcombine.high %v24552_v56, %v24552_v56  ;;  %v4402_v2 = vmul.f32 1.442695, %v4305_v49  ;;  %v4797_v21 = vcombine.high %v24553_v25, %v24553_v25 }
 0x353   :  { %v4404_v46 = vmul.f32 1.442695, %v4306_v59  ;;  %v4307_v12 = vsub.f32 0.0, %v16695_v34  ;;  %v4799_v7 = vcombine.high %v24554_v53, %v24554_v53  ;;  %v5518_v6 = vshrl.u32 %v24552_v56, 16 }
 0x354   :  { %17402 = vpow2.f32 %v4400_v18  ;;  %v5523_v41 = vshrl.u32 %v4747_v1, 16  ;;  %v4468_v10 = vadd.f32 1.0, %v17395_v5  ;;  %v5528_v30 = vshrl.u32 %v4749_v13, 16  ;;  %v24565_v18 = vld [vmem:[#allocation50_spill] sm:$0xff] }
 0x355   :  { %17404 = vpow2.f32 %v4402_v2  ;;  %v4406_v47 = vmul.f32 1.442695, %v4307_v12  ;;  %v5558_v20 = vshrl.u32 %v24554_v53, 16  ;;  %v6105_v24 = vmax.bf16 %v5518_v6, %v24552_v56 }
 0x356   :  { %17406 = vpow2.f32 %v4404_v46  ;;  %v5563_v32 = vshrl.u32 %v4797_v21, 16  ;;  %v6106_v4 = vmax.bf16 %v5523_v41, %v4747_v1  ;;  %v6107_v26 = vmax.bf16 %v5528_v30, %v4749_v13  ;;  %v24568_v30 = vld [vmem:[#allocation49_spill] sm:$0xff] }
 0x357   :  { %17408 = vpow2.f32 %v4406_v47  ;;  %v20333_v51 = vrot.slane %v24555_v23, %v19706_v28  ;;  %v20337_v57 = vrot.slane %v24557_v63, %v19706_v28  ;;  %v5568_v45 = vshrl.u32 %v4799_v7, 16  ;;  %v24570_v63 = vld [vmem:[#allocation14_spill] sm:$0xff] }
 0x358   :  { %v6710_v5 = vcombine.high %v24559_v40, %v24559_v40  ;;  %17410 = vrcp.f32 %v4468_v10  ;;  %v6732_v50 = vcombine.high %v24560_v31, %v24560_v31  ;;  %v20345_v16 = vrot.slane %v24561_v36, %v19706_v28  ;;  %v24567_v10 = vld [vmem:[#allocation41_spill] sm:$0xff] }
 0x359   :  { %24556 = vst [vmem:[#allocation48_spill] sm:$0xff] %v20333_v51  ;;  %24558 = vst [vmem:[#allocation9_spill] sm:$0xff] %v20337_v57  ;;  %v20349_v35 = vrot.slane %v24562_v43, %v19706_v28  ;;  %v17397_v33 = vpop.eup %17396  ;;  %v6113_v0 = vmax.bf16 %v5558_v20, %v24554_v53  ;;  %v20353_v42 = vrot.slane %v6105_v24, %v19706_v28 }
 0x35a   :  { %v20356_v61 = vrot.slane %v6106_v4, %v19706_v28  ;;  %v20359_v17 = vrot.slane %v6107_v26, %v19706_v28  ;;  %v17399_v11 = vpop.eup %17398  ;;  %v4469_v27 = vadd.f32 1.0, %v17397_v33  ;;  %v6114_v29 = vmax.bf16 %v5563_v32, %v4797_v21  ;;  %v24569_v26 = vld [vmem:[#allocation8_spill] sm:$0xff] }
 0x35b   :  { %v6754_v39 = vcombine.high %v20345_v16, %v20345_v16  ;;  %v6776_v54 = vcombine.high %v20349_v35, %v20349_v35  ;;  %v17401_v9 = vpop.eup %17400  ;;  %v4470_v52 = vadd.f32 1.0, %v17399_v11  ;;  %v6115_v62 = vmax.bf16 %v5568_v45, %v4799_v7 }
 0x35c   :  { %v24564_v19 = vcombine.high %v24563_v15, %v24563_v15  ;;  %v20372_v49 = vrot.slane %v6710_v5, %v19706_v28  ;;  %17412 = vrcp.f32 %v4469_v27  ;;  %v4471_v59 = vadd.f32 1.0, %v17401_v9  ;;  %v20410_v5 = vpop.f32.mrb[54].mxu0 }
 0x35d   :  { %v20375_v34 = vrot.slane %v6732_v50, %v19706_v28  ;;  %v24566_v1 = vcombine.high %v24565_v18, %v24565_v18  ;;  %17414 = vrcp.f32 %v4470_v52  ;;  %v6798_v2 = vcombine.high %v20353_v42, %v20353_v42  ;;  %v20416_v33 = vpop.f32.mrb[55].mxu0 }
 0x35e   :  { %v20369_v44 = vrot.slane %v24564_v19, %v19706_v28  ;;  %v17403_v13 = vpop.eup %17402  ;;  %v6820_v46 = vcombine.high %v20356_v61, %v20356_v61  ;;  %v6842_v12 = vcombine.high %v20359_v17, %v20359_v17  ;;  %17416 = vrcp.f32 %v4471_v59 }
 0x35f   :  { %v20381_v56 = vrot.slane %v24566_v1, %v19706_v28  ;;  %v17405_v25 = vpop.eup %17404  ;;  %v4472_v21 = vadd.f32 1.0, %v17403_v13  ;;  %v20390_v53 = vrot.slane %v6754_v39, %v19706_v28  ;;  %v20393_v7 = vrot.slane %v6776_v54, %v19706_v28 }
 0x360   :  { %v17407_v6 = vpop.eup %17406  ;;  %v4473_v41 = vadd.f32 1.0, %v17405_v25  ;;  %v20397_v47 = vrot.slane %v24567_v10, %v19706_v28  ;;  %v20401_v20 = vrot.slane %v24568_v30, %v19706_v28  ;;  %v20404_v24 = vrot.slane %v6113_v0, %v19706_v28 }
 0x361   :  { %v17409_v32 = vpop.eup %17408  ;;  %17418 = vrcp.f32 %v4472_v21  ;;  %v4474_v4 = vadd.f32 1.0, %v17407_v6  ;;  %v6886_v23 = vcombine.high %v24569_v26, %v24569_v26  ;;  %v6908_v45 = vcombine.high %v24570_v63, %v24570_v63 }
 0x362   :  { %17420 = vrcp.f32 %v4473_v41  ;;  %v4475_v50 = vadd.f32 1.0, %v17409_v32  ;;  %v6930_v36 = vcombine.high %v20397_v47, %v20397_v47  ;;  %v6952_v43 = vcombine.high %v20401_v20, %v20401_v20  ;;  %v17411_v0 = vpop.eup %17410 }
 0x363   :  { %17422 = vrcp.f32 %v4474_v4  ;;  %v6974_v11 = vcombine.high %v20404_v24, %v20404_v24  ;;  %v20421_v27 = vrot.slane %v6114_v29, %v19706_v28  ;;  %v20424_v39 = vrot.slane %v6115_v62, %v19706_v28 }
 0x364   :  { %17424 = vrcp.f32 %v4475_v50  ;;  %v6812_v54 = vrot.slane %v6798_v2, %v19706_v28  ;;  %v20428_v9 = vrot.slane %v6820_v46, %v19706_v28  ;;  %v20431_v52 = vrot.slane %v6842_v12, %v19706_v28 }
 0x365   :  { %v20434_v19 = vrot.slane %v6886_v23, %v19706_v28  ;;  %v20437_v59 = vrot.slane %v6908_v45, %v19706_v28  ;;  %v6996_v29 = vcombine.high %v20421_v27, %v20421_v27  ;;  %v7018_v62 = vcombine.high %v20424_v39, %v20424_v39 }
 0x366   :  { %v20444_v1 = vrot.slane %v6930_v36, %v19706_v28  ;;  %v20447_v13 = vrot.slane %v6952_v43, %v19706_v28  ;;  %v8826_v2 = vunpack.c.l.b16 %v20369_v44  ;;  %v8828_v46 = vunpack.c.l.b16 %v20372_v49  ;;  %v17413_v12 = vpop.eup %17412 }
 0x367   :  { %v20452_v25 = vrot.slane %v6974_v11, %v19706_v28  ;;  %v8830_v21 = vunpack.c.l.b16 %v20375_v34  ;;  %v8832_v6 = vunpack.c.l.b16 %v20390_v53  ;;  %v8834_v41 = vunpack.c.l.b16 %v20393_v7  ;;  %v17415_v10 = vpop.eup %17414 }
 0x368   :  { %v15952_v30 = vpack.c.bf16 %v17413_v12, %v17411_v0  ;;  %v20458_v32 = vrot.slane %v6996_v29, %v19706_v28  ;;  %v20461_v4 = vrot.slane %v7018_v62, %v19706_v28  ;;  %v8836_v44 = vunpack.c.l.b16 %v6812_v54  ;;  %v17417_v49 = vpop.eup %17416 }
 0x369   :  { %v8838_v23 = vunpack.c.l.b16 %v20428_v9  ;;  %v8840_v45 = vunpack.c.l.b16 %v20431_v52  ;;  %v8844_v53 = vunpack.c.l.b16 %v20434_v19  ;;  %v15953_v50 = vpack.c.bf16 %v17417_v49, %v17415_v10 }
 0x36a   :  { %v5058_v7 = vrot.slane %v15952_v30, %v19706_v28  ;;  %v8846_v36 = vunpack.c.l.b16 %v20437_v59  ;;  %v9094_v43 = vrot.slane %v8828_v46, 7  ;;  %v9096_v9 = vrot.slane %v8830_v21, 6 }
 0x36b   :  { %v17419_v0 = vpop.eup %17418  ;;  %v5065_v19 = vrot.slane %v15953_v50, %v19706_v28  ;;  %v8854_v59 = vunpack.c.l.b16 %v20458_v32  ;;  %v8856_v46 = vunpack.c.l.b16 %v20461_v4  ;;  %v9098_v38 = vrot.slane %v8832_v6, 5 }
 0x36c   :  { %v17421_v62 = vpop.eup %17420  ;;  %v5066_v52 = vcombine.high %v5058_v7, %v5058_v7  ;;  %v5074_v12 = vrot.slane %v5058_v7, %v19706_v28  ;;  %v9095_v30 = vsel %vm9018_vm2, %v9094_v43, %v8826_v2  ;;  %v9100_v60 = vrot.slane %v8834_v41, 4 }
 0x36d   :  { %v17423_v10 = vpop.eup %17422  ;;  %v15954_v49 = vpack.c.bf16 %v17421_v62, %v17419_v0  ;;  %v9097_v34 = vsel %vm2213_vm11, %v9096_v9, %v9095_v30  ;;  %v5067_v37 = vcombine.high %v5065_v19, %v5065_v19  ;;  %v20480_v7 = vrot.slane %v5065_v19, %v19706_v28 }
 0x36e   :  { %v17425_v11 = vpop.eup %17424  ;;  %v5088_v54 = vrot.slane %v5066_v52, %v19706_v28  ;;  %v5096_v29 = vcombine.high %v5074_v12, %v5074_v12  ;;  %v5773_v21 = vshrl.u32 %v5074_v12, 16  ;;  %v9102_v52 = vrot.slane %v8836_v44, 3 }
 0x36f   :  { %v5108_v2 = vrot.slane %v15954_v49, %v19706_v28  ;;  %v15955_v50 = vpack.c.bf16 %v17425_v11, %v17423_v10  ;;  %v5793_v57 = vshrl.u32 %v20480_v7, 16  ;;  %v9099_v9 = vsel %vm9024_vm12, %v9098_v38, %v9097_v34 }
 0x370   :  { %v5098_v43 = vcombine.high %v5088_v54, %v5088_v54  ;;  %v5778_v0 = vshrl.u32 %v5088_v54, 16  ;;  %v5783_v32 = vshrl.u32 %v5096_v29, 16  ;;  %v6156_v62 = vmax.bf16 %v5773_v21, %v5074_v12 }
 0x371   :  { %v5116_v4 = vcombine.high %v5108_v2, %v5108_v2  ;;  %v5124_v6 = vrot.slane %v5108_v2, %v19706_v28  ;;  %v9104_v30 = vrot.slane %v8838_v23, 2  ;;  %v20491_v21 = vrot.slane %v5067_v37, %v19706_v28 }
 0x372   :  { %v5788_v22 = vshrl.u32 %v5098_v43, 16  ;;  %v20487_v19 = vrot.slane %v6156_v62, %v19706_v28  ;;  %v6157_v51 = vmax.bf16 %v5778_v0, %v5088_v54  ;;  %v6158_v12 = vmax.bf16 %v5783_v32, %v5096_v29 }
 0x373   :  { %v5138_v11 = vrot.slane %v5116_v4, %v19706_v28  ;;  %v5146_v10 = vcombine.high %v5124_v6, %v5124_v6  ;;  %v5813_v49 = vshrl.u32 %v5124_v6, 16  ;;  %24572 = vst [vmem:[#allocation54_spill] sm:$0xff] %v20491_v21  ;;  %v9106_v41 = vrot.slane %v8840_v45, 1  ;;  %v17098_v21 = vld [vmem:[%s23852_s4 + $0x18] sm:$0xff]  }
 0x374   :  { %24571 = vst [vmem:[#allocation31_spill] sm:$0xff] %v20487_v19  ;;  %v20494_v38 = vrot.slane %v15955_v50, %v19706_v28  ;;  %v9101_v23 = vsel %vm2215_vm13, %v9100_v60, %v9099_v9  ;;  %v9122_v34 = vrot.slane %v8844_v53, 7  ;;  %v9124_v62 = vrot.slane %v8846_v36, 6 }
 0x375   :  { %v5148_v44 = vcombine.high %v5138_v11, %v5138_v11  ;;  %v5818_v2 = vshrl.u32 %v5138_v11, 16  ;;  %v5823_v48 = vshrl.u32 %v5146_v10, 16  ;;  %v6164_v3 = vmax.bf16 %v5813_v49, %v5124_v6 }
 0x376   :  { %v20497_v4 = vmax.bf16 %v5788_v22, %v5098_v43  ;;  %v20502_v37 = vmax.bf16 %v5793_v57, %v20480_v7  ;;  %v20505_v29 = vrot.slane %v6157_v51, %v19706_v28  ;;  %v20509_v50 = vrot.slane %v20494_v38, %v19706_v28 }
 0x377   :  { %v5828_v45 = vshrl.u32 %v5148_v44, 16  ;;  %v9103_v60 = vsel %vm24126_vm14, %v9102_v52, %v9101_v23  ;;  %v24577_v53 = vunpack.c.l.b16 %v20381_v56  ;;  %v20516_v36 = vrot.slane %v6158_v12, %v19706_v28  ;;  %v24584_v23 = vld [vmem:[#allocation35_spill] sm:$0xff] }
 0x378   :  { %24573 = vst [vmem:[#allocation55_spill] sm:$0xff] %v20497_v4  ;;  %24574 = vst [vmem:[#allocation20_spill] sm:$0xff] %v20502_v37  ;;  %v20518_v43 = vmax.bf16 %v5818_v2, %v5138_v11  ;;  %v20520_v57 = vmax.bf16 %v5823_v48, %v5146_v10  ;;  %v20523_v51 = vrot.slane %v6164_v3, %v19706_v28  ;;  %v5833_v52 = vshrl.u32 %v20509_v50, 16 }
 0x379   :  { %24575 = vst [vmem:[#allocation21_spill] sm:$0xff] %v20505_v29  ;;  %24576 = vst [vmem:[#allocation18_spill] sm:$0xff] %v20509_v50  ;;  %v9123_v22 = vsel %vm9018_vm2, %v9122_v34, %v24577_v53  ;;  %v20525_v0 = vmax.bf16 %v5828_v45, %v5148_v44  ;;  %v5117_v32 = vcombine.high %v20494_v38, %v20494_v38  ;;  %v24581_v11 = vunpack.c.l.b16 %v20444_v1  ;;  %v24605_v38 = vld [vmem:[#allocation30_spill] sm:$0xff] }
 0x37a   :  { %24578 = vst [vmem:[#allocation3_spill] sm:$0xff] %v20516_v36  ;;  %24579 = vst [vmem:[#allocation4_spill] sm:$0xff] %v20523_v51  ;;  %v9105_v6 = vsel %vm24125_vm15, %v9104_v30, %v9103_v60  ;;  %v9125_v56 = vsel %vm2213_vm11, %v9124_v62, %v9123_v22  ;;  %v24582_v10 = vunpack.c.l.b16 %v20447_v13  ;;  %v24583_v49 = vunpack.c.l.b16 %v20452_v25 }
 0x37b   :  { %24580 = vst [vmem:[#allocation50_spill] sm:$0xff] %v20525_v0  ;;  %v9107_v9 = vsel %vm24124_vm3, %v9106_v41, %v9105_v6  ;;  %v9126_v48 = vrot.slane %v24581_v11, 5  ;;  %v9132_v44 = vrot.slane %v8854_v59, 2  ;;  %v9134_v2 = vrot.slane %v8856_v46, 1 }
 0x37c   :  { %v9128_v3 = vrot.slane %v24582_v10, 4  ;;  %v9130_v12 = vrot.slane %v24583_v49, 3  ;;  %v16696_v30 = vadd.f32 %v24584_v23, %v19683_v55  ;;  %v6695_v62 = vrot.slane %v24563_v15, %v19706_v28 }
 0x37d   :  { %v9127_v34 = vsel %vm9024_vm12, %v9126_v48, %v9125_v56  ;;  %v6717_v1 = vrot.slane %v24559_v40, %v19706_v28  ;;  %v6739_v13 = vrot.slane %v24560_v31, %v19706_v28  ;;  %v6761_v59 = vrot.slane %v20345_v16, %v19706_v28 }
 0x37e   :  { %v9129_v41 = vsel %vm2215_vm13, %v9128_v3, %v9127_v34  ;;  %v4308_v25 = vsub.f32 0.0, %v16696_v30  ;;  %v6783_v46 = vrot.slane %v20349_v35, %v19706_v28  ;;  %v6805_v15 = vrot.slane %v20353_v42, %v19706_v28 }
 0x37f   :  { %v9131_v45 = vsel %vm24126_vm14, %v9130_v12, %v9129_v41  ;;  %v6827_v40 = vrot.slane %v20356_v61, %v19706_v28  ;;  %v6849_v31 = vrot.slane %v20359_v17, %v19706_v28  ;;  %v6871_v16 = vrot.slane %v24565_v18, %v19706_v28 }
 0x380   :  { %v9133_v60 = vsel %vm24125_vm15, %v9132_v44, %v9131_v45  ;;  %v4408_v53 = vmul.f32 1.442695, %v4308_v25  ;;  %v6893_v35 = vrot.slane %v24569_v26, %v19706_v28  ;;  %v6915_v42 = vrot.slane %v24570_v63, %v19706_v28 }
 0x381   :  { %v9135_v22 = vsel %vm24124_vm3, %v9134_v2, %v9133_v60  ;;  %v6937_v61 = vrot.slane %v20397_v47, %v19706_v28  ;;  %v6959_v17 = vrot.slane %v20401_v20, %v19706_v28  ;;  %v6981_v18 = vrot.slane %v20404_v24, %v19706_v28 }
 0x382   :  { %v20572_v6 = vpack.c.b16 %v9135_v22, %v9107_v9  ;;  %17426 = vpow2.f32 %v4408_v53  ;;  %v7003_v26 = vrot.slane %v20421_v27, %v19706_v28  ;;  %v7025_v56 = vrot.slane %v20424_v39, %v19706_v28 }
 0x383   :  { %v8825_v11 = vunpack.c.l.b16 %v6695_v62  ;;  %v8827_v63 = vunpack.c.l.b16 %v6717_v1  ;;  %v8829_v48 = vunpack.c.l.b16 %v6739_v13  ;;  %v8831_v47 = vunpack.c.l.b16 %v6761_v59 }
 0x384   :  { %24585 = vst [vmem:[#allocation41_spill] sm:$0xff] %v20572_v6  ;;  %16086 = vmatprep.mubr.msk.bf16.mxu1 %vm9500_vm6, %v20572_v6  ;;  %v8833_v20 = vunpack.c.l.b16 %v6783_v46  ;;  %v8835_v9 = vunpack.c.l.b16 %v6805_v15  ;;  %v8837_v10 = vunpack.c.l.b16 %v6827_v40  ;;  %v8839_v3 = vunpack.c.l.b16 %v6849_v31 }
 0x385   :  { %v8841_v49 = vunpack.c.l.b16 %v6871_v16  ;;  %v8843_v12 = vunpack.c.l.b16 %v6893_v35  ;;  %v8845_v24 = vunpack.c.l.b16 %v6915_v42  ;;  %v8847_v44 = vunpack.c.l.b16 %v6937_v61  ;;  %v17095_v16 = vld [vmem:[%s23852_s4] sm:$0xff]   ;;  %v24586_v61 = vld [vmem:[#allocation5_spill] sm:$0xff] }
 0x386   :  { %v8849_v2 = vunpack.c.l.b16 %v6959_v17  ;;  %v8851_v27 = vunpack.c.l.b16 %v6981_v18  ;;  %v8853_v23 = vunpack.c.l.b16 %v7003_v26  ;;  %v8855_v30 = vunpack.c.l.b16 %v7025_v56  ;;  %v17096_v18 = vld [vmem:[%s23852_s4 + $0x8] sm:$0xff]   ;;  %9703 = vmatpush1.bf16.msra.mxu1 %v17095_v16 }
 0x387   :  { %v9080_v39 = vrot.slane %v8827_v63, 7  ;;  %v9082_v34 = vrot.slane %v8829_v48, 6  ;;  %v9084_v62 = vrot.slane %v8831_v47, 5  ;;  %v9086_v1 = vrot.slane %v8833_v20, 4  ;;  %v24587_v63 = vld [vmem:[#allocation27_spill] sm:$0xff]  ;;  %v24588_v47 = vld [vmem:[#allocation28_spill] sm:$0xff] }
 0x388   :  { %v9088_v13 = vrot.slane %v8835_v9, 3  ;;  %v9090_v41 = vrot.slane %v8837_v10, 2  ;;  %v9092_v25 = vrot.slane %v8839_v3, 1  ;;  %v9108_v46 = vrot.slane %v8843_v12, 7  ;;  %v24594_v16 = vld [vmem:[#allocation51_spill] sm:$0xff] }
 0x389   :  { %v9081_v59 = vsel %vm9018_vm2, %v9080_v39, %v8825_v11  ;;  %v9110_v45 = vrot.slane %v8845_v24, 6  ;;  %v9112_v15 = vrot.slane %v8847_v44, 5  ;;  %v9114_v31 = vrot.slane %v8849_v2, 4 }
 0x38a   :  { %v9083_v40 = vsel %vm2213_vm11, %v9082_v34, %v9081_v59  ;;  %v9116_v60 = vrot.slane %v8851_v27, 3  ;;  %v9118_v53 = vrot.slane %v8853_v23, 2  ;;  %v9109_v22 = vsel %vm9018_vm2, %v9108_v46, %v8841_v49  ;;  %v24590_v59 = vld [vmem:[#allocation40_spill] sm:$0xff] }
 0x38b   :  { %v9085_v35 = vsel %vm9024_vm12, %v9084_v62, %v9083_v40  ;;  %v9120_v42 = vrot.slane %v8855_v30, 1  ;;  %v16697_v17 = vadd.f32 %v24586_v61, %v19687_v8  ;;  %v9111_v11 = vsel %vm2213_vm11, %v9110_v45, %v9109_v22  ;;  %v17097_v62 = vld [vmem:[%s23852_s4 + $0x10] sm:$0xff]   ;;  %v24592_v40 = vld [vmem:[#allocation42_spill] sm:$0xff] }
 0x38c   :  { %v17427_v26 = vpop.eup %17426  ;;  %v9087_v56 = vsel %vm2215_vm13, %v9086_v1, %v9085_v35  ;;  %v16698_v48 = vadd.f32 %v24587_v63, %v19683_v55  ;;  %v16699_v20 = vadd.f32 %v24588_v47, %v19687_v8  ;;  %v9113_v3 = vsel %vm9024_vm12, %v9112_v15, %v9111_v11  ;;  %v24597_v63 = vld [vmem:[#allocation23_spill] sm:$0xff] }
 0x38d   :  { %v4476_v9 = vadd.f32 1.0, %v17427_v26  ;;  %v9089_v10 = vsel %vm24126_vm14, %v9088_v13, %v9087_v56  ;;  %v4309_v49 = vsub.f32 0.0, %v16697_v17  ;;  %v24589_v12 = vmov 0   ;;  %v24596_v56 = vld [vmem:[#allocation13_spill] sm:$0xff] }
 0x38e   :  { %9704 = vmatprep.subr.bf16.mxu1 %v24589_v12  ;;  %v9091_v24 = vsel %vm24125_vm15, %v9090_v41, %v9089_v10  ;;  %v9115_v44 = vsel %vm2215_vm13, %v9114_v31, %v9113_v3  ;;  %v4310_v2 = vsub.f32 0.0, %v16698_v48  ;;  %v4311_v27 = vsub.f32 0.0, %v16699_v20  ;;  %v24598_v10 = vld [vmem:[#allocation39_spill] sm:$0xff] }
 0x38f   :  { %v9093_v30 = vsel %vm24124_vm3, %v9092_v25, %v9091_v24  ;;  %v9117_v39 = vsel %vm24126_vm14, %v9116_v60, %v9115_v44  ;;  %v4410_v34 = vmul.f32 1.442695, %v4309_v49  ;;  %v16700_v46 = vadd.f32 %v24590_v59, %v19683_v55  ;;  %9705 = vmatpush1.bf16.msra.mxu1 %v17096_v18  ;;  %v24591_v25 = vld [vmem:[#allocation44_spill] sm:$0xff]  ;;  %v24603_v59 = vld [vmem:[#allocation22_spill] sm:$0xff] }
 0x390   :  { %v9119_v1 = vsel %vm24125_vm15, %v9118_v53, %v9117_v39  ;;  %v4412_v13 = vmul.f32 1.442695, %v4310_v2  ;;  %v4414_v41 = vmul.f32 1.442695, %v4311_v27  ;;  %v16701_v15 = vadd.f32 %v24591_v25, %v19687_v8  ;;  %9706 = vmatprep.subr.bf16.mxu1 %v24589_v12 }
 0x391   :  { %v9121_v45 = vsel %vm24124_vm3, %v9120_v42, %v9119_v1  ;;  %17428 = vpow2.f32 %v4410_v34  ;;  %v16702_v31 = vadd.f32 %v24592_v40, %v19683_v55  ;;  %v4312_v53 = vsub.f32 0.0, %v16700_v46  ;;  %v24595_v42 = vld [vmem:[#allocation38_spill] sm:$0xff]  ;;  %v24606_v40 = vld [vmem:[#allocation33_spill] sm:$0xff] }
 0x392   :  { %v20621_v60 = vpack.c.b16 %v9121_v45, %v9093_v30  ;;  %17430 = vpow2.f32 %v4412_v13  ;;  %v16703_v35 = vadd.f32 %v24594_v16, %v19687_v8  ;;  %v4313_v22 = vsub.f32 0.0, %v16701_v15  ;;  %v24604_v45 = vld [vmem:[#allocation19_spill] sm:$0xff] }
 0x393   :  { %17432 = vpow2.f32 %v4414_v41  ;;  %v4314_v61 = vsub.f32 0.0, %v16702_v31  ;;  %v4847_v17 = vcombine.high %v24595_v42, %v24595_v42  ;;  %v4416_v18 = vmul.f32 1.442695, %v4312_v53  ;;  %9707 = vmatpush1.bf16.msra.mxu1 %v17097_v62 }
 0x394   :  { %24593 = vst [vmem:[#allocation49_spill] sm:$0xff] %v20621_v60  ;;  %9567 = vmatmul.mubr.bf16.gmra.mrb[4].mxu1 %v20621_v60  ;;  %v4315_v26 = vsub.f32 0.0, %v16703_v35  ;;  %v4849_v11 = vcombine.high %v24596_v56, %v24596_v56  ;;  %v4897_v48 = vcombine.high %v24597_v63, %v24597_v63  ;;  %v4418_v47 = vmul.f32 1.442695, %v4313_v22  ;;  %9708 = vmatprep.subr.bf16.mxu1 %v24589_v12 }
 0x395   :  { %v4420_v20 = vmul.f32 1.442695, %v4314_v61  ;;  %v4899_v3 = vcombine.high %v24598_v10, %v24598_v10  ;;  %v5598_v49 = vshrl.u32 %v24596_v56, 16  ;;  %17434 = vpow2.f32 %v4416_v18 }
 0x396   :  { %v4422_v24 = vmul.f32 1.442695, %v4315_v26  ;;  %v5603_v44 = vshrl.u32 %v4847_v17, 16  ;;  %v5608_v2 = vshrl.u32 %v4849_v11, 16  ;;  %v20638_v27 = vrot.slane %v20518_v43, %v19706_v28 }
 0x397   :  { %v20642_v30 = vrot.slane %v20520_v57, %v19706_v28  ;;  %17436 = vpow2.f32 %v4418_v47  ;;  %v5638_v39 = vshrl.u32 %v24598_v10, 16  ;;  %v6121_v34 = vmax.bf16 %v5598_v49, %v24596_v56  ;;  %v24607_v47 = vld [vmem:[#allocation17_spill] sm:$0xff]  ;;  %9709 = vmatpush1.bf16.msra.mxu1 %v17098_v21 }
 0x398   :  { %24599 = vst [vmem:[#allocation8_spill] sm:$0xff] %v20638_v27  ;;  %17438 = vpow2.f32 %v4420_v20  ;;  %v6122_v62 = vmax.bf16 %v5603_v44, %v4847_v17  ;;  %v6123_v1 = vmax.bf16 %v5608_v2, %v4849_v11  ;;  %v20650_v13 = vrot.slane %v5117_v32, %v19706_v28  ;;  %9710 = vmatprep.subr.bf16.mxu1 %v24589_v12 }
 0x399   :  { %24600 = vst [vmem:[#allocation14_spill] sm:$0xff] %v20642_v30  ;;  %v20655_v43 = vmax.bf16 %v5833_v52, %v20509_v50  ;;  %17440 = vpow2.f32 %v4422_v24  ;;  %v5643_v57 = vshrl.u32 %v4897_v48, 16  ;;  %v5648_v41 = vshrl.u32 %v4899_v3, 16 }
 0x39a   :  { %24601 = vst [vmem:[#allocation35_spill] sm:$0xff] %v20650_v13  ;;  %17442 = vrcp.f32 %v4476_v9  ;;  %v7062_v46 = vcombine.high %v24603_v59, %v24603_v59  ;;  %v20661_v25 = vrot.slane %v24604_v45, %v19706_v28  ;;  %v7084_v32 = vcombine.high %v24605_v38, %v24605_v38 }
 0x39b   :  { %24602 = vst [vmem:[#allocation5_spill] sm:$0xff] %v20655_v43  ;;  %v17429_v15 = vpop.eup %17428  ;;  %v20667_v31 = vrot.slane %v24606_v40, %v19706_v28  ;;  %v20670_v52 = vrot.slane %v6121_v34, %v19706_v28  ;;  %v20673_v9 = vrot.slane %v6122_v62, %v19706_v28  ;;  %v6129_v35 = vmax.bf16 %v5638_v39, %v24598_v10  ;;  %v24611_v40 = vld [vmem:[#allocation45_spill] sm:$0xff] }
 0x39c   :  { %v17431_v53 = vpop.eup %17430  ;;  %v4477_v16 = vadd.f32 1.0, %v17429_v15  ;;  %v7106_v22 = vcombine.high %v20661_v25, %v20661_v25  ;;  %v20679_v61 = vrot.slane %v6123_v1, %v19706_v28  ;;  %v6130_v18 = vmax.bf16 %v5643_v57, %v4897_v48  ;;  %v24609_v57 = vld [vmem:[#allocation37_spill] sm:$0xff] }
 0x39d   :  { %v17433_v42 = vpop.eup %17432  ;;  %v4478_v17 = vadd.f32 1.0, %v17431_v53  ;;  %v7128_v26 = vcombine.high %v20667_v31, %v20667_v31  ;;  %v7150_v56 = vcombine.high %v20670_v52, %v20670_v52  ;;  %v6131_v63 = vmax.bf16 %v5648_v41, %v4899_v3 }
 0x39e   :  { %17444 = vrcp.f32 %v4477_v16  ;;  %v4479_v11 = vadd.f32 1.0, %v17433_v42  ;;  %v24608_v20 = vcombine.high %v24607_v47, %v24607_v47  ;;  %v7076_v49 = vrot.slane %v7062_v46, %v19706_v28  ;;  %v24610_v46 = vld [vmem:[#allocation46_spill] sm:$0xff] }
 0x39f   :  { %17446 = vrcp.f32 %v4478_v17  ;;  %v20693_v48 = vrot.slane %v7084_v32, %v19706_v28  ;;  %v7172_v24 = vcombine.high %v20673_v9, %v20673_v9  ;;  %v17435_v44 = vpop.eup %17434  ;;  %v20698_v2 = vrot.slane %v7106_v22, %v19706_v28 }
 0x3a0   :  { %v20689_v10 = vrot.slane %v24608_v20, %v19706_v28  ;;  %17448 = vrcp.f32 %v4479_v11  ;;  %v20701_v3 = vrot.slane %v7128_v26, %v19706_v28  ;;  %v7194_v39 = vcombine.high %v20679_v61, %v20679_v61  ;;  %v24612_v26 = vld [vmem:[#allocation47_spill] sm:$0xff] }
 0x3a1   :  { %v17437_v34 = vpop.eup %17436  ;;  %v4480_v62 = vadd.f32 1.0, %v17435_v44  ;;  %v20706_v1 = vrot.slane %v7150_v56, %v19706_v28  ;;  %v20710_v41 = vrot.slane %v24609_v57, %v19706_v28  ;;  %v20714_v45 = vrot.slane %v24610_v46, %v19706_v28 }
 0x3a2   :  { %v17439_v15 = vpop.eup %17438  ;;  %v4481_v32 = vadd.f32 1.0, %v17437_v34  ;;  %v7238_v53 = vcombine.high %v24611_v40, %v24611_v40  ;;  %v20719_v16 = vrot.slane %v6129_v35, %v19706_v28  ;;  %v20722_v22 = vrot.slane %v6130_v18, %v19706_v28 }
 0x3a3   :  { %v17441_v42 = vpop.eup %17440  ;;  %17450 = vrcp.f32 %v4480_v62  ;;  %v4482_v17 = vadd.f32 1.0, %v17439_v15  ;;  %v7260_v56 = vcombine.high %v24612_v26, %v24612_v26  ;;  %v7282_v11 = vcombine.high %v20710_v41, %v20710_v41  ;;  %v24613_v15 = vld [vmem:[#allocation36_spill] sm:$0xff] }
 0x3a4   :  { %v17443_v20 = vpop.eup %17442  ;;  %17452 = vrcp.f32 %v4481_v32  ;;  %v4483_v44 = vadd.f32 1.0, %v17441_v42  ;;  %v7304_v34 = vcombine.high %v20714_v45, %v20714_v45  ;;  %v7326_v35 = vcombine.high %v20719_v16, %v20719_v16 }
 0x3a5   :  { %17454 = vrcp.f32 %v4482_v17  ;;  %v7186_v18 = vrot.slane %v7172_v24, %v19706_v28  ;;  %v7348_v62 = vcombine.high %v20722_v22, %v20722_v22  ;;  %v20736_v57 = vrot.slane %v6131_v63, %v19706_v28 }
 0x3a6   :  { %17456 = vrcp.f32 %v4483_v44  ;;  %v7208_v46 = vrot.slane %v7194_v39, %v19706_v28  ;;  %v24614_v32 = vcombine.high %v24613_v15, %v24613_v15  ;;  %v7252_v23 = vrot.slane %v7238_v53, %v19706_v28 }
 0x3a7   :  { %v20747_v17 = vrot.slane %v7260_v56, %v19706_v28  ;;  %v20750_v24 = vrot.slane %v7282_v11, %v19706_v28  ;;  %v20753_v63 = vrot.slane %v7304_v34, %v19706_v28  ;;  %v7370_v39 = vcombine.high %v20736_v57, %v20736_v57 }
 0x3a8   :  { %v20743_v42 = vrot.slane %v24614_v32, %v19706_v28  ;;  %v17445_v44 = vpop.eup %17444  ;;  %v20758_v54 = vrot.slane %v7326_v35, %v19706_v28  ;;  %v20761_v32 = vrot.slane %v7348_v62, %v19706_v28  ;;  %v8858_v53 = vunpack.c.l.b16 %v20689_v10 }
 0x3a9   :  { %v8860_v56 = vunpack.c.l.b16 %v7076_v49  ;;  %v17447_v60 = vpop.eup %17446  ;;  %v15956_v6 = vpack.c.bf16 %v17445_v44, %v17443_v20  ;;  %v8862_v11 = vunpack.c.l.b16 %v20693_v48  ;;  %v8864_v34 = vunpack.c.l.b16 %v20698_v2 }
 0x3aa   :  { %v8866_v43 = vunpack.c.l.b16 %v20701_v3  ;;  %v17449_v0 = vpop.eup %17448  ;;  %v20768_v30 = vrot.slane %v7370_v39, %v19706_v28  ;;  %v8868_v35 = vunpack.c.l.b16 %v20706_v1  ;;  %v8870_v27 = vunpack.c.l.b16 %v7186_v18 }
 0x3ab   :  { %v8872_v62 = vunpack.c.l.b16 %v7208_v46  ;;  %v5158_v51 = vrot.slane %v15956_v6, %v19706_v28  ;;  %v15957_v10 = vpack.c.bf16 %v17449_v0, %v17447_v60  ;;  %v8874_v49 = vunpack.c.l.b16 %v20743_v42 }
 0x3ac   :  { %v8876_v20 = vunpack.c.l.b16 %v7252_v23  ;;  %v8878_v48 = vunpack.c.l.b16 %v20747_v17  ;;  %v9150_v44 = vrot.slane %v8860_v56, 7  ;;  %v9152_v60 = vrot.slane %v8862_v11, 6 }
 0x3ad   :  { %v17451_v13 = vpop.eup %17450  ;;  %v5166_v39 = vcombine.high %v5158_v51, %v5158_v51  ;;  %v5174_v50 = vrot.slane %v5158_v51, %v19706_v28  ;;  %v5165_v1 = vrot.slane %v15957_v10, %v19706_v28  ;;  %v9154_v46 = vrot.slane %v8864_v34, 5 }
 0x3ae   :  { %v17453_v6 = vpop.eup %17452  ;;  %v9151_v18 = vsel %vm9018_vm2, %v9150_v44, %v8858_v53  ;;  %v9156_v4 = vrot.slane %v8866_v43, 4  ;;  %v9158_v19 = vrot.slane %v8868_v35, 3  ;;  %v9162_v53 = vrot.slane %v8872_v62, 1 }
 0x3af   :  { %v17455_v42 = vpop.eup %17454  ;;  %v5188_v17 = vrot.slane %v5166_v39, %v19706_v28  ;;  %v5196_v3 = vcombine.high %v5174_v50, %v5174_v50  ;;  %v5853_v56 = vshrl.u32 %v5174_v50, 16  ;;  %v5167_v2 = vcombine.high %v5165_v1, %v5165_v1 }
 0x3b0   :  { %v17457_v37 = vpop.eup %17456  ;;  %v20783_v51 = vrot.slane %v5165_v1, %v19706_v28  ;;  %v15958_v10 = vpack.c.bf16 %v17453_v6, %v17451_v13  ;;  %v9160_v39 = vrot.slane %v8870_v27, 2  ;;  %v9153_v13 = vsel %vm2213_vm11, %v9152_v60, %v9151_v18  ;;  %v17099_v27 = vld [vmem:[%s23852_s4 + $0x20] sm:$0xff]  }
 0x3b1   :  { %v5198_v36 = vcombine.high %v5188_v17, %v5188_v17  ;;  %v5858_v0 = vshrl.u32 %v5188_v17, 16  ;;  %v5863_v29 = vshrl.u32 %v5196_v3, 16  ;;  %v6172_v23 = vmax.bf16 %v5853_v56, %v5174_v50  ;;  %9711 = vmatpush1.bf16.msra.mxu1 %v17099_v27 }
 0x3b2   :  { %v5208_v11 = vrot.slane %v15958_v10, %v19706_v28  ;;  %v15959_v34 = vpack.c.bf16 %v17457_v37, %v17455_v42  ;;  %v20791_v1 = vrot.slane %v5167_v2, %v19706_v28  ;;  %v9178_v43 = vrot.slane %v8876_v20, 7  ;;  %9712 = vmatprep.subr.bf16.mxu1 %v24589_v12 }
 0x3b3   :  { %v5873_v44 = vshrl.u32 %v20783_v51, 16  ;;  %v5868_v35 = vshrl.u32 %v5198_v36, 16  ;;  %v6173_v42 = vmax.bf16 %v5858_v0, %v5188_v17  ;;  %v6174_v2 = vmax.bf16 %v5863_v29, %v5196_v3  ;;  %v17100_v17 = vld [vmem:[%s23852_s4 + $0x28] sm:$0xff]  }
 0x3b4   :  { %v5216_v6 = vcombine.high %v5208_v11, %v5208_v11  ;;  %v5224_v50 = vrot.slane %v5208_v11, %v19706_v28  ;;  %v5215_v37 = vrot.slane %v15959_v34, %v19706_v28  ;;  %v20801_v56 = vrot.slane %v6172_v23, %v19706_v28 }
 0x3b5   :  { %v9155_v21 = vsel %vm9024_vm12, %v9154_v46, %v9153_v13  ;;  %v9179_v11 = vsel %vm9018_vm2, %v9178_v43, %v8874_v49  ;;  %v9180_v34 = vrot.slane %v8878_v48, 6  ;;  %v20826_v13 = vrot.slane %v6173_v42, %v19706_v28  ;;  %9713 = vmatpush1.bf16.msra.mxu1 %v17100_v17 }
 0x3b6   :  { %v5238_v62 = vrot.slane %v5216_v6, %v19706_v28  ;;  %v5246_v20 = vcombine.high %v5224_v50, %v5224_v50  ;;  %v5893_v18 = vshrl.u32 %v5224_v50, 16  ;;  %v5217_v60 = vcombine.high %v5215_v37, %v5215_v37  ;;  %9714 = vmatprep.subr.bf16.mxu1 %v24589_v12 }
 0x3b7   :  { %v20806_v10 = vrot.slane %v5215_v37, %v19706_v28  ;;  %v20815_v6 = vmax.bf16 %v5868_v35, %v5198_v36  ;;  %v20818_v37 = vmax.bf16 %v5873_v44, %v20783_v51  ;;  %v9157_v49 = vsel %vm2215_vm13, %v9156_v4, %v9155_v21 }
 0x3b8   :  { %v20810_v0 = vcombine.high %v5238_v62, %v5238_v62  ;;  %v5898_v29 = vshrl.u32 %v5238_v62, 16  ;;  %v5903_v3 = vshrl.u32 %v5246_v20, 16  ;;  %v6180_v23 = vmax.bf16 %v5893_v18, %v5224_v50 }
 0x3b9   :  { %v5913_v46 = vshrl.u32 %v20806_v10, 16  ;;  %v20829_v43 = vrot.slane %v6174_v2, %v19706_v28  ;;  %v9181_v36 = vsel %vm2213_vm11, %v9180_v34, %v9179_v11  ;;  %v20834_v50 = vrot.slane %v5217_v60, %v19706_v28 }
 0x3ba   :  { %v5908_v44 = vshrl.u32 %v20810_v0, 16  ;;  %v9159_v4 = vsel %vm24126_vm14, %v9158_v19, %v9157_v49  ;;  %v24615_v27 = vunpack.c.l.b16 %v20750_v24  ;;  %v20839_v18 = vmax.bf16 %v5898_v29, %v5238_v62 }
 0x3bb   :  { %v20841_v21 = vmax.bf16 %v5903_v3, %v5246_v20  ;;  %v20844_v42 = vrot.slane %v6180_v23, %v19706_v28  ;;  %v24617_v2 = vunpack.c.l.b16 %v20753_v63  ;;  %v20849_v34 = vmax.bf16 %v5913_v46, %v20806_v10 }
 0x3bc   :  { %v9182_v35 = vrot.slane %v24615_v27, 5  ;;  %v9161_v60 = vsel %vm24125_vm15, %v9160_v39, %v9159_v4  ;;  %v24619_v24 = vunpack.c.l.b16 %v20758_v54  ;;  %v24620_v63 = vunpack.c.l.b16 %v20761_v32 }
 0x3bd   :  { %24616 = vst [vmem:[#allocation27_spill] sm:$0xff] %v20844_v42  ;;  %v9184_v11 = vrot.slane %v24617_v2, 4  ;;  %24618 = vst [vmem:[#allocation28_spill] sm:$0xff] %v20849_v34  ;;  %v9163_v20 = vsel %vm24124_vm3, %v9162_v53, %v9161_v60  ;;  %v16704_v23 = vadd.f32 %v20283_v58, %v19683_v55  ;;  %v24621_v39 = vunpack.c.l.b16 %v20768_v30 }
 0x3be   :  { %v9183_v19 = vsel %vm9024_vm12, %v9182_v35, %v9181_v36  ;;  %v9186_v62 = vrot.slane %v24619_v24, 3  ;;  %v9188_v3 = vrot.slane %v24620_v63, 2  ;;  %v7047_v54 = vrot.slane %v24607_v47, %v19706_v28 }
 0x3bf   :  { %v9185_v29 = vsel %vm2215_vm13, %v9184_v11, %v9183_v19  ;;  %v9190_v46 = vrot.slane %v24621_v39, 1  ;;  %v7069_v49 = vrot.slane %v24603_v59, %v19706_v28  ;;  %v4316_v36 = vsub.f32 0.0, %v16704_v23 }
 0x3c0   :  { %v9187_v17 = vsel %vm24126_vm14, %v9186_v62, %v9185_v29  ;;  %v7091_v32 = vrot.slane %v24605_v38, %v19706_v28  ;;  %v7113_v58 = vrot.slane %v20661_v25, %v19706_v28  ;;  %v7135_v30 = vrot.slane %v20667_v31, %v19706_v28 }
 0x3c1   :  { %v9189_v53 = vsel %vm24125_vm15, %v9188_v3, %v9187_v17  ;;  %v7157_v47 = vrot.slane %v20670_v52, %v19706_v28  ;;  %v7179_v59 = vrot.slane %v20673_v9, %v19706_v28  ;;  %v4424_v35 = vmul.f32 1.442695, %v4316_v36 }
 0x3c2   :  { %v9191_v4 = vsel %vm24124_vm3, %v9190_v46, %v9189_v53  ;;  %v7201_v38 = vrot.slane %v20679_v61, %v19706_v28  ;;  %v7223_v25 = vrot.slane %v24613_v15, %v19706_v28  ;;  %v7245_v2 = vrot.slane %v24611_v40, %v19706_v28 }
 0x3c3   :  { %v20881_v27 = vpack.c.b16 %v9191_v4, %v9163_v20  ;;  %v7267_v31 = vrot.slane %v24612_v26, %v19706_v28  ;;  %v7289_v52 = vrot.slane %v20710_v41, %v19706_v28  ;;  %v7311_v9 = vrot.slane %v20714_v45, %v19706_v28 }
 0x3c4   :  { %17458 = vpow2.f32 %v4424_v35  ;;  %v7333_v61 = vrot.slane %v20719_v16, %v19706_v28  ;;  %v7355_v15 = vrot.slane %v20722_v22, %v19706_v28  ;;  %v7377_v40 = vrot.slane %v20736_v57, %v19706_v28 }
 0x3c5   :  { %24622 = vst [vmem:[#allocation40_spill] sm:$0xff] %v20881_v27  ;;  %16087 = vmatprep.mubr.msk.bf16.mxu1 %vm9500_vm6, %v20881_v27  ;;  %v8859_v26 = vunpack.c.l.b16 %v7069_v49  ;;  %v8861_v11 = vunpack.c.l.b16 %v7091_v32  ;;  %v8863_v60 = vunpack.c.l.b16 %v7113_v58  ;;  %v8865_v41 = vunpack.c.l.b16 %v7135_v30 }
 0x3c6   :  { %v8857_v19 = vunpack.c.l.b16 %v7047_v54  ;;  %v8867_v24 = vunpack.c.l.b16 %v7157_v47  ;;  %v8869_v45 = vunpack.c.l.b16 %v7179_v59  ;;  %v8871_v62 = vunpack.c.l.b16 %v7201_v38  ;;  %v17101_v59 = vld [vmem:[%s23852_s4 + $0x30] sm:$0xff]  }
 0x3c7   :  { %v8873_v20 = vunpack.c.l.b16 %v7223_v25  ;;  %v8875_v29 = vunpack.c.l.b16 %v7245_v2  ;;  %v8877_v63 = vunpack.c.l.b16 %v7267_v31  ;;  %v8879_v3 = vunpack.c.l.b16 %v7289_v52  ;;  %9715 = vmatpush1.bf16.msra.mxu1 %v17101_v59 }
 0x3c8   :  { %v8881_v23 = vunpack.c.l.b16 %v7311_v9  ;;  %v8883_v16 = vunpack.c.l.b16 %v7333_v61  ;;  %v8885_v17 = vunpack.c.l.b16 %v7355_v15  ;;  %v9136_v39 = vrot.slane %v8859_v26, 7  ;;  %9716 = vmatprep.subr.bf16.mxu1 %v24589_v12 }
 0x3c9   :  { %v8887_v22 = vunpack.c.l.b16 %v7377_v40  ;;  %v9138_v46 = vrot.slane %v8861_v11, 6  ;;  %v9140_v53 = vrot.slane %v8863_v60, 5  ;;  %v9142_v57 = vrot.slane %v8865_v41, 4 }
 0x3ca   :  { %v9137_v49 = vsel %vm9018_vm2, %v9136_v39, %v8857_v19  ;;  %v9144_v36 = vrot.slane %v8867_v24, 3  ;;  %v9146_v32 = vrot.slane %v8869_v45, 2  ;;  %v9164_v54 = vrot.slane %v8875_v29, 7 }
 0x3cb   :  { %v9139_v58 = vsel %vm2213_vm11, %v9138_v46, %v9137_v49  ;;  %v9148_v4 = vrot.slane %v8871_v62, 1  ;;  %v9166_v30 = vrot.slane %v8877_v63, 6  ;;  %v9168_v47 = vrot.slane %v8879_v3, 5  ;;  %v24623_v3 = vld [vmem:[#allocation43_spill] sm:$0xff]  ;;  %v24626_v46 = vld [vmem:[#allocation10_spill] sm:$0xff] }
 0x3cc   :  { %v9141_v35 = vsel %vm9024_vm12, %v9140_v53, %v9139_v58  ;;  %v9165_v38 = vsel %vm9018_vm2, %v9164_v54, %v8873_v20  ;;  %v9170_v25 = vrot.slane %v8881_v23, 4  ;;  %v9172_v2 = vrot.slane %v8883_v16, 3 }
 0x3cd   :  { %v9143_v31 = vsel %vm2215_vm13, %v9142_v57, %v9141_v35  ;;  %v9167_v52 = vsel %vm2213_vm11, %v9166_v30, %v9165_v38  ;;  %v9174_v9 = vrot.slane %v8885_v17, 2  ;;  %v16705_v61 = vadd.f32 %v20325_v14, %v19687_v8  ;;  %v24624_v17 = vld [vmem:[#allocation6_spill] sm:$0xff]  ;;  %v24627_v57 = vld [vmem:[#allocation24_spill] sm:$0xff] }
 0x3ce   :  { %v17459_v15 = vpop.eup %17458  ;;  %v9145_v40 = vsel %vm24126_vm14, %v9144_v36, %v9143_v31  ;;  %v9169_v26 = vsel %vm9024_vm12, %v9168_v47, %v9167_v52  ;;  %v16706_v11 = vadd.f32 %v20410_v5, %v19683_v55  ;;  %v16707_v60 = vadd.f32 %v20416_v33, %v19687_v8  ;;  %v24631_v31 = vld [vmem:[#allocation12_spill] sm:$0xff] }
 0x3cf   :  { %v9147_v41 = vsel %vm24125_vm15, %v9146_v32, %v9145_v40  ;;  %v9171_v19 = vsel %vm2215_vm13, %v9170_v25, %v9169_v26  ;;  %v9176_v24 = vrot.slane %v8887_v22, 1  ;;  %v4317_v14 = vsub.f32 0.0, %v16705_v61 }
 0x3d0   :  { %v9149_v45 = vsel %vm24124_vm3, %v9148_v4, %v9147_v41  ;;  %v9173_v62 = vsel %vm24126_vm14, %v9172_v2, %v9171_v19  ;;  %v4318_v20 = vsub.f32 0.0, %v16706_v11  ;;  %v4319_v29 = vsub.f32 0.0, %v16707_v60  ;;  %v24634_v11 = vld [vmem:[#allocation7_spill] sm:$0xff] }
 0x3d1   :  { %v4484_v63 = vadd.f32 1.0, %v17459_v15  ;;  %v9175_v55 = vsel %vm24125_vm15, %v9174_v9, %v9173_v62  ;;  %v4426_v5 = vmul.f32 1.442695, %v4317_v14  ;;  %v4947_v8 = vcombine.high %v24623_v3, %v24623_v3  ;;  %v24632_v9 = vld [vmem:[#allocation11_spill] sm:$0xff]  ;;  %v24633_v15 = vld [vmem:[#allocation16_spill] sm:$0xff] }
 0x3d2   :  { %v9177_v33 = vsel %vm24124_vm3, %v9176_v24, %v9175_v55  ;;  %v4428_v23 = vmul.f32 1.442695, %v4318_v20  ;;  %v4430_v16 = vmul.f32 1.442695, %v4319_v29  ;;  %v4949_v39 = vcombine.high %v24624_v17, %v24624_v17  ;;  %v17102_v29 = vld [vmem:[%s23852_s4 + $0x38] sm:$0xff]  }
 0x3d3   :  { %v20931_v22 = vpack.c.b16 %v9177_v33, %v9149_v45  ;;  %17460 = vpow2.f32 %v4426_v5  ;;  %v4997_v53 = vcombine.high %v24626_v46, %v24626_v46  ;;  %v4999_v49 = vcombine.high %v24627_v57, %v24627_v57  ;;  %v24636_v55 = vld [vmem:[#allocation25_spill] sm:$0xff]  ;;  %9717 = vmatpush1.bf16.msra.mxu1 %v17102_v29 }
 0x3d4   :  { %17462 = vpow2.f32 %v4428_v23  ;;  %v5678_v36 = vshrl.u32 %v24624_v17, 16  ;;  %v5683_v32 = vshrl.u32 %v4947_v8, 16  ;;  %v5688_v54 = vshrl.u32 %v4949_v39, 16  ;;  %v24639_v23 = vld [vmem:[#allocation34_spill] sm:$0xff]  ;;  %9718 = vmatprep.subr.bf16.mxu1 %v24589_v12 }
 0x3d5   :  { %24625 = vst [vmem:[#allocation44_spill] sm:$0xff] %v20931_v22  ;;  %v20941_v58 = vmax.bf16 %v5908_v44, %v20810_v0  ;;  %9575 = vmatmul.mubr.bf16.gmra.mrb[8].mxu1 %v20931_v22  ;;  %17464 = vpow2.f32 %v4430_v16  ;;  %v5718_v4 = vshrl.u32 %v24627_v57, 16  ;;  %v5723_v30 = vshrl.u32 %v4997_v53, 16  ;;  %v24630_v0 = vld [vmem:[#allocation15_spill] sm:$0xff] }
 0x3d6   :  { %v5728_v47 = vshrl.u32 %v4999_v49, 16  ;;  %v6137_v59 = vmax.bf16 %v5678_v36, %v24624_v17  ;;  %v6138_v35 = vmax.bf16 %v5683_v32, %v4947_v8  ;;  %v6139_v38 = vmax.bf16 %v5688_v54, %v4949_v39  ;;  %v24638_v8 = vld [vmem:[#allocation29_spill] sm:$0xff] }
 0x3d7   :  { %24628 = vst [vmem:[#allocation42_spill] sm:$0xff] %v20941_v58  ;;  %v20950_v2 = vrot.slane %v20839_v18, %v19706_v28  ;;  %17466 = vrcp.f32 %v4484_v63  ;;  %v7414_v44 = vcombine.high %v24630_v0, %v24630_v0  ;;  %v7436_v52 = vcombine.high %v24631_v31, %v24631_v31 }
 0x3d8   :  { %v20958_v61 = vrot.slane %v24632_v9, %v19706_v28  ;;  %v20962_v40 = vrot.slane %v24633_v15, %v19706_v28  ;;  %v20965_v26 = vrot.slane %v6137_v59, %v19706_v28  ;;  %v6145_v18 = vmax.bf16 %v5718_v4, %v24627_v57 }
 0x3d9   :  { %24629 = vst [vmem:[#allocation51_spill] sm:$0xff] %v20950_v2  ;;  %v24635_v60 = vcombine.high %v24634_v11, %v24634_v11  ;;  %v20975_v19 = vrot.slane %v6138_v35, %v19706_v28  ;;  %v20978_v24 = vrot.slane %v6139_v38, %v19706_v28  ;;  %v6146_v14 = vmax.bf16 %v5723_v30, %v4997_v53  ;;  %v24640_v53 = vld [vmem:[#allocation26_spill] sm:$0xff]  ;;  %v24641_v38 = vld [vmem:[#allocation32_spill] sm:$0xff] }
 0x3da   :  { %v6147_v45 = vmax.bf16 %v5728_v47, %v4999_v49  ;;  %v7458_v62 = vcombine.high %v20958_v61, %v20958_v61  ;;  %v7480_v20 = vcombine.high %v20962_v40, %v20962_v40  ;;  %v7428_v63 = vrot.slane %v7414_v44, %v19706_v28  ;;  %v17103_v49 = vld [vmem:[%s23852_s4 + $0x40] sm:$0xff]  }
 0x3db   :  { %v20972_v41 = vrot.slane %v24635_v60, %v19706_v28  ;;  %v24637_v5 = vcombine.high %v24636_v55, %v24636_v55  ;;  %v7590_v33 = vcombine.high %v24638_v8, %v24638_v8  ;;  %v7612_v16 = vcombine.high %v24639_v23, %v24639_v23  ;;  %9719 = vmatpush1.bf16.msra.mxu1 %v17103_v49 }
 0x3dc   :  { %v7450_v17 = vrot.slane %v7436_v52, %v19706_v28  ;;  %v7502_v39 = vcombine.high %v20965_v26, %v20965_v26  ;;  %v7524_v46 = vcombine.high %v20975_v19, %v20975_v19  ;;  %v21005_v57 = vrot.slane %v24640_v53, %v19706_v28  ;;  %9720 = vmatprep.subr.bf16.mxu1 %v24589_v12 }
 0x3dd   :  { %v20992_v3 = vrot.slane %v24637_v5, %v19706_v28  ;;  %v17461_v36 = vpop.eup %17460  ;;  %v7472_v32 = vrot.slane %v7458_v62, %v19706_v28  ;;  %v7494_v54 = vrot.slane %v7480_v20, %v19706_v28  ;;  %v7546_v4 = vcombine.high %v20978_v24, %v20978_v24 }
 0x3de   :  { %v7604_v30 = vrot.slane %v7590_v33, %v19706_v28  ;;  %v17463_v47 = vpop.eup %17462  ;;  %v4485_v59 = vadd.f32 1.0, %v17461_v36  ;;  %v7634_v35 = vcombine.high %v21005_v57, %v21005_v57  ;;  %v21020_v44 = vrot.slane %v24641_v38, %v19706_v28 }
 0x3df   :  { %v21023_v52 = vrot.slane %v6145_v18, %v19706_v28  ;;  %v17465_v9 = vpop.eup %17464  ;;  %v4486_v15 = vadd.f32 1.0, %v17463_v47  ;;  %v7626_v60 = vrot.slane %v7612_v16, %v19706_v28  ;;  %v21027_v62 = vrot.slane %v6146_v14, %v19706_v28  ;;  %v17104_v18 = vld [vmem:[%s23852_s4 + $0x48] sm:$0xff]  }
 0x3e0   :  { %v21030_v20 = vrot.slane %v6147_v45, %v19706_v28  ;;  %17468 = vrcp.f32 %v4485_v59  ;;  %v4487_v29 = vadd.f32 1.0, %v17465_v9  ;;  %v7648_v5 = vrot.slane %v7634_v35, %v19706_v28  ;;  %9721 = vmatpush1.bf16.msra.mxu1 %v17104_v18 }
 0x3e1   :  { %v7656_v33 = vcombine.high %v21020_v44, %v21020_v44  ;;  %v17467_v53 = vpop.eup %17466  ;;  %17470 = vrcp.f32 %v4486_v15  ;;  %v7678_v14 = vcombine.high %v21023_v52, %v21023_v52  ;;  %v7700_v45 = vcombine.high %v21027_v62, %v21027_v62  ;;  %9722 = vmatprep.subr.bf16.mxu1 %v24589_v12 }
 0x3e2   :  { %v7722_v16 = vcombine.high %v21030_v20, %v21030_v20  ;;  %17472 = vrcp.f32 %v4487_v29  ;;  %v7516_v49 = vrot.slane %v7502_v39, %v19706_v28  ;;  %v7538_v36 = vrot.slane %v7524_v46, %v19706_v28 }
 0x3e3   :  { %v7560_v47 = vrot.slane %v7546_v4, %v19706_v28  ;;  %v7670_v59 = vrot.slane %v7656_v33, %v19706_v28  ;;  %v8892_v35 = vunpack.c.l.b16 %v7428_v63  ;;  %v8894_v38 = vunpack.c.l.b16 %v7450_v17 }
 0x3e4   :  { %v8896_v9 = vunpack.c.l.b16 %v7472_v32  ;;  %v7692_v15 = vrot.slane %v7678_v14, %v19706_v28  ;;  %v7714_v25 = vrot.slane %v7700_v45, %v19706_v28  ;;  %v7736_v48 = vrot.slane %v7722_v16, %v19706_v28 }
 0x3e5   :  { %v8890_v22 = vunpack.c.l.b16 %v20972_v41  ;;  %v8898_v29 = vunpack.c.l.b16 %v7494_v54  ;;  %v8908_v39 = vunpack.c.l.b16 %v7604_v30  ;;  %v8910_v27 = vunpack.c.l.b16 %v7626_v60 }
 0x3e6   :  { %v8912_v46 = vunpack.c.l.b16 %v7648_v5  ;;  %v8900_v4 = vunpack.c.l.b16 %v7516_v49  ;;  %v8902_v33 = vunpack.c.l.b16 %v7538_v36  ;;  %v8904_v63 = vunpack.c.l.b16 %v7560_v47 }
 0x3e7   :  { %v8906_v17 = vunpack.c.l.b16 %v20992_v3  ;;  %v8914_v32 = vunpack.c.l.b16 %v7670_v59  ;;  %v9206_v14 = vrot.slane %v8892_v35, 7  ;;  %v9208_v42 = vrot.slane %v8894_v38, 6 }
 0x3e8   :  { %v9210_v45 = vrot.slane %v8896_v9, 5  ;;  %v8916_v34 = vunpack.c.l.b16 %v7692_v15  ;;  %v8918_v16 = vunpack.c.l.b16 %v7714_v25  ;;  %v8920_v58 = vunpack.c.l.b16 %v7736_v48 }
 0x3e9   :  { %v9234_v41 = vrot.slane %v8908_v39, 7  ;;  %v9207_v54 = vsel %vm9018_vm2, %v9206_v14, %v8890_v22  ;;  %v9212_v30 = vrot.slane %v8898_v29, 4  ;;  %v9236_v60 = vrot.slane %v8910_v27, 6 }
 0x3ea   :  { %v9238_v5 = vrot.slane %v8912_v46, 5  ;;  %v17469_v18 = vpop.eup %17468  ;;  %v9209_v49 = vsel %vm2213_vm11, %v9208_v42, %v9207_v54  ;;  %v9214_v36 = vrot.slane %v8900_v4, 3  ;;  %v9216_v47 = vrot.slane %v8902_v33, 2 }
 0x3eb   :  { %v9235_v3 = vsel %vm9018_vm2, %v9234_v41, %v8906_v17  ;;  %v17471_v59 = vpop.eup %17470  ;;  %v15960_v35 = vpack.c.bf16 %v17469_v18, %v17467_v53  ;;  %v9211_v38 = vsel %vm9024_vm12, %v9210_v45, %v9209_v49  ;;  %v9240_v48 = vrot.slane %v8914_v32, 4 }
 0x3ec   :  { %v9237_v25 = vsel %vm2213_vm11, %v9236_v60, %v9235_v3  ;;  %v17473_v9 = vpop.eup %17472  ;;  %v9213_v22 = vsel %vm2215_vm13, %v9212_v30, %v9211_v38  ;;  %v9218_v15 = vrot.slane %v8904_v63, 1  ;;  %v9242_v29 = vrot.slane %v8916_v34, 3 }
 0x3ed   :  { %v9239_v27 = vsel %vm9024_vm12, %v9238_v5, %v9237_v25  ;;  %v5258_v42 = vrot.slane %v15960_v35, %v19706_v28  ;;  %v15961_v39 = vpack.c.bf16 %v17473_v9, %v17471_v59  ;;  %v9215_v46 = vsel %vm24126_vm14, %v9214_v36, %v9213_v22 }
 0x3ee   :  { %v9241_v4 = vsel %vm2215_vm13, %v9240_v48, %v9239_v27  ;;  %v21067_v53 = vrot.slane %v20841_v21, %v19706_v28  ;;  %v9217_v33 = vsel %vm24125_vm15, %v9216_v47, %v9215_v46  ;;  %v9244_v32 = vrot.slane %v8918_v16, 2 }
 0x3ef   :  { %v9243_v17 = vsel %vm24126_vm14, %v9242_v29, %v9241_v4  ;;  %v5266_v63 = vcombine.high %v5258_v42, %v5258_v42  ;;  %v5274_v14 = vrot.slane %v5258_v42, %v19706_v28  ;;  %v5265_v34 = vrot.slane %v15961_v39, %v19706_v28 }
 0x3f0   :  { %24642 = vst [vmem:[#allocation38_spill] sm:$0xff] %v21067_v53  ;;  %v9219_v45 = vsel %vm24124_vm3, %v9218_v15, %v9217_v33  ;;  %v9245_v41 = vsel %vm24125_vm15, %v9244_v32, %v9243_v17  ;;  %v9246_v54 = vrot.slane %v8920_v58, 1  ;;  %v7399_v30 = vrot.slane %v24634_v11, %v19706_v28 }
 0x3f1   :  { %v7421_v21 = vrot.slane %v24630_v0, %v19706_v28  ;;  %v5288_v60 = vrot.slane %v5266_v63, %v19706_v28  ;;  %v5296_v5 = vcombine.high %v5274_v14, %v5274_v14  ;;  %v5933_v16 = vshrl.u32 %v5274_v14, 16 }
 0x3f2   :  { %v5267_v18 = vcombine.high %v5265_v34, %v5265_v34  ;;  %v21081_v49 = vrot.slane %v5265_v34, %v19706_v28  ;;  %v9247_v36 = vsel %vm24124_vm3, %v9246_v54, %v9245_v41  ;;  %v7443_v47 = vrot.slane %v24631_v31, %v19706_v28 }
 0x3f3   :  { %v7465_v58 = vrot.slane %v20958_v61, %v19706_v28  ;;  %v21088_v11 = vcombine.high %v5288_v60, %v5288_v60  ;;  %v5938_v3 = vshrl.u32 %v5288_v60, 16  ;;  %v5943_v0 = vshrl.u32 %v5296_v5, 16 }
 0x3f4   :  { %v6188_v59 = vmax.bf16 %v5933_v16, %v5274_v14  ;;  %v21090_v35 = vpack.c.b16 %v9247_v36, %v9219_v45  ;;  %v7487_v38 = vrot.slane %v20962_v40, %v19706_v28  ;;  %v7509_v25 = vrot.slane %v20965_v26, %v19706_v28 }
 0x3f5   :  { %v7531_v48 = vrot.slane %v20975_v19, %v19706_v28  ;;  %v21099_v31 = vrot.slane %v5267_v18, %v19706_v28  ;;  %v7553_v9 = vrot.slane %v20978_v24, %v19706_v28  ;;  %v7575_v22 = vrot.slane %v24636_v55, %v19706_v28 }
 0x3f6   :  { %24643 = vst [vmem:[#allocation13_spill] sm:$0xff] %v21090_v35  ;;  %v21107_v40 = vmax.bf16 %v5938_v3, %v5288_v60  ;;  %v21109_v27 = vmax.bf16 %v5943_v0, %v5296_v5  ;;  %16088 = vmatprep.mubr.msk.bf16.mxu1 %vm9500_vm6, %v21090_v35  ;;  %v7597_v26 = vrot.slane %v24638_v8, %v19706_v28  ;;  %v8889_v46 = vunpack.c.l.b16 %v7399_v30 }
 0x3f7   :  { %v21116_v19 = vrot.slane %v6188_v59, %v19706_v28  ;;  %v7619_v24 = vrot.slane %v24639_v23, %v19706_v28  ;;  %v7641_v55 = vrot.slane %v21005_v57, %v19706_v28  ;;  %v7663_v29 = vrot.slane %v21020_v44, %v19706_v28 }
 0x3f8   :  { %24644 = vst [vmem:[#allocation23_spill] sm:$0xff] %v21107_v40  ;;  %24645 = vst [vmem:[#allocation39_spill] sm:$0xff] %v21109_v27  ;;  %v7685_v42 = vrot.slane %v21023_v52, %v19706_v28  ;;  %v7707_v39 = vrot.slane %v21027_v62, %v19706_v28  ;;  %v7729_v8 = vrot.slane %v21030_v20, %v19706_v28  ;;  %v8891_v4 = vunpack.c.l.b16 %v7421_v21 }
 0x3f9   :  { %24646 = vst [vmem:[#allocation22_spill] sm:$0xff] %v21116_v19  ;;  %v8893_v33 = vunpack.c.l.b16 %v7443_v47  ;;  %v8895_v17 = vunpack.c.l.b16 %v7465_v58  ;;  %v8897_v23 = vunpack.c.l.b16 %v7487_v38  ;;  %v8899_v32 = vunpack.c.l.b16 %v7509_v25 }
 0x3fa   :  { %v8901_v63 = vunpack.c.l.b16 %v7531_v48  ;;  %v8903_v57 = vunpack.c.l.b16 %v7553_v9  ;;  %v8905_v14 = vunpack.c.l.b16 %v7575_v22  ;;  %v8907_v34 = vunpack.c.l.b16 %v7597_v26 }
 0x3fb   :  { %v8909_v44 = vunpack.c.l.b16 %v7619_v24  ;;  %v8911_v45 = vunpack.c.l.b16 %v7641_v55  ;;  %v8913_v41 = vunpack.c.l.b16 %v7663_v29  ;;  %v8915_v52 = vunpack.c.l.b16 %v7685_v42  ;;  %v24647_v55 = vld [vmem:[#allocation52_spill] sm:$0xff] }
 0x3fc   :  { %v8917_v54 = vunpack.c.l.b16 %v7707_v39  ;;  %v8919_v60 = vunpack.c.l.b16 %v7729_v8  ;;  %v9192_v62 = vrot.slane %v8891_v4, 7  ;;  %v9194_v5 = vrot.slane %v8893_v33, 6  ;;  %v24648_v8 = vld [vmem:[#allocation53_spill] sm:$0xff] }
 0x3fd   :  { %v9196_v16 = vrot.slane %v8895_v17, 5  ;;  %v9198_v20 = vrot.slane %v8897_v23, 4  ;;  %v9200_v30 = vrot.slane %v8899_v32, 3  ;;  %v9202_v18 = vrot.slane %v8901_v63, 2  ;;  %v24649_v23 = vld [vmem:[#allocation54_spill] sm:$0xff] }
 0x3fe   :  { %v9193_v21 = vsel %vm9018_vm2, %v9192_v62, %v8889_v46  ;;  %v9204_v36 = vrot.slane %v8903_v57, 1  ;;  %v9220_v47 = vrot.slane %v8907_v34, 7  ;;  %v9222_v3 = vrot.slane %v8909_v44, 6 }
 0x3ff   :  { %v9195_v58 = vsel %vm2213_vm11, %v9194_v5, %v9193_v21  ;;  %v9224_v0 = vrot.slane %v8911_v45, 5  ;;  %v9226_v59 = vrot.slane %v8913_v41, 4  ;;  %v9228_v48 = vrot.slane %v8915_v52, 3 }
 0x400   :  { %v9197_v38 = vsel %vm9024_vm12, %v9196_v16, %v9195_v58  ;;  %v9221_v25 = vsel %vm9018_vm2, %v9220_v47, %v8905_v14  ;;  %v9230_v9 = vrot.slane %v8917_v54, 2  ;;  %v9232_v24 = vrot.slane %v8919_v60, 1  ;;  %v24653_v58 = vld [vmem:[#allocation48_spill] sm:$0xff] }
 0x401   :  { %v9199_v22 = vsel %vm2215_vm13, %v9198_v20, %v9197_v38  ;;  %v9223_v26 = vsel %vm2213_vm11, %v9222_v3, %v9221_v25  ;;  %v5047_v29 = vcombine.high %v24647_v55, %v24647_v55  ;;  %v5049_v46 = vcombine.high %v24648_v8, %v24648_v8  ;;  %v24655_v38 = vld [vmem:[#allocation58_spill] sm:$0xff] }
 0x402   :  { %v9201_v42 = vsel %vm24126_vm14, %v9200_v30, %v9199_v22  ;;  %v9225_v39 = vsel %vm9024_vm12, %v9224_v0, %v9223_v26  ;;  %v5097_v4 = vcombine.high %v20480_v7, %v20480_v7  ;;  %v5099_v32 = vcombine.high %v24649_v23, %v24649_v23  ;;  %v24654_v0 = vld [vmem:[#allocation9_spill] sm:$0xff] }
 0x403   :  { %v9203_v33 = vsel %vm24125_vm15, %v9202_v18, %v9201_v42  ;;  %v9227_v17 = vsel %vm2215_vm13, %v9226_v59, %v9225_v39  ;;  %v5758_v63 = vshrl.u32 %v24648_v8, 16  ;;  %v5763_v34 = vshrl.u32 %v5047_v29, 16  ;;  %v24651_v18 = vld [vmem:[#allocation56_spill] sm:$0xff]  ;;  %v24657_v39 = vld [vmem:[#allocation31_spill] sm:$0xff] }
 0x404   :  { %v9205_v57 = vsel %vm24124_vm3, %v9204_v36, %v9203_v33  ;;  %v9229_v14 = vsel %vm24126_vm14, %v9228_v48, %v9227_v17  ;;  %v5768_v44 = vshrl.u32 %v5049_v46, 16  ;;  %v5798_v41 = vshrl.u32 %v24649_v23, 16  ;;  %v24656_v48 = vld [vmem:[#allocation57_spill] sm:$0xff] }
 0x405   :  { %v9231_v45 = vsel %vm24125_vm15, %v9230_v9, %v9229_v14  ;;  %v5803_v7 = vshrl.u32 %v5097_v4, 16  ;;  %v5808_v52 = vshrl.u32 %v5099_v32, 16  ;;  %v6153_v60 = vmax.bf16 %v5758_v63, %v24648_v8  ;;  %v24659_v63 = vld [vmem:[#allocation21_spill] sm:$0xff]  ;;  %v24660_v14 = vld [vmem:[#allocation3_spill] sm:$0xff] }
 0x406   :  { %v9233_v54 = vsel %vm24124_vm3, %v9232_v24, %v9231_v45  ;;  %v6154_v62 = vmax.bf16 %v5763_v34, %v5047_v29  ;;  %v6155_v5 = vmax.bf16 %v5768_v44, %v5049_v46  ;;  %v6161_v20 = vmax.bf16 %v5798_v41, %v24649_v23  ;;  %v24661_v44 = vld [vmem:[#allocation55_spill] sm:$0xff] }
 0x407   :  { %v21155_v16 = vpack.c.b16 %v9233_v54, %v9205_v57  ;;  %v6162_v30 = vmax.bf16 %v5803_v7, %v5097_v4  ;;  %v6163_v21 = vmax.bf16 %v5808_v52, %v5099_v32  ;;  %v24652_v36 = vcombine.high %v24651_v18, %v24651_v18 }
 0x408   :  { %v7766_v3 = vcombine.high %v24653_v58, %v24653_v58  ;;  %v7788_v59 = vcombine.high %v24654_v0, %v24654_v0  ;;  %v21170_v25 = vrot.slane %v24655_v38, %v19706_v28  ;;  %v21175_v9 = vrot.slane %v24656_v48, %v19706_v28 }
 0x409   :  { %24650 = vst [vmem:[#allocation19_spill] sm:$0xff] %v21155_v16  ;;  %v21162_v47 = vrot.slane %v24652_v36, %v19706_v28  ;;  %9583 = vmatmul.mubr.bf16.gmra.mrb[12].mxu1 %v21155_v16  ;;  %v21178_v22 = vrot.slane %v6153_v60, %v19706_v28  ;;  %v21181_v26 = vrot.slane %v6154_v62, %v19706_v28  ;;  %v24662_v36 = vld [vmem:[#allocation20_spill] sm:$0xff] }
 0x40a   :  { %v21184_v24 = vrot.slane %v6155_v5, %v19706_v28  ;;  %v7780_v55 = vrot.slane %v7766_v3, %v19706_v28  ;;  %v7802_v29 = vrot.slane %v7788_v59, %v19706_v28  ;;  %v7810_v42 = vcombine.high %v21170_v25, %v21170_v25 }
 0x40b   :  { %v24658_v8 = vcombine.high %v24657_v39, %v24657_v39  ;;  %v7832_v4 = vcombine.high %v21175_v9, %v21175_v9  ;;  %v7854_v33 = vcombine.high %v21178_v22, %v21178_v22  ;;  %v7876_v17 = vcombine.high %v21181_v26, %v21181_v26 }
 0x40c   :  { %v7898_v23 = vcombine.high %v21184_v24, %v21184_v24  ;;  %v7824_v32 = vrot.slane %v7810_v42, %v19706_v28  ;;  %v7942_v57 = vcombine.high %v24659_v63, %v24659_v63  ;;  %v7964_v34 = vcombine.high %v24660_v14, %v24660_v14 }
 0x40d   :  { %v7934_v46 = vrot.slane %v24658_v8, %v19706_v28  ;;  %v21209_v45 = vrot.slane %v24661_v44, %v19706_v28  ;;  %v7846_v41 = vrot.slane %v7832_v4, %v19706_v28  ;;  %v7868_v7 = vrot.slane %v7854_v33, %v19706_v28 }
 0x40e   :  { %v7890_v52 = vrot.slane %v7876_v17, %v19706_v28  ;;  %v7912_v54 = vrot.slane %v7898_v23, %v19706_v28  ;;  %v7956_v60 = vrot.slane %v7942_v57, %v19706_v28  ;;  %v7978_v62 = vrot.slane %v7964_v34, %v19706_v28 }
 0x40f   :  { %v7986_v5 = vcombine.high %v21209_v45, %v21209_v45  ;;  %v21221_v3 = vrot.slane %v24662_v36, %v19706_v28  ;;  %v21224_v59 = vrot.slane %v6161_v20, %v19706_v28  ;;  %v21227_v38 = vrot.slane %v6162_v30, %v19706_v28 }
 0x410   :  { %v21230_v48 = vrot.slane %v6163_v21, %v19706_v28  ;;  %v8922_v42 = vunpack.c.l.b16 %v21162_v47  ;;  %v8924_v33 = vunpack.c.l.b16 %v7780_v55  ;;  %v8926_v17 = vunpack.c.l.b16 %v7802_v29 }
 0x411   :  { %v8000_v8 = vrot.slane %v7986_v5, %v19706_v28  ;;  %v8008_v4 = vcombine.high %v21221_v3, %v21221_v3  ;;  %v8030_v23 = vcombine.high %v21224_v59, %v21224_v59  ;;  %v8052_v20 = vcombine.high %v21227_v38, %v21227_v38 }
 0x412   :  { %v8074_v30 = vcombine.high %v21230_v48, %v21230_v48  ;;  %v8928_v21 = vunpack.c.l.b16 %v7824_v32  ;;  %v8930_v47 = vunpack.c.l.b16 %v7846_v41  ;;  %v8932_v34 = vunpack.c.l.b16 %v7868_v7 }
 0x413   :  { %v8022_v57 = vrot.slane %v8008_v4, %v19706_v28  ;;  %v8934_v44 = vunpack.c.l.b16 %v7890_v52  ;;  %v8044_v5 = vrot.slane %v8030_v23, %v19706_v28  ;;  %v8066_v55 = vrot.slane %v8052_v20, %v19706_v28 }
 0x414   :  { %v8088_v29 = vrot.slane %v8074_v30, %v19706_v28  ;;  %v8936_v36 = vunpack.c.l.b16 %v7912_v54  ;;  %v8938_v15 = vunpack.c.l.b16 %v7934_v46  ;;  %v8940_v61 = vunpack.c.l.b16 %v7956_v60 }
 0x415   :  { %v8942_v12 = vunpack.c.l.b16 %v7978_v62  ;;  %v8944_v16 = vunpack.c.l.b16 %v8000_v8  ;;  %v8946_v35 = vunpack.c.l.b16 %v8022_v57  ;;  %v8948_v19 = vunpack.c.l.b16 %v8044_v5 }
 0x416   :  { %v8950_v53 = vunpack.c.l.b16 %v8066_v55  ;;  %v8952_v32 = vunpack.c.l.b16 %v8088_v29  ;;  %v9262_v2 = vrot.slane %v8924_v33, 7  ;;  %v9264_v4 = vrot.slane %v8926_v17, 6 }
 0x417   :  { %v9266_v41 = vrot.slane %v8928_v21, 5  ;;  %v9268_v7 = vrot.slane %v8930_v47, 4  ;;  %v9270_v52 = vrot.slane %v8932_v34, 3  ;;  %v9272_v27 = vrot.slane %v8934_v44, 2 }
 0x418   :  { %v9274_v23 = vrot.slane %v8936_v36, 1  ;;  %v9290_v40 = vrot.slane %v8940_v61, 7  ;;  %v9263_v20 = vsel %vm9018_vm2, %v9262_v2, %v8922_v42  ;;  %v9292_v30 = vrot.slane %v8942_v12, 6 }
 0x419   :  { %v9294_v54 = vrot.slane %v8944_v16, 5  ;;  %v9296_v46 = vrot.slane %v8946_v35, 4  ;;  %v9265_v60 = vsel %vm2213_vm11, %v9264_v4, %v9263_v20  ;;  %v9298_v8 = vrot.slane %v8948_v19, 3 }
 0x41a   :  { %v9291_v62 = vsel %vm9018_vm2, %v9290_v40, %v8938_v15  ;;  %v9300_v57 = vrot.slane %v8950_v53, 2  ;;  %v9267_v33 = vsel %vm9024_vm12, %v9266_v41, %v9265_v60  ;;  %v9302_v21 = vrot.slane %v8952_v32, 1 }
 0x41b   :  { %v9293_v17 = vsel %vm2213_vm11, %v9292_v30, %v9291_v62  ;;  %v7751_v47 = vrot.slane %v24651_v18, %v19706_v28  ;;  %v9269_v61 = vsel %vm2215_vm13, %v9268_v7, %v9267_v33  ;;  %v7773_v2 = vrot.slane %v24653_v58, %v19706_v28 }
 0x41c   :  { %v9295_v12 = vsel %vm9024_vm12, %v9294_v54, %v9293_v17  ;;  %v7795_v35 = vrot.slane %v24654_v0, %v19706_v28  ;;  %v9271_v53 = vsel %vm24126_vm14, %v9270_v52, %v9269_v61  ;;  %v7817_v40 = vrot.slane %v21170_v25, %v19706_v28 }
 0x41d   :  { %v9297_v15 = vsel %vm2215_vm13, %v9296_v46, %v9295_v12  ;;  %v7839_v19 = vrot.slane %v21175_v9, %v19706_v28  ;;  %v9273_v16 = vsel %vm24125_vm15, %v9272_v27, %v9271_v53  ;;  %v7861_v58 = vrot.slane %v21178_v22, %v19706_v28 }
 0x41e   :  { %v9299_v18 = vsel %vm24126_vm14, %v9298_v8, %v9297_v15  ;;  %v7883_v0 = vrot.slane %v21181_v26, %v19706_v28  ;;  %v9275_v42 = vsel %vm24124_vm3, %v9274_v23, %v9273_v16  ;;  %v7905_v25 = vrot.slane %v21184_v24, %v19706_v28  ;;  %v24663_v16 = vld [vmem:[#allocation18_spill] sm:$0xff] }
 0x41f   :  { %v9301_v34 = vsel %vm24125_vm15, %v9300_v57, %v9299_v18  ;;  %v7927_v9 = vrot.slane %v24657_v39, %v19706_v28  ;;  %v7949_v44 = vrot.slane %v24659_v63, %v19706_v28  ;;  %v7971_v22 = vrot.slane %v24660_v14, %v19706_v28 }
 0x420   :  { %v9303_v27 = vsel %vm24124_vm3, %v9302_v21, %v9301_v34  ;;  %v7993_v26 = vrot.slane %v21209_v45, %v19706_v28  ;;  %v8015_v55 = vrot.slane %v21221_v3, %v19706_v28  ;;  %v8037_v24 = vrot.slane %v21224_v59, %v19706_v28 }
 0x421   :  { %v21284_v5 = vpack.c.b16 %v9303_v27, %v9275_v42  ;;  %v8059_v39 = vrot.slane %v21227_v38, %v19706_v28  ;;  %v8081_v63 = vrot.slane %v21230_v48, %v19706_v28  ;;  %v8921_v29 = vunpack.c.l.b16 %v7751_v47  ;;  %v24664_v42 = vld [vmem:[#allocation35_spill] sm:$0xff] }
 0x422   :  { %v8923_v36 = vunpack.c.l.b16 %v7773_v2  ;;  %v8925_v14 = vunpack.c.l.b16 %v7795_v35  ;;  %v8927_v45 = vunpack.c.l.b16 %v7817_v40  ;;  %v8929_v32 = vunpack.c.l.b16 %v7839_v19 }
 0x423   :  { %16089 = vmatprep.mubr.msk.bf16.mxu1 %vm9500_vm6, %v21284_v5  ;;  %v8931_v4 = vunpack.c.l.b16 %v7861_v58  ;;  %v8933_v41 = vunpack.c.l.b16 %v7883_v0  ;;  %v8935_v3 = vunpack.c.l.b16 %v7905_v25  ;;  %v8937_v7 = vunpack.c.l.b16 %v7927_v9 }
 0x424   :  { %v8939_v52 = vunpack.c.l.b16 %v7949_v44  ;;  %v8941_v59 = vunpack.c.l.b16 %v7971_v22  ;;  %v8943_v23 = vunpack.c.l.b16 %v7993_v26  ;;  %v8945_v20 = vunpack.c.l.b16 %v8015_v55 }
 0x425   :  { %v8947_v38 = vunpack.c.l.b16 %v8037_v24  ;;  %v8949_v30 = vunpack.c.l.b16 %v8059_v39  ;;  %v8951_v54 = vunpack.c.l.b16 %v8081_v63  ;;  %v9248_v48 = vrot.slane %v8923_v36, 7 }
 0x426   :  { %v9250_v46 = vrot.slane %v8925_v14, 6  ;;  %v9252_v60 = vrot.slane %v8927_v45, 5  ;;  %v9254_v62 = vrot.slane %v8929_v32, 4  ;;  %v9256_v8 = vrot.slane %v8931_v4, 3 }
 0x427   :  { %v9258_v57 = vrot.slane %v8933_v41, 2  ;;  %v9260_v33 = vrot.slane %v8935_v3, 1  ;;  %v9249_v17 = vsel %vm9018_vm2, %v9248_v48, %v8921_v29  ;;  %v9276_v21 = vrot.slane %v8939_v52, 7 }
 0x428   :  { %v9278_v47 = vrot.slane %v8941_v59, 6  ;;  %v9280_v61 = vrot.slane %v8943_v23, 5  ;;  %v9251_v12 = vsel %vm2213_vm11, %v9250_v46, %v9249_v17  ;;  %v9282_v2 = vrot.slane %v8945_v20, 4  ;;  %v24665_v20 = vld [vmem:[#allocation4_spill] sm:$0xff]  ;;  %v24668_v46 = vld [vmem:[#allocation14_spill] sm:$0xff] }
 0x429   :  { %v9284_v35 = vrot.slane %v8947_v38, 3  ;;  %v9286_v53 = vrot.slane %v8949_v30, 2  ;;  %v9253_v15 = vsel %vm9024_vm12, %v9252_v60, %v9251_v12  ;;  %v9277_v40 = vsel %vm9018_vm2, %v9276_v21, %v8937_v7 }
 0x42a   :  { %v9288_v19 = vrot.slane %v8951_v54, 1  ;;  %v5147_v18 = vcombine.high %v24663_v16, %v24663_v16  ;;  %v9255_v58 = vsel %vm2215_vm13, %v9254_v62, %v9253_v15  ;;  %v9279_v0 = vsel %vm2213_vm11, %v9278_v47, %v9277_v40  ;;  %v24667_v54 = vld [vmem:[#allocation8_spill] sm:$0xff]  ;;  %v24669_v62 = vld [vmem:[#allocation50_spill] sm:$0xff] }
 0x42b   :  { %v5149_v34 = vcombine.high %v24664_v42, %v24664_v42  ;;  %v5197_v25 = vcombine.high %v20783_v51, %v20783_v51  ;;  %v9257_v9 = vsel %vm24126_vm14, %v9256_v8, %v9255_v58  ;;  %v9281_v27 = vsel %vm9024_vm12, %v9280_v61, %v9279_v0 }
 0x42c   :  { %v5199_v44 = vcombine.high %v20791_v1, %v20791_v1  ;;  %v5838_v22 = vshrl.u32 %v24664_v42, 16  ;;  %v9259_v26 = vsel %vm24125_vm15, %v9258_v57, %v9257_v9  ;;  %v9283_v55 = vsel %vm2215_vm13, %v9282_v2, %v9281_v27 }
 0x42d   :  { %v5843_v24 = vshrl.u32 %v5147_v18, 16  ;;  %v5848_v39 = vshrl.u32 %v5149_v34, 16  ;;  %v9261_v63 = vsel %vm24124_vm3, %v9260_v33, %v9259_v26  ;;  %v9285_v29 = vsel %vm24126_vm14, %v9284_v35, %v9283_v55 }
 0x42e   :  { %v5878_v51 = vshrl.u32 %v20791_v1, 16  ;;  %v5883_v36 = vshrl.u32 %v5197_v25, 16  ;;  %v9287_v14 = vsel %vm24125_vm15, %v9286_v53, %v9285_v29  ;;  %v5888_v45 = vshrl.u32 %v5199_v44, 16 }
 0x42f   :  { %v6169_v32 = vmax.bf16 %v5838_v22, %v24664_v42  ;;  %v6170_v4 = vmax.bf16 %v5843_v24, %v5147_v18  ;;  %v9289_v41 = vsel %vm24124_vm3, %v9288_v19, %v9287_v14  ;;  %v6171_v3 = vmax.bf16 %v5848_v39, %v5149_v34 }
 0x430   :  { %v6177_v7 = vmax.bf16 %v5878_v51, %v20791_v1  ;;  %v6178_v52 = vmax.bf16 %v5883_v36, %v5197_v25  ;;  %v21322_v59 = vpack.c.b16 %v9289_v41, %v9261_v63  ;;  %v6179_v23 = vmax.bf16 %v5888_v45, %v5199_v44  ;;  %v24670_v1 = vld [vmem:[#allocation5_spill] sm:$0xff] }
 0x431   :  { %v24666_v38 = vcombine.high %v24665_v20, %v24665_v20  ;;  %v8118_v48 = vcombine.high %v24667_v54, %v24667_v54  ;;  %v8140_v60 = vcombine.high %v24668_v46, %v24668_v46  ;;  %v21336_v8 = vrot.slane %v24669_v62, %v19706_v28 }
 0x432   :  { %v21340_v57 = vrot.slane %v24670_v1, %v19706_v28  ;;  %v21343_v33 = vrot.slane %v6169_v32, %v19706_v28  ;;  %9591 = vmatmul.mubr.bf16.gmra.mrb[16].mxu1 %v21322_v59  ;;  %v21348_v21 = vrot.slane %v6170_v4, %v19706_v28  ;;  %v21351_v47 = vrot.slane %v6171_v3, %v19706_v28 }
 0x433   :  { %v21328_v30 = vrot.slane %v24666_v38, %v19706_v28  ;;  %v8132_v17 = vrot.slane %v8118_v48, %v19706_v28  ;;  %v24671_v61 = vcombine.high %v20801_v56, %v20801_v56  ;;  %v8154_v2 = vrot.slane %v8140_v60, %v19706_v28  ;;  %v21413_v38 = vpop.f32.mrb[0].mxu1 }
 0x434   :  { %v8162_v35 = vcombine.high %v21336_v8, %v21336_v8  ;;  %v8184_v53 = vcombine.high %v21340_v57, %v21340_v57  ;;  %v8206_v15 = vcombine.high %v21343_v33, %v21343_v33  ;;  %v8228_v40 = vcombine.high %v21348_v21, %v21348_v21  ;;  %v9562_v1 = vpop.f32.mrb[1].mxu1 }
 0x435   :  { %v21357_v12 = vrot.slane %v24671_v61, %v19706_v28  ;;  %v8250_v19 = vcombine.high %v21351_v47, %v21351_v47  ;;  %v8294_v16 = vcombine.high %v20826_v13, %v20826_v13  ;;  %v8316_v18 = vcombine.high %v20829_v43, %v20829_v43 }
 0x436   :  { %v8176_v58 = vrot.slane %v8162_v35, %v19706_v28  ;;  %v8198_v0 = vrot.slane %v8184_v53, %v19706_v28  ;;  %v8220_v42 = vrot.slane %v8206_v15, %v19706_v28  ;;  %v21379_v34 = vrot.slane %v20815_v6, %v19706_v28  ;;  %v21417_v53 = vpop.f32.mrb[2].mxu1 }
 0x437   :  { %v8242_v25 = vrot.slane %v8228_v40, %v19706_v28  ;;  %v8264_v9 = vrot.slane %v8250_v19, %v19706_v28  ;;  %v8308_v27 = vrot.slane %v8294_v16, %v19706_v28  ;;  %v8330_v44 = vrot.slane %v8316_v18, %v19706_v28  ;;  %v9565_v18 = vpop.f32.mrb[3].mxu1 }
 0x438   :  { %v8338_v22 = vcombine.high %v21379_v34, %v21379_v34  ;;  %v21389_v26 = vrot.slane %v20818_v37, %v19706_v28  ;;  %v21392_v55 = vrot.slane %v6177_v7, %v19706_v28  ;;  %v21395_v6 = vrot.slane %v6178_v52, %v19706_v28 }
 0x439   :  { %v21398_v24 = vrot.slane %v6179_v23, %v19706_v28  ;;  %v8954_v39 = vunpack.c.l.b16 %v21328_v30  ;;  %v8956_v63 = vunpack.c.l.b16 %v8132_v17  ;;  %v8958_v29 = vunpack.c.l.b16 %v8154_v2 }
 0x43a   :  { %v8352_v51 = vrot.slane %v8338_v22, %v19706_v28  ;;  %v8360_v36 = vcombine.high %v21389_v26, %v21389_v26  ;;  %v8382_v37 = vcombine.high %v21392_v55, %v21392_v55  ;;  %v8404_v14 = vcombine.high %v21395_v6, %v21395_v6 }
 0x43b   :  { %v8426_v45 = vcombine.high %v21398_v24, %v21398_v24  ;;  %v8960_v32 = vunpack.c.l.b16 %v8176_v58  ;;  %v8962_v4 = vunpack.c.l.b16 %v8198_v0  ;;  %v8964_v41 = vunpack.c.l.b16 %v8220_v42 }
 0x43c   :  { %v8374_v3 = vrot.slane %v8360_v36, %v19706_v28  ;;  %v8396_v7 = vrot.slane %v8382_v37, %v19706_v28  ;;  %v8418_v52 = vrot.slane %v8404_v14, %v19706_v28  ;;  %v8966_v23 = vunpack.c.l.b16 %v8242_v25 }
 0x43d   :  { %v8440_v30 = vrot.slane %v8426_v45, %v19706_v28  ;;  %v8968_v48 = vunpack.c.l.b16 %v8264_v9  ;;  %v8970_v60 = vunpack.c.l.b16 %v21357_v12  ;;  %v8972_v62 = vunpack.c.l.b16 %v8308_v27 }
 0x43e   :  { %v8974_v17 = vunpack.c.l.b16 %v8330_v44  ;;  %v8976_v61 = vunpack.c.l.b16 %v8352_v51  ;;  %v8978_v2 = vunpack.c.l.b16 %v8374_v3  ;;  %v8980_v35 = vunpack.c.l.b16 %v8396_v7 }
 0x43f   :  { %v8982_v15 = vunpack.c.l.b16 %v8418_v52  ;;  %v8984_v40 = vunpack.c.l.b16 %v8440_v30  ;;  %v9318_v19 = vrot.slane %v8956_v63, 7  ;;  %v9320_v16 = vrot.slane %v8958_v29, 6 }
 0x440   :  { %v9322_v58 = vrot.slane %v8960_v32, 5  ;;  %v9324_v0 = vrot.slane %v8962_v4, 4  ;;  %v9326_v42 = vrot.slane %v8964_v41, 3  ;;  %v9328_v25 = vrot.slane %v8966_v23, 2 }
 0x441   :  { %v9319_v9 = vsel %vm9018_vm2, %v9318_v19, %v8954_v39  ;;  %v9330_v12 = vrot.slane %v8968_v48, 1  ;;  %v9346_v27 = vrot.slane %v8972_v62, 7  ;;  %v9348_v22 = vrot.slane %v8974_v17, 6 }
 0x442   :  { %v9321_v44 = vsel %vm2213_vm11, %v9320_v16, %v9319_v9  ;;  %v9350_v51 = vrot.slane %v8976_v61, 5  ;;  %v9352_v36 = vrot.slane %v8978_v2, 4  ;;  %v9354_v37 = vrot.slane %v8980_v35, 3 }
 0x443   :  { %v9323_v14 = vsel %vm9024_vm12, %v9322_v58, %v9321_v44  ;;  %v9347_v63 = vsel %vm9018_vm2, %v9346_v27, %v8970_v60  ;;  %v9356_v29 = vrot.slane %v8982_v15, 2  ;;  %v9358_v45 = vrot.slane %v8984_v40, 1 }
 0x444   :  { %v9325_v32 = vsel %vm2215_vm13, %v9324_v0, %v9323_v14  ;;  %v9349_v4 = vsel %vm2213_vm11, %v9348_v22, %v9347_v63  ;;  %v8103_v39 = vrot.slane %v24665_v20, %v19706_v28  ;;  %v8125_v41 = vrot.slane %v24667_v54, %v19706_v28 }
 0x445   :  { %v9327_v3 = vsel %vm24126_vm14, %v9326_v42, %v9325_v32  ;;  %v9351_v7 = vsel %vm9024_vm12, %v9350_v51, %v9349_v4  ;;  %v8147_v52 = vrot.slane %v24668_v46, %v19706_v28  ;;  %v8169_v23 = vrot.slane %v21336_v8, %v19706_v28 }
 0x446   :  { %v9329_v30 = vsel %vm24125_vm15, %v9328_v25, %v9327_v3  ;;  %v9353_v48 = vsel %vm2215_vm13, %v9352_v36, %v9351_v7  ;;  %v8191_v20 = vrot.slane %v21340_v57, %v19706_v28  ;;  %v8213_v54 = vrot.slane %v21343_v33, %v19706_v28 }
 0x447   :  { %v9331_v60 = vsel %vm24124_vm3, %v9330_v12, %v9329_v30  ;;  %v9355_v62 = vsel %vm24126_vm14, %v9354_v37, %v9353_v48  ;;  %v8235_v46 = vrot.slane %v21348_v21, %v19706_v28  ;;  %v8257_v8 = vrot.slane %v21351_v47, %v19706_v28 }
 0x448   :  { %v9357_v1 = vsel %vm24125_vm15, %v9356_v29, %v9355_v62  ;;  %v8279_v17 = vrot.slane %v20801_v56, %v19706_v28  ;;  %v8301_v57 = vrot.slane %v20826_v13, %v19706_v28  ;;  %v8323_v33 = vrot.slane %v20829_v43, %v19706_v28 }
 0x449   :  { %v9359_v61 = vsel %vm24124_vm3, %v9358_v45, %v9357_v1  ;;  %v8345_v2 = vrot.slane %v21379_v34, %v19706_v28  ;;  %v8367_v21 = vrot.slane %v21389_v26, %v19706_v28  ;;  %v8389_v47 = vrot.slane %v21392_v55, %v19706_v28 }
 0x44a   :  { %v21461_v35 = vpack.c.b16 %v9359_v61, %v9331_v60  ;;  %v8411_v56 = vrot.slane %v21395_v6, %v19706_v28  ;;  %v8433_v13 = vrot.slane %v21398_v24, %v19706_v28  ;;  %v8953_v43 = vunpack.c.l.b16 %v8103_v39 }
 0x44b   :  { %v8955_v15 = vunpack.c.l.b16 %v8125_v41  ;;  %v8957_v40 = vunpack.c.l.b16 %v8147_v52  ;;  %v8959_v19 = vunpack.c.l.b16 %v8169_v23  ;;  %v8961_v16 = vunpack.c.l.b16 %v8191_v20 }
 0x44c   :  { %16090 = vmatprep.mubr.msk.bf16.mxu1 %vm9500_vm6, %v21461_v35  ;;  %v8963_v34 = vunpack.c.l.b16 %v8213_v54  ;;  %v8965_v26 = vunpack.c.l.b16 %v8235_v46  ;;  %v8967_v18 = vunpack.c.l.b16 %v8257_v8  ;;  %v8969_v55 = vunpack.c.l.b16 %v8279_v17 }
 0x44d   :  { %v8971_v58 = vunpack.c.l.b16 %v8301_v57  ;;  %v8973_v0 = vunpack.c.l.b16 %v8323_v33  ;;  %v8975_v42 = vunpack.c.l.b16 %v8345_v2  ;;  %v8977_v25 = vunpack.c.l.b16 %v8367_v21 }
 0x44e   :  { %v8979_v6 = vunpack.c.l.b16 %v8389_v47  ;;  %v8981_v9 = vunpack.c.l.b16 %v8411_v56  ;;  %v8983_v12 = vunpack.c.l.b16 %v8433_v13  ;;  %v9304_v24 = vrot.slane %v8955_v15, 7 }
 0x44f   :  { %v9306_v27 = vrot.slane %v8957_v40, 6  ;;  %v9308_v22 = vrot.slane %v8959_v19, 5  ;;  %v9310_v44 = vrot.slane %v8961_v16, 4  ;;  %v9312_v51 = vrot.slane %v8963_v34, 3 }
 0x450   :  { %v9305_v36 = vsel %vm9018_vm2, %v9304_v24, %v8953_v43  ;;  %v9314_v37 = vrot.slane %v8965_v26, 2  ;;  %v9316_v14 = vrot.slane %v8967_v18, 1  ;;  %v9332_v63 = vrot.slane %v8971_v58, 7  ;;  %v24674_v26 = vld [vmem:[#allocation23_spill] sm:$0xff] }
 0x451   :  { %v9307_v29 = vsel %vm2213_vm11, %v9306_v27, %v9305_v36  ;;  %v9334_v45 = vrot.slane %v8973_v0, 6  ;;  %v9336_v32 = vrot.slane %v8975_v42, 5  ;;  %v9338_v4 = vrot.slane %v8977_v25, 4  ;;  %v24675_v58 = vld [vmem:[#allocation39_spill] sm:$0xff]  ;;  %v24677_v25 = vld [vmem:[#allocation38_spill] sm:$0xff] }
 0x452   :  { %v9309_v39 = vsel %vm9024_vm12, %v9308_v22, %v9307_v29  ;;  %v9333_v41 = vsel %vm9018_vm2, %v9332_v63, %v8969_v55  ;;  %v9340_v3 = vrot.slane %v8979_v6, 3  ;;  %v9342_v7 = vrot.slane %v8981_v9, 2  ;;  %v24676_v42 = vld [vmem:[#allocation51_spill] sm:$0xff]  ;;  %v24678_v9 = vld [vmem:[#allocation42_spill] sm:$0xff] }
 0x453   :  { %v9311_v52 = vsel %vm2215_vm13, %v9310_v44, %v9309_v39  ;;  %v9335_v23 = vsel %vm2213_vm11, %v9334_v45, %v9333_v41  ;;  %v9344_v30 = vrot.slane %v8983_v12, 1  ;;  %v5247_v48 = vcombine.high %v20806_v10, %v20806_v10  ;;  %v24679_v12 = vld [vmem:[#allocation28_spill] sm:$0xff]  ;;  %v24681_v39 = vld [vmem:[#allocation27_spill] sm:$0xff] }
 0x454   :  { %v9313_v20 = vsel %vm24126_vm14, %v9312_v51, %v9311_v52  ;;  %v9337_v54 = vsel %vm9024_vm12, %v9336_v32, %v9335_v23  ;;  %v5249_v60 = vcombine.high %v20834_v50, %v20834_v50  ;;  %v5297_v62 = vcombine.high %v21081_v49, %v21081_v49  ;;  %v24680_v51 = vld [vmem:[#allocation22_spill] sm:$0xff] }
 0x455   :  { %v9315_v46 = vsel %vm24125_vm15, %v9314_v37, %v9313_v20  ;;  %v9339_v8 = vsel %vm2215_vm13, %v9338_v4, %v9337_v54  ;;  %v5299_v1 = vcombine.high %v21099_v31, %v21099_v31  ;;  %v5918_v17 = vshrl.u32 %v20834_v50, 16 }
 0x456   :  { %v9317_v10 = vsel %vm24124_vm3, %v9316_v14, %v9315_v46  ;;  %v9341_v57 = vsel %vm24126_vm14, %v9340_v3, %v9339_v8  ;;  %v5923_v33 = vshrl.u32 %v5247_v48, 16  ;;  %v5928_v61 = vshrl.u32 %v5249_v60, 16 }
 0x457   :  { %v24672_v2 = vshrl.u32 %v21081_v49, 16  ;;  %v9343_v47 = vsel %vm24125_vm15, %v9342_v7, %v9341_v57  ;;  %v5958_v56 = vshrl.u32 %v21099_v31, 16  ;;  %v5963_v13 = vshrl.u32 %v5297_v62, 16 }
 0x458   :  { %v9345_v43 = vsel %vm24124_vm3, %v9344_v30, %v9343_v47  ;;  %v6185_v15 = vmax.bf16 %v5918_v17, %v20834_v50  ;;  %v6186_v40 = vmax.bf16 %v5923_v33, %v5247_v48  ;;  %v6187_v19 = vmax.bf16 %v5928_v61, %v5249_v60 }
 0x459   :  { %v6192_v21 = vmax.bf16 %v24672_v2, %v21081_v49  ;;  %v24673_v16 = vshrl.u32 %v21088_v11, 16  ;;  %v21502_v18 = vrot.slane %v24674_v26, %v19706_v28  ;;  %v21504_v49 = vpack.c.b16 %v9345_v43, %v9317_v10 }
 0x45a   :  { %v5968_v55 = vshrl.u32 %v5299_v1, 16  ;;  %v21508_v0 = vrot.slane %v24675_v58, %v19706_v28  ;;  %v8470_v50 = vcombine.high %v24676_v42, %v24676_v42  ;;  %v8492_v6 = vcombine.high %v24677_v25, %v24677_v25 }
 0x45b   :  { %v6191_v34 = vmax.bf16 %v24673_v16, %v21088_v11  ;;  %v21516_v11 = vrot.slane %v24678_v9, %v19706_v28  ;;  %9599 = vmatmul.mubr.bf16.gmra.mrb[20].mxu1 %v21504_v49  ;;  %v21521_v24 = vrot.slane %v24679_v12, %v19706_v28  ;;  %v21524_v27 = vrot.slane %v6185_v15, %v19706_v28 }
 0x45c   :  { %v21527_v22 = vrot.slane %v6186_v40, %v19706_v28  ;;  %v21530_v44 = vrot.slane %v6187_v19, %v19706_v28  ;;  %v8624_v36 = vcombine.high %v24680_v51, %v24680_v51  ;;  %v6193_v37 = vmax.bf16 %v5958_v56, %v21099_v31 }
 0x45d   :  { %v6194_v14 = vmax.bf16 %v5963_v13, %v5297_v62  ;;  %v8514_v63 = vcombine.high %v21516_v11, %v21516_v11  ;;  %v6195_v29 = vmax.bf16 %v5968_v55, %v5299_v1  ;;  %v8536_v45 = vcombine.high %v21521_v24, %v21521_v24 }
 0x45e   :  { %v8558_v32 = vcombine.high %v21524_v27, %v21524_v27  ;;  %v8580_v4 = vcombine.high %v21527_v22, %v21527_v22  ;;  %v24682_v41 = vcombine.high %v24681_v39, %v24681_v39  ;;  %v8646_v31 = vcombine.high %v21502_v18, %v21502_v18 }
 0x45f   :  { %v8668_v7 = vcombine.high %v21508_v0, %v21508_v0  ;;  %v21552_v52 = vrot.slane %v6191_v34, %v19706_v28  ;;  %v8484_v23 = vrot.slane %v8470_v50, %v19706_v28  ;;  %v8506_v30 = vrot.slane %v8492_v6, %v19706_v28 }
 0x460   :  { %v8462_v3 = vrot.slane %v24682_v41, %v19706_v28  ;;  %v8528_v48 = vrot.slane %v8514_v63, %v19706_v28  ;;  %v8602_v20 = vcombine.high %v21530_v44, %v21530_v44  ;;  %v8550_v54 = vrot.slane %v8536_v45, %v19706_v28 }
 0x461   :  { %v8572_v60 = vrot.slane %v8558_v32, %v19706_v28  ;;  %v8690_v62 = vcombine.high %v21552_v52, %v21552_v52  ;;  %v21564_v46 = vrot.slane %v6192_v21, %v19706_v28  ;;  %v8594_v8 = vrot.slane %v8580_v4, %v19706_v28 }
 0x462   :  { %v21568_v1 = vrot.slane %v6193_v37, %v19706_v28  ;;  %v21571_v17 = vrot.slane %v6194_v14, %v19706_v28  ;;  %v21574_v10 = vrot.slane %v6195_v29, %v19706_v28  ;;  %v8660_v57 = vrot.slane %v8646_v31, %v19706_v28 }
 0x463   :  { %v8682_v33 = vrot.slane %v8668_v7, %v19706_v28  ;;  %v8704_v61 = vrot.slane %v8690_v62, %v19706_v28  ;;  %v8712_v2 = vcombine.high %v21564_v46, %v21564_v46  ;;  %v8616_v21 = vrot.slane %v8602_v20, %v19706_v28 }
 0x464   :  { %v8734_v47 = vcombine.high %v21568_v1, %v21568_v1  ;;  %v8756_v56 = vcombine.high %v21571_v17, %v21571_v17  ;;  %v8778_v13 = vcombine.high %v21574_v10, %v21574_v10  ;;  %v8988_v15 = vunpack.c.l.b16 %v8484_v23 }
 0x465   :  { %v8726_v43 = vrot.slane %v8712_v2, %v19706_v28  ;;  %v8990_v40 = vunpack.c.l.b16 %v8506_v30  ;;  %v8992_v19 = vunpack.c.l.b16 %v8528_v48  ;;  %v8638_v16 = vrot.slane %v8624_v36, %v19706_v28 }
 0x466   :  { %v8748_v34 = vrot.slane %v8734_v47, %v19706_v28  ;;  %v8770_v26 = vrot.slane %v8756_v56, %v19706_v28  ;;  %v8986_v55 = vunpack.c.l.b16 %v8462_v3  ;;  %v8792_v58 = vrot.slane %v8778_v13, %v19706_v28 }
 0x467   :  { %v9004_v50 = vunpack.c.l.b16 %v8660_v57  ;;  %v9006_v6 = vunpack.c.l.b16 %v8682_v33  ;;  %v9008_v9 = vunpack.c.l.b16 %v8704_v61  ;;  %v8994_v12 = vunpack.c.l.b16 %v8550_v54  ;;  %v21593_v41 = vpop.f32.mrb[4].mxu1 }
 0x468   :  { %v8996_v37 = vunpack.c.l.b16 %v8572_v60  ;;  %v8998_v14 = vunpack.c.l.b16 %v8594_v8  ;;  %v9000_v63 = vunpack.c.l.b16 %v8616_v21  ;;  %v9010_v29 = vunpack.c.l.b16 %v8726_v43  ;;  %v9570_v3 = vpop.f32.mrb[5].mxu1 }
 0x469   :  { %v9374_v45 = vrot.slane %v8988_v15, 7  ;;  %v9376_v32 = vrot.slane %v8990_v40, 6  ;;  %v9378_v4 = vrot.slane %v8992_v19, 5  ;;  %v9002_v36 = vunpack.c.l.b16 %v8638_v16  ;;  %v21596_v54 = vpop.f32.mrb[6].mxu1 }
 0x46a   :  { %v9012_v31 = vunpack.c.l.b16 %v8748_v34  ;;  %v9014_v7 = vunpack.c.l.b16 %v8770_v26  ;;  %v9402_v23 = vrot.slane %v9004_v50, 7  ;;  %v9016_v30 = vunpack.c.l.b16 %v8792_v58  ;;  %v9573_v61 = vpop.f32.mrb[7].mxu1 }
 0x46b   :  { %v9375_v48 = vsel %vm9018_vm2, %v9374_v45, %v8986_v55  ;;  %v9404_v20 = vrot.slane %v9006_v6, 6  ;;  %v9406_v62 = vrot.slane %v9008_v9, 5  ;;  %v9380_v8 = vrot.slane %v8994_v12, 4 }
 0x46c   :  { %v9377_v60 = vsel %vm2213_vm11, %v9376_v32, %v9375_v48  ;;  %v9382_v57 = vrot.slane %v8996_v37, 3  ;;  %v9403_v33 = vsel %vm9018_vm2, %v9402_v23, %v9002_v36  ;;  %v9384_v21 = vrot.slane %v8998_v14, 2 }
 0x46d   :  { %v9379_v2 = vsel %vm9024_vm12, %v9378_v4, %v9377_v60  ;;  %v9405_v47 = vsel %vm2213_vm11, %v9404_v20, %v9403_v33  ;;  %v9408_v56 = vrot.slane %v9010_v29, 4  ;;  %v9386_v43 = vrot.slane %v9000_v63, 1 }
 0x46e   :  { %v9381_v13 = vsel %vm2215_vm13, %v9380_v8, %v9379_v2  ;;  %v9407_v15 = vsel %vm9024_vm12, %v9406_v62, %v9405_v47  ;;  %v9410_v40 = vrot.slane %v9012_v31, 3  ;;  %v9412_v34 = vrot.slane %v9014_v7, 2 }
 0x46f   :  { %v9383_v19 = vsel %vm24126_vm14, %v9382_v57, %v9381_v13  ;;  %v9409_v16 = vsel %vm2215_vm13, %v9408_v56, %v9407_v15  ;;  %v9414_v26 = vrot.slane %v9016_v30, 1  ;;  %v8477_v50 = vrot.slane %v24676_v42, %v19706_v28 }
 0x470   :  { %v9385_v55 = vsel %vm24125_vm15, %v9384_v21, %v9383_v19  ;;  %v9411_v58 = vsel %vm24126_vm14, %v9410_v40, %v9409_v16  ;;  %v8499_v6 = vrot.slane %v24677_v25, %v19706_v28  ;;  %v8521_v37 = vrot.slane %v21516_v11, %v19706_v28 }
 0x471   :  { %v9387_v9 = vsel %vm24124_vm3, %v9386_v43, %v9385_v55  ;;  %v9413_v12 = vsel %vm24125_vm15, %v9412_v34, %v9411_v58  ;;  %v8455_v63 = vrot.slane %v24681_v39, %v19706_v28  ;;  %v8653_v29 = vrot.slane %v21502_v18, %v19706_v28 }
 0x472   :  { %v9415_v14 = vsel %vm24124_vm3, %v9414_v26, %v9413_v12  ;;  %v8675_v42 = vrot.slane %v21508_v0, %v19706_v28  ;;  %v8543_v25 = vrot.slane %v21521_v24, %v19706_v28  ;;  %v8565_v32 = vrot.slane %v21524_v27, %v19706_v28 }
 0x473   :  { %v21623_v45 = vpack.c.b16 %v9415_v14, %v9387_v9  ;;  %v8697_v11 = vrot.slane %v21552_v52, %v19706_v28  ;;  %v8587_v39 = vrot.slane %v21527_v22, %v19706_v28  ;;  %v8609_v18 = vrot.slane %v21530_v44, %v19706_v28 }
 0x474   :  { %v8987_v4 = vunpack.c.l.b16 %v8477_v50  ;;  %v8989_v36 = vunpack.c.l.b16 %v8499_v6  ;;  %v8631_v0 = vrot.slane %v24680_v51, %v19706_v28  ;;  %v8719_v24 = vrot.slane %v21564_v46, %v19706_v28 }
 0x475   :  { %16091 = vmatprep.mubr.msk.bf16.mxu1 %vm9500_vm6, %v21623_v45  ;;  %v8741_v27 = vrot.slane %v21568_v1, %v19706_v28  ;;  %v8991_v52 = vunpack.c.l.b16 %v8521_v37  ;;  %v8763_v22 = vrot.slane %v21571_v17, %v19706_v28  ;;  %v8785_v44 = vrot.slane %v21574_v10, %v19706_v28  ;;  %v17105_v1 = vld [vmem:[%s23852_s4 + $0x50] ss:$0 sps:$4 sm:$0xff]  }
 0x476   :  { %v9003_v31 = vunpack.c.l.b16 %v8653_v29  ;;  %v9005_v7 = vunpack.c.l.b16 %v8675_v42  ;;  %v8985_v23 = vunpack.c.l.b16 %v8455_v63  ;;  %v8993_v3 = vunpack.c.l.b16 %v8543_v25 }
 0x477   :  { %v8995_v30 = vunpack.c.l.b16 %v8565_v32  ;;  %v9007_v48 = vunpack.c.l.b16 %v8697_v11  ;;  %v8997_v51 = vunpack.c.l.b16 %v8587_v39  ;;  %v9360_v20 = vrot.slane %v8987_v4, 7  ;;  %v24683_v39 = vld [vmem:[#allocation59_spill] sm:$0xff]  ;;  %v24685_v4 = vld [vmem:[#allocation41_spill] sm:$0xff] }
 0x478   :  { %v9362_v62 = vrot.slane %v8989_v36, 6  ;;  %v9364_v46 = vrot.slane %v8991_v52, 5  ;;  %v8999_v60 = vunpack.c.l.b16 %v8609_v18  ;;  %v9001_v8 = vunpack.c.l.b16 %v8631_v0  ;;  %v24684_v18 = vld [vmem:[#allocation60_spill] sm:$0xff]  ;;  %v24686_v36 = vld [vmem:[#allocation49_spill] sm:$0xff]  ;;  %v24690_v52 = vld [vmem:[#allocation19_spill] sm:$0xff] }
 0x479   :  { %v9009_v17 = vunpack.c.l.b16 %v8719_v24  ;;  %v9011_v57 = vunpack.c.l.b16 %v8741_v27  ;;  %v9361_v10 = vsel %vm9018_vm2, %v9360_v20, %v8985_v23  ;;  %v9388_v33 = vrot.slane %v9003_v31, 7  ;;  %v24687_v0 = vld [vmem:[#allocation40_spill] sm:$0xff]  ;;  %v24689_v27 = vld [vmem:[#allocation13_spill] sm:$0xff]  ;;  %v17106_v23 = vld [vmem:[%s23853_s5] ss:$8 sps:$4 sm:$0xff]  }
 0x47a   :  { %v9390_v61 = vrot.slane %v9005_v7, 6  ;;  %v9392_v2 = vrot.slane %v9007_v48, 5  ;;  %v9013_v21 = vunpack.c.l.b16 %v8763_v22  ;;  %v9015_v47 = vunpack.c.l.b16 %v8785_v44  ;;  %v24688_v24 = vld [vmem:[#allocation44_spill] sm:$0xff]  ;;  %v17114_v20 = vld [vmem:[%s23853_s5 + $0x24] ss:$8 sps:$4 sm:$0xff]  }
 0x47b   :  { %v9363_v56 = vsel %vm2213_vm11, %v9362_v62, %v9361_v10  ;;  %v9366_v13 = vrot.slane %v8993_v3, 4  ;;  %v9368_v15 = vrot.slane %v8995_v30, 3  ;;  %v9389_v40 = vsel %vm9018_vm2, %v9388_v33, %v9001_v8  ;;  %v17108_v3 = vld [vmem:[%s23853_s5 + $0x4] ss:$8 sps:$4 sm:$0xff]   ;;  %v17117_v62 = vld [vmem:[%s23853_s5 + $0x34] ss:$8 sps:$4 sm:$0xff]  }
 0x47c   :  { %v9365_v43 = vsel %vm9024_vm12, %v9364_v46, %v9363_v56  ;;  %v9700_v19 = vsel %vm24123_vm0, %v17105_v1, 0  ;;  %v9370_v34 = vrot.slane %v8997_v51, 2  ;;  %v9391_v26 = vsel %vm2213_vm11, %v9390_v61, %v9389_v40  ;;  %v17112_v51 = vld [vmem:[%s23853_s5 + $0x20] ss:$8 sps:$4 sm:$0xff]   ;;  %v17115_v46 = vld [vmem:[%s23853_s5 + $0x30] ss:$8 sps:$4 sm:$0xff]  }
 0x47d   :  { %v9367_v16 = vsel %vm2215_vm13, %v9366_v13, %v9365_v43  ;;  %v9394_v55 = vrot.slane %v9009_v17, 4  ;;  %9723 = vmatpush1.bf16.msra.mxu1 %v9700_v19  ;;  %v9372_v50 = vrot.slane %v8999_v60, 1  ;;  %v9393_v6 = vsel %vm9024_vm12, %v9392_v2, %v9391_v26  ;;  %v17118_v1 = vld [vmem:[%s23853_s5 + $0x40] ss:$8 sps:$4 sm:$0xff]   ;;  %v17120_v60 = vld [vmem:[%s23853_s5 + $0x44] ss:$8 sps:$4 sm:$0xff]  }
 0x47e   :  { %v9369_v58 = vsel %vm24126_vm14, %v9368_v15, %v9367_v16  ;;  %v9396_v9 = vrot.slane %v9011_v57, 3  ;;  %v9398_v14 = vrot.slane %v9013_v21, 2  ;;  %v9400_v42 = vrot.slane %v9015_v47, 1  ;;  %10496 = vmatprep.subr.bf16.mxu1 %v17108_v3  ;;  %v10173_v8 = vld [vmem:[%s23853_s5 + $0x50] sm:$0x33] }
 0x47f   :  { %v9371_v12 = vsel %vm24125_vm15, %v9370_v34, %v9369_v58  ;;  %v9395_v37 = vsel %vm2215_vm13, %v9394_v55, %v9393_v6  ;;  %v16136_v17 = vcombine.high %v10173_v8, %v10173_v8  ;;  %v16135_v57 = vcombine.low %v10173_v8, %v10173_v8  ;;  %v17125_v47 = vld [vmem:[%s23853_s5 + $0x5c] ss:$8 sps:$4 sm:$0xff]  }
 0x480   :  { %v9373_v63 = vsel %vm24124_vm3, %v9372_v50, %v9371_v12  ;;  %v9397_v29 = vsel %vm24126_vm14, %v9396_v9, %v9395_v37  ;;  %vm10613_vm0 = vsmask.f32 3340  ;;  %vm10616_vm14 = vsmask.f32 5396  ;;  %v21752_v12 = vld [vmem:[%s23853_s5 + $0xa8] sm:$0x33] }
 0x481   :  { %v9399_v25 = vsel %vm24125_vm15, %v9398_v14, %v9397_v29  ;;  %v10491_v10 = vsel %vm115_vm1, %v16135_v57, 0  ;;  %v16204_v29 = vcombine.low %v21752_v12, %v21752_v12 }
 0x482   :  { %v9401_v32 = vsel %vm24124_vm3, %v9400_v42, %v9399_v25 }
 0x483   :  { %v9428_v11 = vpack.c.b16 %v9401_v32, %v9373_v63 }
 0x485   :  { %9607 = vmatmul.mubr.bf16.gmra.mrb[24].mxu1 %v9428_v11 }
 0x486   :  { %16103 = vmatprep.mubr.msk.bf16.mxu1 %vm9500_vm6, %v24683_v39  ;;  %v21762_v39 = vld [vmem:[%s23853_s5 + $0x100] sm:$0x33] }
 0x48d   :  { %9735 = vmatmul.mubr.bf16.vlgmr.msra.gmra.mrb[28].mxu1 %v24684_v18 }
 0x48e   :  { %16104 = vmatprep.mubr.msk.bf16.mxu1 %vm9500_vm6, %v24685_v4  ;;  %10497 = vmatpush1.bf16.msra.mxu1 %v17106_v23 }
 0x495   :  { %9743 = vmatmul.mubr.bf16.gmra.mrb[32].mxu1 %v24686_v36 }
 0x496   :  { %16105 = vmatprep.mubr.msk.bf16.mxu1 %vm9500_vm6, %v24687_v0 }
 0x49d   :  { %9751 = vmatmul.mubr.bf16.gmra.mrb[36].mxu1 %v24688_v24 }
 0x49e   :  { %16106 = vmatprep.mubr.msk.bf16.mxu1 %vm9500_vm6, %v24689_v27 }
 0x4a5   :  { %9759 = vmatmul.mubr.bf16.gmra.mrb[40].mxu1 %v24690_v52 }
 0x4a6   :  { %16107 = vmatprep.mubr.msk.bf16.mxu1 %vm9500_vm6, %v21284_v5  ;;  %v24691_v5 = vmov 0  }
 0x4a8   :  { %v21679_v22 = vpop.f32.mrb[8].mxu1 }
 0x4a9   :  { %v9578_v44 = vpop.f32.mrb[9].mxu1 }
 0x4aa   :  { %v21681_v31 = vpop.f32.mrb[10].mxu1 }
 0x4ab   :  { %v9581_v7 = vpop.f32.mrb[11].mxu1 }
 0x4ac   :  { %v21777_v7 = vsel %vm115_vm1, %v16204_v29, 0 }
 0x4ad   :  { %9767 = vmatmul.mubr.bf16.gmra.mrb[44].mxu1 %v21322_v59  ;;  %v17109_v59 = vld [vmem:[%s23853_s5 + $0x10] ss:$8 sps:$4 sm:$0xff]  }
 0x4ae   :  { %16108 = vmatprep.mubr.msk.bf16.mxu1 %vm9500_vm6, %v21461_v35  ;;  %v17111_v35 = vld [vmem:[%s23853_s5 + $0x14] ss:$8 sps:$4 sm:$0xff]  }
 0x4af   :  { %10498 = vmatprep.subr.bf16.mxu1 %v17111_v35 }
 0x4b0   :  { %10499 = vmatpush1.bf16.msra.mxu1 %v17109_v59  ;;  %v16235_v59 = vcombine.low %v21762_v39, %v21762_v39 }
 0x4b1   :  { %10500 = vmatprep.subr.bf16.mxu1 %v17114_v20 }
 0x4b4   :  { %10501 = vmatpush1.bf16.msra.mxu1 %v17112_v51 }
 0x4b5   :  { %9775 = vmatmul.mubr.bf16.gmra.mrb[48].mxu1 %v21504_v49  ;;  %10502 = vmatprep.subr.bf16.mxu1 %v17117_v62 }
 0x4b6   :  { %16109 = vmatprep.mubr.msk.bf16.mxu1 %vm9500_vm6, %v21623_v45  ;;  %vm10612_vm6 = vmor %vm10611_vm10, %vm2934_vm5 }
 0x4b7   :  { %vm10614_vm3 = vmor %vm10612_vm6, %vm10613_vm0  ;;  %vm14612_vm0 = vcmask 261120  }
 0x4b8   :  { %10503 = vmatpush1.bf16.msra.mxu1 %v17115_v46  ;;  %vm10615_vm15 = vmor %vm10614_vm3, %vm2936_vm7  ;;  %vm24818_vm3 = vcmask 1046534  }
 0x4b9   :  { %10504 = vmatprep.subr.bf16.mxu1 %v17120_v60  ;;  %vm10617_vm4 = vmor %vm10615_vm15, %vm10616_vm14  ;;  %vm10619_vm15 = vsmask.f32 7452  ;;  %vm24817_vm14 = vcmask 1045509  }
 0x4ba   :  { %vm21765_vm5 = vmor %vm10617_vm4, %vm2938_vm9  ;;  %vm10474_vm9 = vcmask 687104  }
 0x4bb   :  { %vm21792_vm7 = vmor %vm21765_vm5, %vm10619_vm15 }
 0x4bc   :  { %10505 = vmatpush1.bf16.msra.mxu1 %v17118_v1  ;;  %vm24820_vm10 = vmmov %vm24817_vm14 }
 0x4bd   :  { %9783 = vmatmul.mubr.bf16.gmra.mrb[52].mxu1 %v9428_v11  ;;  %16137 = vmatprep.subr.msk.bf16.mxu1 %vm115_vm1, %v16136_v17  ;;  %vm24821_vm6 = vmmov %vm24818_vm3 }
 0x4be   :  { %10528 = vmatprep.mubr.bf16.mxu1 %v24691_v5  ;;  %vm24822_vm4 = vmmov %vm24819_vm8 }
 0x4bf   :  { %vm24823_vm5 = vmmov %vm24820_vm10 }
 0x4c0   :  { %10507 = vmatpush1.bf16.msra.mxu1 %v10491_v10  ;;  %vm24824_vm15 = vmmov %vm24818_vm3 }
 0x4c1   :  { %11282 = vmatprep.subr.bf16.mxu1 %v17125_v47 }
 0x4dc   :  { %v21702_v30 = vpop.f32.mrb[12].mxu1 }
 0x4dd   :  { %v9586_v49 = vpop.f32.mrb[13].mxu1 }
 0x4de   :  { %v21704_v48 = vpop.f32.mrb[14].mxu1 }
 0x4df   :  { %v9589_v45 = vpop.f32.mrb[15].mxu1 }
 0x505   :  { %v21729_v33 = vpop.f32.mrb[16].mxu1 }
 0x506   :  { %v9594_v61 = vpop.f32.mrb[17].mxu1 }
 0x507   :  { %v21731_v2 = vpop.f32.mrb[18].mxu1 }
 0x508   :  { %v9597_v21 = vpop.f32.mrb[19].mxu1 }
 0x52e   :  { %v21736_v56 = vpop.f32.mrb[20].mxu1 }
 0x52f   :  { %v9602_v13 = vpop.f32.mrb[21].mxu1 }
 0x530   :  { %v21738_v43 = vpop.f32.mrb[22].mxu1 }
 0x531   :  { %v9605_v15 = vpop.f32.mrb[23].mxu1 }
 0x558   :  { %v21740_v40 = vpop.f32.mrb[24].mxu1 }
 0x559   :  { %v9610_v19 = vpop.f32.mrb[25].mxu1 }
 0x55a   :  { %v21742_v16 = vpop.f32.mrb[26].mxu1 }
 0x55b   :  { %v9613_v34 = vpop.f32.mrb[27].mxu1 }
 0x560   :  { %v9736_v26 = vpop.f32.mrb[28].mxu1 }
 0x561   :  { %v9791_v55 = vmax.f32 %v21413_v38, %v9736_v26  ;;  %v9738_v58 = vpop.f32.mrb[29].mxu1 }
 0x562   :  { %v9739_v50 = vpop.f32.mrb[30].mxu1 }
 0x563   :  { %v9792_v6 = vmax.f32 %v21417_v53, %v9739_v50  ;;  %v9741_v9 = vpop.f32.mrb[31].mxu1 }
 0x565   :  { %v9805_v37 = vpack.c.bf16 %v9792_v6, %v9791_v55  ;;  %v16110_v14 = vpack.c.bf16 %v9792_v6, %v9792_v6  ;;  %v21820_v55 = vsel %vm115_vm1, %v16235_v59, 0 }
 0x567   :  { %v9826_v63 = vrot.slane %v9805_v37, %v19706_v28  ;;  %v9833_v38 = vrot.slane %v16110_v14, %v19706_v28 }
 0x568   :  { %v9744_v53 = vpop.f32.mrb[32].mxu1 }
 0x569   :  { %v9834_v42 = vcombine.high %v9826_v63, %v9826_v63  ;;  %v9835_v25 = vcombine.high %v9833_v38, %v9833_v38  ;;  %v9842_v32 = vrot.slane %v9826_v63, %v19706_v28  ;;  %v9746_v11 = vpop.f32.mrb[33].mxu1  ;;  %v9793_v4 = vmax.f32 %v21593_v41, %v9744_v53  ;;  %v17131_v41 = vld [vmem:[%s23853_s5 + $0x7c] ss:$8 sps:$4 sm:$0xff]  }
 0x56a   :  { %v9747_v36 = vpop.f32.mrb[34].mxu1  ;;  %v21780_v23 = vrot.slane %v9833_v38, %v19706_v28 }
 0x56b   :  { %v9856_v24 = vrot.slane %v9834_v42, %v19706_v28  ;;  %v21774_v27 = vrot.slane %v9835_v25, %v19706_v28  ;;  %v9864_v52 = vcombine.high %v9842_v32, %v9842_v32  ;;  %v9749_v44 = vpop.f32.mrb[35].mxu1  ;;  %v9794_v3 = vmax.f32 %v21596_v54, %v9747_v36 }
 0x56c   :  { %v10622_v20 = vshrl.u32 %v9842_v32, 16  ;;  %v10651_v47 = vshll.u32 %v21780_v23, 16  ;;  %v10654_v19 = vshrl.u32 %v21780_v23, 16  ;;  %v21836_v53 = vcombine.high %v21780_v23, %v21780_v23 }
 0x56d   :  { %v21787_v35 = vcombine.high %v9856_v24, %v9856_v24  ;;  %v10174_v49 = vcombine.low %v9842_v32, %v9856_v24  ;;  %v16117_v45 = vcombine.high %v9842_v32, %v9856_v24  ;;  %v21798_v54 = vcombine.high %v21774_v27, %v21774_v27 }
 0x56e   :  { %v10627_v62 = vshll.u32 %v9856_v24, 16  ;;  %v10630_v46 = vshrl.u32 %v9856_v24, 16  ;;  %v10635_v1 = vshll.u32 %v9864_v52, 16  ;;  %v10638_v17 = vshrl.u32 %v9864_v52, 16  ;;  %24700 = vst [vmem:[#allocation46_spill] sm:$0xff] %v21836_v53 }
 0x56f   :  { %v10184_v60 = vrot.slane %v10174_v49, %v19706_v28  ;;  %v21802_v8 = vrot.slane %v16117_v45, %v19706_v28  ;;  %v10643_v57 = vshll.u32 %v21787_v35, 16  ;;  %v10646_v21 = vshrl.u32 %v21787_v35, 16 }
 0x570   :  { %v10629_v10 = vsel %vm21792_vm7, %v10622_v20, %v10627_v62  ;;  %v21809_v61 = vsel %vm21792_vm7, %v10630_v46, %v10635_v1  ;;  %v9752_v13 = vpop.f32.mrb[36].mxu1  ;;  %v10659_v34 = vshll.u32 %v21774_v27, 16  ;;  %v11397_v6 = vcombine.low %v9856_v24, %v9864_v52 }
 0x571   :  { %24696 = vst [vmem:[#allocation30_spill] sm:$0xff] %v21802_v8  ;;  %24697 = vst [vmem:[#allocation33_spill] sm:$0xff] %v21809_v61  ;;  %v21815_v15 = vsel %vm21792_vm7, %v10638_v17, %v10643_v57  ;;  %v9754_v26 = vpop.f32.mrb[37].mxu1  ;;  %v21824_v58 = vsel %vm21792_vm7, %v10646_v21, %v10651_v47  ;;  %v10961_v50 = vcombine.low %v10629_v10, %v21809_v61 }
 0x572   :  { %24698 = vst [vmem:[#allocation17_spill] sm:$0xff] %v21815_v15  ;;  %24699 = vst [vmem:[#allocation37_spill] sm:$0xff] %v21824_v58  ;;  %v11398_v9 = vcombine.low %v21787_v35, %v21780_v23  ;;  %v9755_v37 = vpop.f32.mrb[38].mxu1  ;;  %v10176_v14 = vcombine.low %v21780_v23, %v21798_v54  ;;  %v10206_v63 = vcombine.low %v10184_v60, %v21802_v8 }
 0x573   :  { %v9757_v29 = vpop.f32.mrb[39].mxu1  ;;  %v12333_v25 = vcombine.low %v21780_v23, %v21774_v27  ;;  %v9806_v32 = vpack.c.bf16 %v9794_v3, %v9793_v4  ;;  %v16111_v11 = vpack.c.bf16 %v9794_v3, %v9794_v3  ;;  %v21843_v18 = vsel %vm21792_vm7, %v10654_v19, %v10659_v34 }
 0x574   :  { %24701 = vst [vmem:[#allocation45_spill] sm:$0xff] %v21843_v18  ;;  %v10962_v36 = vcombine.low %v21815_v15, %v21824_v58  ;;  %v9795_v24 = vmax.f32 %v21679_v22, %v9752_v13  ;;  %v9796_v52 = vmax.f32 %v21681_v31, %v9755_v37  ;;  %v21850_v44 = vrot.slane %v10961_v50, %v19706_v28 }
 0x575   :  { %v21853_v59 = vrot.slane %v12333_v25, %v19706_v28  ;;  %v9875_v4 = vrot.slane %v9806_v32, %v19706_v28  ;;  %v9882_v23 = vrot.slane %v16111_v11, %v19706_v28  ;;  %v21858_v3 = vrot.slane %v11397_v6, %v19706_v28 }
 0x576   :  { %v9807_v49 = vpack.c.bf16 %v9796_v52, %v9795_v24  ;;  %v16112_v45 = vpack.c.bf16 %v9796_v52, %v9796_v52  ;;  %v10198_v10 = vrot.slane %v10176_v14, %v19706_v28  ;;  %v10214_v19 = vrot.slane %v10206_v63, %v19706_v28 }
 0x577   :  { %24702 = vst [vmem:[#allocation47_spill] sm:$0xff] %v21853_v59  ;;  %v9883_v31 = vcombine.high %v9875_v4, %v9875_v4  ;;  %v9884_v20 = vcombine.high %v9882_v23, %v9882_v23  ;;  %v21864_v62 = vrot.slane %v9875_v4, %v19706_v28  ;;  %v21885_v14 = vrot.slane %v9882_v23, %v19706_v28 }
 0x578   :  { %v9760_v46 = vpop.f32.mrb[40].mxu1  ;;  %v9924_v1 = vrot.slane %v9807_v49, %v19706_v28  ;;  %v9931_v60 = vrot.slane %v16112_v45, %v19706_v28  ;;  %v21890_v63 = vrot.slane %v10962_v36, %v19706_v28  ;;  %v21893_v25 = vrot.slane %v11398_v9, %v19706_v28 }
 0x579   :  { %v9797_v17 = vmax.f32 %v21702_v30, %v9760_v46  ;;  %v9762_v57 = vpop.f32.mrb[41].mxu1  ;;  %v21871_v21 = vrot.slane %v9883_v31, %v19706_v28  ;;  %v21874_v47 = vrot.slane %v9884_v20, %v19706_v28  ;;  %v21880_v26 = vcombine.high %v21864_v62, %v21864_v62 }
 0x57a   :  { %v9763_v13 = vpop.f32.mrb[42].mxu1  ;;  %v9932_v50 = vcombine.high %v9924_v1, %v9924_v1  ;;  %v9933_v6 = vcombine.high %v9931_v60, %v9931_v60  ;;  %v21897_v11 = vrot.slane %v9924_v1, %v19706_v28  ;;  %v21918_v20 = vrot.slane %v9931_v60, %v19706_v28 }
 0x57b   :  { %24703 = vst [vmem:[#allocation36_spill] sm:$0xff] %v21874_v47  ;;  %v9765_v37 = vpop.f32.mrb[43].mxu1  ;;  %v10177_v29 = vcombine.low %v21864_v62, %v21871_v21  ;;  %v9798_v4 = vmax.f32 %v21704_v48, %v9763_v13  ;;  %v16118_v36 = vcombine.high %v21864_v62, %v21871_v21  ;;  %v16119_v9 = vcombine.high %v21885_v14, %v21874_v47 }
 0x57c   :  { %v21900_v24 = vrot.slane %v9932_v50, %v19706_v28  ;;  %v21903_v52 = vrot.slane %v9933_v6, %v19706_v28  ;;  %v21913_v49 = vcombine.high %v21874_v47, %v21874_v47  ;;  %24704 = vst [vmem:[#allocation43_spill] sm:$0xff] %v21918_v20  ;;  %v21922_v13 = vcombine.high %v21897_v11, %v21897_v11 }
 0x57d   :  { %v10205_v23 = vrot.slane %v10177_v29, %v19706_v28  ;;  %v9808_v48 = vpack.c.bf16 %v9798_v4, %v9797_v17  ;;  %v16113_v46 = vpack.c.bf16 %v9798_v4, %v9798_v4  ;;  %v21928_v29 = vrot.slane %v16118_v36, %v19706_v28 }
 0x57e   :  { %v10225_v37 = vcombine.low %v21897_v11, %v21900_v24  ;;  %v10240_v60 = vrot.slane %v16119_v9, %v19706_v28  ;;  %v10226_v22 = vcombine.low %v21922_v13, %v21903_v52  ;;  %v24714_v58 = vshrl.u32 %v21798_v54, 16 }
 0x57f   :  { %v10207_v1 = vcombine.low %v10198_v10, %v10205_v23  ;;  %24705 = vst [vmem:[#allocation6_spill] sm:$0xff] %v21928_v29  ;;  %v9973_v17 = vrot.slane %v9808_v48, %v19706_v28  ;;  %v9980_v10 = vrot.slane %v16113_v46, %v19706_v28 }
 0x580   :  { %v9768_v57 = vpop.f32.mrb[44].mxu1  ;;  %v21943_v9 = vrot.slane %v10225_v37, %v19706_v28  ;;  %v17128_v37 = vld [vmem:[%s23853_s5 + $0x6c] ss:$8 sps:$4 sm:$0xff]  }
 0x581   :  { %v9799_v50 = vmax.f32 %v21729_v33, %v9768_v57  ;;  %v9770_v6 = vpop.f32.mrb[45].mxu1  ;;  %v10221_v4 = vrot.slane %v10207_v1, %v19706_v28  ;;  %v21939_v57 = vcombine.high %v21918_v20, %v21918_v20  ;;  %v9981_v48 = vcombine.high %v9973_v17, %v9973_v17  ;;  %v17123_v33 = vld [vmem:[%s23853_s5 + $0x58] ss:$8 sps:$4 sm:$0xff]  }
 0x582   :  { %v9771_v23 = vpop.f32.mrb[46].mxu1  ;;  %24706 = vst [vmem:[#allocation10_spill] sm:$0xff] %v21943_v9  ;;  %v9982_v46 = vcombine.high %v9980_v10, %v9980_v10  ;;  %v21946_v1 = vrot.slane %v9973_v17, %v19706_v28  ;;  %v21949_v38 = vrot.slane %v9980_v10, %v19706_v28  ;;  %v21960_v17 = vcombine.high %v21903_v52, %v21903_v52 }
 0x583   :  { %v9800_v36 = vmax.f32 %v21731_v2, %v9771_v23  ;;  %v9773_v6 = vpop.f32.mrb[47].mxu1  ;;  %v10222_v35 = vcombine.low %v10214_v19, %v10221_v4  ;;  %v10254_v2 = vrot.slane %v10226_v22, %v19706_v28  ;;  %v10255_v23 = vcombine.low %v21928_v29, %v10240_v60 }
 0x584   :  { %v21963_v10 = vrot.slane %v9982_v46, %v19706_v28  ;;  %v12334_v19 = vcombine.low %v21836_v53, %v21871_v21  ;;  %v21974_v6 = vrot.slane %v9981_v48, %v19706_v28  ;;  %v21978_v46 = vcombine.high %v21946_v1, %v21946_v1 }
 0x585   :  { %v9809_v34 = vpack.c.bf16 %v9800_v36, %v9799_v50  ;;  %v16114_v30 = vpack.c.bf16 %v9800_v36, %v9800_v36  ;;  %16138 = vmatmul.mubr.msk.bf16.vlgmr.msra.gmra.mrb[56].mxu1 %vm10474_vm9, %v10222_v35  ;;  %v10256_v36 = vcombine.low %v21943_v9, %v10254_v2  ;;  %v21982_v60 = vcombine.high %v21949_v38, %v21949_v38 }
 0x586   :  { %10538 = vmatprep.mubr.bf16.mxu1 %v24691_v5  ;;  %11283 = vmatpush1.bf16.msra.mxu1 %v17123_v33  ;;  %v16121_v48 = vcombine.high %v21949_v38, %v21963_v10  ;;  %v10263_v33 = vrot.slane %v10255_v23, %v19706_v28  ;;  %v21999_v0 = vrot.slane %v12334_v19, %v19706_v28 }
 0x587   :  { %v10022_v22 = vrot.slane %v9809_v34, %v19706_v28  ;;  %v10029_v4 = vrot.slane %v16114_v30, %v19706_v28  ;;  %v17126_v34 = vld [vmem:[%s23853_s5 + $0x68] ss:$8 sps:$4 sm:$0xff]   ;;  %v10274_v30 = vcombine.low %v21949_v38, %v21963_v10  ;;  %11284 = vmatprep.subr.bf16.mxu1 %v17128_v37  ;;  %v10270_v45 = vrot.slane %v10256_v36, %v19706_v28  ;;  %v17129_v36 = vld [vmem:[%s23853_s5 + $0x78] ss:$8 sps:$4 sm:$0xff]  }
 0x588   :  { %v9776_v35 = vpop.f32.mrb[48].mxu1  ;;  %24707 = vst [vmem:[#allocation24_spill] sm:$0xff] %v21999_v0 }
 0x589   :  { %v10030_v2 = vcombine.high %v10022_v22, %v10022_v22  ;;  %v10031_v50 = vcombine.high %v10029_v4, %v10029_v4  ;;  %v9778_v31 = vpop.f32.mrb[49].mxu1  ;;  %v9801_v42 = vmax.f32 %v21736_v56, %v9776_v35  ;;  %v22003_v9 = vrot.slane %v10022_v22, %v19706_v28 }
 0x58a   :  { %v9779_v32 = vpop.f32.mrb[50].mxu1  ;;  %v10271_v8 = vcombine.low %v10263_v33, %v10270_v45  ;;  %11285 = vmatpush1.bf16.msra.mxu1 %v17126_v34  ;;  %v16120_v56 = vcombine.high %v21918_v20, %v21903_v52  ;;  %v10273_v22 = vcombine.low %v21946_v1, %v21974_v6  ;;  %v17134_v45 = vld [vmem:[%s23853_s5 + $0x8c] ss:$8 sps:$4 sm:$0xff]   ;;  %v22029_v34 = vrot.slane %v10029_v4, %v19706_v28 }
 0x58b   :  { %v22006_v31 = vrot.slane %v10030_v2, %v19706_v28  ;;  %v22009_v37 = vrot.slane %v10031_v50, %v19706_v28  ;;  %v9802_v59 = vmax.f32 %v21738_v43, %v9779_v32  ;;  %v9781_v23 = vpop.f32.mrb[51].mxu1  ;;  %v10296_v43 = vrot.slane %v10274_v30, %v19706_v28  ;;  %11286 = vmatprep.subr.bf16.mxu1 %v17131_v41 }
 0x58c   :  { %v22023_v32 = vrot.slane %v16121_v48, %v19706_v28  ;;  %v10282_v2 = vrot.slane %v16120_v56, %v19706_v28  ;;  %v22033_v33 = vrot.slane %v10273_v22, %v19706_v28  ;;  %v17132_v22 = vld [vmem:[%s23853_s5 + $0x88] ss:$8 sps:$4 sm:$0xff]  }
 0x58d   :  { %v9810_v50 = vpack.c.bf16 %v9802_v59, %v9801_v42  ;;  %v16115_v35 = vpack.c.bf16 %v9802_v59, %v9802_v59  ;;  %v22037_v42 = vcombine.high %v22006_v31, %v22006_v31  ;;  %16139 = vmatmul.mubr.msk.bf16.gmra.mrb[60].mxu1 %vm10474_vm9, %v10271_v8 }
 0x58e   :  { %24708 = vst [vmem:[#allocation15_spill] sm:$0xff] %v22023_v32  ;;  %24709 = vst [vmem:[#allocation12_spill] sm:$0xff] %v22033_v33  ;;  %v10305_v4 = vcombine.low %v10296_v43, %v22023_v32  ;;  %10548 = vmatprep.mubr.bf16.mxu1 %v24691_v5  ;;  %v10304_v23 = vcombine.low %v10282_v2, %v22033_v33  ;;  %11287 = vmatpush1.bf16.msra.mxu1 %v17129_v36  ;;  %v17137_v2 = vld [vmem:[%s23853_s5 + $0x9c] ss:$8 sps:$4 sm:$0xff]  }
 0x58f   :  { %v10071_v41 = vrot.slane %v9810_v50, %v19706_v28  ;;  %v10078_v30 = vrot.slane %v16115_v35, %v19706_v28  ;;  %v10321_v8 = vcombine.low %v22003_v9, %v22037_v42  ;;  %v10322_v50 = vcombine.low %v22029_v34, %v22009_v37  ;;  %11288 = vmatprep.subr.bf16.mxu1 %v17134_v45 }
 0x590   :  { %v9784_v56 = vpop.f32.mrb[52].mxu1  ;;  %v16122_v36 = vcombine.high %v22029_v34, %v22009_v37  ;;  %v10312_v59 = vrot.slane %v10304_v23, %v19706_v28  ;;  %v10319_v33 = vrot.slane %v10305_v4, %v19706_v28 }
 0x591   :  { %v10079_v35 = vcombine.high %v10071_v41, %v10071_v41  ;;  %v10080_v43 = vcombine.high %v10078_v30, %v10078_v30  ;;  %v22055_v19 = vrot.slane %v10078_v30, %v19706_v28  ;;  %v9786_v48 = vpop.f32.mrb[53].mxu1  ;;  %v9803_v32 = vmax.f32 %v21740_v40, %v9784_v56 }
 0x592   :  { %v9787_v47 = vpop.f32.mrb[54].mxu1  ;;  %v10331_v15 = vrot.slane %v10321_v8, %v19706_v28  ;;  %v22068_v30 = vcombine.high %v22029_v34, %v22029_v34  ;;  %v22078_v4 = vrot.slane %v10071_v41, %v19706_v28  ;;  %v10320_v40 = vcombine.low %v10312_v59, %v10319_v33  ;;  %11289 = vmatpush1.bf16.msra.mxu1 %v17132_v22  ;;  %v17135_v8 = vld [vmem:[%s23853_s5 + $0x98] ss:$8 sps:$4 sm:$0xff]  }
 0x593   :  { %24710 = vst [vmem:[#allocation11_spill] sm:$0xff] %v22055_v19  ;;  %v22071_v45 = vrot.slane %v10079_v35, %v19706_v28  ;;  %v22074_v48 = vrot.slane %v10080_v43, %v19706_v28  ;;  %v9804_v61 = vmax.f32 %v21742_v16, %v9787_v47  ;;  %v9789_v23 = vpop.f32.mrb[55].mxu1  ;;  %v10338_v56 = vrot.slane %v10322_v50, %v19706_v28 }
 0x594   :  { %v24713_v35 = vshll.u32 %v21864_v62, 16  ;;  %v22091_v41 = vrot.slane %v16122_v36, %v19706_v28  ;;  %11290 = vmatprep.subr.bf16.mxu1 %v17137_v2  ;;  %v22095_v33 = vcombine.high %v22055_v19, %v22055_v19  ;;  %v10676_v50 = vshll.u32 %v21871_v21, 16 }
 0x595   :  { %24711 = vst [vmem:[#allocation16_spill] sm:$0xff] %v22071_v45  ;;  %24712 = vst [vmem:[#allocation7_spill] sm:$0xff] %v22074_v48  ;;  %v9811_v16 = vpack.c.bf16 %v9804_v61, %v9803_v32  ;;  %v16116_v47 = vpack.c.bf16 %v9804_v61, %v9804_v61  ;;  %v16123_v59 = vcombine.high %v22078_v4, %v22071_v45  ;;  %16140 = vmatmul.mubr.msk.bf16.gmra.mrb[64].mxu1 %vm10474_vm9, %v10320_v40 }
 0x596   :  { %v10670_v43 = vsel %vm21792_vm7, %v24714_v58, %v24713_v35  ;;  %24715 = vst [vmem:[#allocation25_spill] sm:$0xff] %v22091_v41  ;;  %v10353_v22 = vcombine.low %v10331_v15, %v10338_v56  ;;  %v10370_v54 = vcombine.low %v22055_v19, %v22074_v48  ;;  %v10679_v32 = vshrl.u32 %v21871_v21, 16  ;;  %10558 = vmatprep.mubr.bf16.mxu1 %v24691_v5 }
 0x597   :  { %v10120_v61 = vrot.slane %v9811_v16, %v19706_v28  ;;  %v10127_v58 = vrot.slane %v16116_v47, %v19706_v28  ;;  %v10963_v36 = vcombine.low %v21843_v18, %v10670_v43  ;;  %v22109_v2 = vcombine.high %v22071_v45, %v22071_v45  ;;  %11291 = vmatpush1.bf16.msra.mxu1 %v17135_v8 }
 0x598   :  { %v10352_v15 = vrot.slane %v16123_v59, %v19706_v28  ;;  %v10361_v23 = vrot.slane %v10353_v22, %v19706_v28  ;;  %v24718_v47 = vcombine.high %v21752_v12, %v21752_v12  ;;  %v17142_v59 = vld [vmem:[%s23853_s5 + $0xb4] ss:$8 sps:$4 sm:$0xff]   ;;  %v22130_v8 = vrot.slane %v10370_v54, %v19706_v28 }
 0x599   :  { %v10128_v56 = vcombine.high %v10120_v61, %v10120_v61  ;;  %v10129_v35 = vcombine.high %v10127_v58, %v10127_v58  ;;  %v22116_v16 = vrot.slane %v10120_v61, %v19706_v28  ;;  %v22119_v43 = vrot.slane %v10127_v58, %v19706_v28 }
 0x59a   :  { %16206 = vmatprep.subr.msk.bf16.mxu1 %vm115_vm1, %v24718_v47  ;;  %v10354_v22 = vcombine.low %v22091_v41, %v10352_v15  ;;  %24719 = vst [vmem:[#allocation26_spill] sm:$0xff] %v22130_v8  ;;  %v24720_v61 = vshrl.u32 %v21864_v62, 16  ;;  %v24722_v40 = vshll.u32 %v21880_v26, 16  ;;  %v10985_v54 = vrot.slane %v10963_v36, %v19706_v28 }
 0x59b   :  { %24716 = vst [vmem:[#allocation29_spill] sm:$0xff] %v22116_v16  ;;  %24717 = vst [vmem:[#allocation34_spill] sm:$0xff] %v22119_v43  ;;  %v22145_v47 = vrot.slane %v10128_v56, %v19706_v28  ;;  %v22148_v15 = vrot.slane %v10129_v35, %v19706_v28  ;;  %v10687_v41 = vshrl.u32 %v21880_v26, 16  ;;  %11293 = vmatpush1.bf16.msra.mxu1 %v21777_v7 }
 0x59c   :  { %v22136_v58 = vsel %vm21792_vm7, %v24720_v61, %v10676_v50  ;;  %v22142_v12 = vsel %vm21792_vm7, %v10679_v32, %v24722_v40  ;;  %v22154_v50 = vcombine.high %v22116_v16, %v22116_v16  ;;  %v10368_v61 = vrot.slane %v10354_v22, %v19706_v28  ;;  %11718 = vmatprep.subr.bf16.mxu1 %v17142_v59 }
 0x59d   :  { %24721 = vst [vmem:[#allocation32_spill] sm:$0xff] %v22136_v58  ;;  %v10964_v32 = vcombine.low %v22136_v58, %v22142_v12  ;;  %v10993_v40 = vcombine.low %v21850_v44, %v21890_v63  ;;  %v22164_v56 = vcombine.high %v22119_v43, %v22119_v43  ;;  %v22168_v36 = vcombine.high %v22145_v47, %v22145_v47 }
 0x59e   :  { %v10371_v35 = vcombine.low %v22095_v33, %v22145_v47  ;;  %v16124_v7 = vcombine.high %v22116_v16, %v22145_v47  ;;  %v10369_v22 = vcombine.low %v10361_v23, %v10368_v61  ;;  %v10373_v58 = vcombine.low %v22119_v43, %v22148_v15 }
 0x59f   :  { %v10992_v44 = vrot.slane %v10964_v32, %v19706_v28  ;;  %v22178_v63 = vrot.slane %v10993_v40, %v19706_v28  ;;  %v9914_v45 = vcombine.high %v21885_v14, %v21885_v14  ;;  %v22186_v16 = vcombine.high %v21871_v21, %v21871_v21 }
 0x5a0   :  { %v10387_v18 = vrot.slane %v10371_v35, %v19706_v28  ;;  %v10394_v53 = vrot.slane %v16124_v7, %v19706_v28  ;;  %16141 = vmatmul.mubr.msk.bf16.gmra.mrb[68].mxu1 %vm10474_vm9, %v10369_v22  ;;  %v22190_v23 = vrot.slane %v10373_v58, %v19706_v28  ;;  %v22194_v61 = vcombine.high %v21900_v24, %v21900_v24 }
 0x5a1   :  { %v10994_v59 = vcombine.low %v10985_v54, %v10992_v44  ;;  %v10700_v32 = vshll.u32 %v21885_v14, 16  ;;  %10568 = vmatprep.mubr.bf16.mxu1 %v24691_v5  ;;  %v10692_v35 = vshll.u32 %v22186_v16, 16  ;;  %v10695_v7 = vshrl.u32 %v22186_v16, 16 }
 0x5a2   :  { %24723 = vst [vmem:[#allocation52_spill] sm:$0xff] %v22190_v23  ;;  %24724 = vst [vmem:[#allocation53_spill] sm:$0xff] %v22194_v61  ;;  %v10402_v40 = vcombine.low %v22130_v8, %v10387_v18  ;;  %v10704_v29 = vshrl.u32 %v9914_v45, 16  ;;  %v10403_v22 = vcombine.low %v10394_v53, %v22190_v23  ;;  %v10709_v54 = vshll.u32 %v21913_v49, 16 }
 0x5a3   :  { %v11008_v58 = vrot.slane %v10994_v59, %v19706_v28  ;;  %v10712_v44 = vshrl.u32 %v21913_v49, 16  ;;  %v22208_v20 = vsel %vm21792_vm7, %v10687_v41, %v10692_v35  ;;  %v22212_v18 = vsel %vm21792_vm7, %v10695_v7, %v10700_v32 }
 0x5a4   :  { %v10410_v0 = vrot.slane %v10402_v40, %v19706_v28  ;;  %24725 = vst [vmem:[#allocation54_spill] sm:$0xff] %v22208_v20  ;;  %24726 = vst [vmem:[#allocation56_spill] sm:$0xff] %v22212_v18  ;;  %v10717_v45 = vshll.u32 %v21897_v11, 16  ;;  %v10417_v53 = vrot.slane %v10403_v22, %v19706_v28  ;;  %v10711_v23 = vsel %vm21792_vm7, %v10704_v29, %v10709_v54 }
 0x5a5   :  { %v11009_v59 = vcombine.low %v22178_v63, %v11008_v58  ;;  %v10720_v8 = vshrl.u32 %v21897_v11, 16  ;;  %v10725_v41 = vshll.u32 %v21900_v24, 16  ;;  %v10728_v32 = vshrl.u32 %v21900_v24, 16 }
 0x5a6   :  { %v22222_v40 = vsel %vm21792_vm7, %v10712_v44, %v10717_v45  ;;  %v10733_v35 = vshll.u32 %v21922_v13, 16  ;;  %v10418_v7 = vcombine.low %v10410_v0, %v10417_v53  ;;  %v10736_v22 = vshrl.u32 %v21922_v13, 16 }
 0x5a7   :  { %24727 = vst [vmem:[#allocation48_spill] sm:$0xff] %v22222_v40  ;;  %v10741_v63 = vshll.u32 %v22194_v61, 16  ;;  %v10750_v58 = vshll.u32 %v21939_v57, 16  ;;  %v22232_v29 = vsel %vm21792_vm7, %v10720_v8, %v10725_v41  ;;  %v11010_v44 = vcombine.low %v22208_v20, %v22212_v18 }
 0x5a8   :  { %24728 = vst [vmem:[#allocation9_spill] sm:$0xff] %v22232_v29  ;;  %v22236_v54 = vsel %vm21792_vm7, %v10728_v32, %v10733_v35  ;;  %v11011_v45 = vcombine.low %v10711_v23, %v22222_v40  ;;  %16142 = vmatmul.mubr.msk.bf16.gmra.mrb[72].mxu1 %vm10474_vm9, %v10418_v7  ;;  %v24731_v53 = vshrl.u32 %v21903_v52, 16  ;;  %v10761_v18 = vshrl.u32 %v21960_v17, 16 }
 0x5a9   :  { %24729 = vst [vmem:[#allocation58_spill] sm:$0xff] %v22236_v54  ;;  %v22244_v0 = vsel %vm21792_vm7, %v10736_v22, %v10741_v63  ;;  %v11012_v41 = vcombine.low %v22232_v29, %v22236_v54  ;;  %11314 = vmatprep.mubr.bf16.mxu1 %v24691_v5  ;;  %v11020_v7 = vrot.slane %v11010_v44, %v19706_v28  ;;  %v10777_v54 = vshrl.u32 %v21974_v6, 16 }
 0x5aa   :  { %24730 = vst [vmem:[#allocation57_spill] sm:$0xff] %v22244_v0  ;;  %v10752_v8 = vsel %vm21792_vm7, %v24731_v53, %v10750_v58  ;;  %v11027_v22 = vrot.slane %v11011_v45, %v19706_v28  ;;  %v22262_v63 = vcombine.high %v21963_v10, %v21963_v10  ;;  %v10753_v58 = vshrl.u32 %v21939_v57, 16  ;;  %v17140_v57 = vld [vmem:[%s23853_s5 + $0xb0] ss:$8 sps:$4 sm:$0xff]  }
 0x5ab   :  { %v11013_v23 = vcombine.low %v22244_v0, %v10752_v8  ;;  %v11034_v52 = vrot.slane %v11012_v41, %v19706_v28  ;;  %v10758_v53 = vshll.u32 %v21960_v17, 16  ;;  %v10766_v8 = vshll.u32 %v21946_v1, 16 }
 0x5ac   :  { %v11042_v35 = vcombine.low %v11020_v7, %v11027_v22  ;;  %v10769_v45 = vshrl.u32 %v21946_v1, 16  ;;  %v10774_v41 = vshll.u32 %v21974_v6, 16  ;;  %v10791_v40 = vshll.u32 %v21963_v10, 16 }
 0x5ad   :  { %v11041_v32 = vrot.slane %v11013_v23, %v19706_v28  ;;  %v22271_v44 = vsel %vm21792_vm7, %v10753_v58, %v10758_v53  ;;  %v22282_v22 = vsel %vm21792_vm7, %v10761_v18, %v10766_v8  ;;  %v10782_v58 = vshll.u32 %v21978_v46, 16  ;;  %v17145_v53 = vld [vmem:[%s23853_s5 + $0xc4] ss:$8 sps:$4 sm:$0xff]  }
 0x5ae   :  { %24732 = vst [vmem:[#allocation31_spill] sm:$0xff] %v22271_v44  ;;  %v11050_v7 = vrot.slane %v11042_v35, %v19706_v28  ;;  %24733 = vst [vmem:[#allocation21_spill] sm:$0xff] %v22282_v22  ;;  %v22290_v0 = vsel %vm21792_vm7, %v10769_v45, %v10774_v41  ;;  %v10807_v35 = vshll.u32 %v22262_v63, 16  ;;  %v10810_v8 = vshrl.u32 %v22262_v63, 16 }
 0x5af   :  { %v11043_v23 = vcombine.low %v11034_v52, %v11041_v32  ;;  %24734 = vst [vmem:[#allocation3_spill] sm:$0xff] %v22290_v0  ;;  %v10794_v32 = vshrl.u32 %v21963_v10, 16  ;;  %v22298_v18 = vsel %vm21792_vm7, %v10777_v54, %v10782_v58  ;;  %v10815_v29 = vshll.u32 %v22003_v9, 16 }
 0x5b0   :  { %24735 = vst [vmem:[#allocation55_spill] sm:$0xff] %v22298_v18  ;;  %16207 = vmatmul.mubr.msk.bf16.vlgmr.msra.gmra.mrb[56].mxu1 %vm10474_vm9, %v11009_v59  ;;  %v24736_v45 = vshrl.u32 %v21949_v38, 16  ;;  %v24737_v61 = vshll.u32 %v21982_v60, 16  ;;  %v24739_v54 = vshrl.u32 %v21982_v60, 16  ;;  %v11059_v59 = vcombine.low %v22271_v44, %v22282_v22  ;;  %v17143_v38 = vld [vmem:[%s23853_s5 + $0xc0] ss:$8 sps:$4 sm:$0xff]  }
 0x5b1   :  { %v11057_v52 = vrot.slane %v11043_v23, %v19706_v28  ;;  %11719 = vmatpush1.bf16.msra.mxu1 %v17140_v57  ;;  %11324 = vmatprep.mubr.bf16.mxu1 %v24691_v5  ;;  %v17148_v57 = vld [vmem:[%s23853_s5 + $0xd4] ss:$8 sps:$4 sm:$0xff]  }
 0x5b2   :  { %v10793_v41 = vsel %vm21792_vm7, %v24736_v45, %v10791_v40  ;;  %v22311_v23 = vsel %vm21792_vm7, %v10794_v32, %v24737_v61  ;;  %v22317_v58 = vsel %vm21792_vm7, %v24739_v54, %v10807_v35  ;;  %v22327_v61 = vsel %vm21792_vm7, %v10810_v8, %v10815_v29  ;;  %11720 = vmatprep.subr.bf16.mxu1 %v17145_v53 }
 0x5b3   :  { %24738 = vst [vmem:[#allocation20_spill] sm:$0xff] %v22311_v23  ;;  %24740 = vst [vmem:[#allocation18_spill] sm:$0xff] %v22317_v58  ;;  %v11058_v40 = vcombine.low %v11050_v7, %v11057_v52  ;;  %v11060_v32 = vcombine.low %v22290_v0, %v22298_v18  ;;  %v10818_v35 = vshrl.u32 %v22003_v9, 16  ;;  %v11061_v45 = vcombine.low %v10793_v41, %v22311_v23 }
 0x5b4   :  { %24741 = vst [vmem:[#allocation35_spill] sm:$0xff] %v22327_v61  ;;  %v11062_v54 = vcombine.low %v22317_v58, %v22327_v61  ;;  %v11069_v7 = vrot.slane %v11059_v59, %v19706_v28  ;;  %v22341_v29 = vcombine.high %v22009_v37, %v22009_v37  ;;  %v10109_v53 = vcombine.high %v22078_v4, %v22078_v4 }
 0x5b5   :  { %v11076_v52 = vrot.slane %v11060_v32, %v19706_v28  ;;  %v10823_v8 = vshll.u32 %v22006_v31, 16  ;;  %v10832_v18 = vshll.u32 %v22029_v34, 16  ;;  %v11083_v41 = vrot.slane %v11061_v45, %v19706_v28  ;;  %11721 = vmatpush1.bf16.msra.mxu1 %v17143_v38  ;;  %v17146_v32 = vld [vmem:[%s23853_s5 + $0xd0] ss:$8 sps:$4 sm:$0xff]   ;;  %v17151_v38 = vld [vmem:[%s23853_s5 + $0xe4] ss:$8 sps:$4 sm:$0xff]  }
 0x5b6   :  { %v11090_v23 = vrot.slane %v11062_v54, %v19706_v28  ;;  %v10835_v61 = vshrl.u32 %v22029_v34, 16  ;;  %v10840_v59 = vshll.u32 %v22009_v37, 16  ;;  %v24742_v0 = vshrl.u32 %v22037_v42, 16  ;;  %11722 = vmatprep.subr.bf16.mxu1 %v17148_v57 }
 0x5b7   :  { %v11091_v58 = vcombine.low %v11069_v7, %v11076_v52  ;;  %v22357_v22 = vsel %vm21792_vm7, %v10818_v35, %v10823_v8  ;;  %v10843_v54 = vshrl.u32 %v22009_v37, 16  ;;  %v10848_v35 = vshll.u32 %v22068_v30, 16 }
 0x5b8   :  { %v10834_v45 = vsel %vm21792_vm7, %v24742_v0, %v10832_v18  ;;  %v11092_v44 = vcombine.low %v11083_v41, %v11090_v23  ;;  %v22369_v7 = vsel %vm21792_vm7, %v10835_v61, %v10840_v59  ;;  %v10851_v52 = vshrl.u32 %v22068_v30, 16  ;;  %16208 = vmatmul.mubr.msk.bf16.gmra.mrb[60].mxu1 %vm10474_vm9, %v11058_v40 }
 0x5b9   :  { %24743 = vst [vmem:[#allocation4_spill] sm:$0xff] %v22369_v7  ;;  %v11099_v42 = vrot.slane %v11091_v58, %v19706_v28  ;;  %v10856_v0 = vshll.u32 %v22341_v29, 16  ;;  %v10859_v18 = vshrl.u32 %v22341_v29, 16  ;;  %v10864_v23 = vshll.u32 %v22078_v4, 16  ;;  %11723 = vmatpush1.bf16.msra.mxu1 %v17146_v32  ;;  %11334 = vmatprep.mubr.bf16.mxu1 %v24691_v5  ;;  %v17149_v58 = vld [vmem:[%s23853_s5 + $0xe0] ss:$8 sps:$4 sm:$0xff]  }
 0x5ba   :  { %v11106_v57 = vrot.slane %v11092_v44, %v19706_v28  ;;  %v22381_v61 = vsel %vm21792_vm7, %v10843_v54, %v10848_v35  ;;  %v10868_v8 = vshrl.u32 %v10109_v53, 16  ;;  %v10873_v41 = vshll.u32 %v22109_v2, 16  ;;  %11724 = vmatprep.subr.bf16.mxu1 %v17151_v38 }
 0x5bb   :  { %24744 = vst [vmem:[#allocation8_spill] sm:$0xff] %v22381_v61  ;;  %v22390_v59 = vsel %vm21792_vm7, %v10851_v52, %v10856_v0  ;;  %v22394_v44 = vsel %vm21792_vm7, %v10859_v18, %v10864_v23  ;;  %v10876_v40 = vshrl.u32 %v22109_v2, 16  ;;  %v10881_v53 = vshll.u32 %v22055_v19, 16  ;;  %v17154_v52 = vld [vmem:[%s23853_s5 + $0xf4] ss:$8 sps:$4 sm:$0xff]  }
 0x5bc   :  { %24745 = vst [vmem:[#allocation14_spill] sm:$0xff] %v22390_v59  ;;  %24746 = vst [vmem:[#allocation50_spill] sm:$0xff] %v22394_v44  ;;  %v11107_v54 = vcombine.low %v11099_v42, %v11106_v57  ;;  %v10875_v32 = vsel %vm21792_vm7, %v10868_v8, %v10873_v41  ;;  %v11108_v35 = vcombine.low %v22357_v22, %v10834_v45  ;;  %v10884_v45 = vshrl.u32 %v22055_v19, 16 }
 0x5bd   :  { %v11109_v20 = vcombine.low %v22369_v7, %v22381_v61  ;;  %v22408_v0 = vsel %vm21792_vm7, %v10876_v40, %v10881_v53  ;;  %v11110_v42 = vcombine.low %v22390_v59, %v22394_v44  ;;  %v22414_v38 = vcombine.high %v22074_v48, %v22074_v48  ;;  %11725 = vmatpush1.bf16.msra.mxu1 %v17149_v58  ;;  %v17152_v40 = vld [vmem:[%s23853_s5 + $0xf0] ss:$8 sps:$4 sm:$0xff]  }
 0x5be   :  { %24747 = vst [vmem:[#allocation5_spill] sm:$0xff] %v22408_v0  ;;  %v11111_v18 = vcombine.low %v10875_v32, %v22408_v0  ;;  %v11118_v23 = vrot.slane %v11108_v35, %v19706_v28  ;;  %v10889_v8 = vshll.u32 %v22074_v48, 16  ;;  %v10892_v53 = vshrl.u32 %v22074_v48, 16  ;;  %11726 = vmatprep.subr.bf16.mxu1 %v17154_v52 }
 0x5bf   :  { %v11125_v57 = vrot.slane %v11109_v20, %v19706_v28  ;;  %v11132_v41 = vrot.slane %v11110_v42, %v19706_v28  ;;  %v10897_v44 = vshll.u32 %v22095_v33, 16  ;;  %v10900_v7 = vshrl.u32 %v22095_v33, 16 }
 0x5c0   :  { %v11139_v32 = vrot.slane %v11111_v18, %v19706_v28  ;;  %v22431_v20 = vsel %vm21792_vm7, %v10884_v45, %v10889_v8  ;;  %v10905_v58 = vshll.u32 %v22414_v38, 16  ;;  %v10914_v0 = vshll.u32 %v22154_v50, 16  ;;  %16209 = vmatmul.mubr.msk.bf16.gmra.mrb[64].mxu1 %vm10474_vm9, %v11107_v54 }
 0x5c1   :  { %v11140_v35 = vcombine.low %v11118_v23, %v11125_v57  ;;  %v22436_v42 = vsel %vm21792_vm7, %v10892_v53, %v10897_v44  ;;  %v10917_v61 = vshrl.u32 %v22154_v50, 16  ;;  %v10922_v59 = vshll.u32 %v22168_v36, 16  ;;  %11344 = vmatprep.mubr.bf16.mxu1 %v24691_v5  ;;  %11727 = vmatpush1.bf16.msra.mxu1 %v17152_v40 }
 0x5c2   :  { %v11141_v18 = vcombine.low %v11132_v41, %v11139_v32  ;;  %v22445_v45 = vsel %vm21792_vm7, %v10900_v7, %v10905_v58  ;;  %v10925_v23 = vshrl.u32 %v22168_v36, 16  ;;  %v24748_v44 = vshrl.u32 %v22145_v47, 16 }
 0x5c3   :  { %v11148_v52 = vrot.slane %v11140_v35, %v19706_v28  ;;  %v22455_v54 = vsel %vm21792_vm7, %v10917_v61, %v10922_v59  ;;  %v10930_v57 = vshll.u32 %v22119_v43, 16  ;;  %v10933_v8 = vshrl.u32 %v22119_v43, 16  ;;  %v17159_v61 = vld [vmem:[%s23853_s5 + $0x10c] ss:$8 sps:$4 sm:$0xff]  }
 0x5c4   :  { %v10916_v50 = vsel %vm21792_vm7, %v24748_v44, %v10914_v0  ;;  %v11155_v7 = vrot.slane %v11141_v18, %v19706_v28  ;;  %v10938_v41 = vshll.u32 %v22148_v15, 16  ;;  %v10941_v53 = vshrl.u32 %v22148_v15, 16 }
 0x5c5   :  { %v10946_v40 = vshll.u32 %v22164_v56, 16  ;;  %v24749_v47 = vcombine.high %v21762_v39, %v21762_v39  ;;  %v22472_v59 = vsel %vm21792_vm7, %v10925_v23, %v10930_v57  ;;  %v11157_v0 = vcombine.low %v22431_v20, %v22436_v42 }
 0x5c6   :  { %v11158_v32 = vcombine.low %v22445_v45, %v10916_v50  ;;  %v11400_v35 = vcombine.low %v21871_v21, %v21880_v26  ;;  %v11156_v58 = vcombine.low %v11148_v52, %v11155_v7  ;;  %v22481_v39 = vsel %vm21792_vm7, %v10933_v8, %v10938_v41 }
 0x5c7   :  { %16237 = vmatprep.subr.msk.bf16.mxu1 %vm115_vm1, %v24749_v47  ;;  %v22485_v18 = vsel %vm21792_vm7, %v10941_v53, %v10946_v40  ;;  %v11159_v23 = vcombine.low %v22455_v54, %v22472_v59  ;;  %v11167_v50 = vrot.slane %v11157_v0, %v19706_v28  ;;  %v24750_v21 = vcombine.low %v21774_v27, %v21864_v62  ;;  %v24751_v0 = vld [vmem:[#allocation43_spill] sm:$0xff] }
 0x5c8   :  { %v11160_v44 = vcombine.low %v22481_v39, %v22485_v18  ;;  %v11174_v57 = vrot.slane %v11158_v32, %v19706_v28  ;;  %11729 = vmatpush1.bf16.msra.mxu1 %v21820_v55  ;;  %v11428_v8 = vrot.slane %v11400_v35, %v19706_v28  ;;  %v11429_v7 = vcombine.low %v21858_v3, %v21893_v25 }
 0x5c9   :  { %v11421_v26 = vrot.slane %v24750_v21, %v19706_v28  ;;  %v11181_v52 = vrot.slane %v11159_v23, %v19706_v28  ;;  %12218 = vmatprep.subr.bf16.mxu1 %v17159_v61  ;;  %v11446_v41 = vcombine.low %v22186_v16, %v21885_v14  ;;  %v11447_v55 = vcombine.low %v21913_v49, %v21897_v11 }
 0x5ca   :  { %v11188_v53 = vrot.slane %v11160_v44, %v19706_v28  ;;  %v11189_v40 = vcombine.low %v11167_v50, %v11174_v57  ;;  %v11448_v62 = vcombine.low %v21900_v24, %v21922_v13  ;;  %16210 = vmatmul.mubr.msk.bf16.gmra.mrb[68].mxu1 %vm10474_vm9, %v11156_v58  ;;  %v22511_v61 = vrot.slane %v11429_v7, %v19706_v28 }
 0x5cb   :  { %v11430_v47 = vcombine.low %v11421_v26, %v11428_v8  ;;  %v16223_v3 = vcombine.high %v21900_v24, %v24751_v0  ;;  %v11456_v25 = vrot.slane %v11446_v41, %v19706_v28  ;;  %11354 = vmatprep.mubr.bf16.mxu1 %v24691_v5  ;;  %v11463_v49 = vrot.slane %v11447_v55, %v19706_v28  ;;  %v24753_v55 = vld [vmem:[#allocation6_spill] sm:$0xff] }
 0x5cc   :  { %v11190_v16 = vcombine.low %v11181_v52, %v11188_v53  ;;  %v11197_v32 = vrot.slane %v11189_v40, %v19706_v28  ;;  %v11470_v13 = vrot.slane %v11448_v62, %v19706_v28  ;;  %v11495_v23 = vcombine.low %v21960_v17, %v21946_v1  ;;  %v24752_v40 = vld [vmem:[#allocation24_spill] sm:$0xff] }
 0x5cd   :  { %v11444_v35 = vrot.slane %v11430_v47, %v19706_v28  ;;  %v11477_v58 = vrot.slane %v16223_v3, %v19706_v28  ;;  %v11496_v44 = vcombine.low %v21974_v6, %v21978_v46  ;;  %v11478_v57 = vcombine.low %v11456_v25, %v11463_v49 }
 0x5ce   :  { %v11204_v50 = vrot.slane %v11190_v16, %v19706_v28  ;;  %v11497_v21 = vcombine.low %v21963_v10, %v21982_v60  ;;  %v11498_v26 = vcombine.low %v22262_v63, %v22003_v9  ;;  %v11505_v7 = vrot.slane %v11495_v23, %v19706_v28  ;;  %v24771_v23 = vld [vmem:[#allocation36_spill] sm:$0xff] }
 0x5cf   :  { %v11445_v52 = vcombine.low %v22511_v61, %v11444_v35  ;;  %v11479_v8 = vcombine.low %v11470_v13, %v11477_v58  ;;  %v11512_v41 = vrot.slane %v11496_v44, %v19706_v28  ;;  %v24754_v62 = vcombine.low %v24752_v40, %v24753_v55  ;;  %v24755_v58 = vld [vmem:[#allocation16_spill] sm:$0xff] }
 0x5d0   :  { %v11519_v10 = vrot.slane %v11497_v21, %v19706_v28  ;;  %v11526_v60 = vrot.slane %v11498_v26, %v19706_v28  ;;  %v11205_v63 = vcombine.low %v11197_v32, %v11204_v50  ;;  %v11544_v25 = vcombine.low %v22006_v31, %v22029_v34  ;;  %v24756_v32 = vld [vmem:[#allocation29_spill] sm:$0xff] }
 0x5d1   :  { %v22539_v47 = vrot.slane %v24754_v62, %v19706_v28  ;;  %v22544_v61 = vrot.slane %v11479_v8, %v19706_v28  ;;  %v11527_v3 = vcombine.low %v11505_v7, %v11512_v41  ;;  %v11546_v49 = vcombine.low %v22341_v29, %v22078_v4  ;;  %v24757_v29 = vld [vmem:[#allocation54_spill] sm:$0xff] }
 0x5d2   :  { %v11528_v16 = vcombine.low %v11519_v10, %v11526_v60  ;;  %v11547_v13 = vcombine.low %v22109_v2, %v22055_v19  ;;  %v11593_v35 = vcombine.low %v22074_v48, %v22095_v33  ;;  %16211 = vmatmul.mubr.msk.bf16.gmra.mrb[72].mxu1 %vm10474_vm9, %v11205_v63  ;;  %v22558_v50 = vrot.slane %v11478_v57, %v19706_v28  ;;  %v22595_v10 = vld [vmem:[%s23853_s5 + $0x158] sm:$0x33] }
 0x5d3   :  { %v11545_v34 = vcombine.low %v22009_v37, %v22068_v30  ;;  %v24758_v21 = vcombine.low %v22142_v12, %v24757_v29  ;;  %11750 = vmatprep.mubr.bf16.mxu1 %v24691_v5  ;;  %v16224_v57 = vcombine.high %v22074_v48, %v24756_v32  ;;  %v22578_v30 = vrot.slane %v11527_v3, %v19706_v28  ;;  %v24763_v60 = vld [vmem:[#allocation37_spill] sm:$0xff] }
 0x5d4   :  { %v22568_v33 = vrot.slane %v11528_v16, %v19706_v28  ;;  %v22571_v26 = vrot.slane %v11547_v13, %v19706_v28  ;;  %v11595_v12 = vcombine.low %v22168_v36, %v22119_v43  ;;  %v11596_v7 = vcombine.low %v22148_v15, %v22164_v56  ;;  %v17157_v16 = vld [vmem:[%s23853_s5 + $0x108] ss:$8 sps:$4 sm:$0xff]  }
 0x5d5   :  { %v11928_v2 = vrot.slane %v24758_v21, %v19706_v28  ;;  %v22585_v41 = vrot.slane %v11544_v25, %v19706_v28  ;;  %v22588_v40 = vrot.slane %v11546_v49, %v19706_v28  ;;  %v11603_v55 = vrot.slane %v11593_v35, %v19706_v28  ;;  %v24759_v35 = vld [vmem:[#allocation46_spill] sm:$0xff]  ;;  %v24764_v49 = vld [vmem:[#allocation32_spill] sm:$0xff] }
 0x5d6   :  { %v11610_v62 = vrot.slane %v16224_v57, %v19706_v28  ;;  %v22600_v63 = vrot.slane %v11545_v34, %v19706_v28  ;;  %v11617_v3 = vrot.slane %v11595_v12, %v19706_v28  ;;  %v11624_v25 = vrot.slane %v11596_v7, %v19706_v28  ;;  %v24762_v57 = vld [vmem:[#allocation45_spill] sm:$0xff] }
 0x5d7   :  { %v24760_v29 = vshll.u32 %v24759_v35, 16  ;;  %v24761_v21 = vshrl.u32 %v21774_v27, 16  ;;  %v11898_v12 = vcombine.low %v24763_v60, %v24762_v57  ;;  %v17162_v7 = vld [vmem:[%s23853_s5 + $0x11c] ss:$8 sps:$4 sm:$0xff]  }
 0x5d8   :  { %v11625_v13 = vcombine.low %v11603_v55, %v11610_v62  ;;  %v11626_v44 = vcombine.low %v11617_v3, %v11624_v25  ;;  %v24765_v62 = vld [vmem:[#allocation33_spill] sm:$0xff]  ;;  %v11829_v3 = vshrl.u32 %v21885_v14, 16 }
 0x5d9   :  { %v11828_v34 = vsel %vm21792_vm7, %v24761_v21, %v24760_v29  ;;  %v24766_v35 = vld [vmem:[#allocation17_spill] sm:$0xff]  ;;  %v11914_v21 = vrot.slane %v11898_v12, %v19706_v28 }
 0x5da   :  { %v11899_v55 = vcombine.low %v11828_v34, %v24764_v49  ;;  %v24767_v27 = vcombine.low %v24765_v62, %v24766_v35  ;;  %v22628_v29 = vrot.slane %v11625_v13, %v19706_v28  ;;  %16238 = vmatmul.mubr.msk.bf16.vlgmr.msra.gmra.mrb[56].mxu1 %vm10474_vm9, %v11445_v52  ;;  %v22636_v25 = vrot.slane %v11626_v44, %v19706_v28  ;;  %v24768_v34 = vld [vmem:[#allocation53_spill] sm:$0xff]  ;;  %v24770_v35 = vld [vmem:[#allocation48_spill] sm:$0xff] }
 0x5db   :  { %v11837_v57 = vshrl.u32 %v24768_v34, 16  ;;  %v24769_v62 = vld [vmem:[#allocation9_spill] sm:$0xff]  ;;  %12219 = vmatpush1.bf16.msra.mxu1 %v17157_v16  ;;  %11760 = vmatprep.mubr.bf16.mxu1 %v24691_v5  ;;  %v24772_v52 = vshll.u32 %v24771_v23, 16  ;;  %v11845_v34 = vshrl.u32 %v21978_v46, 16  ;;  %v17165_v16 = vld [vmem:[%s23853_s5 + $0x12c] ss:$8 sps:$4 sm:$0xff]  }
 0x5dc   :  { %v11907_v8 = vrot.slane %v24767_v27, %v19706_v28  ;;  %v11921_v49 = vrot.slane %v11899_v55, %v19706_v28  ;;  %v11947_v13 = vcombine.low %v24770_v35, %v24769_v62  ;;  %v17160_v27 = vld [vmem:[%s23853_s5 + $0x118] ss:$8 sps:$4 sm:$0xff]   ;;  %12220 = vmatprep.subr.bf16.mxu1 %v17162_v7  ;;  %v24777_v46 = vld [vmem:[#allocation31_spill] sm:$0xff] }
 0x5dd   :  { %v11836_v44 = vsel %vm21792_vm7, %v11829_v3, %v24772_v52  ;;  %v24773_v60 = vld [vmem:[#allocation57_spill] sm:$0xff]  ;;  %v24774_v55 = vld [vmem:[#allocation58_spill] sm:$0xff]  ;;  %v24776_v3 = vld [vmem:[#allocation56_spill] sm:$0xff] }
 0x5de   :  { %v11929_v12 = vcombine.low %v11907_v8, %v11914_v21  ;;  %v11948_v53 = vcombine.low %v24774_v55, %v24773_v60  ;;  %v11930_v35 = vcombine.low %v11921_v49, %v11928_v2  ;;  %v24775_v8 = vshll.u32 %v24751_v0, 16 }
 0x5df   :  { %v11946_v52 = vcombine.low %v24776_v3, %v11836_v44  ;;  %v11963_v55 = vrot.slane %v11947_v13, %v19706_v28  ;;  %v10013_v49 = vcombine.high %v21974_v6, %v21974_v6  ;;  %12221 = vmatpush1.bf16.msra.mxu1 %v17160_v27  ;;  %v17168_v27 = vld [vmem:[%s23853_s5 + $0x13c] ss:$8 sps:$4 sm:$0xff]  }
 0x5e0   :  { %v11844_v21 = vsel %vm21792_vm7, %v11837_v57, %v24775_v8  ;;  %v22664_v60 = vrot.slane %v11929_v12, %v19706_v28  ;;  %v11970_v43 = vrot.slane %v11948_v53, %v19706_v28  ;;  %v22670_v19 = vrot.slane %v11930_v35, %v19706_v28  ;;  %v24778_v57 = vld [vmem:[#allocation3_spill] sm:$0xff]  ;;  %v24779_v8 = vld [vmem:[#allocation21_spill] sm:$0xff]  ;;  %v24781_v53 = vld [vmem:[#allocation20_spill] sm:$0xff]  ;;  %12222 = vmatprep.subr.bf16.mxu1 %v17165_v16 }
 0x5e1   :  { %v11949_v7 = vcombine.low %v11844_v21, %v24777_v46  ;;  %v11956_v2 = vrot.slane %v11946_v52, %v19706_v28  ;;  %v11995_v44 = vcombine.low %v24779_v8, %v24778_v57  ;;  %v17163_v12 = vld [vmem:[%s23853_s5 + $0x128] ss:$8 sps:$4 sm:$0xff]   ;;  %v24780_v21 = vld [vmem:[#allocation18_spill] sm:$0xff]  ;;  %v22687_v52 = vcombine.high %v22003_v9, %v22003_v9 }
 0x5e2   :  { %v11997_v3 = vcombine.low %v24781_v53, %v24780_v21  ;;  %v24782_v35 = vld [vmem:[#allocation35_spill] sm:$0xff]  ;;  %v24783_v16 = vcombine.low %v22558_v50, %v22544_v61 }
 0x5e3   :  { %v11977_v13 = vrot.slane %v11949_v7, %v19706_v28  ;;  %v11998_v46 = vcombine.low %v24782_v35, %v22357_v22  ;;  %v11978_v8 = vcombine.low %v11956_v2, %v11963_v55  ;;  %v11850_v7 = vshll.u32 %v10013_v49, 16  ;;  %12223 = vmatpush1.bf16.msra.mxu1 %v17163_v12  ;;  %v17166_v49 = vld [vmem:[%s23853_s5 + $0x138] ss:$8 sps:$4 sm:$0xff]   ;;  %v24784_v50 = vld [vmem:[#allocation55_spill] sm:$0xff] }
 0x5e4   :  { %v12005_v62 = vrot.slane %v11995_v44, %v19706_v28  ;;  %v12019_v53 = vrot.slane %v11997_v3, %v19706_v28  ;;  %v11853_v35 = vshrl.u32 %v22006_v31, 16  ;;  %16239 = vmatmul.mubr.msk.bf16.gmra.mrb[60].mxu1 %vm10474_vm9, %v24783_v16  ;;  %v11858_v2 = vshll.u32 %v22687_v52, 16  ;;  %12224 = vmatprep.subr.bf16.mxu1 %v17168_v27 }
 0x5e5   :  { %v11979_v21 = vcombine.low %v11970_v43, %v11977_v13  ;;  %v12026_v22 = vrot.slane %v11998_v46, %v19706_v28  ;;  %v22703_v48 = vrot.slane %v11978_v8, %v19706_v28  ;;  %v11852_v55 = vsel %vm21792_vm7, %v11845_v34, %v11850_v7  ;;  %11770 = vmatprep.mubr.bf16.mxu1 %v24691_v5  ;;  %v17171_v34 = vld [vmem:[%s23853_s5 + $0x14c] ss:$8 sps:$4 sm:$0xff]   ;;  %v24786_v7 = vld [vmem:[#allocation14_spill] sm:$0xff] }
 0x5e6   :  { %v11861_v43 = vshrl.u32 %v22078_v4, 16  ;;  %v11996_v44 = vcombine.low %v24784_v50, %v11852_v55  ;;  %v11869_v3 = vshrl.u32 %v22414_v38, 16  ;;  %v11860_v12 = vsel %vm21792_vm7, %v11853_v35, %v11858_v2  ;;  %v24789_v35 = vld [vmem:[#allocation4_spill] sm:$0xff]  ;;  %v24790_v50 = vld [vmem:[#allocation50_spill] sm:$0xff] }
 0x5e7   :  { %v22714_v61 = vrot.slane %v11979_v21, %v19706_v28  ;;  %v12028_v13 = vcombine.low %v12019_v53, %v12026_v22  ;;  %v24785_v46 = vshll.u32 %v24755_v58, 16  ;;  %v24787_v21 = vld [vmem:[#allocation8_spill] sm:$0xff]  ;;  %v24788_v53 = vld [vmem:[#allocation5_spill] sm:$0xff]  ;;  %v12044_v2 = vcombine.low %v11860_v12, %v24789_v35  ;;  %12225 = vmatpush1.bf16.msra.mxu1 %v17166_v49 }
 0x5e8   :  { %v12045_v16 = vcombine.low %v24787_v21, %v24786_v7  ;;  %v12047_v22 = vcombine.low %v24788_v53, %v22431_v20  ;;  %v12012_v27 = vrot.slane %v11996_v44, %v19706_v28  ;;  %v10161_v7 = vcombine.high %v22148_v15, %v22148_v15  ;;  %v17169_v20 = vld [vmem:[%s23853_s5 + $0x148] ss:$8 sps:$4 sm:$0xff]   ;;  %12226 = vmatprep.subr.bf16.mxu1 %v17171_v34 }
 0x5e9   :  { %v11868_v8 = vsel %vm21792_vm7, %v11861_v43, %v24785_v46  ;;  %v11994_v38 = vcombine.low %v22703_v48, %v22714_v61  ;;  %v22735_v55 = vrot.slane %v12028_v13, %v19706_v28  ;;  %v12054_v13 = vrot.slane %v12044_v2, %v19706_v28  ;;  %v17186_v48 = vld [vmem:[%s23853_s5 + $0x1a0] ss:$8 sps:$4 sm:$0xff]  }
 0x5ea   :  { %v12046_v57 = vcombine.low %v24790_v50, %v11868_v8  ;;  %v12061_v43 = vrot.slane %v12045_v16, %v19706_v28  ;;  %v12075_v46 = vrot.slane %v12047_v22, %v19706_v28  ;;  %v12027_v44 = vcombine.low %v12005_v62, %v12012_v27 }
 0x5eb   :  { %v24791_v21 = vshll.u32 %v24756_v32, 16  ;;  %v11877_v8 = vshrl.u32 %v22164_v56, 16  ;;  %v11882_v53 = vshll.u32 %v10161_v7, 16  ;;  %v12093_v49 = vcombine.low %v22436_v42, %v22445_v45  ;;  %12227 = vmatpush1.bf16.msra.mxu1 %v17169_v20 }
 0x5ec   :  { %v12068_v16 = vrot.slane %v12046_v57, %v19706_v28  ;;  %v11576_v62 = vcombine.low %v22585_v41, %v22600_v63  ;;  %v12035_v27 = vrot.slane %v12027_v44, %v19706_v28  ;;  %v12076_v35 = vcombine.low %v12054_v13, %v12061_v43  ;;  %v24797_v43 = vld [vmem:[#allocation47_spill] sm:$0xff] }
 0x5ed   :  { %v11876_v12 = vsel %vm21792_vm7, %v11869_v3, %v24791_v21  ;;  %v12095_v3 = vcombine.low %v22472_v59, %v22481_v39  ;;  %v24792_v56 = vcombine.low %v22578_v30, %v22568_v33  ;;  %v11884_v42 = vsel %vm21792_vm7, %v11877_v8, %v11882_v53  ;;  %vm24825_vm7 = vmmov %vm24823_vm5 }
 0x5ee   :  { %v12094_v22 = vcombine.low %v11876_v12, %v22455_v54  ;;  %v12077_v57 = vcombine.low %v12068_v16, %v12075_v46  ;;  %v12103_v45 = vrot.slane %v12093_v49, %v19706_v28  ;;  %v24793_v41 = vcombine.low %v22588_v40, %v22571_v26  ;;  %v17176_v26 = vld [vmem:[%s23853_s5 + $0x164] ss:$8 sps:$4 sm:$0xff]   ;;  %v17179_v49 = vld [vmem:[%s23853_s5 + $0x174] ss:$8 sps:$4 sm:$0xff]  }
 0x5ef   :  { %16240 = vmatmul.mubr.msk.bf16.gmra.mrb[64].mxu1 %vm10474_vm9, %v24792_v56  ;;  %v24794_v39 = vcombine.low %v22595_v10, %v22595_v10  ;;  %v12043_v51 = vcombine.low %v12035_v27, %v22735_v55  ;;  %v12096_v30 = vcombine.low %v22485_v18, %v11884_v42  ;;  %v24795_v63 = vcombine.high %v22595_v10, %v22595_v10  ;;  %v24796_v18 = vld [vmem:[#allocation30_spill] sm:$0xff] }
 0x5f0   :  { %v12110_v54 = vrot.slane %v12094_v22, %v19706_v28  ;;  %11780 = vmatprep.mubr.bf16.mxu1 %v24691_v5  ;;  %v11591_v59 = vrot.slane %v24793_v41, %v19706_v28  ;;  %v12084_v40 = vrot.slane %v12076_v35, %v19706_v28  ;;  %v12091_v34 = vrot.slane %v12077_v57, %v19706_v28  ;;  %v17188_v27 = vld [vmem:[%s23853_s5 + $0x1a4] ss:$8 sps:$4 sm:$0xff]   ;;  %v16290_v35 = vld [vmem:[%s23853_s5 + $0x1b0] sm:$0x33] }
 0x5f1   :  { %v12213_v33 = vsel %vm115_vm1, %v24794_v39, 0  ;;  %16274 = vmatprep.subr.msk.bf16.mxu1 %vm115_vm1, %v24795_v63  ;;  %v12117_v2 = vrot.slane %v12095_v3, %v19706_v28  ;;  %v12124_v55 = vrot.slane %v12096_v30, %v19706_v28  ;;  %v24798_v46 = vcombine.low %v24796_v18, %v24797_v43  ;;  %v24802_v30 = vld [vmem:[#allocation15_spill] sm:$0xff]  ;;  %v24803_v63 = vld [vmem:[#allocation12_spill] sm:$0xff]  ;;  %v24805_v18 = vld [vmem:[#allocation25_spill] sm:$0xff] }
 0x5f2   :  { %v12125_v50 = vcombine.low %v12103_v45, %v12110_v54  ;;  %v11584_v7 = vrot.slane %v11576_v62, %v19706_v28  ;;  %v12092_v20 = vcombine.low %v12084_v40, %v12091_v34  ;;  %12229 = vmatpush1.bf16.msra.mxu1 %v12213_v33  ;;  %v24799_v53 = vcombine.low %v22628_v29, %v22636_v25  ;;  %v17177_v29 = vld [vmem:[%s23853_s5 + $0x170] ss:$8 sps:$4 sm:$0xff]   ;;  %v17182_v25 = vld [vmem:[%s23853_s5 + $0x184] ss:$8 sps:$4 sm:$0xff]   ;;  %v17180_v62 = vld [vmem:[%s23853_s5 + $0x180] ss:$8 sps:$4 sm:$0xff]  }
 0x5f3   :  { %v12357_v10 = vrot.slane %v24798_v46, %v19706_v28  ;;  %v12126_v44 = vcombine.low %v12117_v2, %v12124_v55  ;;  %12590 = vmatprep.subr.bf16.mxu1 %v17176_v26  ;;  %v24800_v22 = vcombine.low %v22664_v60, %v22670_v19  ;;  %v17185_v19 = vld [vmem:[%s23853_s5 + $0x194] ss:$8 sps:$4 sm:$0xff]   ;;  %v17183_v60 = vld [vmem:[%s23853_s5 + $0x190] ss:$8 sps:$4 sm:$0xff]   ;;  %v16306_v61 = vcombine.high %v16290_v35, %v16290_v35  ;;  %v24804_v55 = vld [vmem:[#allocation26_spill] sm:$0xff] }
 0x5f4   :  { %v12133_v13 = vrot.slane %v12125_v50, %v19706_v28  ;;  %v11592_v12 = vcombine.low %v11584_v7, %v11591_v59  ;;  %v12368_v56 = vcombine.low %v24751_v0, %v21960_v17  ;;  %v16291_v57 = vcombine.high %v21897_v11, %v21900_v24  ;;  %v24801_v0 = vld [vmem:[#allocation10_spill] sm:$0xff]  ;;  %v24807_v43 = vld [vmem:[#allocation11_spill] sm:$0xff] }
 0x5f5   :  { %v12365_v21 = vcombine.low %v12357_v10, %v22539_v47  ;;  %v12140_v8 = vrot.slane %v12126_v44, %v19706_v28  ;;  %v17174_v47 = vld [vmem:[%s23853_s5 + $0x160] ss:$8 sps:$4 sm:$0xff]   ;;  %v12366_v42 = vcombine.low %v21885_v14, %v24771_v23  ;;  %v12408_v17 = vcombine.low %v22003_v9, %v22006_v31 }
 0x5f6   :  { %v12389_v45 = vrot.slane %v12368_v56, %v19706_v28  ;;  %v12382_v54 = vrot.slane %v16291_v57, %v19706_v28  ;;  %v16292_v11 = vcombine.high %v21946_v1, %v21974_v6  ;;  %v12441_v31 = vcombine.low %v22078_v4, %v24755_v58  ;;  %v24808_v10 = vld [vmem:[#allocation34_spill] sm:$0xff] }
 0x5f7   :  { %16241 = vmatmul.mubr.msk.bf16.gmra.mrb[68].mxu1 %vm10474_vm9, %v11592_v12  ;;  %v12141_v16 = vcombine.low %v12133_v13, %v12140_v8  ;;  %v12375_v41 = vrot.slane %v12366_v42, %v19706_v28  ;;  %v12422_v24 = vrot.slane %v12408_v17, %v19706_v28  ;;  %v12440_v6 = vcombine.low %v22687_v52, %v22009_v37  ;;  %v24806_v52 = vld [vmem:[#allocation7_spill] sm:$0xff]  ;;  %v24809_v8 = vld [vmem:[#allocation52_spill] sm:$0xff] }
 0x5f8   :  { %11790 = vmatprep.mubr.bf16.mxu1 %v24691_v5  ;;  %v12391_v59 = vcombine.low %v12382_v54, %v12389_v45  ;;  %v12415_v33 = vrot.slane %v16292_v11, %v19706_v28  ;;  %v12455_v40 = vrot.slane %v12441_v31, %v19706_v28  ;;  %v12474_v58 = vcombine.low %v24756_v32, %v22168_v36  ;;  %v17200_v45 = vld [vmem:[%s23854_s7 + $0x48] sm:$0xff]  }
 0x5f9   :  { %v12390_v39 = vcombine.low %v12375_v41, %v24801_v0  ;;  %v12424_v9 = vcombine.low %v24802_v30, %v12422_v24  ;;  %v12448_v2 = vrot.slane %v12440_v6, %v19706_v28  ;;  %v16293_v46 = vcombine.high %v24807_v43, %v24806_v52 }
 0x5fa   :  { %v12405_v14 = vrot.slane %v12391_v59, %v19706_v28  ;;  %v12423_v1 = vcombine.low %v24803_v63, %v12415_v33  ;;  %v12457_v4 = vcombine.low %v12455_v40, %v24804_v55  ;;  %v16294_v7 = vcombine.high %v24808_v10, %v22148_v15 }
 0x5fb   :  { %v12398_v23 = vrot.slane %v12390_v39, %v19706_v28  ;;  %v12438_v26 = vrot.slane %v12424_v9, %v19706_v28  ;;  %v12456_v37 = vcombine.low %v12448_v2, %v24805_v18  ;;  %v12489_v44 = vrot.slane %v12474_v58, %v19706_v28 }
 0x5fc   :  { %v12431_v34 = vrot.slane %v12423_v1, %v19706_v28  ;;  %v12482_v36 = vrot.slane %v16293_v46, %v19706_v28  ;;  %v12496_v32 = vrot.slane %v16294_v7, %v19706_v28 }
 0x5fd   :  { %v12464_v13 = vrot.slane %v12456_v37, %v19706_v28 }
 0x5fe   :  { %v12439_v50 = vcombine.low %v12431_v34, %v12438_v26  ;;  %v12497_v12 = vcombine.low %v12482_v36, %v12489_v44 }
 0x5ff   :  { %16242 = vmatmul.mubr.msk.bf16.gmra.mrb[72].mxu1 %vm10474_vm9, %v24799_v53 }
 0x600   :  { %12250 = vmatprep.mubr.bf16.mxu1 %v24691_v5  ;;  %v12505_v15 = vrot.slane %v12497_v12, %v19706_v28 }
 0x607   :  { %16275 = vmatmul.mubr.msk.bf16.vlgmr.msra.gmra.mrb[56].mxu1 %vm10474_vm9, %v24800_v22  ;;  %v17192_v22 = vld [vmem:[%s23854_s7 + $0x8] sm:$0xff]  }
 0x608   :  { %12591 = vmatpush1.bf16.msra.mxu1 %v17174_v47  ;;  %12260 = vmatprep.mubr.bf16.mxu1 %v24691_v5 }
 0x609   :  { %12592 = vmatprep.subr.bf16.mxu1 %v17179_v49  ;;  %v17191_v49 = vld [vmem:[%s23854_s7] sm:$0xff]  }
 0x60c   :  { %12593 = vmatpush1.bf16.msra.mxu1 %v17177_v29  ;;  %v17193_v29 = vld [vmem:[%s23854_s7 + $0x10] sm:$0xff]  }
 0x60d   :  { %12594 = vmatprep.subr.bf16.mxu1 %v17182_v25  ;;  %v17194_v25 = vld [vmem:[%s23854_s7 + $0x18] sm:$0xff]  }
 0x60f   :  { %16276 = vmatmul.mubr.msk.bf16.gmra.mrb[60].mxu1 %vm10474_vm9, %v11994_v38  ;;  %v16305_v38 = vcombine.low %v16290_v35, %v16290_v35  ;;  %v10162_v35 = vld [vmem:[%s23855_s6] sm:$0x3] }
 0x610   :  { %12595 = vmatpush1.bf16.msra.mxu1 %v17180_v62  ;;  %12270 = vmatprep.mubr.bf16.mxu1 %v24691_v5  ;;  %v17195_v62 = vld [vmem:[%s23854_s7 + $0x20] sm:$0xff]  }
 0x611   :  { %12596 = vmatprep.subr.bf16.mxu1 %v17185_v19  ;;  %v12585_v3 = vsel %vm115_vm1, %v16305_v38, 0  ;;  %v17196_v19 = vld [vmem:[%s23854_s7 + $0x28] sm:$0xff]  }
 0x614   :  { %12597 = vmatpush1.bf16.msra.mxu1 %v17183_v60  ;;  %v17197_v60 = vld [vmem:[%s23854_s7 + $0x30] sm:$0xff]  }
 0x615   :  { %12598 = vmatprep.subr.bf16.mxu1 %v17188_v27  ;;  %v17198_v27 = vld [vmem:[%s23854_s7 + $0x38] sm:$0xff]  }
 0x617   :  { %16277 = vmatmul.mubr.msk.bf16.gmra.mrb[64].mxu1 %vm10474_vm9, %v12043_v51  ;;  %v12406_v51 = vcombine.low %v12398_v23, %v12405_v14 }
 0x618   :  { %12280 = vmatprep.mubr.bf16.mxu1 %v24691_v5  ;;  %12599 = vmatpush1.bf16.msra.mxu1 %v17186_v48  ;;  %v17199_v48 = vld [vmem:[%s23854_s7 + $0x40] sm:$0xff]  }
 0x619   :  { %16307 = vmatprep.subr.msk.bf16.mxu1 %vm115_vm1, %v16306_v61  ;;  %v24810_v61 = vld [vmem:[#allocation2_spill] sm:$0xff] }
 0x61a   :  { %v24811_v38 = vsub.s32 0, %v24810_v61  ;;  %v24812_v56 = vsub.s32 1, %v24810_v61 }
 0x61c   :  { %12601 = vmatpush1.bf16.msra.mxu1 %v12585_v3  ;;  %v22947_v3 = vrot.slane %v10162_v35, %v24811_v38  ;;  %v22952_v57 = vrot.slane %v10162_v35, %v24812_v56 }
 0x61d   :  { %14622 = vmatprep.subr.bf16.mxu1 %v24691_v5 }
 0x61f   :  { %16278 = vmatmul.mubr.msk.bf16.gmra.mrb[68].mxu1 %vm10474_vm9, %v12092_v20  ;;  %v12471_v20 = vrot.slane %v12457_v4, %v19706_v28 }
 0x620   :  { %12290 = vmatprep.mubr.bf16.mxu1 %v24691_v5 }
 0x627   :  { %16279 = vmatmul.mubr.msk.bf16.gmra.mrb[72].mxu1 %vm10474_vm9, %v12141_v16  ;;  %v12498_v16 = vcombine.low %v24809_v8, %v12496_v32 }
 0x628   :  { %12622 = vmatprep.mubr.bf16.mxu1 %v24691_v5 }
 0x629   :  { %v12512_v53 = vrot.slane %v12498_v16, %v19706_v28 }
 0x62b   :  { %v12513_v47 = vcombine.low %v12505_v15, %v12512_v53 }
 0x62f   :  { %16308 = vmatmul.mubr.msk.bf16.vlgmr.msra.gmra.mrb[56].mxu1 %vm10474_vm9, %v12365_v21  ;;  %v12472_v21 = vcombine.low %v12464_v13, %v12471_v20 }
 0x630   :  { %12632 = vmatprep.mubr.bf16.mxu1 %v24691_v5  ;;  %14623 = vmatpush1.bf16.msra.mxu1 %v17191_v49 }
 0x631   :  { %14624 = vmatprep.subr.bf16.mxu1 %v24691_v5 }
 0x634   :  { %14625 = vmatpush1.bf16.msra.mxu1 %v17192_v22 }
 0x635   :  { %14626 = vmatprep.subr.bf16.mxu1 %v24691_v5 }
 0x637   :  { %16309 = vmatmul.mubr.msk.bf16.gmra.mrb[60].mxu1 %vm10474_vm9, %v12406_v51 }
 0x638   :  { %12642 = vmatprep.mubr.bf16.mxu1 %v24691_v5  ;;  %14627 = vmatpush1.bf16.msra.mxu1 %v17193_v29 }
 0x639   :  { %14628 = vmatprep.subr.bf16.mxu1 %v24691_v5 }
 0x63c   :  { %14629 = vmatpush1.bf16.msra.mxu1 %v17194_v25 }
 0x63d   :  { %14630 = vmatprep.subr.bf16.mxu1 %v24691_v5 }
 0x63f   :  { %16310 = vmatmul.mubr.msk.bf16.gmra.mrb[64].mxu1 %vm10474_vm9, %v12439_v50 }
 0x640   :  { %12652 = vmatprep.mubr.bf16.mxu1 %v24691_v5  ;;  %14631 = vmatpush1.bf16.msra.mxu1 %v17195_v62 }
 0x641   :  { %14632 = vmatprep.subr.bf16.mxu1 %v24691_v5 }
 0x644   :  { %14633 = vmatpush1.bf16.msra.mxu1 %v17196_v19 }
 0x645   :  { %14634 = vmatprep.subr.bf16.mxu1 %v24691_v5 }
 0x647   :  { %16311 = vmatmul.mubr.msk.bf16.gmra.mrb[68].mxu1 %vm10474_vm9, %v12472_v21 }
 0x648   :  { %12662 = vmatprep.mubr.bf16.mxu1 %v24691_v5  ;;  %14635 = vmatpush1.bf16.msra.mxu1 %v17197_v60 }
 0x649   :  { %14636 = vmatprep.subr.bf16.mxu1 %v24691_v5 }
 0x64c   :  { %14637 = vmatpush1.bf16.msra.mxu1 %v17198_v27 }
 0x64d   :  { %14638 = vmatprep.subr.bf16.mxu1 %v24691_v5 }
 0x64f   :  { %16312 = vmatmul.mubr.msk.bf16.gmra.mrb[72].mxu1 %vm10474_vm9, %v12513_v47 }
 0x650   :  { %14639 = vmatpush1.bf16.msra.mxu1 %v17199_v48 }
 0x651   :  { %14640 = vmatprep.subr.bf16.mxu1 %v24691_v5 }
 0x654   :  { %14641 = vmatpush1.bf16.msra.mxu1 %v17200_v45 }
 0x655   :  { %14758 = vmatprep.subr.bf16.mxu1 %v24691_v5 }
 0x702   :  { %v12624_v42 = vpop.f32.mrb[56].mxu1 }
 0x703   :  { %v16708_v54 = vadd.f32 %v12624_v42, %v22947_v3  ;;  %v12626_v41 = vpop.f32.mrb[57].mxu1 }
 0x704   :  { %v16709_v59 = vadd.f32 %v12626_v41, %v22952_v57  ;;  %v12628_v17 = vpop.f32.mrb[58].mxu1 }
 0x705   :  { %v12693_v0 = vsub.f32 0.0, %v16708_v54  ;;  %v16710_v39 = vadd.f32 %v12628_v17, %v22947_v3  ;;  %v12630_v11 = vpop.f32.mrb[59].mxu1 }
 0x706   :  { %v12694_v14 = vsub.f32 0.0, %v16709_v59  ;;  %v16711_v24 = vadd.f32 %v12630_v11, %v22952_v57 }
 0x707   :  { %v12713_v23 = vmul.f32 1.442695, %v12693_v0  ;;  %v12695_v33 = vsub.f32 0.0, %v16710_v39 }
 0x708   :  { %v12715_v51 = vmul.f32 1.442695, %v12694_v14  ;;  %v12696_v30 = vsub.f32 0.0, %v16711_v24 }
 0x709   :  { %17474 = vpow2.f32 %v12713_v23  ;;  %v12717_v9 = vmul.f32 1.442695, %v12695_v33 }
 0x70a   :  { %17476 = vpow2.f32 %v12715_v51  ;;  %v12719_v31 = vmul.f32 1.442695, %v12696_v30  ;;  %v12634_v63 = vpop.f32.mrb[60].mxu1 }
 0x70b   :  { %17478 = vpow2.f32 %v12717_v9  ;;  %v16712_v1 = vadd.f32 %v12634_v63, %v22947_v3  ;;  %v12636_v6 = vpop.f32.mrb[61].mxu1 }
 0x70c   :  { %17480 = vpow2.f32 %v12719_v31  ;;  %v16713_v26 = vadd.f32 %v12636_v6, %v22952_v57  ;;  %v12638_v40 = vpop.f32.mrb[62].mxu1 }
 0x70d   :  { %v12697_v34 = vsub.f32 0.0, %v16712_v1  ;;  %v16714_v2 = vadd.f32 %v12638_v40, %v22947_v3  ;;  %v12640_v50 = vpop.f32.mrb[63].mxu1 }
 0x70e   :  { %v12698_v55 = vsub.f32 0.0, %v16713_v26  ;;  %v16715_v4 = vadd.f32 %v12640_v50, %v22952_v57 }
 0x70f   :  { %v12721_v58 = vmul.f32 1.442695, %v12697_v34  ;;  %v12699_v18 = vsub.f32 0.0, %v16714_v2 }
 0x710   :  { %v12723_v37 = vmul.f32 1.442695, %v12698_v55  ;;  %v12700_v52 = vsub.f32 0.0, %v16715_v4 }
 0x711   :  { %17482 = vpow2.f32 %v12721_v58  ;;  %v12725_v43 = vmul.f32 1.442695, %v12699_v18 }
 0x712   :  { %17484 = vpow2.f32 %v12723_v37  ;;  %v12727_v46 = vmul.f32 1.442695, %v12700_v52  ;;  %v12644_v10 = vpop.f32.mrb[64].mxu1 }
 0x713   :  { %v17475_v7 = vpop.eup %17474  ;;  %17486 = vpow2.f32 %v12725_v43  ;;  %v16716_v20 = vadd.f32 %v12644_v10, %v22947_v3  ;;  %v12646_v44 = vpop.f32.mrb[65].mxu1 }
 0x714   :  { %v17477_v13 = vpop.eup %17476  ;;  %v12753_v36 = vadd.f32 1.0, %v17475_v7  ;;  %17488 = vpow2.f32 %v12727_v46  ;;  %v16717_v32 = vadd.f32 %v12646_v44, %v22952_v57  ;;  %v12648_v21 = vpop.f32.mrb[66].mxu1 }
 0x715   :  { %v17479_v12 = vpop.eup %17478  ;;  %v12754_v8 = vadd.f32 1.0, %v17477_v13  ;;  %v12701_v16 = vsub.f32 0.0, %v16716_v20  ;;  %v16718_v15 = vadd.f32 %v12648_v21, %v22947_v3  ;;  %v12650_v53 = vpop.f32.mrb[67].mxu1 }
 0x716   :  { %v17481_v47 = vpop.eup %17480  ;;  %17490 = vrcp.f32 %v12753_v36  ;;  %v12755_v49 = vadd.f32 1.0, %v17479_v12  ;;  %v12702_v22 = vsub.f32 0.0, %v16717_v32  ;;  %v16719_v29 = vadd.f32 %v12650_v53, %v22952_v57 }
 0x717   :  { %17492 = vrcp.f32 %v12754_v8  ;;  %v12756_v25 = vadd.f32 1.0, %v17481_v47  ;;  %v12729_v62 = vmul.f32 1.442695, %v12701_v16  ;;  %v12703_v19 = vsub.f32 0.0, %v16718_v15 }
 0x718   :  { %17494 = vrcp.f32 %v12755_v49  ;;  %v12731_v60 = vmul.f32 1.442695, %v12702_v22  ;;  %v12704_v27 = vsub.f32 0.0, %v16719_v29 }
 0x719   :  { %17496 = vrcp.f32 %v12756_v25  ;;  %v12733_v35 = vmul.f32 1.442695, %v12703_v19 }
 0x71a   :  { %17498 = vpow2.f32 %v12729_v62  ;;  %v12735_v48 = vmul.f32 1.442695, %v12704_v27  ;;  %v12654_v61 = vpop.f32.mrb[68].mxu1 }
 0x71b   :  { %v17483_v38 = vpop.eup %17482  ;;  %17500 = vpow2.f32 %v12731_v60  ;;  %v16720_v56 = vadd.f32 %v12654_v61, %v22947_v3  ;;  %v12656_v42 = vpop.f32.mrb[69].mxu1 }
 0x71c   :  { %v17485_v45 = vpop.eup %17484  ;;  %v12757_v54 = vadd.f32 1.0, %v17483_v38  ;;  %17502 = vpow2.f32 %v12733_v35  ;;  %v16721_v41 = vadd.f32 %v12656_v42, %v22952_v57  ;;  %v12658_v59 = vpop.f32.mrb[70].mxu1 }
 0x71d   :  { %v17487_v17 = vpop.eup %17486  ;;  %v12758_v0 = vadd.f32 1.0, %v17485_v45  ;;  %17504 = vpow2.f32 %v12735_v48  ;;  %v12705_v39 = vsub.f32 0.0, %v16720_v56  ;;  %v16722_v11 = vadd.f32 %v12658_v59, %v22947_v3  ;;  %v12660_v14 = vpop.f32.mrb[71].mxu1 }
 0x71e   :  { %v17489_v24 = vpop.eup %17488  ;;  %17506 = vrcp.f32 %v12757_v54  ;;  %v12759_v23 = vadd.f32 1.0, %v17487_v17  ;;  %v12706_v33 = vsub.f32 0.0, %v16721_v41  ;;  %v16723_v51 = vadd.f32 %v12660_v14, %v22952_v57 }
 0x71f   :  { %17508 = vrcp.f32 %v12758_v0  ;;  %v12760_v30 = vadd.f32 1.0, %v17489_v24  ;;  %v12737_v9 = vmul.f32 1.442695, %v12705_v39  ;;  %v12707_v31 = vsub.f32 0.0, %v16722_v11 }
 0x720   :  { %v17491_v63 = vpop.eup %17490  ;;  %17510 = vrcp.f32 %v12759_v23  ;;  %v12739_v1 = vmul.f32 1.442695, %v12706_v33  ;;  %v12708_v6 = vsub.f32 0.0, %v16723_v51 }
 0x721   :  { %v17493_v26 = vpop.eup %17492  ;;  %17512 = vrcp.f32 %v12760_v30  ;;  %v12741_v40 = vmul.f32 1.442695, %v12707_v31 }
 0x722   :  { %v17495_v34 = vpop.eup %17494  ;;  %v16313_v2 = vpack.c.bf16 %v17493_v26, %v17491_v63  ;;  %17514 = vpow2.f32 %v12737_v9  ;;  %v12743_v50 = vmul.f32 1.442695, %v12708_v6  ;;  %v12664_v55 = vpop.f32.mrb[72].mxu1 }
 0x723   :  { %v17497_v4 = vpop.eup %17496  ;;  %17516 = vpow2.f32 %v12739_v1  ;;  %v16724_v58 = vadd.f32 %v12664_v55, %v22947_v3  ;;  %v12666_v18 = vpop.f32.mrb[73].mxu1 }
 0x724   :  { %v17499_v37 = vpop.eup %17498  ;;  %v12821_v52 = vrot.slane %v16313_v2, %v19706_v28  ;;  %v16314_v43 = vpack.c.bf16 %v17497_v4, %v17495_v34  ;;  %17518 = vpow2.f32 %v12741_v40  ;;  %v16725_v46 = vadd.f32 %v12666_v18, %v22952_v57  ;;  %v12668_v10 = vpop.f32.mrb[74].mxu1 }
 0x725   :  { %v17501_v7 = vpop.eup %17500  ;;  %v12761_v20 = vadd.f32 1.0, %v17499_v37  ;;  %17520 = vpow2.f32 %v12743_v50  ;;  %v12709_v44 = vsub.f32 0.0, %v16724_v58  ;;  %v22979_v13 = vadd.f32 %v12668_v10, %v22947_v3  ;;  %v22981_v36 = vpop.f32.mrb[75].mxu1 }
 0x726   :  { %v17503_v32 = vpop.eup %17502  ;;  %v12829_v21 = vcombine.high %v12821_v52, %v12821_v52  ;;  %v12837_v12 = vrot.slane %v12821_v52, %v19706_v28  ;;  %v12828_v8 = vrot.slane %v16314_v43, %v19706_v28  ;;  %v12762_v16 = vadd.f32 1.0, %v17501_v7 }
 0x727   :  { %v17505_v15 = vpop.eup %17504  ;;  %17522 = vrcp.f32 %v12761_v20  ;;  %v12763_v53 = vadd.f32 1.0, %v17503_v32  ;;  %v22985_v47 = vmul.f32 1.442695, %v12709_v44  ;;  %v12710_v49 = vsub.f32 0.0, %v16725_v46 }
 0x728   :  { %v17507_v22 = vpop.eup %17506  ;;  %v12851_v29 = vrot.slane %v12829_v21, %v19706_v28  ;;  %v12859_v3 = vcombine.high %v12837_v12, %v12837_v12  ;;  %v13104_v25 = vshrl.u32 %v12837_v12, 16  ;;  %v12830_v62 = vcombine.high %v12828_v8, %v12828_v8 }
 0x729   :  { %v17509_v19 = vpop.eup %17508  ;;  %v22989_v60 = vrot.slane %v12828_v8, %v19706_v28  ;;  %17524 = vrcp.f32 %v12762_v16  ;;  %v12764_v27 = vadd.f32 1.0, %v17505_v15  ;;  %v22991_v35 = vmul.f32 1.442695, %v12710_v49 }
 0x72a   :  { %v17511_v48 = vpop.eup %17510  ;;  %v12861_v61 = vcombine.high %v12851_v29, %v12851_v29  ;;  %v13109_v38 = vshrl.u32 %v12851_v29, 16  ;;  %v13114_v56 = vshrl.u32 %v12859_v3, 16  ;;  %v13343_v42 = vmax.bf16 %v13104_v25, %v12837_v12 }
 0x72b   :  { %v17513_v45 = vpop.eup %17512  ;;  %v22994_v54 = vrot.slane %v12830_v62, %v19706_v28  ;;  %v13124_v41 = vshrl.u32 %v22989_v60, 16  ;;  %v16315_v59 = vpack.c.bf16 %v17509_v19, %v17507_v22  ;;  %17526 = vrcp.f32 %v12763_v53 }
 0x72c   :  { %v17515_v17 = vpop.eup %17514  ;;  %v13119_v0 = vshrl.u32 %v12861_v61, 16  ;;  %v13344_v39 = vmax.bf16 %v13109_v38, %v12851_v29  ;;  %v13345_v11 = vmax.bf16 %v13114_v56, %v12859_v3  ;;  %v22998_v14 = vrot.slane %v13343_v42, %v19706_v28 }
 0x72d   :  { %v17517_v24 = vpop.eup %17516  ;;  %v23001_v23 = vmax.bf16 %v13124_v41, %v22989_v60  ;;  %v12871_v33 = vrot.slane %v16315_v59, %v19706_v28  ;;  %v16316_v51 = vpack.c.bf16 %v17513_v45, %v17511_v48  ;;  %17528 = vrcp.f32 %v12764_v27 }
 0x72e   :  { %v17519_v30 = vpop.eup %17518  ;;  %v23004_v9 = vmax.bf16 %v13119_v0, %v12861_v61  ;;  %v13450_v31 = vcombine.high %v22998_v14, %v22998_v14  ;;  %v13457_v63 = vrot.slane %v22998_v14, %v19706_v28  ;;  %v23011_v1 = vrot.slane %v13344_v39, %v19706_v28 }
 0x72f   :  { %v17521_v6 = vpop.eup %17520  ;;  %v23014_v26 = vrot.slane %v13345_v11, %v19706_v28  ;;  %v12879_v40 = vcombine.high %v12871_v33, %v12871_v33  ;;  %v12887_v34 = vrot.slane %v12871_v33, %v19706_v28  ;;  %v12878_v2 = vrot.slane %v16316_v51, %v19706_v28 }
 0x730   :  { %v13479_v50 = vrot.slane %v23011_v1, %v19706_v28  ;;  %v23020_v55 = vunpack.c.l.b16 %v13457_v63  ;;  %v12765_v4 = vadd.f32 1.0, %v17515_v17  ;;  %v12766_v58 = vadd.f32 1.0, %v17517_v24 }
 0x731   :  { %v17523_v18 = vpop.eup %17522  ;;  %v12901_v37 = vrot.slane %v12879_v40, %v19706_v28  ;;  %v12909_v52 = vcombine.high %v12887_v34, %v12887_v34  ;;  %v13144_v43 = vshrl.u32 %v12887_v34, 16  ;;  %v12880_v46 = vcombine.high %v12878_v2, %v12878_v2 }
 0x732   :  { %v23023_v10 = vunpack.c.l.b16 %v13479_v50  ;;  %v23026_v7 = vrot.slane %v12878_v2, %v19706_v28  ;;  %17530 = vrcp.f32 %v12765_v4  ;;  %v12767_v20 = vadd.f32 1.0, %v17519_v30 }
 0x733   :  { %v17525_v44 = vpop.eup %17524  ;;  %v12911_v32 = vcombine.high %v12901_v37, %v12901_v37  ;;  %v13149_v21 = vshrl.u32 %v12901_v37, 16  ;;  %v13154_v12 = vshrl.u32 %v12909_v52, 16  ;;  %v13351_v8 = vmax.bf16 %v13144_v43, %v12887_v34 }
 0x734   :  { %v23029_v16 = vrot.slane %v12880_v46, %v19706_v28  ;;  %v13164_v15 = vshrl.u32 %v23026_v7, 16  ;;  %v16317_v53 = vpack.c.bf16 %v17525_v44, %v17523_v18  ;;  %17532 = vrcp.f32 %v12766_v58 }
 0x735   :  { %v17527_v49 = vpop.eup %17526  ;;  %v13159_v22 = vshrl.u32 %v12911_v32, 16  ;;  %v13352_v29 = vmax.bf16 %v13149_v21, %v12901_v37  ;;  %v13353_v3 = vmax.bf16 %v13154_v12, %v12909_v52  ;;  %v23033_v25 = vrot.slane %v13351_v8, %v19706_v28 }
 0x736   :  { %v23036_v62 = vmax.bf16 %v13164_v15, %v23026_v7  ;;  %v12921_v19 = vrot.slane %v16317_v53, %v19706_v28  ;;  %17534 = vrcp.f32 %v12767_v20  ;;  %v12768_v27 = vadd.f32 1.0, %v17521_v6 }
 0x737   :  { %v17529_v48 = vpop.eup %17528  ;;  %v23039_v61 = vmax.bf16 %v13159_v22, %v12911_v32  ;;  %v13626_v38 = vcombine.high %v23033_v25, %v23033_v25  ;;  %v13633_v56 = vrot.slane %v23033_v25, %v19706_v28  ;;  %v23046_v42 = vrot.slane %v13352_v29, %v19706_v28 }
 0x738   :  { %v23049_v45 = vrot.slane %v13353_v3, %v19706_v28  ;;  %v12929_v41 = vcombine.high %v12921_v19, %v12921_v19  ;;  %v12937_v59 = vrot.slane %v12921_v19, %v19706_v28  ;;  %v16318_v17 = vpack.c.bf16 %v17529_v48, %v17527_v49 }
 0x739   :  { %v13655_v0 = vrot.slane %v23046_v42, %v19706_v28  ;;  %v23054_v39 = vunpack.c.l.b16 %v13633_v56  ;;  %17536 = vrcp.f32 %v12768_v27  ;;  %v12711_v11 = vsub.f32 0.0, %v22979_v13 }
 0x73a   :  { %v12951_v24 = vrot.slane %v12929_v41, %v19706_v28  ;;  %v12959_v33 = vcombine.high %v12937_v59, %v12937_v59  ;;  %v13184_v51 = vshrl.u32 %v12937_v59, 16  ;;  %v12928_v30 = vrot.slane %v16318_v17, %v19706_v28 }
 0x73b   :  { %v23059_v63 = vunpack.c.l.b16 %v13655_v0  ;;  %17538 = vpow2.f32 %v22985_v47  ;;  %v12749_v6 = vmul.f32 1.442695, %v12711_v11  ;;  %v16727_v40 = vadd.f32 %v22981_v36, %v22952_v57 }
 0x73c   :  { %v17531_v34 = vpop.eup %17530  ;;  %v12961_v2 = vcombine.high %v12951_v24, %v12951_v24  ;;  %v13189_v50 = vshrl.u32 %v12951_v24, 16  ;;  %v13194_v4 = vshrl.u32 %v12959_v33, 16  ;;  %v13359_v58 = vmax.bf16 %v13184_v51, %v12937_v59 }
 0x73d   :  { %v12930_v13 = vcombine.high %v12928_v30, %v12928_v30  ;;  %v23065_v18 = vrot.slane %v12928_v30, %v19706_v28  ;;  %17540 = vpow2.f32 %v22991_v35  ;;  %v12712_v37 = vsub.f32 0.0, %v16727_v40 }
 0x73e   :  { %v17533_v52 = vpop.eup %17532  ;;  %v13199_v43 = vshrl.u32 %v12961_v2, 16  ;;  %v13360_v46 = vmax.bf16 %v13189_v50, %v12951_v24  ;;  %v13361_v47 = vmax.bf16 %v13194_v4, %v12959_v33  ;;  %v23069_v20 = vrot.slane %v13359_v58, %v19706_v28 }
 0x73f   :  { %v23072_v57 = vrot.slane %v12930_v13, %v19706_v28  ;;  %v13204_v36 = vshrl.u32 %v23065_v18, 16  ;;  %v16319_v44 = vpack.c.bf16 %v17533_v52, %v17531_v34  ;;  %17542 = vpow2.f32 %v12749_v6 }
 0x740   :  { %v17535_v32 = vpop.eup %17534  ;;  %v23075_v21 = vmax.bf16 %v13199_v43, %v12961_v2  ;;  %v23080_v12 = vrot.slane %v13360_v46, %v19706_v28  ;;  %v23083_v8 = vrot.slane %v13361_v47, %v19706_v28  ;;  %v12751_v49 = vmul.f32 1.442695, %v12712_v37 }
 0x741   :  { %v23086_v15 = vmax.bf16 %v13204_v36, %v23065_v18  ;;  %v12971_v53 = vrot.slane %v16319_v44, %v19706_v28  ;;  %v12860_v22 = vcombine.high %v22989_v60, %v22989_v60  ;;  %v12862_v29 = vcombine.high %v22994_v54, %v22994_v54 }
 0x742   :  { %v12910_v3 = vcombine.high %v23026_v7, %v23026_v7  ;;  %v12912_v19 = vcombine.high %v23029_v16, %v23029_v16  ;;  %v13129_v27 = vshrl.u32 %v22994_v54, 16  ;;  %17544 = vpow2.f32 %v12751_v49 }
 0x743   :  { %v17537_v48 = vpop.eup %17536  ;;  %v12979_v56 = vcombine.high %v12971_v53, %v12971_v53  ;;  %v12987_v41 = vrot.slane %v12971_v53, %v19706_v28  ;;  %v13134_v59 = vshrl.u32 %v12860_v22, 16  ;;  %v13139_v0 = vshrl.u32 %v12862_v29, 16 }
 0x744   :  { %v16320_v17 = vpack.c.bf16 %v17537_v48, %v17535_v32  ;;  %v13169_v60 = vshrl.u32 %v23029_v16, 16  ;;  %v13174_v11 = vshrl.u32 %v12910_v3, 16  ;;  %v13179_v30 = vshrl.u32 %v12912_v19, 16 }
 0x745   :  { %v17539_v24 = vpop.eup %17538  ;;  %v13001_v33 = vrot.slane %v12979_v56, %v19706_v28  ;;  %v13009_v7 = vcombine.high %v12987_v41, %v12987_v41  ;;  %v13224_v51 = vshrl.u32 %v12987_v41, 16  ;;  %v13348_v34 = vmax.bf16 %v13129_v27, %v22994_v54 }
 0x746   :  { %v12978_v6 = vrot.slane %v16320_v17, %v19706_v28  ;;  %v12769_v40 = vadd.f32 1.0, %v17539_v24  ;;  %v13349_v2 = vmax.bf16 %v13134_v59, %v12860_v22  ;;  %v13350_v17 = vmax.bf16 %v13139_v0, %v12862_v29 }
 0x747   :  { %v17541_v50 = vpop.eup %17540  ;;  %v13011_v4 = vcombine.high %v13001_v33, %v13001_v33  ;;  %v13229_v58 = vshrl.u32 %v13001_v33, 16  ;;  %v13234_v13 = vshrl.u32 %v13009_v7, 16  ;;  %v13367_v37 = vmax.bf16 %v13224_v51, %v12987_v41 }
 0x748   :  { %v12980_v52 = vcombine.high %v12978_v6, %v12978_v6  ;;  %v23104_v43 = vrot.slane %v12978_v6, %v19706_v28  ;;  %17546 = vrcp.f32 %v12769_v40  ;;  %v12770_v46 = vadd.f32 1.0, %v17541_v50 }
 0x749   :  { %v17543_v47 = vpop.eup %17542  ;;  %v13239_v36 = vshrl.u32 %v13011_v4, 16  ;;  %v13368_v44 = vmax.bf16 %v13229_v58, %v13001_v33  ;;  %v13369_v32 = vmax.bf16 %v13234_v13, %v13009_v7  ;;  %v23107_v53 = vrot.slane %v13367_v37, %v19706_v28 }
 0x74a   :  { %v23110_v54 = vrot.slane %v12980_v52, %v19706_v28  ;;  %v13244_v49 = vshrl.u32 %v23104_v43, 16  ;;  %17548 = vrcp.f32 %v12770_v46  ;;  %v12771_v22 = vadd.f32 1.0, %v17543_v47 }
 0x74b   :  { %v23113_v27 = vmax.bf16 %v13239_v36, %v13011_v4  ;;  %v23118_v56 = vrot.slane %v13368_v44, %v19706_v28  ;;  %v23121_v41 = vrot.slane %v13369_v32, %v19706_v28  ;;  %v13356_v24 = vmax.bf16 %v13169_v60, %v23029_v16 }
 0x74c   :  { %v23124_v59 = vmax.bf16 %v13244_v49, %v23104_v43  ;;  %17550 = vrcp.f32 %v12771_v22  ;;  %v17545_v33 = vpop.eup %17544  ;;  %v13357_v7 = vmax.bf16 %v13174_v11, %v12910_v3  ;;  %v13358_v51 = vmax.bf16 %v13179_v30, %v12912_v19 }
 0x74d   :  { %24813 = vst [vmem:[#allocation23_spill] sm:$0xff] %v23113_v27  ;;  %24814 = vst [vmem:[#allocation39_spill] sm:$0xff] %v23118_v56  ;;  %v23131_v6 = vrot.slane %v13450_v31, %v19706_v28  ;;  %v13472_v40 = vcombine.high %v23011_v1, %v23011_v1  ;;  %v12772_v50 = vadd.f32 1.0, %v17545_v33  ;;  %v13494_v4 = vcombine.high %v23014_v26, %v23014_v26 }
 0x74e   :  { %24815 = vst [vmem:[#allocation51_spill] sm:$0xff] %v23121_v41  ;;  %24816 = vst [vmem:[#allocation38_spill] sm:$0xff] %v23124_v59  ;;  %v23139_v29 = vrot.slane %v23004_v9, %v19706_v28  ;;  %v23143_v16 = vrot.slane %v23001_v23, %v19706_v28  ;;  %v23149_v14 = vrot.slane %v13348_v34, %v19706_v28 }
 0x74f   :  { %v23146_v3 = vrot.slane %v13472_v40, %v19706_v28  ;;  %v23152_v31 = vrot.slane %v13349_v2, %v19706_v28  ;;  %v23155_v1 = vrot.slane %v13350_v17, %v19706_v28  ;;  %17552 = vrcp.f32 %v12772_v50 }
 0x750   :  { %v23158_v9 = vrot.slane %v13494_v4, %v19706_v28  ;;  %v13516_v23 = vcombine.high %v23139_v29, %v23139_v29  ;;  %v13538_v19 = vcombine.high %v23143_v16, %v23143_v16  ;;  %v13560_v0 = vcombine.high %v23149_v14, %v23149_v14 }
 0x751   :  { %v13582_v60 = vcombine.high %v23152_v31, %v23152_v31  ;;  %v13604_v11 = vcombine.high %v23155_v1, %v23155_v1  ;;  %v23174_v30 = vrot.slane %v13626_v38, %v19706_v28  ;;  %v13648_v13 = vcombine.high %v23046_v42, %v23046_v42 }
 0x752   :  { %v17547_v34 = vpop.eup %17546  ;;  %v23177_v2 = vrot.slane %v13516_v23, %v19706_v28  ;;  %v23180_v58 = vrot.slane %v13538_v19, %v19706_v28  ;;  %v13670_v37 = vcombine.high %v23049_v45, %v23049_v45  ;;  %v23187_v52 = vrot.slane %v13560_v0, %v19706_v28 }
 0x753   :  { %v23190_v25 = vrot.slane %v13582_v60, %v19706_v28  ;;  %v23193_v38 = vrot.slane %v13604_v11, %v19706_v28  ;;  %v23197_v46 = vrot.slane %v23039_v61, %v19706_v28  ;;  %v23200_v36 = vrot.slane %v13648_v13, %v19706_v28 }
 0x754   :  { %v17549_v47 = vpop.eup %17548  ;;  %v23203_v42 = vrot.slane %v13670_v37, %v19706_v28  ;;  %v23207_v44 = vrot.slane %v23036_v62, %v19706_v28  ;;  %v23210_v32 = vrot.slane %v13356_v24, %v19706_v28  ;;  %v23215_v61 = vrot.slane %v13357_v7, %v19706_v28 }
 0x755   :  { %v16321_v49 = vpack.c.bf16 %v17549_v47, %v17547_v34  ;;  %v13692_v22 = vcombine.high %v23197_v46, %v23197_v46  ;;  %v23218_v17 = vrot.slane %v13358_v51, %v19706_v28  ;;  %v14324_v24 = vunpack.c.l.b16 %v23131_v6 }
 0x756   :  { %v17551_v33 = vpop.eup %17550  ;;  %v13714_v40 = vcombine.high %v23207_v44, %v23207_v44  ;;  %v13736_v62 = vcombine.high %v23210_v32, %v23210_v32  ;;  %v14326_v50 = vunpack.c.l.b16 %v23146_v3  ;;  %v13758_v7 = vcombine.high %v23215_v61, %v23215_v61 }
 0x757   :  { %v13021_v4 = vrot.slane %v16321_v49, %v19706_v28  ;;  %v13706_v23 = vrot.slane %v13692_v22, %v19706_v28  ;;  %v13780_v51 = vcombine.high %v23218_v17, %v23218_v17  ;;  %v14328_v60 = vunpack.c.l.b16 %v23158_v9 }
 0x758   :  { %v13728_v19 = vrot.slane %v13714_v40, %v19706_v28  ;;  %v13750_v0 = vrot.slane %v13736_v62, %v19706_v28  ;;  %v14330_v6 = vunpack.c.l.b16 %v23177_v2  ;;  %v13772_v34 = vrot.slane %v13758_v7, %v19706_v28 }
 0x759   :  { %v13029_v11 = vcombine.high %v13021_v4, %v13021_v4  ;;  %v13037_v3 = vrot.slane %v13021_v4, %v19706_v28  ;;  %v13794_v13 = vrot.slane %v13780_v51, %v19706_v28  ;;  %v17553_v37 = vpop.eup %17552  ;;  %v14332_v47 = vunpack.c.l.b16 %v23180_v58 }
 0x75a   :  { %v14334_v49 = vunpack.c.l.b16 %v23187_v52  ;;  %v14336_v22 = vunpack.c.l.b16 %v23190_v25  ;;  %v14338_v40 = vunpack.c.l.b16 %v23193_v38  ;;  %v16322_v48 = vpack.c.bf16 %v17553_v37, %v17551_v33 }
 0x75b   :  { %v13051_v9 = vrot.slane %v13029_v11, %v19706_v28  ;;  %v13059_v62 = vcombine.high %v13037_v3, %v13037_v3  ;;  %v13264_v2 = vshrl.u32 %v13037_v3, 16  ;;  %v14340_v4 = vunpack.c.l.b16 %v23174_v30 }
 0x75c   :  { %v14342_v7 = vunpack.c.l.b16 %v23200_v36  ;;  %v14344_v51 = vunpack.c.l.b16 %v23203_v42  ;;  %v14346_v35 = vunpack.c.l.b16 %v13706_v23  ;;  %v13028_v25 = vrot.slane %v16322_v48, %v19706_v28 }
 0x75d   :  { %v23247_v59 = vcombine.high %v13051_v9, %v13051_v9  ;;  %v13269_v58 = vshrl.u32 %v13051_v9, 16  ;;  %v13274_v52 = vshrl.u32 %v13059_v62, 16  ;;  %v13375_v27 = vmax.bf16 %v13264_v2, %v13037_v3 }
 0x75e   :  { %v14348_v38 = vunpack.c.l.b16 %v13728_v19  ;;  %v14350_v41 = vunpack.c.l.b16 %v13750_v0  ;;  %v14352_v11 = vunpack.c.l.b16 %v13772_v34  ;;  %v13030_v36 = vcombine.high %v13028_v25, %v13028_v25 }
 0x75f   :  { %v13279_v56 = vshrl.u32 %v23247_v59, 16  ;;  %v13376_v33 = vmax.bf16 %v13269_v58, %v13051_v9  ;;  %v23251_v37 = vmax.bf16 %v13274_v52, %v13059_v62  ;;  %v23254_v30 = vrot.slane %v13375_v27, %v19706_v28 }
 0x760   :  { %v23257_v42 = vrot.slane %v13028_v25, %v19706_v28  ;;  %v14354_v23 = vunpack.c.l.b16 %v13794_v13  ;;  %v14417_v5 = vrot.slane %v14326_v50, 7  ;;  %v14419_v48 = vrot.slane %v14328_v60, 6 }
 0x761   :  { %v23260_v3 = vrot.slane %v13376_v33, %v19706_v28  ;;  %v14421_v19 = vrot.slane %v14330_v6, 5  ;;  %v14423_v0 = vrot.slane %v14332_v47, 4  ;;  %v23263_v34 = vrot.slane %v13030_v36, %v19706_v28 }
 0x762   :  { %v13284_v9 = vshrl.u32 %v23257_v42, 16  ;;  %v14418_v27 = vsel %vm9018_vm2, %v14417_v5, %v14324_v24  ;;  %v14425_v62 = vrot.slane %v14334_v49, 3  ;;  %v14427_v58 = vrot.slane %v14336_v22, 2 }
 0x763   :  { %v14420_v2 = vsel %vm2213_vm11, %v14419_v48, %v14418_v27  ;;  %v14429_v52 = vrot.slane %v14338_v40, 1  ;;  %v14445_v13 = vrot.slane %v14342_v7, 7  ;;  %v14447_v6 = vrot.slane %v14344_v51, 6 }
 0x764   :  { %v23269_v50 = vmax.bf16 %v13284_v9, %v23257_v42  ;;  %v14422_v60 = vsel %vm9024_vm12, %v14421_v19, %v14420_v2  ;;  %v14449_v47 = vrot.slane %v14346_v35, 5  ;;  %v14451_v36 = vrot.slane %v14348_v38, 4 }
 0x765   :  { %v14424_v25 = vsel %vm2215_vm13, %v14423_v0, %v14422_v60  ;;  %v14446_v33 = vsel %vm9018_vm2, %v14445_v13, %v14340_v4  ;;  %v14453_v5 = vrot.slane %v14350_v41, 3  ;;  %v14455_v22 = vrot.slane %v14352_v11, 2 }
 0x766   :  { %v14426_v24 = vsel %vm24817_vm14, %v14425_v62, %v14424_v25  ;;  %v14448_v49 = vsel %vm2213_vm11, %v14447_v6, %v14446_v33  ;;  %v14457_v40 = vrot.slane %v14354_v23, 1  ;;  %v13501_v51 = vrot.slane %v23014_v26, %v19706_v28  ;;  %vm24826_vm14 = vmmov %vm24822_vm4 }
 0x767   :  { %v14428_v7 = vsel %vm24818_vm3, %v14427_v58, %v14426_v24  ;;  %v14450_v48 = vsel %vm9024_vm12, %v14449_v47, %v14448_v49  ;;  %v13523_v35 = vrot.slane %v23139_v29, %v19706_v28  ;;  %v13545_v38 = vrot.slane %v23143_v16, %v19706_v28 }
 0x768   :  { %v14430_v4 = vsel %vm24819_vm8, %v14429_v52, %v14428_v7  ;;  %v14452_v41 = vsel %vm2215_vm13, %v14451_v36, %v14450_v48  ;;  %v13567_v11 = vrot.slane %v23149_v14, %v19706_v28  ;;  %v13589_v19 = vrot.slane %v23152_v31, %v19706_v28  ;;  %vm24827_vm8 = vmmov %vm24822_vm4 }
 0x769   :  { %v14454_v23 = vsel %vm24820_vm10, %v14453_v5, %v14452_v41  ;;  %v13611_v26 = vrot.slane %v23155_v1, %v19706_v28  ;;  %v13677_v29 = vrot.slane %v23049_v45, %v19706_v28  ;;  %v13699_v9 = vrot.slane %v23197_v46, %v19706_v28  ;;  %vm24835_vm10 = vmmov %vm24823_vm5 }
 0x76a   :  { %v14456_v0 = vsel %vm24821_vm6, %v14455_v22, %v14454_v23  ;;  %v13721_v16 = vrot.slane %v23207_v44, %v19706_v28  ;;  %v13743_v14 = vrot.slane %v23210_v32, %v19706_v28  ;;  %v13765_v31 = vrot.slane %v23215_v61, %v19706_v28  ;;  %vm24836_vm6 = vmmov %vm24818_vm3 }
 0x76b   :  { %v14458_v27 = vsel %vm24822_vm4, %v14457_v40, %v14456_v0  ;;  %v13787_v1 = vrot.slane %v23218_v17, %v19706_v28  ;;  %v14327_v45 = vunpack.c.l.b16 %v13501_v51  ;;  %v14329_v2 = vunpack.c.l.b16 %v13523_v35 }
 0x76c   :  { %v23307_v62 = vpack.c.b16 %v14458_v27, %v14430_v4  ;;  %v14331_v58 = vunpack.c.l.b16 %v13545_v38  ;;  %v14333_v46 = vunpack.c.l.b16 %v13567_v11  ;;  %v14335_v52 = vunpack.c.l.b16 %v13589_v19 }
 0x76d   :  { %v14337_v13 = vunpack.c.l.b16 %v13611_v26  ;;  %v14343_v44 = vunpack.c.l.b16 %v13677_v29  ;;  %v14345_v60 = vunpack.c.l.b16 %v13699_v9  ;;  %v14347_v32 = vunpack.c.l.b16 %v13721_v16 }
 0x76e   :  { %16373 = vmatprep.mubr.msk.bf16.mxu1 %vm14612_vm0, %v23307_v62  ;;  %v14349_v6 = vunpack.c.l.b16 %v13743_v14  ;;  %v14351_v47 = vunpack.c.l.b16 %v13765_v31  ;;  %v14353_v61 = vunpack.c.l.b16 %v13787_v1  ;;  %v14403_v25 = vrot.slane %v23023_v10, 7 }
 0x76f   :  { %v14405_v17 = vrot.slane %v14327_v45, 6  ;;  %v14407_v33 = vrot.slane %v14329_v2, 5  ;;  %v14409_v36 = vrot.slane %v14331_v58, 4  ;;  %v14411_v5 = vrot.slane %v14333_v46, 3  ;;  %v17201_v46 = vld [vmem:[%s23856_s8] sm:$0xff]  }
 0x770   :  { %v14413_v24 = vrot.slane %v14335_v52, 2  ;;  %v14415_v49 = vrot.slane %v14337_v13, 1  ;;  %v14431_v22 = vrot.slane %v23059_v63, 7  ;;  %v14404_v40 = vsel %vm9018_vm2, %v14403_v25, %v23020_v55 }
 0x771   :  { %v14433_v7 = vrot.slane %v14343_v44, 6  ;;  %v14435_v48 = vrot.slane %v14345_v60, 5  ;;  %v14437_v51 = vrot.slane %v14347_v32, 4  ;;  %v14406_v35 = vsel %vm2213_vm11, %v14405_v17, %v14404_v40 }
 0x772   :  { %v14432_v4 = vsel %vm9018_vm2, %v14431_v22, %v23054_v39  ;;  %v14439_v10 = vrot.slane %v14349_v6, 3  ;;  %v14441_v41 = vrot.slane %v14351_v47, 2  ;;  %v14408_v38 = vsel %vm9024_vm12, %v14407_v33, %v14406_v35 }
 0x773   :  { %v14434_v11 = vsel %vm2213_vm11, %v14433_v7, %v14432_v4  ;;  %v14443_v23 = vrot.slane %v14353_v61, 1  ;;  %v12960_v63 = vcombine.high %v23065_v18, %v23065_v18  ;;  %v14410_v55 = vsel %vm2215_vm13, %v14409_v36, %v14408_v38  ;;  %v24831_v38 = vld [vmem:[#allocation39_spill] sm:$0xff] }
 0x774   :  { %v14436_v19 = vsel %vm9024_vm12, %v14435_v48, %v14434_v11  ;;  %v12962_v26 = vcombine.high %v23072_v57, %v23072_v57  ;;  %v13010_v39 = vcombine.high %v23104_v43, %v23104_v43  ;;  %v14412_v29 = vsel %vm24823_vm5, %v14411_v5, %v14410_v55  ;;  %v24833_v55 = vld [vmem:[#allocation23_spill] sm:$0xff] }
 0x775   :  { %v14438_v0 = vsel %vm2215_vm13, %v14437_v51, %v14436_v19  ;;  %v13012_v9 = vcombine.high %v23110_v54, %v23110_v54  ;;  %v13209_v16 = vshrl.u32 %v23072_v57, 16  ;;  %v14414_v18 = vsel %vm24824_vm15, %v14413_v24, %v14412_v29  ;;  %vm24837_vm15 = vmmov %vm24818_vm3 }
 0x776   :  { %v14440_v14 = vsel %vm24825_vm7, %v14439_v10, %v14438_v0  ;;  %v13214_v27 = vshrl.u32 %v12960_v63, 16  ;;  %v13219_v31 = vshrl.u32 %v12962_v26, 16  ;;  %v14416_v1 = vsel %vm24826_vm14, %v14415_v49, %v14414_v18  ;;  %v17202_v49 = vld [vmem:[%s23856_s8 + $0x8] sm:$0xff]   ;;  %vm24838_vm7 = vmmov %vm24822_vm4 }
 0x777   :  { %v14442_v45 = vsel %vm24818_vm3, %v14441_v41, %v14440_v14  ;;  %v13249_v43 = vshrl.u32 %v23110_v54, 16  ;;  %v13254_v2 = vshrl.u32 %v13010_v39, 16  ;;  %v13259_v52 = vshrl.u32 %v13012_v9, 16  ;;  %vm24839_vm14 = vmmov %vm24823_vm5 }
 0x778   :  { %v14444_v58 = vsel %vm24827_vm8, %v14443_v23, %v14442_v45  ;;  %v13364_v13 = vmax.bf16 %v13209_v16, %v23072_v57  ;;  %v13365_v44 = vmax.bf16 %v13214_v27, %v12960_v63  ;;  %v13366_v32 = vmax.bf16 %v13219_v31, %v12962_v26  ;;  %v24832_v23 = vld [vmem:[#allocation51_spill] sm:$0xff]  ;;  %v24834_v31 = vld [vmem:[#allocation38_spill] sm:$0xff]  ;;  %vm24840_vm8 = vmmov %vm24822_vm4 }
 0x779   :  { %v23343_v60 = vpack.c.b16 %v14444_v58, %v14416_v1  ;;  %v13372_v6 = vmax.bf16 %v13249_v43, %v23110_v54  ;;  %v13373_v47 = vmax.bf16 %v13254_v2, %v13010_v39  ;;  %v13374_v61 = vmax.bf16 %v13259_v52, %v13012_v9  ;;  %v17203_v9 = vld [vmem:[%s23856_s8 + $0x10] sm:$0xff]  }
 0x77a   :  { %v24828_v25 = vcombine.high %v23069_v20, %v23069_v20  ;;  %v13824_v33 = vcombine.high %v23080_v12, %v23080_v12  ;;  %v13846_v57 = vcombine.high %v23083_v8, %v23083_v8  ;;  %v23359_v36 = vrot.slane %v23075_v21, %v19706_v28 }
 0x77b   :  { %14655 = vmatmul.mubr.bf16.vlgmr.msra.gmra.mrb[76].mxu1 %v23343_v60  ;;  %v23363_v54 = vrot.slane %v23086_v15, %v19706_v28  ;;  %v23366_v5 = vrot.slane %v13364_v13, %v19706_v28  ;;  %v23369_v24 = vrot.slane %v13365_v44, %v19706_v28  ;;  %v23377_v40 = vrot.slane %v13366_v32, %v19706_v28 }
 0x77c   :  { %v23350_v17 = vrot.slane %v24828_v25, %v19706_v28  ;;  %14759 = vmatpush1.bf16.msra.mxu1 %v17201_v46  ;;  %v13838_v22 = vrot.slane %v13824_v33, %v19706_v28  ;;  %v13860_v21 = vrot.slane %v13846_v57, %v19706_v28  ;;  %v24829_v15 = vcombine.high %v23107_v53, %v23107_v53 }
 0x77d   :  { %v24830_v48 = vmov 0   ;;  %v13868_v51 = vcombine.high %v23359_v36, %v23359_v36  ;;  %v13890_v35 = vcombine.high %v23363_v54, %v23363_v54  ;;  %v13912_v4 = vcombine.high %v23366_v5, %v23366_v5 }
 0x77e   :  { %v23383_v7 = vrot.slane %v24829_v15, %v19706_v28  ;;  %14760 = vmatprep.subr.bf16.mxu1 %v24830_v48  ;;  %v13934_v10 = vcombine.high %v23369_v24, %v23369_v24  ;;  %v13956_v41 = vcombine.high %v23377_v40, %v23377_v40  ;;  %v14000_v11 = vcombine.high %v24831_v38, %v24831_v38 }
 0x77f   :  { %v14022_v63 = vcombine.high %v24832_v23, %v24832_v23  ;;  %v23402_v19 = vrot.slane %v24833_v55, %v19706_v28  ;;  %v13882_v26 = vrot.slane %v13868_v51, %v19706_v28  ;;  %v13904_v39 = vrot.slane %v13890_v35, %v19706_v28 }
 0x780   :  { %v13926_v29 = vrot.slane %v13912_v4, %v19706_v28  ;;  %v13948_v0 = vrot.slane %v13934_v10, %v19706_v28  ;;  %14761 = vmatpush1.bf16.msra.mxu1 %v17202_v49  ;;  %v13970_v16 = vrot.slane %v13956_v41, %v19706_v28  ;;  %v14014_v18 = vrot.slane %v14000_v11, %v19706_v28 }
 0x781   :  { %v14036_v14 = vrot.slane %v14022_v63, %v19706_v28  ;;  %v14044_v27 = vcombine.high %v23402_v19, %v23402_v19  ;;  %14762 = vmatprep.subr.bf16.mxu1 %v24830_v48  ;;  %v23419_v1 = vrot.slane %v24834_v31, %v19706_v28  ;;  %v23422_v45 = vrot.slane %v13372_v6, %v19706_v28 }
 0x782   :  { %v23425_v43 = vrot.slane %v13373_v47, %v19706_v28  ;;  %v23428_v2 = vrot.slane %v13374_v61, %v19706_v28  ;;  %v14356_v46 = vunpack.c.l.b16 %v23350_v17  ;;  %v14358_v52 = vunpack.c.l.b16 %v13838_v22  ;;  %v17204_v61 = vld [vmem:[%s23856_s8 + $0x18] sm:$0xff]  }
 0x783   :  { %v14058_v58 = vrot.slane %v14044_v27, %v19706_v28  ;;  %v14360_v13 = vunpack.c.l.b16 %v13860_v21  ;;  %v14066_v44 = vcombine.high %v23419_v1, %v23419_v1  ;;  %v14088_v32 = vcombine.high %v23422_v45, %v23422_v45 }
 0x784   :  { %v14110_v6 = vcombine.high %v23425_v43, %v23425_v43  ;;  %v14132_v47 = vcombine.high %v23428_v2, %v23428_v2  ;;  %14763 = vmatpush1.bf16.msra.mxu1 %v17203_v9  ;;  %v14362_v25 = vunpack.c.l.b16 %v13882_v26  ;;  %v14364_v17 = vunpack.c.l.b16 %v13904_v39  ;;  %v17205_v9 = vld [vmem:[%s23856_s8 + $0x20] sm:$0xff]  }
 0x785   :  { %v14366_v33 = vunpack.c.l.b16 %v13926_v29  ;;  %v14368_v57 = vunpack.c.l.b16 %v13948_v0  ;;  %14764 = vmatprep.subr.bf16.mxu1 %v24830_v48  ;;  %v14080_v49 = vrot.slane %v14066_v44, %v19706_v28  ;;  %v14102_v22 = vrot.slane %v14088_v32, %v19706_v28 }
 0x786   :  { %v14124_v21 = vrot.slane %v14110_v6, %v19706_v28  ;;  %v14146_v15 = vrot.slane %v14132_v47, %v19706_v28  ;;  %v14370_v51 = vunpack.c.l.b16 %v13970_v16  ;;  %v14372_v35 = vunpack.c.l.b16 %v23383_v7 }
 0x787   :  { %v14374_v4 = vunpack.c.l.b16 %v14014_v18  ;;  %v14376_v10 = vunpack.c.l.b16 %v14036_v14  ;;  %v14378_v41 = vunpack.c.l.b16 %v14058_v58  ;;  %v14380_v11 = vunpack.c.l.b16 %v14080_v49 }
 0x788   :  { %v14382_v63 = vunpack.c.l.b16 %v14102_v22  ;;  %v14384_v55 = vunpack.c.l.b16 %v14124_v21  ;;  %14765 = vmatpush1.bf16.msra.mxu1 %v17204_v61  ;;  %v14386_v26 = vunpack.c.l.b16 %v14146_v15  ;;  %v14473_v39 = vrot.slane %v14358_v52, 7 }
 0x789   :  { %v14475_v29 = vrot.slane %v14360_v13, 6  ;;  %v14477_v0 = vrot.slane %v14362_v25, 5  ;;  %v14479_v27 = vrot.slane %v14364_v17, 4  ;;  %v14481_v31 = vrot.slane %v14366_v33, 3  ;;  %14766 = vmatprep.subr.bf16.mxu1 %v24830_v48 }
 0x78a   :  { %v14483_v16 = vrot.slane %v14368_v57, 2  ;;  %v14485_v44 = vrot.slane %v14370_v51, 1  ;;  %v14474_v7 = vsel %vm9018_vm2, %v14473_v39, %v14356_v46  ;;  %v14501_v18 = vrot.slane %v14374_v4, 7  ;;  %v17206_v46 = vld [vmem:[%s23856_s8 + $0x28] sm:$0xff]  }
 0x78b   :  { %v14503_v14 = vrot.slane %v14376_v10, 6  ;;  %v14505_v58 = vrot.slane %v14378_v41, 5  ;;  %v14476_v32 = vsel %vm2213_vm11, %v14475_v29, %v14474_v7  ;;  %v14507_v52 = vrot.slane %v14380_v11, 4  ;;  %v17207_v11 = vld [vmem:[%s23856_s8 + $0x30] sm:$0xff]  }
 0x78c   :  { %v14509_v13 = vrot.slane %v14382_v63, 3  ;;  %v14511_v6 = vrot.slane %v14384_v55, 2  ;;  %v14478_v47 = vsel %vm9024_vm12, %v14477_v0, %v14476_v32  ;;  %v14502_v61 = vsel %vm9018_vm2, %v14501_v18, %v14372_v35  ;;  %14767 = vmatpush1.bf16.msra.mxu1 %v17205_v9 }
 0x78d   :  { %v14513_v25 = vrot.slane %v14386_v26, 1  ;;  %v13809_v17 = vrot.slane %v23069_v20, %v19706_v28  ;;  %v14480_v33 = vsel %vm2215_vm13, %v14479_v27, %v14478_v47  ;;  %v14504_v57 = vsel %vm2213_vm11, %v14503_v14, %v14502_v61  ;;  %14768 = vmatprep.subr.bf16.mxu1 %v24830_v48 }
 0x78e   :  { %v13831_v49 = vrot.slane %v23080_v12, %v19706_v28  ;;  %v13853_v22 = vrot.slane %v23083_v8, %v19706_v28  ;;  %v14482_v21 = vsel %vm24835_vm10, %v14481_v31, %v14480_v33  ;;  %v14506_v20 = vsel %vm9024_vm12, %v14505_v58, %v14504_v57  ;;  %vm24841_vm10 = vmmov %vm24823_vm5 }
 0x78f   :  { %v13875_v15 = vrot.slane %v23359_v36, %v19706_v28  ;;  %v13897_v51 = vrot.slane %v23363_v54, %v19706_v28  ;;  %v14484_v35 = vsel %vm24836_vm6, %v14483_v16, %v14482_v21  ;;  %v14508_v4 = vsel %vm2215_vm13, %v14507_v52, %v14506_v20  ;;  %vm24842_vm6 = vmmov %vm24818_vm3 }
 0x790   :  { %v13919_v12 = vrot.slane %v23366_v5, %v19706_v28  ;;  %v13941_v8 = vrot.slane %v23369_v24, %v19706_v28  ;;  %v14486_v10 = vsel %vm24822_vm4, %v14485_v44, %v14484_v35  ;;  %v14510_v41 = vsel %vm24823_vm5, %v14509_v13, %v14508_v4  ;;  %14769 = vmatpush1.bf16.msra.mxu1 %v17206_v46 }
 0x791   :  { %v13963_v36 = vrot.slane %v23377_v40, %v19706_v28  ;;  %v13985_v54 = vrot.slane %v23107_v53, %v19706_v28  ;;  %v14512_v5 = vsel %vm24837_vm15, %v14511_v6, %v14510_v41  ;;  %v14007_v24 = vrot.slane %v24831_v38, %v19706_v28  ;;  %14770 = vmatprep.subr.bf16.mxu1 %v24830_v48  ;;  %vm24843_vm15 = vmmov %vm24818_vm3 }
 0x792   :  { %v14029_v63 = vrot.slane %v24832_v23, %v19706_v28  ;;  %v14051_v55 = vrot.slane %v23402_v19, %v19706_v28  ;;  %v14514_v53 = vsel %vm24838_vm7, %v14513_v25, %v14512_v5  ;;  %v14073_v40 = vrot.slane %v23419_v1, %v19706_v28  ;;  %v17208_v1 = vld [vmem:[%s23856_s8 + $0x38] sm:$0xff]   ;;  %vm24844_vm7 = vmmov %vm24822_vm4 }
 0x793   :  { %v14095_v26 = vrot.slane %v23422_v45, %v19706_v28  ;;  %v14117_v39 = vrot.slane %v23425_v43, %v19706_v28  ;;  %v23505_v38 = vpack.c.b16 %v14514_v53, %v14486_v10  ;;  %v14139_v23 = vrot.slane %v23428_v2, %v19706_v28 }
 0x794   :  { %v14355_v29 = vunpack.c.l.b16 %v13809_v17  ;;  %v14357_v19 = vunpack.c.l.b16 %v13831_v49  ;;  %v14359_v0 = vunpack.c.l.b16 %v13853_v22  ;;  %v14361_v9 = vunpack.c.l.b16 %v13875_v15  ;;  %14771 = vmatpush1.bf16.msra.mxu1 %v17207_v11  ;;  %v17209_v17 = vld [vmem:[%s23856_s8 + $0x40] sm:$0xff]  }
 0x795   :  { %v14363_v27 = vunpack.c.l.b16 %v13897_v51  ;;  %v14365_v31 = vunpack.c.l.b16 %v13919_v12  ;;  %16374 = vmatprep.mubr.msk.bf16.mxu1 %vm14612_vm0, %v23505_v38  ;;  %v14367_v45 = vunpack.c.l.b16 %v13941_v8  ;;  %v14369_v43 = vunpack.c.l.b16 %v13963_v36  ;;  %14772 = vmatprep.subr.bf16.mxu1 %v24830_v48 }
 0x796   :  { %v14371_v16 = vunpack.c.l.b16 %v13985_v54  ;;  %v14373_v44 = vunpack.c.l.b16 %v14007_v24  ;;  %v14375_v2 = vunpack.c.l.b16 %v14029_v63  ;;  %v14377_v7 = vunpack.c.l.b16 %v14051_v55  ;;  %v17210_v54 = vld [vmem:[%s23856_s8 + $0x48] sm:$0xff]  }
 0x797   :  { %v14379_v18 = vunpack.c.l.b16 %v14073_v40  ;;  %v14381_v14 = vunpack.c.l.b16 %v14095_v26  ;;  %v14383_v58 = vunpack.c.l.b16 %v14117_v39  ;;  %v14385_v32 = vunpack.c.l.b16 %v14139_v23 }
 0x798   :  { %v14459_v52 = vrot.slane %v14357_v19, 7  ;;  %v14461_v13 = vrot.slane %v14359_v0, 6  ;;  %v14463_v6 = vrot.slane %v14361_v9, 5  ;;  %v14465_v47 = vrot.slane %v14363_v27, 4  ;;  %14773 = vmatpush1.bf16.msra.mxu1 %v17208_v1 }
 0x799   :  { %v14467_v61 = vrot.slane %v14365_v31, 3  ;;  %v14469_v25 = vrot.slane %v14367_v45, 2  ;;  %v14471_v33 = vrot.slane %v14369_v43, 1  ;;  %v14487_v57 = vrot.slane %v14373_v44, 7  ;;  %14774 = vmatprep.subr.bf16.mxu1 %v24830_v48 }
 0x79a   :  { %v14460_v46 = vsel %vm9018_vm2, %v14459_v52, %v14355_v29  ;;  %v14489_v49 = vrot.slane %v14375_v2, 6  ;;  %v14491_v21 = vrot.slane %v14377_v7, 5  ;;  %v14493_v20 = vrot.slane %v14379_v18, 4 }
 0x79b   :  { %v14462_v22 = vsel %vm2213_vm11, %v14461_v13, %v14460_v46  ;;  %v14495_v15 = vrot.slane %v14381_v14, 3  ;;  %v14488_v35 = vsel %vm9018_vm2, %v14487_v57, %v14371_v16  ;;  %v14497_v4 = vrot.slane %v14383_v58, 2 }
 0x79c   :  { %v14464_v51 = vsel %vm9024_vm12, %v14463_v6, %v14462_v22  ;;  %v14499_v12 = vrot.slane %v14385_v32, 1  ;;  %v14490_v10 = vsel %vm2213_vm11, %v14489_v49, %v14488_v35  ;;  %v13060_v41 = vcombine.high %v23257_v42, %v23257_v42  ;;  %14775 = vmatpush1.bf16.msra.mxu1 %v17209_v17 }
 0x79d   :  { %v14466_v8 = vsel %vm2215_vm13, %v14465_v47, %v14464_v51  ;;  %v13062_v36 = vcombine.high %v23263_v34, %v23263_v34  ;;  %v14492_v5 = vsel %vm9024_vm12, %v14491_v21, %v14490_v10  ;;  %v13289_v24 = vshrl.u32 %v23263_v34, 16  ;;  %14776 = vmatprep.subr.bf16.mxu1 %v24830_v48 }
 0x79e   :  { %v14468_v11 = vsel %vm24839_vm14, %v14467_v61, %v14466_v8  ;;  %v13378_v63 = vmax.bf16 %v13279_v56, %v23247_v59  ;;  %v14494_v55 = vsel %vm2215_vm13, %v14493_v20, %v14492_v5  ;;  %v13294_v53 = vshrl.u32 %v13060_v41, 16  ;;  %vm24845_vm14 = vmmov %vm24823_vm5 }
 0x79f   :  { %v14470_v42 = vsel %vm24818_vm3, %v14469_v25, %v14468_v11  ;;  %v13299_v40 = vshrl.u32 %v13062_v36, 16  ;;  %v14496_v39 = vsel %vm24841_vm10, %v14495_v15, %v14494_v55  ;;  %v13380_v23 = vmax.bf16 %v13289_v24, %v23263_v34 }
 0x7a0   :  { %v14472_v26 = vsel %vm24840_vm8, %v14471_v33, %v14470_v42  ;;  %v14154_v29 = vcombine.high %v23254_v30, %v23254_v30  ;;  %v14498_v19 = vsel %vm24842_vm6, %v14497_v4, %v14496_v39  ;;  %v13381_v56 = vmax.bf16 %v13294_v53, %v13060_v41  ;;  %14777 = vmatpush1.bf16.msra.mxu1 %v17210_v54  ;;  %vm24846_vm8 = vmmov %vm24822_vm4 }
 0x7a1   :  { %v13382_v59 = vmax.bf16 %v13299_v40, %v13062_v36  ;;  %v14176_v48 = vcombine.high %v23260_v3, %v23260_v3  ;;  %v14500_v0 = vsel %vm24822_vm4, %v14499_v12, %v14498_v19  ;;  %v14197_v27 = vrot.slane %v23251_v37, %v19706_v28 }
 0x7a2   :  { %v14168_v9 = vrot.slane %v14154_v29, %v19706_v28  ;;  %v14219_v34 = vrot.slane %v13378_v63, %v19706_v28  ;;  %v23554_v31 = vpack.c.b16 %v14500_v0, %v14472_v26  ;;  %v14241_v45 = vrot.slane %v23269_v50, %v19706_v28 }
 0x7a3   :  { %v14190_v1 = vrot.slane %v14176_v48, %v19706_v28  ;;  %v14263_v43 = vrot.slane %v13380_v23, %v19706_v28  ;;  %v14198_v16 = vcombine.high %v14197_v27, %v14197_v27  ;;  %v14285_v2 = vrot.slane %v13381_v56, %v19706_v28 }
 0x7a4   :  { %v14220_v44 = vcombine.high %v14219_v34, %v14219_v34  ;;  %v14307_v7 = vrot.slane %v13382_v59, %v19706_v28  ;;  %14663 = vmatmul.mubr.bf16.gmra.mrb[80].mxu1 %v23554_v31  ;;  %v14242_v37 = vcombine.high %v14241_v45, %v14241_v45  ;;  %v14388_v47 = vunpack.c.l.b16 %v14168_v9 }
 0x7a5   :  { %v14264_v18 = vcombine.high %v14263_v43, %v14263_v43  ;;  %v14390_v14 = vunpack.c.l.b16 %v14190_v1  ;;  %v14212_v58 = vrot.slane %v14198_v16, %v19706_v28  ;;  %v14286_v52 = vcombine.high %v14285_v2, %v14285_v2 }
 0x7a6   :  { %v14234_v32 = vrot.slane %v14220_v44, %v19706_v28  ;;  %v14308_v13 = vcombine.high %v14307_v7, %v14307_v7  ;;  %v14256_v50 = vrot.slane %v14242_v37, %v19706_v28  ;;  %v14183_v51 = vrot.slane %v23260_v3, %v19706_v28 }
 0x7a7   :  { %v14278_v6 = vrot.slane %v14264_v18, %v19706_v28  ;;  %v14529_v61 = vrot.slane %v14390_v14, 7  ;;  %v14300_v25 = vrot.slane %v14286_v52, %v19706_v28  ;;  %v14392_v46 = vunpack.c.l.b16 %v14212_v58 }
 0x7a8   :  { %v14322_v17 = vrot.slane %v14308_v13, %v19706_v28  ;;  %v14394_v33 = vunpack.c.l.b16 %v14234_v32  ;;  %v14396_v57 = vunpack.c.l.b16 %v14256_v50  ;;  %v14161_v4 = vrot.slane %v23254_v30, %v19706_v28  ;;  %v17211_v13 = vld [vmem:[%s23857_s9] sm:$0xff]  }
 0x7a9   :  { %v14398_v49 = vunpack.c.l.b16 %v14278_v6  ;;  %v14530_v22 = vsel %vm9018_vm2, %v14529_v61, %v14388_v47  ;;  %v14400_v21 = vunpack.c.l.b16 %v14300_v25  ;;  %v14531_v20 = vrot.slane %v14392_v46, 6 }
 0x7aa   :  { %v14533_v15 = vrot.slane %v14394_v33, 5  ;;  %v14402_v35 = vunpack.c.l.b16 %v14322_v17  ;;  %v14205_v12 = vrot.slane %v14197_v27, %v19706_v28  ;;  %v14227_v8 = vrot.slane %v14219_v34, %v19706_v28 }
 0x7ab   :  { %v14532_v10 = vsel %vm2213_vm11, %v14531_v20, %v14530_v22  ;;  %v14535_v41 = vrot.slane %v14396_v57, 4  ;;  %v14537_v36 = vrot.slane %v14398_v49, 3  ;;  %v14249_v54 = vrot.slane %v14241_v45, %v19706_v28 }
 0x7ac   :  { %v14534_v11 = vsel %vm9024_vm12, %v14533_v15, %v14532_v10  ;;  %v14539_v5 = vrot.slane %v14400_v21, 2  ;;  %v14271_v24 = vrot.slane %v14263_v43, %v19706_v28  ;;  %v14293_v3 = vrot.slane %v14285_v2, %v19706_v28 }
 0x7ad   :  { %v14536_v63 = vsel %vm2215_vm13, %v14535_v41, %v14534_v11  ;;  %v14315_v30 = vrot.slane %v14307_v7, %v19706_v28  ;;  %v14389_v42 = vunpack.c.l.b16 %v14183_v51  ;;  %v14391_v55 = vunpack.c.l.b16 %v14205_v12 }
 0x7ae   :  { %v14538_v53 = vsel %vm24823_vm5, %v14537_v36, %v14536_v63  ;;  %v14541_v40 = vrot.slane %v14402_v35, 1  ;;  %v14393_v26 = vunpack.c.l.b16 %v14227_v8  ;;  %v14395_v39 = vunpack.c.l.b16 %v14249_v54 }
 0x7af   :  { %v14540_v23 = vsel %vm24843_vm15, %v14539_v5, %v14538_v53  ;;  %v14387_v29 = vunpack.c.l.b16 %v14161_v4  ;;  %v14397_v19 = vunpack.c.l.b16 %v14271_v24  ;;  %v14515_v56 = vrot.slane %v14389_v42, 7 }
 0x7b0   :  { %v14542_v59 = vsel %vm24844_vm7, %v14541_v40, %v14540_v23  ;;  %v14399_v48 = vunpack.c.l.b16 %v14293_v3  ;;  %v14517_v0 = vrot.slane %v14391_v55, 6  ;;  %v14519_v9 = vrot.slane %v14393_v26, 5 }
 0x7b1   :  { %v14548_v27 = vpack.c.b16 %v14542_v59, %v14542_v59  ;;  %v14401_v34 = vunpack.c.l.b16 %v14315_v30  ;;  %v14516_v1 = vsel %vm9018_vm2, %v14515_v56, %v14387_v29  ;;  %v14521_v43 = vrot.slane %v14395_v39, 4 }
 0x7b2   :  { %v14518_v45 = vsel %vm2213_vm11, %v14517_v0, %v14516_v1  ;;  %v14523_v44 = vrot.slane %v14397_v19, 3  ;;  %v14525_v7 = vrot.slane %v14399_v48, 2  ;;  %v17565_v52 = vmov 0.0  }
 0x7b3   :  { %16375 = vmatprep.mubr.msk.bf16.mxu1 %vm14612_vm0, %v14548_v27  ;;  %v14520_v16 = vsel %vm9024_vm12, %v14519_v9, %v14518_v45  ;;  %v14527_v18 = vrot.slane %v14401_v34, 1  ;;  %16546 = vmatprep.subr.bf16.mxu1 %v17565_v52  ;;  %vm17566_vm11 = vmmov 0   ;;  %vm24847_vm2 = vcmask 1043456  }
 0x7b4   :  { %v14522_v2 = vsel %vm2215_vm13, %v14521_v43, %v14520_v16  ;;  %vm15056_vm13 = vcmask 654336   ;;  %vm15632_vm12 = vcmask 982016  }
 0x7b5   :  { %v14524_v37 = vsel %vm24845_vm14, %v14523_v44, %v14522_v2 }
 0x7b6   :  { %v14526_v14 = vsel %vm24818_vm3, %v14525_v7, %v14524_v37 }
 0x7b7   :  { %v14528_v58 = vsel %vm24846_vm8, %v14527_v18, %v14526_v14 }
 0x7b8   :  { %v14547_v32 = vpack.c.b16 %v14528_v58, %v14528_v58 }
 0x7ba   :  { %14671 = vmatmul.mubr.bf16.gmra.mrb[84].mxu1 %v14547_v32 }
 0x7bb   :  { %16386 = vmatprep.mubr.msk.bf16.mxu1 %vm14612_vm0, %v23307_v62  ;;  %v17212_v62 = vld [vmem:[%s23857_s9 + $0x8] sm:$0xff]  }
 0x7c2   :  { %14791 = vmatmul.mubr.bf16.vlgmr.msra.gmra.mrb[88].mxu1 %v23343_v60  ;;  %v17213_v60 = vld [vmem:[%s23857_s9 + $0x10] sm:$0xff]  }
 0x7c3   :  { %16387 = vmatprep.mubr.msk.bf16.mxu1 %vm14612_vm0, %v23505_v38  ;;  %16547 = vmatpush3.bf16.msra.mxu1 %v17211_v13  ;;  %v17214_v38 = vld [vmem:[%s23857_s9 + $0x18] sm:$0xff]  }
 0x7c4   :  { %16548 = vmatprep.subr.bf16.mxu1 %v17565_v52 }
 0x7c7   :  { %16549 = vmatpush3.bf16.msra.mxu1 %v17212_v62 }
 0x7c8   :  { %16550 = vmatprep.subr.bf16.mxu1 %v17565_v52 }
 0x7ca   :  { %14799 = vmatmul.mubr.bf16.gmra.mrb[92].mxu1 %v23554_v31  ;;  %v17215_v31 = vld [vmem:[%s23857_s9 + $0x20] sm:$0xff]  }
 0x7cb   :  { %16388 = vmatprep.mubr.msk.bf16.mxu1 %vm14612_vm0, %v14548_v27  ;;  %16551 = vmatpush3.bf16.msra.mxu1 %v17213_v60 }
 0x7cc   :  { %16552 = vmatprep.subr.bf16.mxu1 %v17565_v52 }
 0x7cf   :  { %16553 = vmatpush3.bf16.msra.mxu1 %v17214_v38 }
 0x7d0   :  { %16554 = vmatprep.subr.bf16.mxu1 %v17565_v52 }
 0x7d2   :  { %14807 = vmatmul.mubr.bf16.gmra.mrb[96].mxu1 %v14547_v32 }
 0x7d3   :  { %16556 = vmatprep.mubr.msk.bf16.mxu1 %vm17566_vm11, %v17565_v52  ;;  %16555 = vmatpush3.bf16.msra.mxu1 %v17215_v31 }
 0x7d4   :  { %16560 = vmatprep.subr.bf16.mxu1 %v17565_v52 }
 0x84e   :  { %v14656_v50 = vpop.f32.mrb[76].mxu1 }
 0x84f   :  { %v14658_v6 = vpop.f32.mrb[77].mxu1 }
 0x850   :  { %v14659_v47 = vpop.f32.mrb[78].mxu1 }
 0x851   :  { %v14661_v61 = vpop.f32.mrb[79].mxu1 }
 0x877   :  { %v14664_v25 = vpop.f32.mrb[80].mxu1 }
 0x878   :  { %v14666_v17 = vpop.f32.mrb[81].mxu1 }
 0x879   :  { %v14667_v46 = vpop.f32.mrb[82].mxu1 }
 0x87a   :  { %v14669_v33 = vpop.f32.mrb[83].mxu1 }
 0x88d   :  { %v14672_v57 = vpop.f32.mrb[84].mxu1 }
 0x88e   :  { %v14674_v49 = vpop.f32.mrb[85].mxu1 }
 0x88f   :  { %v14675_v22 = vpop.f32.mrb[86].mxu1 }
 0x890   :  { %v14676_v21 = vpop.f32.mrb[87].mxu1 }
 0x895   :  { %v14792_v20 = vpop.f32.mrb[88].mxu1 }
 0x896   :  { %v14814_v15 = vmax.f32 %v14656_v50, %v14792_v20  ;;  %v14794_v51 = vpop.f32.mrb[89].mxu1 }
 0x897   :  { %v14795_v35 = vpop.f32.mrb[90].mxu1 }
 0x898   :  { %v14815_v4 = vmax.f32 %v14659_v47, %v14795_v35  ;;  %v14797_v12 = vpop.f32.mrb[91].mxu1 }
 0x89a   :  { %v14819_v8 = vpack.c.bf16 %v14815_v4, %v14814_v15  ;;  %v16389_v10 = vpack.c.bf16 %v14815_v4, %v14815_v4 }
 0x89c   :  { %v14832_v41 = vrot.slane %v14819_v8, %v19706_v28  ;;  %v14839_v36 = vrot.slane %v16389_v10, %v19706_v28 }
 0x89d   :  { %v14800_v54 = vpop.f32.mrb[92].mxu1 }
 0x89e   :  { %v14840_v11 = vcombine.high %v14832_v41, %v14832_v41  ;;  %v14841_v5 = vcombine.high %v14839_v36, %v14839_v36  ;;  %v14848_v24 = vrot.slane %v14832_v41, %v19706_v28  ;;  %v14855_v3 = vrot.slane %v14839_v36, %v19706_v28  ;;  %v14802_v63 = vpop.f32.mrb[93].mxu1 }
 0x89f   :  { %v14816_v30 = vmax.f32 %v14664_v25, %v14800_v54  ;;  %v14803_v42 = vpop.f32.mrb[94].mxu1 }
 0x8a0   :  { %v14862_v55 = vrot.slane %v14840_v11, %v19706_v28  ;;  %v14869_v53 = vrot.slane %v14841_v5, %v19706_v28  ;;  %v14870_v40 = vcombine.high %v14848_v24, %v14848_v24  ;;  %v14805_v26 = vpop.f32.mrb[95].mxu1  ;;  %v14956_v39 = vunpack.i.h.s16 %v14855_v3 }
 0x8a1   :  { %v14817_v23 = vmax.f32 %v14667_v46, %v14803_v42  ;;  %v14871_v27 = vcombine.high %v14855_v3, %v14855_v3  ;;  %v14948_v1 = vunpack.i.h.s16 %v14848_v24 }
 0x8a2   :  { %v14872_v29 = vcombine.high %v14862_v55, %v14862_v55  ;;  %v14873_v19 = vcombine.high %v14869_v53, %v14869_v53  ;;  %v14950_v56 = vunpack.i.h.s16 %v14862_v55  ;;  %v14952_v59 = vunpack.i.h.s16 %v14870_v40 }
 0x8a3   :  { %v23630_v48 = vpack.i.b16 %v14956_v39, %v14870_v40  ;;  %v14820_v0 = vpack.c.bf16 %v14817_v23, %v14816_v30  ;;  %v16390_v9 = vpack.c.bf16 %v14817_v23, %v14817_v23  ;;  %v14960_v38 = vunpack.i.h.s16 %v14871_v27 }
 0x8a4   :  { %v14962_v34 = vunpack.i.h.s16 %v14873_v19  ;;  %v23632_v45 = vpack.i.b16 %v14855_v3, %v14950_v56  ;;  %v14954_v2 = vunpack.i.h.s16 %v14872_v29  ;;  %v23636_v7 = vpack.i.b16 %v14952_v59, %v14848_v24 }
 0x8a5   :  { %v14881_v43 = vrot.slane %v14820_v0, %v19706_v28  ;;  %v14888_v16 = vrot.slane %v16390_v9, %v19706_v28  ;;  %v14808_v44 = vpop.f32.mrb[96].mxu1  ;;  %v16412_v50 = vpack.i.b16 %v14872_v29, %v14948_v1  ;;  %v14958_v6 = vunpack.i.h.s16 %v14869_v53 }
 0x8a6   :  { %v23638_v37 = vpack.i.b16 %v14962_v34, %v14869_v53  ;;  %v14818_v18 = vmax.f32 %v14672_v57, %v14808_v44  ;;  %v14810_v14 = vpop.f32.mrb[97].mxu1  ;;  %v16432_v21 = vpack.i.b16 %v14954_v2, %v14862_v55 }
 0x8a7   :  { %v14889_v58 = vcombine.high %v14881_v43, %v14881_v43  ;;  %v14890_v32 = vcombine.high %v14888_v16, %v14888_v16  ;;  %v14897_v13 = vrot.slane %v14881_v43, %v19706_v28  ;;  %v14904_v62 = vrot.slane %v14888_v16, %v19706_v28  ;;  %v14811_v60 = vpop.f32.mrb[98].mxu1 }
 0x8a8   :  { %v15002_v31 = vcombine.low %v23636_v7, %v23638_v37  ;;  %v14812_v47 = vpop.f32.mrb[99].mxu1  ;;  %v14821_v22 = vpack.c.bf16 %v14818_v18, %v14818_v18 }
 0x8a9   :  { %v14911_v61 = vrot.slane %v14889_v58, %v19706_v28  ;;  %v14918_v25 = vrot.slane %v14890_v32, %v19706_v28  ;;  %v14919_v17 = vcombine.high %v14897_v13, %v14897_v13  ;;  %v14920_v46 = vcombine.high %v14904_v62, %v14904_v62 }
 0x8aa   :  { %v14964_v33 = vunpack.i.h.s16 %v14897_v13  ;;  %v14972_v57 = vunpack.i.h.s16 %v14904_v62  ;;  %v16413_v49 = vpack.i.b16 %v14897_v13, %v14958_v6  ;;  %v14929_v3 = vrot.slane %v14821_v22, %v19706_v28  ;;  %v17220_v22 = vld [vmem:[%s23857_s9 + $0x48] sm:$0xff]  }
 0x8ab   :  { %v14921_v20 = vcombine.high %v14911_v61, %v14911_v61  ;;  %v14966_v15 = vunpack.i.h.s16 %v14911_v61  ;;  %v14968_v51 = vunpack.i.h.s16 %v14919_v17  ;;  %v14974_v35 = vunpack.i.h.s16 %v14918_v25 }
 0x8ac   :  { %v14976_v4 = vunpack.i.h.s16 %v14920_v46  ;;  %v16393_v12 = vpack.i.b16 %v14972_v57, %v14919_v17  ;;  %v15122_v8 = vcombine.low %v16412_v50, %v16413_v49  ;;  %v16433_v36 = vpack.i.b16 %v14964_v33, %v14871_v27  ;;  %v17217_v33 = vld [vmem:[%s23857_s9 + $0x30] sm:$0xff]   ;;  %v17218_v57 = vld [vmem:[%s23857_s9 + $0x38] sm:$0xff]   ;;  %v17219_v49 = vld [vmem:[%s23857_s9 + $0x40] sm:$0xff]  }
 0x8ad   :  { %v14970_v10 = vunpack.i.h.s16 %v14921_v20  ;;  %v16414_v41 = vpack.i.b16 %v14918_v25, %v14968_v51  ;;  %v16453_v54 = vpack.i.b16 %v14911_v61, %v14960_v38  ;;  %v14922_v11 = vcombine.high %v14918_v25, %v14918_v25  ;;  %v17216_v61 = vld [vmem:[%s23857_s9 + $0x28] sm:$0xff]   ;;  %v17223_v51 = vld [vmem:[%s23857_s9 + $0x60] sm:$0xff]  }
 0x8ae   :  { %v16473_v5 = vpack.i.b16 %v14966_v15, %v14873_v19  ;;  %v16474_v24 = vpack.i.b16 %v14976_v4, %v14904_v62  ;;  %v15235_v63 = vcombine.low %v16432_v21, %v16433_v36  ;;  %v14930_v53 = vcombine.high %v14929_v3, %v14929_v3  ;;  %v17221_v21 = vld [vmem:[%s23857_s9 + $0x50] sm:$0xff]   ;;  %v17222_v15 = vld [vmem:[%s23857_s9 + $0x58] sm:$0xff]  }
 0x8af   :  { %v16454_v30 = vpack.i.b16 %v14920_v46, %v14970_v10  ;;  %v15348_v42 = vcombine.low %v23632_v45, %v16453_v54  ;;  %v14937_v40 = vrot.slane %v14929_v3, %v19706_v28  ;;  %v16434_v26 = vpack.i.b16 %v14974_v35, %v14921_v20  ;;  %v17224_v35 = vld [vmem:[%s23857_s9 + $0x68] sm:$0xff]   ;;  %v17225_v4 = vld [vmem:[%s23857_s9 + $0x70] sm:$0xff]   ;;  %v17227_v10 = vld [vmem:[%s23857_s9 + $0x80] sm:$0xff]  }
 0x8b0   :  { %v15461_v55 = vcombine.low %v23630_v48, %v16473_v5  ;;  %v14944_v39 = vrot.slane %v14930_v53, %v19706_v28  ;;  %v14978_v29 = vunpack.i.h.s16 %v14922_v11  ;;  %v15130_v45 = vrot.slane %v15122_v8, %v19706_v28  ;;  %v17229_v36 = vld [vmem:[%s23857_s9 + $0x90] sm:$0xff]   ;;  %v17230_v54 = vld [vmem:[%s23857_s9 + $0x98] sm:$0xff]   ;;  %v17237_v53 = vld [vmem:[%s23858_s11 + $0x8] sm:$0xff]  }
 0x8b1   :  { %v14945_v23 = vcombine.high %v14937_v40, %v14937_v40  ;;  %v14980_v9 = vunpack.i.h.s16 %v14937_v40  ;;  %v15010_v37 = vrot.slane %v15002_v31, %v19706_v28  ;;  %v15243_v14 = vrot.slane %v15235_v63, %v19706_v28  ;;  %v17233_v3 = vld [vmem:[%s23857_s9 + $0xb0] sm:$0xff]   ;;  %v17234_v63 = vld [vmem:[%s23857_s9 + $0xb8] sm:$0xff]  }
 0x8b2   :  { %v14946_v56 = vcombine.high %v14944_v39, %v14944_v39  ;;  %v14982_v59 = vunpack.i.h.s16 %v14944_v39  ;;  %v23661_v38 = vrot.slane %v15348_v42, %v19706_v28  ;;  %v23667_v47 = vrot.slane %v15461_v55, %v19706_v28  ;;  %v17236_v55 = vld [vmem:[%s23858_s11] sm:$0xff]  }
 0x8b3   :  { %v14984_v19 = vunpack.i.h.s16 %v14945_v23  ;;  %v16415_v0 = vpack.i.b16 %v14945_v23, %v14978_v29  ;;  %v17242_v23 = vld [vmem:[%s23858_s11 + $0x30] sm:$0xff]   ;;  %v17243_v29 = vld [vmem:[%s23858_s11 + $0x38] ss:$0 sps:$4 sm:$0xff]  }
 0x8b4   :  { %v14986_v27 = vunpack.i.h.s16 %v14946_v56  ;;  %v16394_v34 = vpack.i.b16 %v14982_v59, %v14922_v11  ;;  %v16455_v48 = vpack.i.b16 %v14946_v56, %v14980_v9  ;;  %v17231_v11 = vld [vmem:[%s23857_s9 + $0xa0] sm:$0xff]   ;;  %v15637_v56 = vsel %vm24847_vm2, %v17243_v29, 0 }
 0x8b5   :  { %v15123_v1 = vcombine.low %v16414_v41, %v16415_v0  ;;  %v16435_v43 = vpack.i.b16 %v14984_v19, %v14937_v40  ;;  %v17228_v41 = vld [vmem:[%s23857_s9 + $0x88] sm:$0xff]   ;;  %v17239_v40 = vld [vmem:[%s23858_s11 + $0x18] sm:$0xff]   ;;  %v16401_v59 = vld [vmem:[%s23859_s10] ss:$0 sm:$0xff] }
 0x8b6   :  { %v15003_v16 = vcombine.low %v16393_v12, %v16394_v34  ;;  %v16475_v7 = vpack.i.b16 %v14986_v27, %v14944_v39  ;;  %v15349_v18 = vcombine.low %v16454_v30, %v16455_v48  ;;  %v17226_v12 = vld [vmem:[%s23857_s9 + $0x78] sm:$0xff]   ;;  %v17235_v30 = vld [vmem:[%s23857_s9 + $0xc0] sm:$0xff]   ;;  %v17241_v39 = vld [vmem:[%s23858_s11 + $0x28] sm:$0xff]  }
 0x8b7   :  { %v15137_v44 = vrot.slane %v15123_v1, %v19706_v28  ;;  %v15236_v2 = vcombine.low %v16434_v26, %v16435_v43  ;;  %v17240_v26 = vld [vmem:[%s23858_s11 + $0x20] sm:$0xff]  }
 0x8b8   :  { %v15017_v58 = vrot.slane %v15003_v16, %v19706_v28  ;;  %v15462_v13 = vcombine.low %v16474_v24, %v16475_v7  ;;  %v23658_v60 = vrot.slane %v15349_v18, %v19706_v28  ;;  %v17232_v24 = vld [vmem:[%s23857_s9 + $0xa8] sm:$0xff]   ;;  %v17247_v18 = vld [vmem:[%s23860_s13 + $0x18] sm:$0xff]  }
 0x8b9   :  { %v15250_v32 = vrot.slane %v15236_v2, %v19706_v28  ;;  %v15138_v62 = vcombine.low %v15130_v45, %v15137_v44  ;;  %v17244_v2 = vld [vmem:[%s23860_s13] sm:$0xff]   ;;  %v17245_v7 = vld [vmem:[%s23860_s13 + $0x8] sm:$0xff]  }
 0x8ba   :  { %v23664_v50 = vrot.slane %v15462_v13, %v19706_v28  ;;  %v15018_v6 = vcombine.low %v15010_v37, %v15017_v58  ;;  %v15364_v25 = vcombine.low %v23661_v38, %v23658_v60  ;;  %v17246_v37 = vld [vmem:[%s23860_s13 + $0x10] sm:$0xff]   ;;  %v17249_v58 = vld [vmem:[%s23860_s13 + $0x28] ss:$0 sps:$4 sm:$0x33]   ;;  %v16482_v13 = vld [vmem:[%s23861_s12] ss:$0 sm:$0xff] }
 0x8bb   :  { %v15251_v31 = vcombine.low %v15243_v14, %v15250_v32  ;;  %v15145_v20 = vrot.slane %v15138_v62, %v19706_v28  ;;  %v17248_v14 = vld [vmem:[%s23860_s13 + $0x20] sm:$0xff]   ;;  %v15740_v32 = vsel %vm115_vm1, %v17249_v58, 0 }
 0x8bc   :  { %v15025_v17 = vrot.slane %v15018_v6, %v19706_v28  ;;  %v15477_v46 = vcombine.low %v23667_v47, %v23664_v50  ;;  %v15371_v5 = vrot.slane %v15364_v25, %v19706_v28 }
 0x8bd   :  { %v15258_v8 = vrot.slane %v15251_v31, %v19706_v28 }
 0x8be   :  { %16557 = vmatmul.mubr.msk.bf16.vlgmr.msra.gmra.mrb[100].mxu1 %vm15056_vm13, %v15025_v17  ;;  %v15484_v42 = vrot.slane %v15477_v46, %v19706_v28  ;;  %v17238_v28 = vld [vmem:[%s23858_s11 + $0x10] sm:$0xff]   ;;  %v16492_v46 = vld [vmem:[%s23862_s14] ss:$0 sm:$0xff] }
 0x8bf   :  { %16561 = vmatpush3.bf16.msra.mxu1 %v17216_v61  ;;  %16570 = vmatprep.mubr.msk.bf16.mxu1 %vm17566_vm11, %v17565_v52 }
 0x8c0   :  { %16562 = vmatprep.subr.bf16.mxu1 %v17565_v52 }
 0x8c3   :  { %16563 = vmatpush3.bf16.msra.mxu1 %v17217_v33 }
 0x8c4   :  { %16564 = vmatprep.subr.bf16.mxu1 %v17565_v52 }
 0x8c7   :  { %16565 = vmatpush3.bf16.msra.mxu1 %v17218_v57 }
 0x8c8   :  { %16566 = vmatprep.subr.bf16.mxu1 %v17565_v52 }
 0x8cb   :  { %16567 = vmatpush3.bf16.msra.mxu1 %v17219_v49 }
 0x8cc   :  { %16568 = vmatprep.subr.bf16.mxu1 %v17565_v52 }
 0x8cf   :  { %16569 = vmatpush3.bf16.msra.mxu1 %v17220_v22 }
 0x8d0   :  { %16574 = vmatprep.subr.bf16.mxu1 %v17565_v52 }
 0x8d2   :  { %16571 = vmatmul.mubr.msk.bf16.vlgmr.msra.gmra.mrb[100].mxu1 %vm15056_vm13, %v15145_v20 }
 0x8d3   :  { %16575 = vmatpush3.bf16.msra.mxu1 %v17221_v21  ;;  %16584 = vmatprep.mubr.msk.bf16.mxu1 %vm17566_vm11, %v17565_v52 }
 0x8d4   :  { %16576 = vmatprep.subr.bf16.mxu1 %v17565_v52 }
 0x8d7   :  { %16577 = vmatpush3.bf16.msra.mxu1 %v17222_v15 }
 0x8d8   :  { %16578 = vmatprep.subr.bf16.mxu1 %v17565_v52 }
 0x8db   :  { %16579 = vmatpush3.bf16.msra.mxu1 %v17223_v51 }
 0x8dc   :  { %16580 = vmatprep.subr.bf16.mxu1 %v17565_v52 }
 0x8df   :  { %16581 = vmatpush3.bf16.msra.mxu1 %v17224_v35 }
 0x8e0   :  { %16582 = vmatprep.subr.bf16.mxu1 %v17565_v52 }
 0x8e3   :  { %16583 = vmatpush3.bf16.msra.mxu1 %v17225_v4 }
 0x8e4   :  { %16588 = vmatprep.subr.bf16.mxu1 %v17565_v52 }
 0x8e6   :  { %16585 = vmatmul.mubr.msk.bf16.vlgmr.msra.gmra.mrb[100].mxu1 %vm15056_vm13, %v15258_v8 }
 0x8e7   :  { %16589 = vmatpush3.bf16.msra.mxu1 %v17226_v12  ;;  %16598 = vmatprep.mubr.msk.bf16.mxu1 %vm17566_vm11, %v17565_v52 }
 0x8e8   :  { %16590 = vmatprep.subr.bf16.mxu1 %v17565_v52 }
 0x8eb   :  { %16591 = vmatpush3.bf16.msra.mxu1 %v17227_v10 }
 0x8ec   :  { %16592 = vmatprep.subr.bf16.mxu1 %v17565_v52 }
 0x8ef   :  { %16593 = vmatpush3.bf16.msra.mxu1 %v17228_v41 }
 0x8f0   :  { %16594 = vmatprep.subr.bf16.mxu1 %v17565_v52 }
 0x8f3   :  { %16595 = vmatpush3.bf16.msra.mxu1 %v17229_v36 }
 0x8f4   :  { %16596 = vmatprep.subr.bf16.mxu1 %v17565_v52 }
 0x8f7   :  { %16597 = vmatpush3.bf16.msra.mxu1 %v17230_v54 }
 0x8f8   :  { %16602 = vmatprep.subr.bf16.mxu1 %v17565_v52 }
 0x8fa   :  { %16599 = vmatmul.mubr.msk.bf16.vlgmr.msra.gmra.mrb[100].mxu1 %vm15056_vm13, %v15371_v5 }
 0x8fb   :  { %16603 = vmatpush3.bf16.msra.mxu1 %v17231_v11  ;;  %16612 = vmatprep.mubr.msk.bf16.mxu1 %vm17566_vm11, %v17565_v52 }
 0x8fc   :  { %16604 = vmatprep.subr.bf16.mxu1 %v17565_v52 }
 0x8ff   :  { %16605 = vmatpush3.bf16.msra.mxu1 %v17232_v24 }
 0x900   :  { %16606 = vmatprep.subr.bf16.mxu1 %v17565_v52 }
 0x903   :  { %16607 = vmatpush3.bf16.msra.mxu1 %v17233_v3 }
 0x904   :  { %16608 = vmatprep.subr.bf16.mxu1 %v17565_v52 }
 0x907   :  { %16609 = vmatpush3.bf16.msra.mxu1 %v17234_v63 }
 0x908   :  { %16610 = vmatprep.subr.bf16.mxu1 %v17565_v52 }
 0x90b   :  { %16611 = vmatpush3.bf16.msra.mxu1 %v17235_v30 }
 0x90c   :  { %16616 = vmatprep.subr.bf16.mxu1 %v17565_v52 }
 0x90e   :  { %16613 = vmatmul.mubr.msk.bf16.vlgmr.msra.gmra.mrb[100].mxu1 %vm15056_vm13, %v15484_v42 }
 0x90f   :  { %16632 = vmatprep.mubr.msk.bf16.mxu1 %vm17566_vm11, %v17565_v52  ;;  %16617 = vmatpush3.bf16.msra.mxu1 %v17236_v55 }
 0x910   :  { %16618 = vmatprep.subr.bf16.mxu1 %v17565_v52 }
 0x913   :  { %16619 = vmatpush3.bf16.msra.mxu1 %v17237_v53 }
 0x914   :  { %16620 = vmatprep.subr.bf16.mxu1 %v17565_v52 }
 0x917   :  { %16621 = vmatpush3.bf16.msra.mxu1 %v17238_v28 }
 0x918   :  { %16622 = vmatprep.subr.bf16.mxu1 %v17565_v52 }
 0x91b   :  { %16623 = vmatpush3.bf16.msra.mxu1 %v17239_v40 }
 0x91c   :  { %16624 = vmatprep.subr.bf16.mxu1 %v17565_v52 }
 0x91f   :  { %16625 = vmatpush3.bf16.msra.mxu1 %v17240_v26 }
 0x920   :  { %16626 = vmatprep.subr.bf16.mxu1 %v17565_v52 }
 0x923   :  { %16627 = vmatpush3.bf16.msra.mxu1 %v17241_v39 }
 0x924   :  { %16628 = vmatprep.subr.bf16.mxu1 %v17565_v52 }
 0x927   :  { %16629 = vmatpush3.bf16.msra.mxu1 %v17242_v23 }
 0x928   :  { %16630 = vmatprep.subr.bf16.mxu1 %v17565_v52 }
 0x92b   :  { %16631 = vmatpush3.bf16.msra.mxu1 %v15637_v56 }
 0x92c   :  { %16636 = vmatprep.subr.bf16.mxu1 %v17565_v52 }
 0x9e1   :  { %v15552_v19 = vpop.f32.mrb[100].mxu1 }
 0x9e2   :  { %v16728_v0 = vadd.f32 %v16401_v59, %v15552_v19  ;;  %v16614_v9 = vpop.f32.mrb[101].mxu1 }
 0x9e3   :  { %v15555_v27 = vpop.f32.mrb[102].mxu1 }
 0x9e4   :  { %v15559_v34 = vsub.f32 0.0, %v16728_v0  ;;  %v16615_v1 = vpop.f32.mrb[103].mxu1 }
 0x9e6   :  { %v15560_v43 = vmul.f32 1.442695, %v15559_v34 }
 0x9e8   :  { %17554 = vpow2.f32 %v15560_v43 }
 0x9f2   :  { %v17555_v45 = vpop.eup %17554 }
 0x9f3   :  { %v15562_v48 = vadd.f32 1.0, %v17555_v45 }
 0x9f5   :  { %17556 = vrcp.f32 %v15562_v48 }
 0x9ff   :  { %v17557_v16 = vpop.eup %17556 }
 0xa00   :  { %v15564_v44 = vpack.c.bf16 %v17557_v16, %v17557_v16 }
 0xa02   :  { %16633 = vmatmul.mubr.msk.bf16.vlgmr.msra.gmra.mrb[104].mxu1 %vm15632_vm12, %v15564_v44 }
 0xa03   :  { %16648 = vmatprep.mubr.msk.bf16.mxu1 %vm17566_vm11, %v17565_v52  ;;  %16637 = vmatpush3.bf16.msra.mxu1 %v17244_v2 }
 0xa04   :  { %16638 = vmatprep.subr.bf16.mxu1 %v17565_v52 }
 0xa07   :  { %16639 = vmatpush3.bf16.msra.mxu1 %v17245_v7 }
 0xa08   :  { %16640 = vmatprep.subr.bf16.mxu1 %v17565_v52 }
 0xa0b   :  { %16641 = vmatpush3.bf16.msra.mxu1 %v17246_v37 }
 0xa0c   :  { %16642 = vmatprep.subr.bf16.mxu1 %v17565_v52 }
 0xa0f   :  { %16643 = vmatpush3.bf16.msra.mxu1 %v17247_v18 }
 0xa10   :  { %16644 = vmatprep.subr.bf16.mxu1 %v17565_v52 }
 0xa13   :  { %16645 = vmatpush3.bf16.msra.mxu1 %v17248_v14 }
 0xa14   :  { %16646 = vmatprep.subr.bf16.mxu1 %v17565_v52 }
 0xa17   :  { %16647 = vmatpush3.bf16.msra.mxu1 %v15740_v32 }
 0xad5   :  { %v15673_v62 = vpop.f32.mrb[104].mxu1 }
 0xad6   :  { %v15674_v60 = vadd.f32 %v16482_v13, %v15673_v62  ;;  %v16634_v38 = vpop.f32.mrb[105].mxu1 }
 0xad7   :  { %v15676_v50 = vpop.f32.mrb[106].mxu1 }
 0xad8   :  { %v15679_v6 = vsub.f32 0.0, %v15674_v60  ;;  %v16635_v31 = vpop.f32.mrb[107].mxu1 }
 0xada   :  { %v15680_v47 = vmul.f32 1.442695, %v15679_v6 }
 0xadc   :  { %17558 = vpow2.f32 %v15680_v47 }
 0xae6   :  { %v17559_v61 = vpop.eup %17558 }
 0xae7   :  { %v15682_v25 = vadd.f32 1.0, %v17559_v61 }
 0xae9   :  { %17560 = vrcp.f32 %v15682_v25 }
 0xaf3   :  { %v17561_v17 = vpop.eup %17560 }
 0xaf4   :  { %v15684_v52 = vpack.c.bf16 %v17561_v17, %v17561_v17 }
 0xaf6   :  { %16649 = vmatmul.mubr.msk.bf16.vlgmr.msra.gmra.mrb[108].mxu1 %vm10474_vm9, %v15684_v52 }
 0xbc9   :  { %v15776_v33 = vpop.f32.mrb[108].mxu1 }
 0xbca   :  { %v15777_v57 = vadd.f32 %v16492_v46, %v15776_v33  ;;  %v16650_v49 = vpop.f32.mrb[109].mxu1 }
 0xbcb   :  { %v15779_v22 = vpop.f32.mrb[110].mxu1 }
 0xbcc   :  { %15782 = vst [vmem:[%s23863_s15] sm:$0xff] %v15777_v57  ;;  %v16651_v21 = vpop.f32.mrb[111].mxu1 }

</bundles_post_ra>
